<compile_context>
chip_gen: v5e
topology: v5e:2x2
jax: 0.10.0
libtpu: 0.0.40
codegen_flags: <defaults>
</compile_context>

<pallas_src>
import math
import functools

import jax
import jax.numpy as jnp
from jax.experimental import pallas as pl
from jax.experimental.pallas import tpu as pltpu

EMBED_DIM = 512          # fixed by the module (__init__: embed_dim = 512)
NUM_HEADS = 8            # fairseq base decoder default
HEAD_DIM = EMBED_DIM // NUM_HEADS
FFN_DIM = 2048           # fairseq base decoder default
NUM_LAYERS = 6
MAX_TARGET_POSITIONS = 1024
LN_EPS = 1e-5
NEG_BIG = -1e30          # finite "−inf" so fully-masked tiles never NaN


def _itemsize(dt):
    return jnp.dtype(dt).itemsize


# ----------------------------- linear (matmul) kernels -----------------------------

def _matmul_bias_kernel(x_ref, w_ref, b_ref, o_ref, *, activation, contract_axis):
    acc = jax.lax.dot_general(
        x_ref[...], w_ref[...],
        (((1,), (contract_axis,)), ((), ())),
        preferred_element_type=jnp.float32)
    acc = acc + b_ref[...].astype(jnp.float32)
    if activation == "relu":
        acc = jnp.maximum(acc, 0.0)
    o_ref[...] = acc.astype(o_ref.dtype)


def _matmul_kernel(x_ref, w_ref, o_ref, *, activation, contract_axis):
    acc = jax.lax.dot_general(
        x_ref[...], w_ref[...],
        (((1,), (contract_axis,)), ((), ())),
        preferred_element_type=jnp.float32)
    if activation == "relu":
        acc = jnp.maximum(acc, 0.0)
    o_ref[...] = acc.astype(o_ref.dtype)


def linear(x, w, b=None, activation=None, w_transposed=False,
           tile_m=256, tile_n=512, out_dtype=None):
    """y = x @ w (+ b), bf16 MXU inputs, f32 accumulation.

    x: (M, K).  w: (K, N) or (N, K) if w_transposed (contraction on w axis 1,
    so embed_weight is used directly for the vocab projection — no .T copy).
    """
    x = x.astype(jnp.bfloat16)
    w = w.astype(jnp.bfloat16)
    M, K = x.shape
    if w_transposed:
        N = w.shape[0]
        contract = 1
    else:
        N = w.shape[1]
        contract = 0
    out_dtype = out_dtype if out_dtype is not None else x.dtype

    tm = M if M <= tile_m else tile_m
    tn = N if N <= tile_n else tile_n
    grid = (pl.cdiv(M, tm), pl.cdiv(N, tn))

    x_spec = pl.BlockSpec((tm, K), lambda i, j: (i, 0))
    if w_transposed:
        w_spec = pl.BlockSpec((tn, K), lambda i, j: (j, 0))
    else:
        w_spec = pl.BlockSpec((K, tn), lambda i, j: (0, j))
    out_spec = pl.BlockSpec((tm, tn), lambda i, j: (i, j))

    cost = pl.CostEstimate(
        flops=2 * M * N * K,
        transcendentals=0,
        bytes_accessed=int(M * K * 2 + K * N * 2 + M * N * _itemsize(out_dtype)
                           + (N * 4 if b is not None else 0)),
    )
    cparams = pltpu.CompilerParams(dimension_semantics=("parallel", "parallel"))

    if b is not None:
        b2 = b.reshape(1, N).astype(jnp.float32)
        kern = functools.partial(_matmul_bias_kernel, activation=activation,
                                 contract_axis=contract)
        return pl.pallas_call(
            kern,
            out_shape=jax.ShapeDtypeStruct((M, N), out_dtype),
            grid=grid,
            in_specs=[x_spec, w_spec, pl.BlockSpec((1, tn), lambda i, j: (0, j))],
            out_specs=out_spec,
            compiler_params=cparams,
            cost_estimate=cost,
        )(x, w, b2)

    kern = functools.partial(_matmul_kernel, activation=activation,
                             contract_axis=contract)
    return pl.pallas_call(
        kern,
        out_shape=jax.ShapeDtypeStruct((M, N), out_dtype),
        grid=grid,
        in_specs=[x_spec, w_spec],
        out_specs=out_spec,
        compiler_params=cparams,
        cost_estimate=cost,
    )(x, w)


# ----------------------------- flash attention + fused o-proj -----------------------------

def _flash_oproj_kernel(q_ref, k_ref, v_ref, ow_ref, ob_ref, o_ref,
                        m_scr, l_scr, acc_scr, oacc_scr, *, tq, tk):
    qi = pl.program_id(1)
    h = pl.program_id(2)
    kv = pl.program_id(3)
    n_h = pl.num_programs(2)
    n_kv = pl.num_programs(3)

    @pl.when(kv == 0)
    def _():
        m_scr[...] = jnp.full_like(m_scr, NEG_BIG)
        l_scr[...] = jnp.zeros_like(l_scr)
        acc_scr[...] = jnp.zeros_like(acc_scr)

    @pl.when(jnp.logical_and(h == 0, kv == 0))
    def _():
        oacc_scr[...] = jnp.zeros_like(oacc_scr)

    # Skip kv tiles that lie entirely in the causal future of this q tile.
    @pl.when(kv * tk <= qi * tq + (tq - 1))
    def _():
        # (tq, hd) @ (tk, hd)^T on the MXU, bf16 in / f32 out.
        s = jax.lax.dot_general(q_ref[...], k_ref[...],
                                (((1,), (1,)), ((), ())),
                                preferred_element_type=jnp.float32)   # (tq, tk)
        # Causal mask generated in-kernel (no (T,T) mask DMA).
        row = qi * tq + jax.lax.broadcasted_iota(jnp.int32, (tq, tk), 0)
        col = kv * tk + jax.lax.broadcasted_iota(jnp.int32, (tq, tk), 1)
        s = jnp.where(col <= row, s, NEG_BIG)

        m_prev = m_scr[...]                                            # (tq, 1)
        m_new = jnp.maximum(m_prev, jnp.max(s, axis=-1, keepdims=True))
        alpha = jnp.exp(m_prev - m_new)
        p = jnp.exp(s - m_new)                                         # (tq, tk) f32
        l_scr[...] = alpha * l_scr[...] + jnp.sum(p, axis=-1, keepdims=True)
        acc_scr[...] = alpha * acc_scr[...] + jax.lax.dot_general(
            p.astype(v_ref.dtype), v_ref[...],
            (((1,), (0,)), ((), ())),
            preferred_element_type=jnp.float32)                        # (tq, hd)
        m_scr[...] = m_new

    # Per-head finalize: fold this head's contribution through o_proj so the
    # kernel output is lane-dense (tq, D) and no head-merge transpose is needed.
    @pl.when(kv == n_kv - 1)
    def _():
        inv_l = pl.reciprocal(l_scr[...], approx=True)
        head_out = (acc_scr[...] * inv_l).astype(ow_ref.dtype)         # (tq, hd) bf16
        oacc_scr[...] += jax.lax.dot_general(
            head_out, ow_ref[...],
            (((1,), (0,)), ((), ())),
            preferred_element_type=jnp.float32)                        # (tq, D)

    @pl.when(jnp.logical_and(h == n_h - 1, kv == n_kv - 1))
    def _():
        o_ref[...] = (oacc_scr[...] + ob_ref[...].astype(jnp.float32)).astype(o_ref.dtype)


def flash_attention_oproj(q, k, v, o_w_h, o_b, tile_q=128, tile_k=128):
    """Causal self-attention + output projection.

    q, k, v: (B, H, T, hd) bf16 (q already scaled via folded weights).
    o_w_h:   (H, hd, D) bf16 per-head slices of the output projection.
    o_b:     (1, D) f32.
    Returns (B, T, D) bf16 = concat_heads(softmax(qk^T)v) @ o_w + o_b.
    """
    B, H, T, hd = q.shape
    D = o_w_h.shape[-1]
    tq = T if T <= tile_q else tile_q
    tk = T if T <= tile_k else tile_k
    n_q = pl.cdiv(T, tq)
    n_kv = pl.cdiv(T, tk)

    cost = pl.CostEstimate(
        flops=4 * B * H * T * T * hd + 2 * B * T * D * D,
        transcendentals=B * H * T * T,
        bytes_accessed=int(3 * B * H * T * hd * 2 + H * hd * D * 2
                           + B * T * D * 2 + D * 4),
    )

    kern = functools.partial(_flash_oproj_kernel, tq=tq, tk=tk)
    return pl.pallas_call(
        kern,
        out_shape=jax.ShapeDtypeStruct((B, T, D), q.dtype),
        grid=(B, n_q, H, n_kv),
        in_specs=[
            pl.BlockSpec((None, None, tq, hd), lambda b, qi, h, kv: (b, h, qi, 0)),
            pl.BlockSpec((None, None, tk, hd), lambda b, qi, h, kv: (b, h, kv, 0)),
            pl.BlockSpec((None, None, tk, hd), lambda b, qi, h, kv: (b, h, kv, 0)),
            pl.BlockSpec((None, hd, D), lambda b, qi, h, kv: (h, 0, 0)),
            pl.BlockSpec((1, D), lambda b, qi, h, kv: (0, 0)),
        ],
        out_specs=pl.BlockSpec((None, tq, D), lambda b, qi, h, kv: (b, qi, 0)),
        scratch_shapes=[
            pltpu.VMEM((tq, 1), jnp.float32),    # running max m
            pltpu.VMEM((tq, 1), jnp.float32),    # running denom l
            pltpu.VMEM((tq, hd), jnp.float32),   # per-head context accumulator
            pltpu.VMEM((tq, D), jnp.float32),    # projected output accumulator
        ],
        compiler_params=pltpu.CompilerParams(
            dimension_semantics=("parallel", "parallel", "arbitrary", "arbitrary")),
        cost_estimate=cost,
    )(q, k, v, o_w_h, o_b)


# ----------------------------- fused residual + layernorm -----------------------------

def _ln_residual_kernel(x_ref, res_ref, g_ref, b_ref, o_ref):
    x = x_ref[...].astype(jnp.float32) + res_ref[...].astype(jnp.float32)
    mu = jnp.mean(x, axis=-1, keepdims=True)
    xc = x - mu
    var = jnp.mean(xc * xc, axis=-1, keepdims=True)
    y = xc * jax.lax.rsqrt(var + LN_EPS)
    o_ref[...] = (y * g_ref[...].astype(jnp.float32)
                  + b_ref[...].astype(jnp.float32)).astype(o_ref.dtype)


def layernorm_residual(x, res, gamma, beta, tile_m=512):
    """LN(res + x) — residual add fused into the layernorm kernel."""
    M, D = x.shape
    tm = M if M <= tile_m else tile_m
    g2 = gamma.reshape(1, D).astype(jnp.float32)
    b2 = beta.reshape(1, D).astype(jnp.float32)
    return pl.pallas_call(
        _ln_residual_kernel,
        out_shape=jax.ShapeDtypeStruct((M, D), x.dtype),
        grid=(pl.cdiv(M, tm),),
        in_specs=[
            pl.BlockSpec((tm, D), lambda i: (i, 0)),
            pl.BlockSpec((tm, D), lambda i: (i, 0)),
            pl.BlockSpec((1, D), lambda i: (0, 0)),
            pl.BlockSpec((1, D), lambda i: (0, 0)),
        ],
        out_specs=pl.BlockSpec((tm, D), lambda i: (i, 0)),
        compiler_params=pltpu.CompilerParams(dimension_semantics=("parallel",)),
    )(x, res, g2, b2)


# ----------------------------- model glue -----------------------------

def sinusoidal_embedding(num_embeddings, embedding_dim, padding_idx):
    """fairseq SinusoidalPositionalEmbedding.get_embedding."""
    half_dim = embedding_dim // 2
    emb = math.log(10000) / (half_dim - 1)
    emb = jnp.exp(jnp.arange(half_dim, dtype=jnp.float32) * -emb)
    emb = jnp.arange(num_embeddings, dtype=jnp.float32)[:, None] * emb[None, :]
    emb = jnp.concatenate([jnp.sin(emb), jnp.cos(emb)], axis=1)
    if embedding_dim % 2 == 1:
        emb = jnp.concatenate([emb, jnp.zeros((num_embeddings, 1), jnp.float32)], axis=1)
    if padding_idx is not None:
        emb = emb.at[padding_idx].set(0.0)
    return emb


def prepare_layer_params(p):
    """Fold the q scale into the fused QKV weights, cast matmul weights to bf16,
    reshape the output projection into per-head (H, hd, D) slices."""
    scale = HEAD_DIM ** -0.5
    qkv_w = jnp.concatenate([p["q_w"] * scale, p["k_w"], p["v_w"]], axis=1)
    qkv_b = jnp.concatenate([p["q_b"] * scale, p["k_b"], p["v_b"]], axis=0)
    return dict(
        qkv_w=qkv_w.astype(jnp.bfloat16),
        qkv_b=qkv_b.astype(jnp.float32),
        o_w_h=p["o_w"].reshape(NUM_HEADS, HEAD_DIM, EMBED_DIM).astype(jnp.bfloat16),
        o_b=p["o_b"].reshape(1, EMBED_DIM).astype(jnp.float32),
        ln1_g=p["ln1_g"], ln1_b=p["ln1_b"],
        fc1_w=p["fc1_w"].astype(jnp.bfloat16), fc1_b=p["fc1_b"],
        fc2_w=p["fc2_w"].astype(jnp.bfloat16), fc2_b=p["fc2_b"],
        ln2_g=p["ln2_g"], ln2_b=p["ln2_b"],
    )


def decoder_layer(x, p, B, T):
    """Post-norm fairseq TransformerDecoderLayerBase (self-attn + FFN).

    x: (B*T, D) bf16 activations, rows are (batch, time)-major.
    """
    M, D = x.shape
    H, hd = NUM_HEADS, HEAD_DIM

    # --- self attention (fused QKV projection, flash attention + fused o-proj) ---
    residual = x
    qkv = linear(x, p["qkv_w"], p["qkv_b"])                      # (M, 3D) bf16
    qkv = qkv.reshape(B, T, 3, H, hd).transpose(2, 0, 3, 1, 4)   # (3, B, H, T, hd)
    q, k, v = qkv[0], qkv[1], qkv[2]
    attn_out = flash_attention_oproj(q, k, v, p["o_w_h"], p["o_b"])  # (B, T, D) bf16
    x = layernorm_residual(attn_out.reshape(M, D), residual, p["ln1_g"], p["ln1_b"])

    # TODO(synk): encoder (cross) attention branch not exercised because
    # encoder_out=None in this script; fairseq skips it in that case too.

    # --- feed forward ---
    residual = x
    h1 = linear(x, p["fc1_w"], p["fc1_b"], activation="relu")    # (M, FFN_DIM) bf16
    h2 = linear(h1, p["fc2_w"], p["fc2_b"])                      # (M, D) bf16
    x = layernorm_residual(h2, residual, p["ln2_g"], p["ln2_b"])
    return x


def decoder_forward(prev_output_tokens, embed_weight, layer_params, padding_idx):
    """TransformerDecoderBase.forward(prev_output_tokens, encoder_out=None)."""
    B, T = prev_output_tokens.shape
    vocab = embed_weight.shape[0]
    embed_scale = math.sqrt(EMBED_DIM)

    # positional embeddings (sinusoidal, fairseq make_positions) -- plain XLA gather.
    pos_table = sinusoidal_embedding(
        MAX_TARGET_POSITIONS + padding_idx + 1, EMBED_DIM, padding_idx)
    nonpad = (prev_output_tokens != padding_idx).astype(jnp.int32)
    positions = jnp.cumsum(nonpad, axis=1) * nonpad + padding_idx
    pos_emb = pos_table[positions]                               # (B, T, D) f32

    # token embedding (scaled) + positions; dropout_module = identity at inference.
    x = embed_scale * embed_weight[prev_output_tokens] + pos_emb  # (B, T, D) f32
    # TODO(synk): self_attn_padding_mask not plumbed into the attention kernel
    # (example input has no padding tokens, so fairseq also leaves it None).
    x = x.astype(jnp.bfloat16).reshape(B * T, EMBED_DIM)          # (B*T, D) bf16

    prepared = [prepare_layer_params(p) for p in layer_params]
    embed_bf16 = embed_weight.astype(jnp.bfloat16)

    def record(xflat):  # fairseq keeps inner_states in (T, B, D)
        return jnp.transpose(xflat.reshape(B, T, EMBED_DIM), (1, 0, 2))

    inner_states = [record(x)]
    for p in prepared:
        x = decoder_layer(x, p, B, T)
        inner_states.append(record(x))

    # output_layer: shared input/output embedding -> features @ E^T (no bias),
    # contracting against embed_weight axis 1 (no transposed copy), vocab tiled.
    logits = linear(x, embed_bf16, b=None, w_transposed=True,
                    out_dtype=jnp.float32, tile_n=1024)
    logits = logits.reshape(B, T, vocab)

    # TODO(synk): per-head attention weights for the alignment layer are not
    # materialized by the flash kernel, so extra["attn"] stays [None].
    extra = {"attn": [None], "inner_states": inner_states}
    return logits, extra


# ----------------------------- parameter init -----------------------------

def _xavier(key, shape):
    fan_in, fan_out = shape
    bound = math.sqrt(6.0 / (fan_in + fan_out))
    return jax.random.uniform(key, shape, jnp.float32, -bound, bound)


def init_params(key, vocab, padding_idx):
    keys = jax.random.split(key, 1 + NUM_LAYERS)
    # embed_tokens: normal(0, D^-0.5), padding row zeroed (fairseq Embedding)
    embed_weight = jax.random.normal(keys[0], (vocab, EMBED_DIM), jnp.float32) * (EMBED_DIM ** -0.5)
    embed_weight = embed_weight.at[padding_idx].set(0.0)

    layers = []
    for l in range(NUM_LAYERS):
        lk = jax.random.split(keys[1 + l], 6)
        layers.append(dict(
            q_w=_xavier(lk[0], (EMBED_DIM, EMBED_DIM)), q_b=jnp.zeros((EMBED_DIM,), jnp.float32),
            k_w=_xavier(lk[1], (EMBED_DIM, EMBED_DIM)), k_b=jnp.zeros((EMBED_DIM,), jnp.float32),
            v_w=_xavier(lk[2], (EMBED_DIM, EMBED_DIM)), v_b=jnp.zeros((EMBED_DIM,), jnp.float32),
            o_w=_xavier(lk[3], (EMBED_DIM, EMBED_DIM)), o_b=jnp.zeros((EMBED_DIM,), jnp.float32),
            ln1_g=jnp.ones((EMBED_DIM,), jnp.float32), ln1_b=jnp.zeros((EMBED_DIM,), jnp.float32),
            fc1_w=_xavier(lk[4], (EMBED_DIM, FFN_DIM)), fc1_b=jnp.zeros((FFN_DIM,), jnp.float32),
            fc2_w=_xavier(lk[5], (FFN_DIM, EMBED_DIM)), fc2_b=jnp.zeros((EMBED_DIM,), jnp.float32),
            ln2_g=jnp.ones((EMBED_DIM,), jnp.float32), ln2_b=jnp.zeros((EMBED_DIM,), jnp.float32),
        ))
    return embed_weight, layers


# ----------------------------- main -----------------------------

if __name__ == "__main__":
    key = jax.random.PRNGKey(0)
    k_tok, k_par = jax.random.split(key)

    B, T = 2, 8
    VOCAB = 64
    PADDING_IDX = 1

    # previous decoder output tokens (no padding tokens -> padding mask is None)
    prev_output_tokens = jax.random.randint(k_tok, (B, T), 2, VOCAB, dtype=jnp.int32)

    embed_weight, layer_params = init_params(k_par, VOCAB, PADDING_IDX)

    fwd = jax.jit(lambda toks, emb, lp: decoder_forward(toks, emb, lp, PADDING_IDX))
    logits, extra = fwd(prev_output_tokens, embed_weight, layer_params)
    logits = jax.block_until_ready(logits)

    assert logits.shape == (B, T, VOCAB), logits.shape
    assert logits.dtype == jnp.float32
    assert len(extra["inner_states"]) == NUM_LAYERS + 1
    assert bool(jnp.all(jnp.isfinite(logits)))

    print("KERNEL_OK")
</pallas_src>

<mosaic_0001>
module attributes {stable_mosaic.version = 11 : i64} {
  func.func @_matmul_bias_kernel(%arg0: i32, %arg1: i32, %arg2: memref<16x512xbf16, #tpu.memory_space<vmem>>, %arg3: memref<512x512xbf16, #tpu.memory_space<vmem>>, %arg4: memref<1x512xf32, #tpu.memory_space<vmem>>, %arg5: memref<16x512xbf16, #tpu.memory_space<vmem>>) attributes {dimension_semantics = [#tpu.dimension_semantics<parallel>, #tpu.dimension_semantics<parallel>], iteration_bounds = array<i64: 1, 3>, scalar_prefetch = 0 : i64, scratch_operands = 0 : i64, tpu.core_type = #tpu.core_type<tc>, window_params = [{transform_indices = @transform_0, window_bounds = array<i64: 16, 512>}, {transform_indices = @transform_1, window_bounds = array<i64: 512, 512>}, {transform_indices = @transform_2, window_bounds = array<i64: 1, 512>}, {transform_indices = @transform_3, window_bounds = array<i64: 16, 512>}]} {
    %c0 = arith.constant 0 : index
    %c0_0 = arith.constant 0 : index
    %0 = vector.load %arg2[%c0, %c0_0] : memref<16x512xbf16, #tpu.memory_space<vmem>>, vector<16x512xbf16>
    %c0_1 = arith.constant 0 : index
    %c0_2 = arith.constant 0 : index
    %1 = vector.load %arg3[%c0_1, %c0_2] : memref<512x512xbf16, #tpu.memory_space<vmem>>, vector<512x512xbf16>
    %cst = arith.constant dense<0.000000e+00> : vector<16x512xf32>
    %2 = tpu.matmul %0, %1, %cst {dimension_numbers = #tpu.dot_dimension_numbers<[1], [0], [0], [1], [0, 0, 1, 1], [], []>} : vector<16x512xbf16>, vector<512x512xbf16>, vector<16x512xf32> -> vector<16x512xf32>
    %c0_3 = arith.constant 0 : index
    %c0_4 = arith.constant 0 : index
    %3 = vector.load %arg4[%c0_3, %c0_4] : memref<1x512xf32, #tpu.memory_space<vmem>>, vector<1x512xf32>
    %4 = vector.broadcast %3 : vector<1x512xf32> to vector<16x512xf32>
    %5 = arith.addf %2, %4 : vector<16x512xf32>
    %6 = arith.truncf %5 : vector<16x512xf32> to vector<16x512xbf16>
    %c0_5 = arith.constant 0 : index
    %c0_6 = arith.constant 0 : index
    %7 = vector.load %arg5[%c0_5, %c0_6] : memref<16x512xbf16, #tpu.memory_space<vmem>>, vector<16x512xbf16>
    tpu.vector_store %arg5[%c0_5, %c0_6], %6 {strides = array<i32>} : memref<16x512xbf16, #tpu.memory_space<vmem>>, vector<16x512xbf16>,
    return
  }
  func.func @transform_0(%arg0: i32, %arg1: i32) -> (i32, i32) {
    %c0_i32 = arith.constant 0 : i32
    %c0_i32_0 = arith.constant 0 : i32
    return %arg0, %c0_i32 : i32, i32
  }
  func.func @transform_1(%arg0: i32, %arg1: i32) -> (i32, i32) {
    %c0_i32 = arith.constant 0 : i32
    %c0_i32_0 = arith.constant 0 : i32
    return %c0_i32, %arg1 : i32, i32
  }
  func.func @transform_2(%arg0: i32, %arg1: i32) -> (i32, i32) {
    %c0_i32 = arith.constant 0 : i32
    %c0_i32_0 = arith.constant 0 : i32
    return %c0_i32, %arg1 : i32, i32
  }
  func.func @transform_3(%arg0: i32, %arg1: i32) -> (i32, i32) {
    %c0_i32 = arith.constant 0 : i32
    return %arg0, %arg1 : i32, i32
  }
}

module attributes {stable_mosaic.version = 11 : i64} {
  func.func @_flash_oproj_kernel(%arg0: i32, %arg1: i32, %arg2: i32, %arg3: i32, %arg4: memref<1x1x8x64xbf16, #tpu.memory_space<vmem>>, %arg5: memref<1x1x8x64xbf16, #tpu.memory_space<vmem>>, %arg6: memref<1x1x8x64xbf16, #tpu.memory_space<vmem>>, %arg7: memref<1x64x512xbf16, #tpu.memory_space<vmem>>, %arg8: memref<1x512xf32, #tpu.memory_space<vmem>>, %arg9: memref<1x8x512xbf16, #tpu.memory_space<vmem>>, %arg10: memref<8x1xf32, #tpu.memory_space<vmem>>, %arg11: memref<8x1xf32, #tpu.memory_space<vmem>>, %arg12: memref<8x64xf32, #tpu.memory_space<vmem>>, %arg13: memref<8x512xf32, #tpu.memory_space<vmem>>) attributes {dimension_semantics = [#tpu.dimension_semantics<parallel>, #tpu.dimension_semantics<parallel>, #tpu.dimension_semantics<arbitrary>, #tpu.dimension_semantics<arbitrary>], iteration_bounds = array<i64: 2, 1, 8, 1>, scalar_prefetch = 0 : i64, scratch_operands = 4 : i64, tpu.core_type = #tpu.core_type<tc>, window_params = [{transform_indices = @transform_0, window_bounds = array<i64: 1, 1, 8, 64>}, {transform_indices = @transform_1, window_bounds = array<i64: 1, 1, 8, 64>}, {transform_indices = @transform_2, window_bounds = array<i64: 1, 1, 8, 64>}, {transform_indices = @transform_3, window_bounds = array<i64: 1, 64, 512>}, {pipeline_mode = #tpu.pipeline_mode<synchronous>, transform_indices = @transform_4, window_bounds = array<i64: 1, 512>}, {transform_indices = @transform_5, window_bounds = array<i64: 1, 8, 512>}]} {
    %c0_i32 = arith.constant 0 : i32
    %0 = arith.cmpi eq, %arg3, %c0_i32 : i32
    %1 = arith.extui %0 : i1 to i32
    %c0_i32_0 = arith.constant 0 : i32
    %2 = arith.cmpi ne, %1, %c0_i32_0 : i32
    scf.if %2 {
      %cst = arith.constant -1.000000e+30 : f32
      %22 = vector.broadcast %cst : f32 to vector<8x1xf32>
      %c0 = arith.constant 0 : index
      %c0_11 = arith.constant 0 : index
      %23 = vector.load %arg10[%c0, %c0_11] : memref<8x1xf32, #tpu.memory_space<vmem>>, vector<8x1xf32>
      tpu.vector_store %arg10[%c0, %c0_11], %22 {strides = array<i32>} : memref<8x1xf32, #tpu.memory_space<vmem>>, vector<8x1xf32>,
      %cst_12 = arith.constant 0.000000e+00 : f32
      %24 = vector.broadcast %cst_12 : f32 to vector<8x1xf32>
      %c0_13 = arith.constant 0 : index
      %c0_14 = arith.constant 0 : index
      %25 = vector.load %arg11[%c0_13, %c0_14] : memref<8x1xf32, #tpu.memory_space<vmem>>, vector<8x1xf32>
      tpu.vector_store %arg11[%c0_13, %c0_14], %24 {strides = array<i32>} : memref<8x1xf32, #tpu.memory_space<vmem>>, vector<8x1xf32>,
      %cst_15 = arith.constant 0.000000e+00 : f32
      %26 = vector.broadcast %cst_15 : f32 to vector<8x64xf32>
      %c0_16 = arith.constant 0 : index
      %c0_17 = arith.constant 0 : index
      %27 = vector.load %arg12[%c0_16, %c0_17] : memref<8x64xf32, #tpu.memory_space<vmem>>, vector<8x64xf32>
      tpu.vector_store %arg12[%c0_16, %c0_17], %26 {strides = array<i32>} : memref<8x64xf32, #tpu.memory_space<vmem>>, vector<8x64xf32>,
    } else {
    }
    %c0_i32_1 = arith.constant 0 : i32
    %3 = arith.cmpi eq, %arg2, %c0_i32_1 : i32
    %c0_i32_2 = arith.constant 0 : i32
    %4 = arith.cmpi eq, %arg3, %c0_i32_2 : i32
    %5 = arith.andi %3, %4 : i1
    %6 = arith.extui %5 : i1 to i32
    %c0_i32_3 = arith.constant 0 : i32
    %7 = arith.cmpi ne, %6, %c0_i32_3 : i32
    scf.if %7 {
      %cst = arith.constant 0.000000e+00 : f32
      %22 = vector.broadcast %cst : f32 to vector<8x512xf32>
      %c0 = arith.constant 0 : index
      %c0_11 = arith.constant 0 : index
      %23 = vector.load %arg13[%c0, %c0_11] : memref<8x512xf32, #tpu.memory_space<vmem>>, vector<8x512xf32>
      tpu.vector_store %arg13[%c0, %c0_11], %22 {strides = array<i32>} : memref<8x512xf32, #tpu.memory_space<vmem>>, vector<8x512xf32>,
    } else {
    }
    %c8_i32 = arith.constant 8 : i32
    %8 = arith.muli %arg3, %c8_i32 : i32
    %c8_i32_4 = arith.constant 8 : i32
    %9 = arith.muli %arg1, %c8_i32_4 : i32
    %c7_i32 = arith.constant 7 : i32
    %10 = arith.addi %9, %c7_i32 : i32
    %11 = arith.cmpi sle, %8, %10 : i32
    %12 = arith.extui %11 : i1 to i32
    %c0_i32_5 = arith.constant 0 : i32
    %13 = arith.cmpi ne, %12, %c0_i32_5 : i32
    scf.if %13 {
      %c0 = arith.constant 0 : index
      %c0_11 = arith.constant 0 : index
      %c0_12 = arith.constant 0 : index
      %c0_13 = arith.constant 0 : index
      %22 = vector.load %arg4[%c0, %c0_11, %c0_12, %c0_13] : memref<1x1x8x64xbf16, #tpu.memory_space<vmem>>, vector<1x1x8x64xbf16>
      %23 = vector.shape_cast %22 : vector<1x1x8x64xbf16> to vector<8x64xbf16>
      %c0_14 = arith.constant 0 : index
      %c0_15 = arith.constant 0 : index
      %c0_16 = arith.constant 0 : index
      %c0_17 = arith.constant 0 : index
      %24 = vector.load %arg5[%c0_14, %c0_15, %c0_16, %c0_17] : memref<1x1x8x64xbf16, #tpu.memory_space<vmem>>, vector<1x1x8x64xbf16>
      %25 = vector.shape_cast %24 : vector<1x1x8x64xbf16> to vector<8x64xbf16>
      %cst = arith.constant dense<0.000000e+00> : vector<8x8xf32>
      %26 = tpu.matmul %23, %25, %cst {dimension_numbers = #tpu.dot_dimension_numbers<[1], [1], [0], [0], [0, 0, 1, 0], [], []>} : vector<8x64xbf16>, vector<8x64xbf16>, vector<8x8xf32> -> vector<8x8xf32>
      %c8_i32_18 = arith.constant 8 : i32
      %27 = arith.muli %arg1, %c8_i32_18 : i32
      %28 = tpu.iota {dimensions = array<i32: 0>} : vector<8x8xi32>
      %29 = vector.broadcast %27 : i32 to vector<8x8xi32>
      %30 = arith.addi %29, %28 : vector<8x8xi32>
      %c8_i32_19 = arith.constant 8 : i32
      %31 = arith.muli %arg3, %c8_i32_19 : i32
      %32 = tpu.iota {dimensions = array<i32: 1>} : vector<8x8xi32>
      %33 = vector.broadcast %31 : i32 to vector<8x8xi32>
      %34 = arith.addi %33, %32 : vector<8x8xi32>
      %35 = arith.cmpi sle, %34, %30 : vector<8x8xi32>
      %cst_20 = arith.constant -1.000000e+30 : f32
      %36 = vector.broadcast %cst_20 : f32 to vector<8x8xf32>
      %37 = arith.select %35, %26, %36 : vector<8x8xi1>, vector<8x8xf32>
      %c0_21 = arith.constant 0 : index
      %c0_22 = arith.constant 0 : index
      %38 = vector.load %arg10[%c0_21, %c0_22] : memref<8x1xf32, #tpu.memory_space<vmem>>, vector<8x1xf32>
      %cst_23 = arith.constant dense<0xFF800000> : vector<8xf32>
      %39 = vector.multi_reduction <maximumf>, %37, %cst_23 [1] : vector<8x8xf32> to vector<8xf32>
      %40 = vector.shape_cast %39 : vector<8xf32> to vector<8x1xf32>
      %41 = arith.maximumf %38, %40 : vector<8x1xf32>
      %42 = arith.subf %38, %41 : vector<8x1xf32>
      %43 = math.exp %42 : vector<8x1xf32>
      %44 = vector.broadcast %41 : vector<8x1xf32> to vector<8x8xf32>
      %45 = arith.subf %37, %44 : vector<8x8xf32>
      %46 = math.exp %45 : vector<8x8xf32>
      %c0_24 = arith.constant 0 : index
      %c0_25 = arith.constant 0 : index
      %47 = vector.load %arg11[%c0_24, %c0_25] : memref<8x1xf32, #tpu.memory_space<vmem>>, vector<8x1xf32>
      %48 = arith.mulf %43, %47 : vector<8x1xf32>
      %cst_26 = arith.constant dense<0.000000e+00> : vector<8xf32>
      %49 = vector.multi_reduction <add>, %46, %cst_26 [1] : vector<8x8xf32> to vector<8xf32>
      %50 = vector.shape_cast %49 : vector<8xf32> to vector<8x1xf32>
      %51 = arith.addf %48, %50 : vector<8x1xf32>
      %c0_27 = arith.constant 0 : index
      %c0_28 = arith.constant 0 : index
      %52 = vector.load %arg11[%c0_27, %c0_28] : memref<8x1xf32, #tpu.memory_space<vmem>>, vector<8x1xf32>
      tpu.vector_store %arg11[%c0_27, %c0_28], %51 {strides = array<i32>} : memref<8x1xf32, #tpu.memory_space<vmem>>, vector<8x1xf32>,
      %c0_29 = arith.constant 0 : index
      %c0_30 = arith.constant 0 : index
      %53 = vector.load %arg12[%c0_29, %c0_30] : memref<8x64xf32, #tpu.memory_space<vmem>>, vector<8x64xf32>
      %54 = vector.broadcast %43 : vector<8x1xf32> to vector<8x64xf32>
      %55 = arith.mulf %54, %53 : vector<8x64xf32>
      %56 = arith.truncf %46 : vector<8x8xf32> to vector<8x8xbf16>
      %c0_31 = arith.constant 0 : index
      %c0_32 = arith.constant 0 : index
      %c0_33 = arith.constant 0 : index
      %c0_34 = arith.constant 0 : index
      %57 = vector.load %arg6[%c0_31, %c0_32, %c0_33, %c0_34] : memref<1x1x8x64xbf16, #tpu.memory_space<vmem>>, vector<1x1x8x64xbf16>
      %58 = vector.shape_cast %57 : vector<1x1x8x64xbf16> to vector<8x64xbf16>
      %cst_35 = arith.constant dense<0.000000e+00> : vector<8x64xf32>
      %59 = tpu.matmul %56, %58, %cst_35 {dimension_numbers = #tpu.dot_dimension_numbers<[1], [0], [0], [1], [0, 0, 1, 1], [], []>} : vector<8x8xbf16>, vector<8x64xbf16>, vector<8x64xf32> -> vector<8x64xf32>
      %60 = arith.addf %55, %59 : vector<8x64xf32>
      %c0_36 = arith.constant 0 : index
      %c0_37 = arith.constant 0 : index
      %61 = vector.load %arg12[%c0_36, %c0_37] : memref<8x64xf32, #tpu.memory_space<vmem>>, vector<8x64xf32>
      tpu.vector_store %arg12[%c0_36, %c0_37], %60 {strides = array<i32>} : memref<8x64xf32, #tpu.memory_space<vmem>>, vector<8x64xf32>,
      %c0_38 = arith.constant 0 : index
      %c0_39 = arith.constant 0 : index
      %62 = vector.load %arg10[%c0_38, %c0_39] : memref<8x1xf32, #tpu.memory_space<vmem>>, vector<8x1xf32>
      tpu.vector_store %arg10[%c0_38, %c0_39], %41 {strides = array<i32>} : memref<8x1xf32, #tpu.memory_space<vmem>>, vector<8x1xf32>,
    } else {
    }
    %c0_i32_6 = arith.constant 0 : i32
    %14 = arith.cmpi eq, %arg3, %c0_i32_6 : i32
    %15 = arith.extui %14 : i1 to i32
    %c0_i32_7 = arith.constant 0 : i32
    %16 = arith.cmpi ne, %15, %c0_i32_7 : i32
    scf.if %16 {
      %c0 = arith.constant 0 : index
      %c0_11 = arith.constant 0 : index
      %22 = vector.load %arg11[%c0, %c0_11] : memref<8x1xf32, #tpu.memory_space<vmem>>, vector<8x1xf32>
      %23 = tpu.reciprocal %22 {approx = true} : vector<8x1xf32> -> vector<8x1xf32>
      %c0_12 = arith.constant 0 : index
      %c0_13 = arith.constant 0 : index
      %24 = vector.load %arg12[%c0_12, %c0_13] : memref<8x64xf32, #tpu.memory_space<vmem>>, vector<8x64xf32>
      %25 = vector.broadcast %23 : vector<8x1xf32> to vector<8x64xf32>
      %26 = arith.mulf %24, %25 : vector<8x64xf32>
      %27 = arith.truncf %26 : vector<8x64xf32> to vector<8x64xbf16>
      %c0_14 = arith.constant 0 : index
      %c0_15 = arith.constant 0 : index
      %28 = vector.load %arg13[%c0_14, %c0_15] : memref<8x512xf32, #tpu.memory_space<vmem>>, vector<8x512xf32>
      %c0_16 = arith.constant 0 : index
      %c0_17 = arith.constant 0 : index
      %c0_18 = arith.constant 0 : index
      %29 = vector.load %arg7[%c0_16, %c0_17, %c0_18] : memref<1x64x512xbf16, #tpu.memory_space<vmem>>, vector<1x64x512xbf16>
      %30 = vector.shape_cast %29 : vector<1x64x512xbf16> to vector<64x512xbf16>
      %cst = arith.constant dense<0.000000e+00> : vector<8x512xf32>
      %31 = tpu.matmul %27, %30, %cst {dimension_numbers = #tpu.dot_dimension_numbers<[1], [0], [0], [1], [0, 0, 1, 1], [], []>} : vector<8x64xbf16>, vector<64x512xbf16>, vector<8x512xf32> -> vector<8x512xf32>
      %32 = arith.addf %28, %31 : vector<8x512xf32>
      %c0_19 = arith.constant 0 : index
      %c0_20 = arith.constant 0 : index
      %33 = vector.load %arg13[%c0_19, %c0_20] : memref<8x512xf32, #tpu.memory_space<vmem>>, vector<8x512xf32>
      tpu.vector_store %arg13[%c0_19, %c0_20], %32 {strides = array<i32>} : memref<8x512xf32, #tpu.memory_space<vmem>>, vector<8x512xf32>,
    } else {
    }
    %c7_i32_8 = arith.constant 7 : i32
    %17 = arith.cmpi eq, %arg2, %c7_i32_8 : i32
    %c0_i32_9 = arith.constant 0 : i32
    %18 = arith.cmpi eq, %arg3, %c0_i32_9 : i32
    %19 = arith.andi %17, %18 : i1
    %20 = arith.extui %19 : i1 to i32
    %c0_i32_10 = arith.constant 0 : i32
    %21 = arith.cmpi ne, %20, %c0_i32_10 : i32
    scf.if %21 {
      %c0 = arith.constant 0 : index
      %c0_11 = arith.constant 0 : index
      %22 = vector.load %arg13[%c0, %c0_11] : memref<8x512xf32, #tpu.memory_space<vmem>>, vector<8x512xf32>
      %c0_12 = arith.constant 0 : index
      %c0_13 = arith.constant 0 : index
      %23 = vector.load %arg8[%c0_12, %c0_13] : memref<1x512xf32, #tpu.memory_space<vmem>>, vector<1x512xf32>
      %24 = vector.broadcast %23 : vector<1x512xf32> to vector<8x512xf32>
      %25 = arith.addf %22, %24 : vector<8x512xf32>
      %26 = arith.truncf %25 : vector<8x512xf32> to vector<8x512xbf16>
      %c0_14 = arith.constant 0 : index
      %c0_15 = arith.constant 0 : index
      %c0_16 = arith.constant 0 : index
      %27 = vector.load %arg9[%c0_14, %c0_15, %c0_16] : memref<1x8x512xbf16, #tpu.memory_space<vmem>>, vector<1x8x512xbf16>
      %28 = vector.shape_cast %27 : vector<1x8x512xbf16> to vector<8x512xbf16>
      %29 = vector.shape_cast %26 : vector<8x512xbf16> to vector<1x8x512xbf16>
      tpu.vector_store %arg9[%c0_14, %c0_15, %c0_16], %29 {strides = array<i32>} : memref<1x8x512xbf16, #tpu.memory_space<vmem>>, vector<1x8x512xbf16>,
    } else {
    }
    return
  }
  func.func @transform_0(%arg0: i32, %arg1: i32, %arg2: i32, %arg3: i32) -> (i32, i32, i32, i32) {
    %c0_i32 = arith.constant 0 : i32
    %c0_i32_0 = arith.constant 0 : i32
    return %arg0, %arg2, %arg1, %c0_i32 : i32, i32, i32, i32
  }
  func.func @transform_1(%arg0: i32, %arg1: i32, %arg2: i32, %arg3: i32) -> (i32, i32, i32, i32) {
    %c0_i32 = arith.constant 0 : i32
    %c0_i32_0 = arith.constant 0 : i32
    return %arg0, %arg2, %arg3, %c0_i32 : i32, i32, i32, i32
  }
  func.func @transform_2(%arg0: i32, %arg1: i32, %arg2: i32, %arg3: i32) -> (i32, i32, i32, i32) {
    %c0_i32 = arith.constant 0 : i32
    %c0_i32_0 = arith.constant 0 : i32
    return %arg0, %arg2, %arg3, %c0_i32 : i32, i32, i32, i32
  }
  func.func @transform_3(%arg0: i32, %arg1: i32, %arg2: i32, %arg3: i32) -> (i32, i32, i32) {
    %c0_i32 = arith.constant 0 : i32
    %c0_i32_0 = arith.constant 0 : i32
    %c0_i32_1 = arith.constant 0 : i32
    return %arg2, %c0_i32, %c0_i32_0 : i32, i32, i32
  }
  func.func @transform_4(%arg0: i32, %arg1: i32, %arg2: i32, %arg3: i32) -> (i32, i32) {
    %c0_i32 = arith.constant 0 : i32
    %c0_i32_0 = arith.constant 0 : i32
    %c0_i32_1 = arith.constant 0 : i32
    return %c0_i32, %c0_i32_0 : i32, i32
  }
  func.func @transform_5(%arg0: i32, %arg1: i32, %arg2: i32, %arg3: i32) -> (i32, i32, i32) {
    %c0_i32 = arith.constant 0 : i32
    %c0_i32_0 = arith.constant 0 : i32
    return %arg0, %arg1, %c0_i32 : i32, i32, i32
  }
}

module attributes {stable_mosaic.version = 11 : i64} {
  func.func @_ln_residual_kernel(%arg0: i32, %arg1: memref<16x512xbf16, #tpu.memory_space<vmem>>, %arg2: memref<16x512xbf16, #tpu.memory_space<vmem>>, %arg3: memref<1x512xf32, #tpu.memory_space<vmem>>, %arg4: memref<1x512xf32, #tpu.memory_space<vmem>>, %arg5: memref<16x512xbf16, #tpu.memory_space<vmem>>) attributes {dimension_semantics = [#tpu.dimension_semantics<parallel>], iteration_bounds = array<i64: 1>, scalar_prefetch = 0 : i64, scratch_operands = 0 : i64, tpu.core_type = #tpu.core_type<tc>, window_params = [{transform_indices = @transform_0, window_bounds = array<i64: 16, 512>}, {transform_indices = @transform_1, window_bounds = array<i64: 16, 512>}, {pipeline_mode = #tpu.pipeline_mode<synchronous>, transform_indices = @transform_2, window_bounds = array<i64: 1, 512>}, {pipeline_mode = #tpu.pipeline_mode<synchronous>, transform_indices = @transform_3, window_bounds = array<i64: 1, 512>}, {transform_indices = @transform_4, window_bounds = array<i64: 16, 512>}]} {
    %c0 = arith.constant 0 : index
    %c0_0 = arith.constant 0 : index
    %0 = vector.load %arg1[%c0, %c0_0] : memref<16x512xbf16, #tpu.memory_space<vmem>>, vector<16x512xbf16>
    %1 = arith.extf %0 : vector<16x512xbf16> to vector<16x512xf32>
    %c0_1 = arith.constant 0 : index
    %c0_2 = arith.constant 0 : index
    %2 = vector.load %arg2[%c0_1, %c0_2] : memref<16x512xbf16, #tpu.memory_space<vmem>>, vector<16x512xbf16>
    %3 = arith.extf %2 : vector<16x512xbf16> to vector<16x512xf32>
    %4 = arith.addf %1, %3 : vector<16x512xf32>
    %cst = arith.constant dense<0.000000e+00> : vector<16xf32>
    %5 = vector.multi_reduction <add>, %4, %cst [1] : vector<16x512xf32> to vector<16xf32>
    %6 = vector.shape_cast %5 : vector<16xf32> to vector<16x1xf32>
    %cst_3 = arith.constant 5.120000e+02 : f32
    %7 = vector.broadcast %cst_3 : f32 to vector<16x1xf32>
    %8 = arith.divf %6, %7 : vector<16x1xf32>
    %9 = vector.broadcast %8 : vector<16x1xf32> to vector<16x512xf32>
    %10 = arith.subf %4, %9 : vector<16x512xf32>
    %11 = arith.mulf %10, %10 : vector<16x512xf32>
    %cst_4 = arith.constant dense<0.000000e+00> : vector<16xf32>
    %12 = vector.multi_reduction <add>, %11, %cst_4 [1] : vector<16x512xf32> to vector<16xf32>
    %13 = vector.shape_cast %12 : vector<16xf32> to vector<16x1xf32>
    %cst_5 = arith.constant 5.120000e+02 : f32
    %14 = vector.broadcast %cst_5 : f32 to vector<16x1xf32>
    %15 = arith.divf %13, %14 : vector<16x1xf32>
    %cst_6 = arith.constant 9.99999974E-6 : f32
    %16 = vector.broadcast %cst_6 : f32 to vector<16x1xf32>
    %17 = arith.addf %15, %16 : vector<16x1xf32>
    %18 = math.rsqrt %17 : vector<16x1xf32>
    %19 = vector.broadcast %18 : vector<16x1xf32> to vector<16x512xf32>
    %20 = arith.mulf %10, %19 : vector<16x512xf32>
    %c0_7 = arith.constant 0 : index
    %c0_8 = arith.constant 0 : index
    %21 = vector.load %arg3[%c0_7, %c0_8] : memref<1x512xf32, #tpu.memory_space<vmem>>, vector<1x512xf32>
    %22 = vector.broadcast %21 : vector<1x512xf32> to vector<16x512xf32>
    %23 = arith.mulf %20, %22 : vector<16x512xf32>
    %c0_9 = arith.constant 0 : index
    %c0_10 = arith.constant 0 : index
    %24 = vector.load %arg4[%c0_9, %c0_10] : memref<1x512xf32, #tpu.memory_space<vmem>>, vector<1x512xf32>
    %25 = vector.broadcast %24 : vector<1x512xf32> to vector<16x512xf32>
    %26 = arith.addf %23, %25 : vector<16x512xf32>
    %27 = arith.truncf %26 : vector<16x512xf32> to vector<16x512xbf16>
    %c0_11 = arith.constant 0 : index
    %c0_12 = arith.constant 0 : index
    %28 = vector.load %arg5[%c0_11, %c0_12] : memref<16x512xbf16, #tpu.memory_space<vmem>>, vector<16x512xbf16>
    tpu.vector_store %arg5[%c0_11, %c0_12], %27 {strides = array<i32>} : memref<16x512xbf16, #tpu.memory_space<vmem>>, vector<16x512xbf16>,
    return
  }
  func.func @transform_0(%arg0: i32) -> (i32, i32) {
    %c0_i32 = arith.constant 0 : i32
    %c0_i32_0 = arith.constant 0 : i32
    return %arg0, %c0_i32 : i32, i32
  }
  func.func @transform_1(%arg0: i32) -> (i32, i32) {
    %c0_i32 = arith.constant 0 : i32
    %c0_i32_0 = arith.constant 0 : i32
    return %arg0, %c0_i32 : i32, i32
  }
  func.func @transform_2(%arg0: i32) -> (i32, i32) {
    %c0_i32 = arith.constant 0 : i32
    %c0_i32_0 = arith.constant 0 : i32
    %c0_i32_1 = arith.constant 0 : i32
    return %c0_i32, %c0_i32_0 : i32, i32
  }
  func.func @transform_3(%arg0: i32) -> (i32, i32) {
    %c0_i32 = arith.constant 0 : i32
    %c0_i32_0 = arith.constant 0 : i32
    %c0_i32_1 = arith.constant 0 : i32
    return %c0_i32, %c0_i32_0 : i32, i32
  }
  func.func @transform_4(%arg0: i32) -> (i32, i32) {
    %c0_i32 = arith.constant 0 : i32
    %c0_i32_0 = arith.constant 0 : i32
    return %arg0, %c0_i32 : i32, i32
  }
}

module attributes {stable_mosaic.version = 11 : i64} {
  func.func @_matmul_bias_kernel(%arg0: i32, %arg1: i32, %arg2: memref<16x512xbf16, #tpu.memory_space<vmem>>, %arg3: memref<512x512xbf16, #tpu.memory_space<vmem>>, %arg4: memref<1x512xf32, #tpu.memory_space<vmem>>, %arg5: memref<16x512xbf16, #tpu.memory_space<vmem>>) attributes {dimension_semantics = [#tpu.dimension_semantics<parallel>, #tpu.dimension_semantics<parallel>], iteration_bounds = array<i64: 1, 4>, scalar_prefetch = 0 : i64, scratch_operands = 0 : i64, tpu.core_type = #tpu.core_type<tc>, window_params = [{transform_indices = @transform_0, window_bounds = array<i64: 16, 512>}, {transform_indices = @transform_1, window_bounds = array<i64: 512, 512>}, {transform_indices = @transform_2, window_bounds = array<i64: 1, 512>}, {transform_indices = @transform_3, window_bounds = array<i64: 16, 512>}]} {
    %c0 = arith.constant 0 : index
    %c0_0 = arith.constant 0 : index
    %0 = vector.load %arg2[%c0, %c0_0] : memref<16x512xbf16, #tpu.memory_space<vmem>>, vector<16x512xbf16>
    %c0_1 = arith.constant 0 : index
    %c0_2 = arith.constant 0 : index
    %1 = vector.load %arg3[%c0_1, %c0_2] : memref<512x512xbf16, #tpu.memory_space<vmem>>, vector<512x512xbf16>
    %cst = arith.constant dense<0.000000e+00> : vector<16x512xf32>
    %2 = tpu.matmul %0, %1, %cst {dimension_numbers = #tpu.dot_dimension_numbers<[1], [0], [0], [1], [0, 0, 1, 1], [], []>} : vector<16x512xbf16>, vector<512x512xbf16>, vector<16x512xf32> -> vector<16x512xf32>
    %c0_3 = arith.constant 0 : index
    %c0_4 = arith.constant 0 : index
    %3 = vector.load %arg4[%c0_3, %c0_4] : memref<1x512xf32, #tpu.memory_space<vmem>>, vector<1x512xf32>
    %4 = vector.broadcast %3 : vector<1x512xf32> to vector<16x512xf32>
    %5 = arith.addf %2, %4 : vector<16x512xf32>
    %cst_5 = arith.constant 0.000000e+00 : f32
    %6 = vector.broadcast %cst_5 : f32 to vector<16x512xf32>
    %7 = arith.maximumf %5, %6 : vector<16x512xf32>
    %8 = arith.truncf %7 : vector<16x512xf32> to vector<16x512xbf16>
    %c0_6 = arith.constant 0 : index
    %c0_7 = arith.constant 0 : index
    %9 = vector.load %arg5[%c0_6, %c0_7] : memref<16x512xbf16, #tpu.memory_space<vmem>>, vector<16x512xbf16>
    tpu.vector_store %arg5[%c0_6, %c0_7], %8 {strides = array<i32>} : memref<16x512xbf16, #tpu.memory_space<vmem>>, vector<16x512xbf16>,
    return
  }
  func.func @transform_0(%arg0: i32, %arg1: i32) -> (i32, i32) {
    %c0_i32 = arith.constant 0 : i32
    %c0_i32_0 = arith.constant 0 : i32
    return %arg0, %c0_i32 : i32, i32
  }
  func.func @transform_1(%arg0: i32, %arg1: i32) -> (i32, i32) {
    %c0_i32 = arith.constant 0 : i32
    %c0_i32_0 = arith.constant 0 : i32
    return %c0_i32, %arg1 : i32, i32
  }
  func.func @transform_2(%arg0: i32, %arg1: i32) -> (i32, i32) {
    %c0_i32 = arith.constant 0 : i32
    %c0_i32_0 = arith.constant 0 : i32
    return %c0_i32, %arg1 : i32, i32
  }
  func.func @transform_3(%arg0: i32, %arg1: i32) -> (i32, i32) {
    %c0_i32 = arith.constant 0 : i32
    return %arg0, %arg1 : i32, i32
  }
}

module attributes {stable_mosaic.version = 11 : i64} {
  func.func @_matmul_bias_kernel(%arg0: i32, %arg1: i32, %arg2: memref<16x2048xbf16, #tpu.memory_space<vmem>>, %arg3: memref<2048x512xbf16, #tpu.memory_space<vmem>>, %arg4: memref<1x512xf32, #tpu.memory_space<vmem>>, %arg5: memref<16x512xbf16, #tpu.memory_space<vmem>>) attributes {dimension_semantics = [#tpu.dimension_semantics<parallel>, #tpu.dimension_semantics<parallel>], iteration_bounds = array<i64: 1, 1>, scalar_prefetch = 0 : i64, scratch_operands = 0 : i64, tpu.core_type = #tpu.core_type<tc>, window_params = [{transform_indices = @transform_0, window_bounds = array<i64: 16, 2048>}, {transform_indices = @transform_1, window_bounds = array<i64: 2048, 512>}, {transform_indices = @transform_2, window_bounds = array<i64: 1, 512>}, {transform_indices = @transform_3, window_bounds = array<i64: 16, 512>}]} {
    %c0 = arith.constant 0 : index
    %c0_0 = arith.constant 0 : index
    %0 = vector.load %arg2[%c0, %c0_0] : memref<16x2048xbf16, #tpu.memory_space<vmem>>, vector<16x2048xbf16>
    %c0_1 = arith.constant 0 : index
    %c0_2 = arith.constant 0 : index
    %1 = vector.load %arg3[%c0_1, %c0_2] : memref<2048x512xbf16, #tpu.memory_space<vmem>>, vector<2048x512xbf16>
    %cst = arith.constant dense<0.000000e+00> : vector<16x512xf32>
    %2 = tpu.matmul %0, %1, %cst {dimension_numbers = #tpu.dot_dimension_numbers<[1], [0], [0], [1], [0, 0, 1, 1], [], []>} : vector<16x2048xbf16>, vector<2048x512xbf16>, vector<16x512xf32> -> vector<16x512xf32>
    %c0_3 = arith.constant 0 : index
    %c0_4 = arith.constant 0 : index
    %3 = vector.load %arg4[%c0_3, %c0_4] : memref<1x512xf32, #tpu.memory_space<vmem>>, vector<1x512xf32>
    %4 = vector.broadcast %3 : vector<1x512xf32> to vector<16x512xf32>
    %5 = arith.addf %2, %4 : vector<16x512xf32>
    %6 = arith.truncf %5 : vector<16x512xf32> to vector<16x512xbf16>
    %c0_5 = arith.constant 0 : index
    %c0_6 = arith.constant 0 : index
    %7 = vector.load %arg5[%c0_5, %c0_6] : memref<16x512xbf16, #tpu.memory_space<vmem>>, vector<16x512xbf16>
    tpu.vector_store %arg5[%c0_5, %c0_6], %6 {strides = array<i32>} : memref<16x512xbf16, #tpu.memory_space<vmem>>, vector<16x512xbf16>,
    return
  }
  func.func @transform_0(%arg0: i32, %arg1: i32) -> (i32, i32) {
    %c0_i32 = arith.constant 0 : i32
    %c0_i32_0 = arith.constant 0 : i32
    return %arg0, %c0_i32 : i32, i32
  }
  func.func @transform_1(%arg0: i32, %arg1: i32) -> (i32, i32) {
    %c0_i32 = arith.constant 0 : i32
    %c0_i32_0 = arith.constant 0 : i32
    return %c0_i32, %arg1 : i32, i32
  }
  func.func @transform_2(%arg0: i32, %arg1: i32) -> (i32, i32) {
    %c0_i32 = arith.constant 0 : i32
    %c0_i32_0 = arith.constant 0 : i32
    return %c0_i32, %arg1 : i32, i32
  }
  func.func @transform_3(%arg0: i32, %arg1: i32) -> (i32, i32) {
    %c0_i32 = arith.constant 0 : i32
    return %arg0, %arg1 : i32, i32
  }
}

module attributes {stable_mosaic.version = 11 : i64} {
  func.func @_matmul_kernel(%arg0: i32, %arg1: i32, %arg2: memref<16x512xbf16, #tpu.memory_space<vmem>>, %arg3: memref<64x512xbf16, #tpu.memory_space<vmem>>, %arg4: memref<16x64xf32, #tpu.memory_space<vmem>>) attributes {dimension_semantics = [#tpu.dimension_semantics<parallel>, #tpu.dimension_semantics<parallel>], iteration_bounds = array<i64: 1, 1>, scalar_prefetch = 0 : i64, scratch_operands = 0 : i64, tpu.core_type = #tpu.core_type<tc>, window_params = [{transform_indices = @transform_0, window_bounds = array<i64: 16, 512>}, {transform_indices = @transform_1, window_bounds = array<i64: 64, 512>}, {transform_indices = @transform_2, window_bounds = array<i64: 16, 64>}]} {
    %c0 = arith.constant 0 : index
    %c0_0 = arith.constant 0 : index
    %0 = vector.load %arg2[%c0, %c0_0] : memref<16x512xbf16, #tpu.memory_space<vmem>>, vector<16x512xbf16>
    %c0_1 = arith.constant 0 : index
    %c0_2 = arith.constant 0 : index
    %1 = vector.load %arg3[%c0_1, %c0_2] : memref<64x512xbf16, #tpu.memory_space<vmem>>, vector<64x512xbf16>
    %cst = arith.constant dense<0.000000e+00> : vector<16x64xf32>
    %2 = tpu.matmul %0, %1, %cst {dimension_numbers = #tpu.dot_dimension_numbers<[1], [1], [0], [0], [0, 0, 1, 0], [], []>} : vector<16x512xbf16>, vector<64x512xbf16>, vector<16x64xf32> -> vector<16x64xf32>
    %c0_3 = arith.constant 0 : index
    %c0_4 = arith.constant 0 : index
    %3 = vector.load %arg4[%c0_3, %c0_4] : memref<16x64xf32, #tpu.memory_space<vmem>>, vector<16x64xf32>
    tpu.vector_store %arg4[%c0_3, %c0_4], %2 {strides = array<i32>} : memref<16x64xf32, #tpu.memory_space<vmem>>, vector<16x64xf32>,
    return
  }
  func.func @transform_0(%arg0: i32, %arg1: i32) -> (i32, i32) {
    %c0_i32 = arith.constant 0 : i32
    %c0_i32_0 = arith.constant 0 : i32
    return %arg0, %c0_i32 : i32, i32
  }
  func.func @transform_1(%arg0: i32, %arg1: i32) -> (i32, i32) {
    %c0_i32 = arith.constant 0 : i32
    %c0_i32_0 = arith.constant 0 : i32
    return %arg1, %c0_i32 : i32, i32
  }
  func.func @transform_2(%arg0: i32, %arg1: i32) -> (i32, i32) {
    %c0_i32 = arith.constant 0 : i32
    return %arg0, %arg1 : i32, i32
  }
}

</mosaic_0001>

<bundles_post_ra>
// kernel: _lambda_.37
= control target key start
LH: loop header
LB: loop body
LE: loop exit
PB: predicated region body
PF: predicated region fallthrough
CT: control target
= control target key end

     0   :  { %s2441_s12 = smov 0   ;;  %s2443_s13 = smov 0   ;;  %s3103_s0 = inlined_call_operand.vmem [shape: bf16[16,512], index: 0, kind: input, shape index: {}]   ;;  %s3104_s1 = inlined_call_operand.vmem [shape: bf16[512,1536], index: 1, kind: input, shape index: {}]   ;;  %s3105_s2 = inlined_call_operand.vmem [shape: f32[1,1536], index: 2, kind: input, shape index: {}]   ;;  %s3106_s3 = inlined_call_operand.vmem [shape: bf16[16,1536], index: 3, kind: output, shape index: {}]  }
   0x1   :  { %s2445_s14 = smov 0   ;;  %s2447_s15 = smov 0  }
   0x2   :  { %s2449_s16 = smov 0  }
   0x3 LB: > { %s22_s17 = sadd.s32 1, %s2415_s15  ;;  %s1662_s18 = sadd.s32 4294967295, %s2419_s16   ;;  %s2419_s16 = sphi %s2449_s16, %s13_s16   ;;  %s2415_s15 = sphi %s2447_s15, %s3111_s15   ;;  %s2411_s14 = sphi %s2445_s14, %s3110_s14   ;;  %s2407_s13 = sphi %s2443_s13, %s3109_s13   ;;  %s2403_s12 = sphi %s2441_s12, %s3108_s12  }
   0x4   : > { %p23_p0 = scmp.ge.s32.totalorder %s22_s17, 3  ;;  %p65_p1 = scmp.ne.s32.totalorder %s2407_s13, %s2403_s12 }
   0x5   : > { %p66_p2 = scmp.eq.s32.totalorder %s2419_s16, 0  ;;  %p123_p4 = scmp.eq.s32.totalorder %s1662_s18, 2 }
   0x6   : > { %s3113_s17 = smov (%p23_p0, %s22_s17), 0  ;;  %s58_s20 = sadd.s32 1, %s2407_s13 }
   0x7   : > { %p67_p3 = por %p66_p2, %p65_p1  ;;  %s55_s19 = ssub.s32 %s2415_s15, %s3113_s17 }
   0x8   : > { %p56_p5 = scmp.eq.s32.totalorder %s55_s19, 0  ;;  %p2476_p6 = por %p123_p4, %p65_p1 }
   0x9   : > { %p1666_p7 = scmp.ge.s32.totalorder %s2419_s16, 3 }
   0xa   : > { %s2481_s22 = scalar_select %p56_p5, %s2407_s13, %s58_s20  }
   0xb   : > { %155 = sbr.rel (%p1666_p7) target bundleno = 148 (0x94), region = 20 }
  0x10   : > { %158 = sbr.rel (!%p67_p3) target bundleno = 148 (0x94), region = 24  ;;  %s160_s23 = sand.u32 (%p67_p3), 1, %s2407_s13  }
  0x11   : > { %s2207_s24 = sshll.u32 (%p67_p3), %s2415_s15, 4  ;;  %s1667_s25 = sshll.u32 (%p67_p3), %s160_s23, 10 }
  0x12   : > { %s2489_s28 = scalar_lea.vmem (%p67_p3), %s3104_s1, %s2207_s24  ;;  %s2494_s29 = scalar_lea.vmem (%p67_p3), [#allocation2], %s1667_s25 }
  0x13   : > { %v178_v0 = vld [vmem:[%s2489_s28] sm:$0xff] (%p67_p3)  ;;  %v180_v1 = vld [vmem:[%s2489_s28 + $0x8] sm:$0xff] (%p67_p3)  ;;  %v182_v2 = vld [vmem:[%s2489_s28 + $0x30] sm:$0xff] (%p67_p3) }
  0x14   : > { %179 = vst [vmem:[%s2494_s29] sm:$0xff] (%p67_p3), %v178_v0  ;;  %v184_v3 = vld [vmem:[%s2489_s28 + $0x38] sm:$0xff] (%p67_p3)  ;;  %v186_v4 = vld [vmem:[%s2489_s28 + $0x60] sm:$0xff] (%p67_p3)  ;;  %v188_v5 = vld [vmem:[%s2489_s28 + $0x68] sm:$0xff] (%p67_p3) }
  0x15   : > { %181 = vst [vmem:[%s2494_s29 + $0x8] sm:$0xff] %v180_v1  ;;  %v190_v6 = vld [vmem:[%s2489_s28 + $0x90] sm:$0xff]  ;;  %v192_v7 = vld [vmem:[%s2489_s28 + $0x98] sm:$0xff]  ;;  %v194_v8 = vld [vmem:[%s2489_s28 + $0xc0] sm:$0xff] }
  0x16   : > { %183 = vst [vmem:[%s2494_s29 + $0x10] sm:$0xff] %v182_v2  ;;  %v196_v9 = vld [vmem:[%s2489_s28 + $0xc8] sm:$0xff]  ;;  %v198_v10 = vld [vmem:[%s2489_s28 + $0xf0] sm:$0xff]  ;;  %v200_v11 = vld [vmem:[%s2489_s28 + $0xf8] sm:$0xff] }
  0x17   : > { %185 = vst [vmem:[%s2494_s29 + $0x18] sm:$0xff] %v184_v3  ;;  %v202_v12 = vld [vmem:[%s2489_s28 + $0x120] sm:$0xff]  ;;  %v204_v13 = vld [vmem:[%s2489_s28 + $0x128] sm:$0xff]  ;;  %v206_v14 = vld [vmem:[%s2489_s28 + $0x150] sm:$0xff] }
  0x18   : > { %187 = vst [vmem:[%s2494_s29 + $0x20] sm:$0xff] %v186_v4  ;;  %v208_v15 = vld [vmem:[%s2489_s28 + $0x158] sm:$0xff]  ;;  %v210_v16 = vld [vmem:[%s2489_s28 + $0x180] sm:$0xff]  ;;  %v212_v17 = vld [vmem:[%s2489_s28 + $0x188] sm:$0xff] }
  0x19   : > { %189 = vst [vmem:[%s2494_s29 + $0x28] sm:$0xff] %v188_v5  ;;  %v214_v18 = vld [vmem:[%s2489_s28 + $0x1b0] sm:$0xff]  ;;  %v216_v19 = vld [vmem:[%s2489_s28 + $0x1b8] sm:$0xff]  ;;  %v218_v20 = vld [vmem:[%s2489_s28 + $0x1e0] sm:$0xff] }
  0x1a   : > { %191 = vst [vmem:[%s2494_s29 + $0x30] sm:$0xff] %v190_v6  ;;  %v220_v21 = vld [vmem:[%s2489_s28 + $0x1e8] sm:$0xff]  ;;  %v222_v22 = vld [vmem:[%s2489_s28 + $0x210] sm:$0xff]  ;;  %v224_v23 = vld [vmem:[%s2489_s28 + $0x218] sm:$0xff] }
  0x1b   : > { %193 = vst [vmem:[%s2494_s29 + $0x38] sm:$0xff] %v192_v7  ;;  %v226_v24 = vld [vmem:[%s2489_s28 + $0x240] sm:$0xff]  ;;  %v228_v25 = vld [vmem:[%s2489_s28 + $0x248] sm:$0xff]  ;;  %v230_v26 = vld [vmem:[%s2489_s28 + $0x270] sm:$0xff] }
  0x1c   : > { %195 = vst [vmem:[%s2494_s29 + $0x40] sm:$0xff] %v194_v8  ;;  %v232_v27 = vld [vmem:[%s2489_s28 + $0x278] sm:$0xff]  ;;  %v234_v28 = vld [vmem:[%s2489_s28 + $0x2a0] sm:$0xff]  ;;  %v236_v29 = vld [vmem:[%s2489_s28 + $0x2a8] sm:$0xff] }
  0x1d   : > { %197 = vst [vmem:[%s2494_s29 + $0x48] sm:$0xff] %v196_v9  ;;  %v238_v30 = vld [vmem:[%s2489_s28 + $0x2d0] sm:$0xff]  ;;  %v240_v31 = vld [vmem:[%s2489_s28 + $0x2d8] sm:$0xff]  ;;  %v242_v32 = vld [vmem:[%s2489_s28 + $0x300] sm:$0xff] }
  0x1e   : > { %199 = vst [vmem:[%s2494_s29 + $0x50] sm:$0xff] %v198_v10  ;;  %v244_v33 = vld [vmem:[%s2489_s28 + $0x308] sm:$0xff]  ;;  %v246_v34 = vld [vmem:[%s2489_s28 + $0x330] sm:$0xff]  ;;  %v248_v35 = vld [vmem:[%s2489_s28 + $0x338] sm:$0xff] }
  0x1f   : > { %201 = vst [vmem:[%s2494_s29 + $0x58] sm:$0xff] %v200_v11  ;;  %v250_v36 = vld [vmem:[%s2489_s28 + $0x360] sm:$0xff]  ;;  %v252_v37 = vld [vmem:[%s2489_s28 + $0x368] sm:$0xff]  ;;  %v254_v38 = vld [vmem:[%s2489_s28 + $0x390] sm:$0xff] }
  0x20   : > { %203 = vst [vmem:[%s2494_s29 + $0x60] sm:$0xff] %v202_v12  ;;  %v256_v39 = vld [vmem:[%s2489_s28 + $0x398] sm:$0xff]  ;;  %v258_v40 = vld [vmem:[%s2489_s28 + $0x3c0] sm:$0xff]  ;;  %v260_v41 = vld [vmem:[%s2489_s28 + $0x3c8] sm:$0xff] }
  0x21   : > { %205 = vst [vmem:[%s2494_s29 + $0x68] sm:$0xff] %v204_v13  ;;  %v262_v42 = vld [vmem:[%s2489_s28 + $0x3f0] sm:$0xff]  ;;  %v264_v43 = vld [vmem:[%s2489_s28 + $0x3f8] sm:$0xff]  ;;  %v266_v44 = vld [vmem:[%s2489_s28 + $0x420] sm:$0xff] }
  0x22   : > { %207 = vst [vmem:[%s2494_s29 + $0x70] sm:$0xff] %v206_v14  ;;  %v268_v45 = vld [vmem:[%s2489_s28 + $0x428] sm:$0xff]  ;;  %v270_v46 = vld [vmem:[%s2489_s28 + $0x450] sm:$0xff]  ;;  %v272_v47 = vld [vmem:[%s2489_s28 + $0x458] sm:$0xff] }
  0x23   : > { %209 = vst [vmem:[%s2494_s29 + $0x78] sm:$0xff] %v208_v15  ;;  %v274_v48 = vld [vmem:[%s2489_s28 + $0x480] sm:$0xff]  ;;  %v276_v49 = vld [vmem:[%s2489_s28 + $0x488] sm:$0xff]  ;;  %v278_v50 = vld [vmem:[%s2489_s28 + $0x4b0] sm:$0xff] }
  0x24   : > { %211 = vst [vmem:[%s2494_s29 + $0x80] sm:$0xff] %v210_v16  ;;  %v280_v51 = vld [vmem:[%s2489_s28 + $0x4b8] sm:$0xff]  ;;  %v282_v52 = vld [vmem:[%s2489_s28 + $0x4e0] sm:$0xff]  ;;  %v284_v53 = vld [vmem:[%s2489_s28 + $0x4e8] sm:$0xff] }
  0x25   : > { %213 = vst [vmem:[%s2494_s29 + $0x88] sm:$0xff] %v212_v17  ;;  %v286_v54 = vld [vmem:[%s2489_s28 + $0x510] sm:$0xff]  ;;  %v288_v55 = vld [vmem:[%s2489_s28 + $0x518] sm:$0xff]  ;;  %v290_v56 = vld [vmem:[%s2489_s28 + $0x540] sm:$0xff] }
  0x26   : > { %215 = vst [vmem:[%s2494_s29 + $0x90] sm:$0xff] %v214_v18  ;;  %v292_v57 = vld [vmem:[%s2489_s28 + $0x548] sm:$0xff]  ;;  %v294_v58 = vld [vmem:[%s2489_s28 + $0x570] sm:$0xff]  ;;  %v296_v59 = vld [vmem:[%s2489_s28 + $0x578] sm:$0xff] }
  0x27   : > { %217 = vst [vmem:[%s2494_s29 + $0x98] sm:$0xff] %v216_v19  ;;  %v298_v60 = vld [vmem:[%s2489_s28 + $0x5a0] sm:$0xff]  ;;  %v300_v61 = vld [vmem:[%s2489_s28 + $0x5a8] sm:$0xff]  ;;  %v302_v62 = vld [vmem:[%s2489_s28 + $0x5d0] sm:$0xff] }
  0x28   : > { %219 = vst [vmem:[%s2494_s29 + $0xa0] sm:$0xff] %v218_v20  ;;  %v304_v63 = vld [vmem:[%s2489_s28 + $0x5d8] sm:$0xff]  ;;  %v306_v0 = vld [vmem:[%s2489_s28 + $0x600] sm:$0xff]  ;;  %v308_v1 = vld [vmem:[%s2489_s28 + $0x608] sm:$0xff] }
  0x29   : > { %221 = vst [vmem:[%s2494_s29 + $0xa8] sm:$0xff] %v220_v21  ;;  %v310_v2 = vld [vmem:[%s2489_s28 + $0x630] sm:$0xff]  ;;  %v312_v3 = vld [vmem:[%s2489_s28 + $0x638] sm:$0xff]  ;;  %v314_v4 = vld [vmem:[%s2489_s28 + $0x660] sm:$0xff] }
  0x2a   : > { %223 = vst [vmem:[%s2494_s29 + $0xb0] sm:$0xff] %v222_v22  ;;  %v316_v5 = vld [vmem:[%s2489_s28 + $0x668] sm:$0xff]  ;;  %v318_v6 = vld [vmem:[%s2489_s28 + $0x690] sm:$0xff]  ;;  %v320_v7 = vld [vmem:[%s2489_s28 + $0x698] sm:$0xff] }
  0x2b   : > { %225 = vst [vmem:[%s2494_s29 + $0xb8] sm:$0xff] %v224_v23  ;;  %v322_v8 = vld [vmem:[%s2489_s28 + $0x6c0] sm:$0xff]  ;;  %v324_v9 = vld [vmem:[%s2489_s28 + $0x6c8] sm:$0xff]  ;;  %v326_v10 = vld [vmem:[%s2489_s28 + $0x6f0] sm:$0xff] }
  0x2c   : > { %227 = vst [vmem:[%s2494_s29 + $0xc0] sm:$0xff] %v226_v24  ;;  %v328_v11 = vld [vmem:[%s2489_s28 + $0x6f8] sm:$0xff]  ;;  %v330_v12 = vld [vmem:[%s2489_s28 + $0x720] sm:$0xff]  ;;  %v332_v13 = vld [vmem:[%s2489_s28 + $0x728] sm:$0xff] }
  0x2d   : > { %229 = vst [vmem:[%s2494_s29 + $0xc8] sm:$0xff] %v228_v25  ;;  %v334_v14 = vld [vmem:[%s2489_s28 + $0x750] sm:$0xff]  ;;  %v336_v15 = vld [vmem:[%s2489_s28 + $0x758] sm:$0xff]  ;;  %v338_v16 = vld [vmem:[%s2489_s28 + $0x780] sm:$0xff] }
  0x2e   : > { %231 = vst [vmem:[%s2494_s29 + $0xd0] sm:$0xff] %v230_v26  ;;  %v340_v17 = vld [vmem:[%s2489_s28 + $0x788] sm:$0xff]  ;;  %v342_v18 = vld [vmem:[%s2489_s28 + $0x7b0] sm:$0xff]  ;;  %v344_v19 = vld [vmem:[%s2489_s28 + $0x7b8] sm:$0xff] }
  0x2f   : > { %233 = vst [vmem:[%s2494_s29 + $0xd8] sm:$0xff] %v232_v27  ;;  %v346_v20 = vld [vmem:[%s2489_s28 + $0x7e0] sm:$0xff]  ;;  %v348_v21 = vld [vmem:[%s2489_s28 + $0x7e8] sm:$0xff]  ;;  %v350_v22 = vld [vmem:[%s2489_s28 + $0x810] sm:$0xff] }
  0x30   : > { %235 = vst [vmem:[%s2494_s29 + $0xe0] sm:$0xff] %v234_v28  ;;  %v352_v23 = vld [vmem:[%s2489_s28 + $0x818] sm:$0xff]  ;;  %v354_v24 = vld [vmem:[%s2489_s28 + $0x840] sm:$0xff]  ;;  %v356_v25 = vld [vmem:[%s2489_s28 + $0x848] sm:$0xff] }
  0x31   : > { %237 = vst [vmem:[%s2494_s29 + $0xe8] sm:$0xff] %v236_v29  ;;  %v358_v26 = vld [vmem:[%s2489_s28 + $0x870] sm:$0xff]  ;;  %v360_v27 = vld [vmem:[%s2489_s28 + $0x878] sm:$0xff]  ;;  %v362_v28 = vld [vmem:[%s2489_s28 + $0x8a0] sm:$0xff] }
  0x32   : > { %239 = vst [vmem:[%s2494_s29 + $0xf0] sm:$0xff] %v238_v30  ;;  %v364_v29 = vld [vmem:[%s2489_s28 + $0x8a8] sm:$0xff]  ;;  %v366_v30 = vld [vmem:[%s2489_s28 + $0x8d0] sm:$0xff] }
  0x33   : > { %241 = vst [vmem:[%s2494_s29 + $0xf8] sm:$0xff] %v240_v31  ;;  %v368_v31 = vld [vmem:[%s2489_s28 + $0x8d8] sm:$0xff] }
  0x34   : > { %243 = vst [vmem:[%s2494_s29 + $0x100] sm:$0xff] %v242_v32  ;;  %v370_v32 = vld [vmem:[%s2489_s28 + $0x900] sm:$0xff] }
  0x35   : > { %245 = vst [vmem:[%s2494_s29 + $0x108] sm:$0xff] %v244_v33  ;;  %v372_v33 = vld [vmem:[%s2489_s28 + $0x908] sm:$0xff] }
  0x36   : > { %247 = vst [vmem:[%s2494_s29 + $0x110] sm:$0xff] %v246_v34  ;;  %v374_v34 = vld [vmem:[%s2489_s28 + $0x930] sm:$0xff] }
  0x37   : > { %249 = vst [vmem:[%s2494_s29 + $0x118] sm:$0xff] %v248_v35  ;;  %v376_v35 = vld [vmem:[%s2489_s28 + $0x938] sm:$0xff] }
  0x38   : > { %251 = vst [vmem:[%s2494_s29 + $0x120] sm:$0xff] %v250_v36  ;;  %v378_v36 = vld [vmem:[%s2489_s28 + $0x960] sm:$0xff] }
  0x39   : > { %253 = vst [vmem:[%s2494_s29 + $0x128] sm:$0xff] %v252_v37  ;;  %v380_v37 = vld [vmem:[%s2489_s28 + $0x968] sm:$0xff] }
  0x3a   : > { %255 = vst [vmem:[%s2494_s29 + $0x130] sm:$0xff] %v254_v38  ;;  %v382_v38 = vld [vmem:[%s2489_s28 + $0x990] sm:$0xff] }
  0x3b   : > { %257 = vst [vmem:[%s2494_s29 + $0x138] sm:$0xff] %v256_v39  ;;  %v384_v39 = vld [vmem:[%s2489_s28 + $0x998] sm:$0xff] }
  0x3c   : > { %259 = vst [vmem:[%s2494_s29 + $0x140] sm:$0xff] %v258_v40  ;;  %v386_v40 = vld [vmem:[%s2489_s28 + $0x9c0] sm:$0xff] }
  0x3d   : > { %261 = vst [vmem:[%s2494_s29 + $0x148] sm:$0xff] %v260_v41  ;;  %v388_v41 = vld [vmem:[%s2489_s28 + $0x9c8] sm:$0xff] }
  0x3e   : > { %263 = vst [vmem:[%s2494_s29 + $0x150] sm:$0xff] %v262_v42  ;;  %v390_v42 = vld [vmem:[%s2489_s28 + $0x9f0] sm:$0xff] }
  0x3f   : > { %265 = vst [vmem:[%s2494_s29 + $0x158] sm:$0xff] %v264_v43  ;;  %v392_v43 = vld [vmem:[%s2489_s28 + $0x9f8] sm:$0xff] }
  0x40   : > { %267 = vst [vmem:[%s2494_s29 + $0x160] sm:$0xff] %v266_v44  ;;  %v394_v44 = vld [vmem:[%s2489_s28 + $0xa20] sm:$0xff] }
  0x41   : > { %269 = vst [vmem:[%s2494_s29 + $0x168] sm:$0xff] %v268_v45  ;;  %v396_v45 = vld [vmem:[%s2489_s28 + $0xa28] sm:$0xff] }
  0x42   : > { %271 = vst [vmem:[%s2494_s29 + $0x170] sm:$0xff] %v270_v46  ;;  %v398_v46 = vld [vmem:[%s2489_s28 + $0xa50] sm:$0xff] }
  0x43   : > { %273 = vst [vmem:[%s2494_s29 + $0x178] sm:$0xff] %v272_v47  ;;  %v400_v47 = vld [vmem:[%s2489_s28 + $0xa58] sm:$0xff] }
  0x44   : > { %275 = vst [vmem:[%s2494_s29 + $0x180] sm:$0xff] %v274_v48  ;;  %v402_v48 = vld [vmem:[%s2489_s28 + $0xa80] sm:$0xff] }
  0x45   : > { %277 = vst [vmem:[%s2494_s29 + $0x188] sm:$0xff] %v276_v49  ;;  %v404_v49 = vld [vmem:[%s2489_s28 + $0xa88] sm:$0xff] }
  0x46   : > { %279 = vst [vmem:[%s2494_s29 + $0x190] sm:$0xff] %v278_v50  ;;  %v406_v50 = vld [vmem:[%s2489_s28 + $0xab0] sm:$0xff] }
  0x47   : > { %281 = vst [vmem:[%s2494_s29 + $0x198] sm:$0xff] %v280_v51  ;;  %v408_v51 = vld [vmem:[%s2489_s28 + $0xab8] sm:$0xff] }
  0x48   : > { %283 = vst [vmem:[%s2494_s29 + $0x1a0] sm:$0xff] %v282_v52  ;;  %v410_v52 = vld [vmem:[%s2489_s28 + $0xae0] sm:$0xff] }
  0x49   : > { %285 = vst [vmem:[%s2494_s29 + $0x1a8] sm:$0xff] %v284_v53  ;;  %v412_v53 = vld [vmem:[%s2489_s28 + $0xae8] sm:$0xff] }
  0x4a   : > { %287 = vst [vmem:[%s2494_s29 + $0x1b0] sm:$0xff] %v286_v54  ;;  %v414_v54 = vld [vmem:[%s2489_s28 + $0xb10] sm:$0xff] }
  0x4b   : > { %289 = vst [vmem:[%s2494_s29 + $0x1b8] sm:$0xff] %v288_v55  ;;  %v416_v55 = vld [vmem:[%s2489_s28 + $0xb18] sm:$0xff] }
  0x4c   : > { %291 = vst [vmem:[%s2494_s29 + $0x1c0] sm:$0xff] %v290_v56  ;;  %v418_v56 = vld [vmem:[%s2489_s28 + $0xb40] sm:$0xff] }
  0x4d   : > { %293 = vst [vmem:[%s2494_s29 + $0x1c8] sm:$0xff] %v292_v57  ;;  %v420_v57 = vld [vmem:[%s2489_s28 + $0xb48] sm:$0xff] }
  0x4e   : > { %295 = vst [vmem:[%s2494_s29 + $0x1d0] sm:$0xff] %v294_v58  ;;  %v422_v58 = vld [vmem:[%s2489_s28 + $0xb70] sm:$0xff] }
  0x4f   : > { %297 = vst [vmem:[%s2494_s29 + $0x1d8] sm:$0xff] %v296_v59  ;;  %v424_v59 = vld [vmem:[%s2489_s28 + $0xb78] sm:$0xff] }
  0x50   : > { %299 = vst [vmem:[%s2494_s29 + $0x1e0] sm:$0xff] %v298_v60  ;;  %v426_v60 = vld [vmem:[%s2489_s28 + $0xba0] sm:$0xff] }
  0x51   : > { %301 = vst [vmem:[%s2494_s29 + $0x1e8] sm:$0xff] %v300_v61  ;;  %v428_v61 = vld [vmem:[%s2489_s28 + $0xba8] sm:$0xff] }
  0x52   : > { %303 = vst [vmem:[%s2494_s29 + $0x1f0] sm:$0xff] %v302_v62  ;;  %v430_v62 = vld [vmem:[%s2489_s28 + $0xbd0] sm:$0xff] }
  0x53   : > { %305 = vst [vmem:[%s2494_s29 + $0x1f8] sm:$0xff] %v304_v63  ;;  %v432_v63 = vld [vmem:[%s2489_s28 + $0xbd8] sm:$0xff] }
  0x54   : > { %307 = vst [vmem:[%s2494_s29 + $0x200] sm:$0xff] %v306_v0 }
  0x55   : > { %309 = vst [vmem:[%s2494_s29 + $0x208] sm:$0xff] %v308_v1 }
  0x56   : > { %311 = vst [vmem:[%s2494_s29 + $0x210] sm:$0xff] %v310_v2 }
  0x57   : > { %313 = vst [vmem:[%s2494_s29 + $0x218] sm:$0xff] %v312_v3 }
  0x58   : > { %315 = vst [vmem:[%s2494_s29 + $0x220] sm:$0xff] %v314_v4 }
  0x59   : > { %317 = vst [vmem:[%s2494_s29 + $0x228] sm:$0xff] %v316_v5 }
  0x5a   : > { %319 = vst [vmem:[%s2494_s29 + $0x230] sm:$0xff] %v318_v6 }
  0x5b   : > { %321 = vst [vmem:[%s2494_s29 + $0x238] sm:$0xff] %v320_v7 }
  0x5c   : > { %323 = vst [vmem:[%s2494_s29 + $0x240] sm:$0xff] %v322_v8 }
  0x5d   : > { %325 = vst [vmem:[%s2494_s29 + $0x248] sm:$0xff] %v324_v9 }
  0x5e   : > { %327 = vst [vmem:[%s2494_s29 + $0x250] sm:$0xff] %v326_v10 }
  0x5f   : > { %329 = vst [vmem:[%s2494_s29 + $0x258] sm:$0xff] %v328_v11 }
  0x60   : > { %331 = vst [vmem:[%s2494_s29 + $0x260] sm:$0xff] %v330_v12 }
  0x61   : > { %333 = vst [vmem:[%s2494_s29 + $0x268] sm:$0xff] %v332_v13 }
  0x62   : > { %335 = vst [vmem:[%s2494_s29 + $0x270] sm:$0xff] %v334_v14 }
  0x63   : > { %337 = vst [vmem:[%s2494_s29 + $0x278] sm:$0xff] %v336_v15 }
  0x64   : > { %339 = vst [vmem:[%s2494_s29 + $0x280] sm:$0xff] %v338_v16 }
  0x65   : > { %341 = vst [vmem:[%s2494_s29 + $0x288] sm:$0xff] %v340_v17 }
  0x66   : > { %343 = vst [vmem:[%s2494_s29 + $0x290] sm:$0xff] %v342_v18 }
  0x67   : > { %345 = vst [vmem:[%s2494_s29 + $0x298] sm:$0xff] %v344_v19 }
  0x68   : > { %347 = vst [vmem:[%s2494_s29 + $0x2a0] sm:$0xff] %v346_v20 }
  0x69   : > { %349 = vst [vmem:[%s2494_s29 + $0x2a8] sm:$0xff] %v348_v21 }
  0x6a   : > { %351 = vst [vmem:[%s2494_s29 + $0x2b0] sm:$0xff] %v350_v22 }
  0x6b   : > { %353 = vst [vmem:[%s2494_s29 + $0x2b8] sm:$0xff] %v352_v23 }
  0x6c   : > { %355 = vst [vmem:[%s2494_s29 + $0x2c0] sm:$0xff] %v354_v24 }
  0x6d   : > { %357 = vst [vmem:[%s2494_s29 + $0x2c8] sm:$0xff] %v356_v25 }
  0x6e   : > { %359 = vst [vmem:[%s2494_s29 + $0x2d0] sm:$0xff] %v358_v26 }
  0x6f   : > { %361 = vst [vmem:[%s2494_s29 + $0x2d8] sm:$0xff] %v360_v27 }
  0x70   : > { %363 = vst [vmem:[%s2494_s29 + $0x2e0] sm:$0xff] %v362_v28 }
  0x71   : > { %365 = vst [vmem:[%s2494_s29 + $0x2e8] sm:$0xff] %v364_v29 }
  0x72   : > { %367 = vst [vmem:[%s2494_s29 + $0x2f0] sm:$0xff] %v366_v30 }
  0x73   : > { %369 = vst [vmem:[%s2494_s29 + $0x2f8] sm:$0xff] %v368_v31 }
  0x74   : > { %371 = vst [vmem:[%s2494_s29 + $0x300] sm:$0xff] %v370_v32 }
  0x75   : > { %373 = vst [vmem:[%s2494_s29 + $0x308] sm:$0xff] %v372_v33 }
  0x76   : > { %375 = vst [vmem:[%s2494_s29 + $0x310] sm:$0xff] %v374_v34 }
  0x77   : > { %377 = vst [vmem:[%s2494_s29 + $0x318] sm:$0xff] %v376_v35 }
  0x78   : > { %379 = vst [vmem:[%s2494_s29 + $0x320] sm:$0xff] %v378_v36 }
  0x79   : > { %381 = vst [vmem:[%s2494_s29 + $0x328] sm:$0xff] %v380_v37 }
  0x7a   : > { %383 = vst [vmem:[%s2494_s29 + $0x330] sm:$0xff] %v382_v38 }
  0x7b   : > { %385 = vst [vmem:[%s2494_s29 + $0x338] sm:$0xff] %v384_v39 }
  0x7c   : > { %387 = vst [vmem:[%s2494_s29 + $0x340] sm:$0xff] %v386_v40 }
  0x7d   : > { %389 = vst [vmem:[%s2494_s29 + $0x348] sm:$0xff] %v388_v41 }
  0x7e   : > { %391 = vst [vmem:[%s2494_s29 + $0x350] sm:$0xff] %v390_v42 }
  0x7f   : > { %393 = vst [vmem:[%s2494_s29 + $0x358] sm:$0xff] %v392_v43 }
  0x80   : > { %395 = vst [vmem:[%s2494_s29 + $0x360] sm:$0xff] %v394_v44 }
  0x81   : > { %397 = vst [vmem:[%s2494_s29 + $0x368] sm:$0xff] %v396_v45 }
  0x82   : > { %399 = vst [vmem:[%s2494_s29 + $0x370] sm:$0xff] %v398_v46 }
  0x83   : > { %401 = vst [vmem:[%s2494_s29 + $0x378] sm:$0xff] %v400_v47 }
  0x84   : > { %403 = vst [vmem:[%s2494_s29 + $0x380] sm:$0xff] %v402_v48 }
  0x85   : > { %405 = vst [vmem:[%s2494_s29 + $0x388] sm:$0xff] %v404_v49 }
  0x86   : > { %407 = vst [vmem:[%s2494_s29 + $0x390] sm:$0xff] %v406_v50 }
  0x87   : > { %409 = vst [vmem:[%s2494_s29 + $0x398] sm:$0xff] %v408_v51 }
  0x88   : > { %411 = vst [vmem:[%s2494_s29 + $0x3a0] sm:$0xff] %v410_v52 }
  0x89   : > { %413 = vst [vmem:[%s2494_s29 + $0x3a8] sm:$0xff] %v412_v53 }
  0x8a   : > { %415 = vst [vmem:[%s2494_s29 + $0x3b0] sm:$0xff] %v414_v54 }
  0x8b   : > { %417 = vst [vmem:[%s2494_s29 + $0x3b8] sm:$0xff] %v416_v55 }
  0x8c   : > { %419 = vst [vmem:[%s2494_s29 + $0x3c0] sm:$0xff] %v418_v56 }
  0x8d   : > { %421 = vst [vmem:[%s2494_s29 + $0x3c8] sm:$0xff] %v420_v57 }
  0x8e   : > { %423 = vst [vmem:[%s2494_s29 + $0x3d0] sm:$0xff] %v422_v58 }
  0x8f   : > { %425 = vst [vmem:[%s2494_s29 + $0x3d8] sm:$0xff] %v424_v59 }
  0x90   : > { %427 = vst [vmem:[%s2494_s29 + $0x3e0] sm:$0xff] %v426_v60 }
  0x91   : > { %429 = vst [vmem:[%s2494_s29 + $0x3e8] sm:$0xff] %v428_v61 }
  0x92   : > { %431 = vst [vmem:[%s2494_s29 + $0x3f0] sm:$0xff] %v430_v62 }
  0x93   : > { %433 = vst [vmem:[%s2494_s29 + $0x3f8] sm:$0xff] %v432_v63 }
  0x94 PF: > { %p1670_p8 = scmp.ge.s32.totalorder %s2419_s16, 1  ;;  %p446_p9 = scmp.lt.s32.totalorder %s2419_s16, 4 }
  0x96   : > { %p447_p10 = pnand %p1670_p8, %p446_p9 }
  0x97   : > { %s453_s30 = sand.u32 (!%p447_p10), 1, %s2403_s12  }
  0x98   : > { %450 = sbr.rel (%p447_p10) target bundleno = 444 (0x1bc), region = 51  ;;  %s1671_s4 = sshll.u32 (!%p447_p10), %s453_s30, 10 }
  0x99   : > { %s2754_s5 = scalar_lea.vmem (!%p447_p10), [#allocation2], %s1671_s4  ;;  %s1673_s4 = sshll.u32 (!%p447_p10), %s2411_s14, 2 }
  0x9a   : > { %p494_p11 = scmp.lt.s32.totalorder (!%p447_p10), %s1673_s4, 11  ;;  %s1672_s8 = sshll.u32 (!%p447_p10), %s453_s30, 5 }
  0x9b   : > { %s3070_s9 = scalar_lea.vmem (!%p447_p10), [#allocation3], %s1672_s8 }
  0x9d   : > { %v1804_v0 = vld [vmem:[%s2754_s5 + $0xe0] sm:$0xf]  ;;  %v2242_v1 = vld [vmem:[%s2754_s5 + $0xec] sm:$0xf0]  ;;  %s3115_s4 = smov (!%p494_p11, %s1673_s4), 11  ;;  %s2340_s12 = sshll.u32 (%p2476_p6), %s2411_s14, 4 }
  0x9e   : > { %v1932_v2 = vld [vmem:[%s2754_s5 + $0x1e0] sm:$0xf]  ;;  %v1805_v3 = vor.u32 %v2242_v1, %v1804_v0  ;;  %v2274_v4 = vld [vmem:[%s2754_s5 + $0x1ec] sm:$0xf0]  ;;  %s496_s7 = scalar_lea.vmem %s3105_s2, %s3115_s4  ;;  %s1546_s11 = scalar_lea.vmem (%p2476_p6), %s3106_s3, %s2340_s12 }
  0x9f   : > { %v2060_v5 = vld [vmem:[%s2754_s5 + $0x2e0] sm:$0xf]  ;;  %v2306_v6 = vld [vmem:[%s2754_s5 + $0x2ec] sm:$0xf0]  ;;  %v1933_v7 = vor.u32 %v2274_v4, %v1932_v2 }
  0xa0   : > { %v2061_v8 = vor.u32 %v2306_v6, %v2060_v5  ;;  %v2188_v9 = vld [vmem:[%s2754_s5 + $0x3e0] sm:$0xf]  ;;  %v2338_v10 = vld [vmem:[%s2754_s5 + $0x3ec] sm:$0xf0]  ;;  %1302 = vmatpush.bf16.msra.mxu0 %v1805_v3 }
  0xa1   : > { %v1788_v11 = vld [vmem:[%s2754_s5 + $0xc0] sm:$0xf]  ;;  %v2189_v12 = vor.u32 %v2338_v10, %v2188_v9  ;;  %v2238_v13 = vld [vmem:[%s2754_s5 + $0xcc] sm:$0xf0]  ;;  %1316 = vmatpush.bf16.msra.mxu1 %v1933_v7 }
  0xa2   : > { %v1916_v14 = vld [vmem:[%s2754_s5 + $0x1c0] sm:$0xf]  ;;  %v2270_v15 = vld [vmem:[%s2754_s5 + $0x1cc] sm:$0xf0]  ;;  %1330 = vmatpush.bf16.msra.mxu2 %v2061_v8  ;;  %v1789_v16 = vor.u32 %v2238_v13, %v1788_v11 }
  0xa3   : > { %v1917_v17 = vor.u32 %v2270_v15, %v1916_v14  ;;  %v2044_v18 = vld [vmem:[%s2754_s5 + $0x2c0] sm:$0xf]  ;;  %v2302_v19 = vld [vmem:[%s2754_s5 + $0x2cc] sm:$0xf0]  ;;  %1344 = vmatpush.bf16.msra.mxu3 %v2189_v12 }
  0xa4   : > { %v2172_v20 = vld [vmem:[%s2754_s5 + $0x3c0] sm:$0xf]  ;;  %v2045_v21 = vor.u32 %v2302_v19, %v2044_v18  ;;  %v2334_v22 = vld [vmem:[%s2754_s5 + $0x3cc] sm:$0xf0]  ;;  %1303 = vmatpush.bf16.msra.mxu0 %v1789_v16 }
  0xa5   : > { %v1772_v23 = vld [vmem:[%s2754_s5 + $0xa0] sm:$0xf]  ;;  %v2234_v24 = vld [vmem:[%s2754_s5 + $0xac] sm:$0xf0]  ;;  %v2173_v25 = vor.u32 %v2334_v22, %v2172_v20  ;;  %1317 = vmatpush.bf16.msra.mxu1 %v1917_v17 }
  0xa6   : > { %v1900_v26 = vld [vmem:[%s2754_s5 + $0x1a0] sm:$0xf]  ;;  %v2266_v27 = vld [vmem:[%s2754_s5 + $0x1ac] sm:$0xf0]  ;;  %v1773_v29 = vor.u32 %v2234_v24, %v1772_v23  ;;  %1331 = vmatpush.bf16.msra.mxu2 %v2045_v21 }
  0xa7   : > { %v2028_v28 = vld [vmem:[%s2754_s5 + $0x2a0] sm:$0xf]  ;;  %v2298_v30 = vld [vmem:[%s2754_s5 + $0x2ac] sm:$0xf0]  ;;  %v1901_v33 = vor.u32 %v2266_v27, %v1900_v26  ;;  %1345 = vmatpush.bf16.msra.mxu3 %v2173_v25 }
  0xa8   : > { %v2156_v31 = vld [vmem:[%s2754_s5 + $0x3a0] sm:$0xf]  ;;  %v2330_v32 = vld [vmem:[%s2754_s5 + $0x3ac] sm:$0xf0]  ;;  %v2029_v34 = vor.u32 %v2298_v30, %v2028_v28  ;;  %1304 = vmatpush.bf16.msra.mxu0 %v1773_v29  ;;  %v2240_v28 = vld [vmem:[%s2754_s5 + $0xe4] sm:$0xf] }
  0xa9   : > { %v1756_v35 = vld [vmem:[%s2754_s5 + $0x80] sm:$0xf]  ;;  %v2230_v36 = vld [vmem:[%s2754_s5 + $0x8c] sm:$0xf0]  ;;  %v2157_v38 = vor.u32 %v2330_v32, %v2156_v31  ;;  %1318 = vmatpush.bf16.msra.mxu1 %v1901_v33  ;;  %v1806_v29 = vld [vmem:[%s2754_s5 + $0xf0] sm:$0xf0] }
  0xaa   : > { %v1884_v37 = vld [vmem:[%s2754_s5 + $0x180] sm:$0xf]  ;;  %v2262_v39 = vld [vmem:[%s2754_s5 + $0x18c] sm:$0xf0]  ;;  %v1757_v44 = vor.u32 %v2230_v36, %v1756_v35  ;;  %1332 = vmatpush.bf16.msra.mxu2 %v2029_v34  ;;  %v2272_v30 = vld [vmem:[%s2754_s5 + $0x1e4] sm:$0xf] }
  0xab   : > { %v2012_v40 = vld [vmem:[%s2754_s5 + $0x280] sm:$0xf]  ;;  %v2294_v41 = vld [vmem:[%s2754_s5 + $0x28c] sm:$0xf0]  ;;  %v1885_v45 = vor.u32 %v2262_v39, %v1884_v37  ;;  %1346 = vmatpush.bf16.msra.mxu3 %v2157_v38  ;;  %v1934_v32 = vld [vmem:[%s2754_s5 + $0x1f0] sm:$0xf0] }
  0xac   : > { %v2140_v42 = vld [vmem:[%s2754_s5 + $0x380] sm:$0xf]  ;;  %v2326_v43 = vld [vmem:[%s2754_s5 + $0x38c] sm:$0xf0]  ;;  %v2013_v46 = vor.u32 %v2294_v41, %v2012_v40  ;;  %1305 = vmatpush.bf16.msra.mxu0 %v1757_v44  ;;  %v2304_v33 = vld [vmem:[%s2754_s5 + $0x2e4] sm:$0xf]  ;;  %v1809_v40 = vor.u32 %v2240_v28, %v1806_v29 }
  0xad   : > { %v1740_v47 = vld [vmem:[%s2754_s5 + $0x60] sm:$0xf]  ;;  %v2226_v48 = vld [vmem:[%s2754_s5 + $0x6c] sm:$0xf0]  ;;  %v2141_v50 = vor.u32 %v2326_v43, %v2140_v42  ;;  %1319 = vmatpush.bf16.msra.mxu1 %v1885_v45  ;;  %v2062_v34 = vld [vmem:[%s2754_s5 + $0x2f0] sm:$0xf0]  ;;  %v1937_v43 = vor.u32 %v2272_v30, %v1934_v32 }
  0xae   : > { %v1868_v49 = vld [vmem:[%s2754_s5 + $0x160] sm:$0xf]  ;;  %v2258_v51 = vld [vmem:[%s2754_s5 + $0x16c] sm:$0xf0]  ;;  %v1741_v56 = vor.u32 %v2226_v48, %v1740_v47  ;;  %1333 = vmatpush.bf16.msra.mxu2 %v2013_v46  ;;  %v2336_v37 = vld [vmem:[%s2754_s5 + $0x3e4] sm:$0xf]  ;;  %v2065_v44 = vor.u32 %v2304_v33, %v2062_v34 }
  0xaf   : > { %v1996_v52 = vld [vmem:[%s2754_s5 + $0x260] sm:$0xf]  ;;  %v2290_v53 = vld [vmem:[%s2754_s5 + $0x26c] sm:$0xf0]  ;;  %v1869_v57 = vor.u32 %v2258_v51, %v1868_v49  ;;  %1347 = vmatpush.bf16.msra.mxu3 %v2141_v50  ;;  %v2190_v38 = vld [vmem:[%s2754_s5 + $0x3f0] sm:$0xf0] }
  0xb0   : > { %v2124_v54 = vld [vmem:[%s2754_s5 + $0x360] sm:$0xf]  ;;  %v2322_v55 = vld [vmem:[%s2754_s5 + $0x36c] sm:$0xf0]  ;;  %v1997_v58 = vor.u32 %v2290_v53, %v1996_v52  ;;  %1306 = vmatpush.bf16.msra.mxu0 %v1741_v56  ;;  %v2236_v41 = vld [vmem:[%s2754_s5 + $0xc4] sm:$0xf]  ;;  %v2193_v48 = vor.u32 %v2336_v37, %v2190_v38 }
  0xb1   : > { %v1724_v59 = vld [vmem:[%s2754_s5 + $0x40] sm:$0xf]  ;;  %v2222_v60 = vld [vmem:[%s2754_s5 + $0x4c] sm:$0xf0]  ;;  %v2125_v62 = vor.u32 %v2322_v55, %v2124_v54  ;;  %1320 = vmatpush.bf16.msra.mxu1 %v1869_v57  ;;  %v1790_v42 = vld [vmem:[%s2754_s5 + $0xd0] sm:$0xf0] }
  0xb2   : > { %v1852_v61 = vld [vmem:[%s2754_s5 + $0x140] sm:$0xf]  ;;  %v2254_v63 = vld [vmem:[%s2754_s5 + $0x14c] sm:$0xf0]  ;;  %v1725_v4 = vor.u32 %v2222_v60, %v1724_v59  ;;  %1334 = vmatpush.bf16.msra.mxu2 %v1997_v58  ;;  %v2268_v45 = vld [vmem:[%s2754_s5 + $0x1c4] sm:$0xf]  ;;  %v1793_v55 = vor.u32 %v2236_v41, %v1790_v42 }
  0xb3   : > { %v1980_v0 = vld [vmem:[%s2754_s5 + $0x240] sm:$0xf]  ;;  %v2286_v1 = vld [vmem:[%s2754_s5 + $0x24c] sm:$0xf0]  ;;  %v1853_v5 = vor.u32 %v2254_v63, %v1852_v61  ;;  %1348 = vmatpush.bf16.msra.mxu3 %v2125_v62  ;;  %v1918_v46 = vld [vmem:[%s2754_s5 + $0x1d0] sm:$0xf0] }
  0xb4   : > { %v2108_v2 = vld [vmem:[%s2754_s5 + $0x340] sm:$0xf]  ;;  %v2318_v3 = vld [vmem:[%s2754_s5 + $0x34c] sm:$0xf0]  ;;  %v1981_v6 = vor.u32 %v2286_v1, %v1980_v0  ;;  %1307 = vmatpush.bf16.msra.mxu0 %v1725_v4  ;;  %v2300_v47 = vld [vmem:[%s2754_s5 + $0x2c4] sm:$0xf]  ;;  %v1921_v60 = vor.u32 %v2268_v45, %v1918_v46 }
  0xb5   : > { %v1708_v7 = vld [vmem:[%s2754_s5 + $0x20] sm:$0xf]  ;;  %v2218_v8 = vld [vmem:[%s2754_s5 + $0x2c] sm:$0xf0]  ;;  %v2109_v10 = vor.u32 %v2318_v3, %v2108_v2  ;;  %1321 = vmatpush.bf16.msra.mxu1 %v1853_v5  ;;  %v2046_v49 = vld [vmem:[%s2754_s5 + $0x2d0] sm:$0xf0] }
  0xb6   : > { %v1836_v9 = vld [vmem:[%s2754_s5 + $0x120] sm:$0xf]  ;;  %v2250_v11 = vld [vmem:[%s2754_s5 + $0x12c] sm:$0xf0]  ;;  %v1709_v16 = vor.u32 %v2218_v8, %v1708_v7  ;;  %1335 = vmatpush.bf16.msra.mxu2 %v1981_v6  ;;  %v2332_v50 = vld [vmem:[%s2754_s5 + $0x3c4] sm:$0xf]  ;;  %v2049_v61 = vor.u32 %v2300_v47, %v2046_v49 }
  0xb7   : > { %v1964_v12 = vld [vmem:[%s2754_s5 + $0x220] sm:$0xf]  ;;  %v2282_v13 = vld [vmem:[%s2754_s5 + $0x22c] sm:$0xf0]  ;;  %v1837_v19 = vor.u32 %v2250_v11, %v1836_v9  ;;  %1349 = vmatpush.bf16.msra.mxu3 %v2109_v10  ;;  %v2174_v51 = vld [vmem:[%s2754_s5 + $0x3d0] sm:$0xf0] }
  0xb8   : > { %v2092_v14 = vld [vmem:[%s2754_s5 + $0x320] sm:$0xf]  ;;  %v2314_v15 = vld [vmem:[%s2754_s5 + $0x32c] sm:$0xf0]  ;;  %v1965_v20 = vor.u32 %v2282_v13, %v1964_v12  ;;  %1308 = vmatpush.bf16.msra.mxu0 %v1709_v16  ;;  %v2232_v52 = vld [vmem:[%s2754_s5 + $0xa4] sm:$0xf]  ;;  %v2177_v1 = vor.u32 %v2332_v50, %v2174_v51 }
  0xb9   : > { %v1692_v17 = vld [vmem:[%s2754_s5] sm:$0xf]  ;;  %v2214_v18 = vld [vmem:[%s2754_s5 + $0xc] sm:$0xf0]  ;;  %v2093_v24 = vor.u32 %v2314_v15, %v2092_v14  ;;  %1322 = vmatpush.bf16.msra.mxu1 %v1837_v19  ;;  %v1684_v53 = vld [vmem:[%s3103_s0 + $0x8] sm:$0xf] }
  0xba   : > { %v1820_v21 = vld [vmem:[%s2754_s5 + $0x100] sm:$0xf]  ;;  %v2246_v22 = vld [vmem:[%s2754_s5 + $0x10c] sm:$0xf0]  ;;  %v1693_v31 = vor.u32 %v2214_v18, %v1692_v17  ;;  %1336 = vmatpush.bf16.msra.mxu2 %v1965_v20  ;;  %v2211_v54 = vld [vmem:[%s3103_s0 + $0x14] sm:$0xf0] }
  0xbb   : > { %v1948_v23 = vld [vmem:[%s2754_s5 + $0x200] sm:$0xf]  ;;  %v2278_v25 = vld [vmem:[%s2754_s5 + $0x20c] sm:$0xf0]  ;;  %v1821_v35 = vor.u32 %v2246_v22, %v1820_v21  ;;  %1350 = vmatpush.bf16.msra.mxu3 %v2093_v24  ;;  %v1774_v56 = vld [vmem:[%s2754_s5 + $0xb0] sm:$0xf0]  ;;  %v2846_v59 = vor.u32 %v2211_v54, %v1684_v53 }
  0xbc   : > { %v2076_v26 = vld [vmem:[%s2754_s5 + $0x300] sm:$0xf]  ;;  %v2310_v27 = vld [vmem:[%s2754_s5 + $0x30c] sm:$0xf0]  ;;  %v1949_v36 = vor.u32 %v2278_v25, %v1948_v23  ;;  %1309 = vmatpush.bf16.msra.mxu0 %v1693_v31  ;;  %v2264_v57 = vld [vmem:[%s2754_s5 + $0x1a4] sm:$0xf]  ;;  %v1777_v9 = vor.u32 %v2232_v52, %v1774_v56 }
  0xbd   : > { %v2077_v39 = vor.u32 %v2310_v27, %v2076_v26  ;;  %1323 = vmatpush.bf16.msra.mxu1 %v1821_v35  ;;  %v1902_v58 = vld [vmem:[%s2754_s5 + $0x1b0] sm:$0xf0]  ;;  %v2296_v62 = vld [vmem:[%s2754_s5 + $0x2a4] sm:$0xf]  ;;  %v1676_v3 = vld [vmem:[%s3103_s0] sm:$0xf] }
  0xbe   : > { %1337 = vmatpush.bf16.msra.mxu2 %v1949_v36  ;;  %v2030_v63 = vld [vmem:[%s2754_s5 + $0x2b0] sm:$0xf0]  ;;  %v2328_v0 = vld [vmem:[%s2754_s5 + $0x3a4] sm:$0xf]  ;;  %v2210_v4 = vld [vmem:[%s3103_s0 + $0xc] sm:$0xf0]  ;;  %v1905_v12 = vor.u32 %v2264_v57, %v1902_v58 }
  0xbf   : > { %1351 = vmatpush.bf16.msra.mxu3 %v2077_v39  ;;  %v2158_v2 = vld [vmem:[%s2754_s5 + $0x3b0] sm:$0xf0]  ;;  %v2859_v5 = vor.u32 %v2210_v4, %v1676_v3  ;;  %v2209_v6 = vld [vmem:[%s3103_s0 + $0xc] sm:$0xf]  ;;  %v1686_v7 = vld [vmem:[%s3103_s0 + $0x18] sm:$0xf0]  ;;  %v2033_v13 = vor.u32 %v2296_v62, %v2030_v63 }
  0xc0   : > { %1358 = vmatpush.bf16.msrb.mxu0 %v1809_v40  ;;  %v2208_v8 = vld [vmem:[%s3103_s0 + $0x4] sm:$0xf]  ;;  %v2870_v10 = vor.u32 %v2209_v6, %v1686_v7  ;;  %v1678_v11 = vld [vmem:[%s3103_s0 + $0x10] sm:$0xf0]  ;;  %v2161_v18 = vor.u32 %v2328_v0, %v2158_v2 }
  0xc1   : > { %1372 = vmatpush.bf16.msrb.mxu1 %v1937_v43  ;;  %1338 = vmatmul.bf16.vlgmr.msra.gmra.mxu2 %v2846_v59  ;;  %v2228_v14 = vld [vmem:[%s2754_s5 + $0x84] sm:$0xf]  ;;  %v1758_v15 = vld [vmem:[%s2754_s5 + $0x90] sm:$0xf0]  ;;  %v2878_v17 = vor.u32 %v2208_v8, %v1678_v11  ;;  %v1812_v11 = vld [vmem:[%s2754_s5 + $0xe8] sm:$0xf] }
  0xc2   : > { %1386 = vmatpush.bf16.msrb.mxu2 %v2065_v44  ;;  %v2260_v16 = vld [vmem:[%s2754_s5 + $0x184] sm:$0xf]  ;;  %v1886_v19 = vld [vmem:[%s2754_s5 + $0x190] sm:$0xf0]  ;;  %1310 = vmatmul.bf16.vlgmr.msra.gmra.mxu0 %v2859_v5  ;;  %v1761_v24 = vor.u32 %v2228_v14, %v1758_v15  ;;  %v2275_v15 = vld [vmem:[%s2754_s5 + $0x1f4] sm:$0xf0] }
  0xc3   : > { %1400 = vmatpush.bf16.msrb.mxu3 %v2193_v48  ;;  %v2292_v20 = vld [vmem:[%s2754_s5 + $0x284] sm:$0xf]  ;;  %v2014_v21 = vld [vmem:[%s2754_s5 + $0x290] sm:$0xf0]  ;;  %1324 = vmatmul.bf16.vlgmr.msra.gmra.mxu1 %v2878_v17  ;;  %v1889_v25 = vor.u32 %v2260_v16, %v1886_v19  ;;  %v2068_v16 = vld [vmem:[%s2754_s5 + $0x2e8] sm:$0xf] }
  0xc4   : > { %1359 = vmatpush.bf16.msrb.mxu0 %v1793_v55  ;;  %v2324_v22 = vld [vmem:[%s2754_s5 + $0x384] sm:$0xf]  ;;  %v2142_v23 = vld [vmem:[%s2754_s5 + $0x390] sm:$0xf0]  ;;  %1352 = vmatmul.bf16.vlgmr.msra.gmra.mxu3 %v2870_v10  ;;  %v2017_v26 = vor.u32 %v2292_v20, %v2014_v21  ;;  %v2196_v21 = vld [vmem:[%s2754_s5 + $0x3e8] sm:$0xf] }
  0xc5   : > { %1373 = vmatpush.bf16.msrb.mxu1 %v1921_v60  ;;  %v2224_v27 = vld [vmem:[%s2754_s5 + $0x64] sm:$0xf]  ;;  %v1742_v28 = vld [vmem:[%s2754_s5 + $0x70] sm:$0xf0]  ;;  %v2145_v30 = vor.u32 %v2324_v22, %v2142_v23  ;;  %v2339_v22 = vld [vmem:[%s2754_s5 + $0x3f4] sm:$0xf0] }
  0xc6   : > { %1387 = vmatpush.bf16.msrb.mxu2 %v2049_v61  ;;  %v2256_v29 = vld [vmem:[%s2754_s5 + $0x164] sm:$0xf]  ;;  %v1870_v31 = vld [vmem:[%s2754_s5 + $0x170] sm:$0xf0]  ;;  %v1745_v36 = vor.u32 %v2224_v27, %v1742_v28  ;;  %v1796_v27 = vld [vmem:[%s2754_s5 + $0xc8] sm:$0xf] }
  0xc7   : > { %1401 = vmatpush.bf16.msrb.mxu3 %v2177_v1  ;;  %v2288_v32 = vld [vmem:[%s2754_s5 + $0x264] sm:$0xf]  ;;  %v1998_v33 = vld [vmem:[%s2754_s5 + $0x270] sm:$0xf0]  ;;  %v1873_v37 = vor.u32 %v2256_v29, %v1870_v31  ;;  %v2239_v28 = vld [vmem:[%s2754_s5 + $0xd4] sm:$0xf0] }
  0xc8   : > { %1360 = vmatpush.bf16.msrb.mxu0 %v1777_v9  ;;  %v2320_v34 = vld [vmem:[%s2754_s5 + $0x364] sm:$0xf]  ;;  %v2126_v35 = vld [vmem:[%s2754_s5 + $0x370] sm:$0xf0]  ;;  %v2001_v38 = vor.u32 %v2288_v32, %v1998_v33  ;;  %v1924_v29 = vld [vmem:[%s2754_s5 + $0x1c8] sm:$0xf] }
  0xc9   : > { %1374 = vmatpush.bf16.msrb.mxu1 %v1905_v12  ;;  %v2220_v39 = vld [vmem:[%s2754_s5 + $0x44] sm:$0xf]  ;;  %v1726_v40 = vld [vmem:[%s2754_s5 + $0x50] sm:$0xf0]  ;;  %v2129_v42 = vor.u32 %v2320_v34, %v2126_v35  ;;  %v2243_v12 = vld [vmem:[%s2754_s5 + $0xf4] sm:$0xf0] }
  0xca   : > { %1388 = vmatpush.bf16.msrb.mxu2 %v2033_v13  ;;  %v2252_v41 = vld [vmem:[%s2754_s5 + $0x144] sm:$0xf]  ;;  %v1854_v43 = vld [vmem:[%s2754_s5 + $0x150] sm:$0xf0]  ;;  %v1729_v48 = vor.u32 %v2220_v39, %v1726_v40  ;;  %v1940_v13 = vld [vmem:[%s2754_s5 + $0x1e8] sm:$0xf] }
  0xcb   : > { %1402 = vmatpush.bf16.msrb.mxu3 %v2161_v18  ;;  %v2284_v44 = vld [vmem:[%s2754_s5 + $0x244] sm:$0xf]  ;;  %v1982_v45 = vld [vmem:[%s2754_s5 + $0x250] sm:$0xf0]  ;;  %v1857_v49 = vor.u32 %v2252_v41, %v1854_v43  ;;  %v2307_v18 = vld [vmem:[%s2754_s5 + $0x2f4] sm:$0xf0] }
  0xcc   : > { %1361 = vmatpush.bf16.msrb.mxu0 %v1761_v24  ;;  %v2316_v46 = vld [vmem:[%s2754_s5 + $0x344] sm:$0xf]  ;;  %v2110_v47 = vld [vmem:[%s2754_s5 + $0x350] sm:$0xf0]  ;;  %v1985_v50 = vor.u32 %v2284_v44, %v1982_v45  ;;  %v1813_v24 = vor.u32 %v2243_v12, %v1812_v11  ;;  %v2271_v31 = vld [vmem:[%s2754_s5 + $0x1d4] sm:$0xf0] }
  0xcd   : > { %1375 = vmatpush.bf16.msrb.mxu1 %v1889_v25  ;;  %v2216_v51 = vld [vmem:[%s2754_s5 + $0x24] sm:$0xf]  ;;  %v1710_v52 = vld [vmem:[%s2754_s5 + $0x30] sm:$0xf0]  ;;  %v2113_v54 = vor.u32 %v2316_v46, %v2110_v47  ;;  %v1941_v25 = vor.u32 %v2275_v15, %v1940_v13  ;;  %v2052_v32 = vld [vmem:[%s2754_s5 + $0x2c8] sm:$0xf] }
  0xce   : > { %1389 = vmatpush.bf16.msrb.mxu2 %v2017_v26  ;;  %v2248_v53 = vld [vmem:[%s2754_s5 + $0x124] sm:$0xf]  ;;  %v1838_v55 = vld [vmem:[%s2754_s5 + $0x130] sm:$0xf0]  ;;  %v1713_v61 = vor.u32 %v2216_v51, %v1710_v52  ;;  %v2069_v26 = vor.u32 %v2307_v18, %v2068_v16  ;;  %v2303_v33 = vld [vmem:[%s2754_s5 + $0x2d4] sm:$0xf0] }
  0xcf   : > { %1403 = vmatpush.bf16.msrb.mxu3 %v2145_v30  ;;  %v2280_v56 = vld [vmem:[%s2754_s5 + $0x224] sm:$0xf]  ;;  %v1966_v57 = vld [vmem:[%s2754_s5 + $0x230] sm:$0xf0]  ;;  %v1841_v0 = vor.u32 %v2248_v53, %v1838_v55  ;;  %v2197_v30 = vor.u32 %v2339_v22, %v2196_v21  ;;  %v2180_v34 = vld [vmem:[%s2754_s5 + $0x3c8] sm:$0xf] }
  0xd0   : > { %1362 = vmatpush.bf16.msrb.mxu0 %v1745_v36  ;;  %v2312_v58 = vld [vmem:[%s2754_s5 + $0x324] sm:$0xf]  ;;  %v2094_v60 = vld [vmem:[%s2754_s5 + $0x330] sm:$0xf0]  ;;  %v1969_v1 = vor.u32 %v2280_v56, %v1966_v57  ;;  %v2335_v35 = vld [vmem:[%s2754_s5 + $0x3d4] sm:$0xf0]  ;;  %v1797_v36 = vor.u32 %v2239_v28, %v1796_v27 }
  0xd1   : > { %1376 = vmatpush.bf16.msrb.mxu1 %v1873_v37  ;;  %v2212_v62 = vld [vmem:[%s2754_s5 + $0x4] sm:$0xf]  ;;  %v1694_v63 = vld [vmem:[%s2754_s5 + $0x10] sm:$0xf0]  ;;  %v2097_v6 = vor.u32 %v2312_v58, %v2094_v60  ;;  %v1925_v37 = vor.u32 %v2271_v31, %v1924_v29  ;;  %v1780_v39 = vld [vmem:[%s2754_s5 + $0xa8] sm:$0xf] }
  0xd2   : > { %1390 = vmatpush.bf16.msrb.mxu2 %v2001_v38  ;;  %v2244_v2 = vld [vmem:[%s2754_s5 + $0x104] sm:$0xf]  ;;  %v1822_v3 = vld [vmem:[%s2754_s5 + $0x110] sm:$0xf0]  ;;  %v1697_v14 = vor.u32 %v2212_v62, %v1694_v63  ;;  %v2053_v38 = vor.u32 %v2303_v33, %v2052_v32  ;;  %v2235_v40 = vld [vmem:[%s2754_s5 + $0xb4] sm:$0xf0] }
  0xd3   : > { %1404 = vmatpush.bf16.msrb.mxu3 %v2129_v42  ;;  %v2276_v4 = vld [vmem:[%s2754_s5 + $0x204] sm:$0xf]  ;;  %v1950_v7 = vld [vmem:[%s2754_s5 + $0x210] sm:$0xf0]  ;;  %v1825_v19 = vor.u32 %v2244_v2, %v1822_v3  ;;  %v1908_v41 = vld [vmem:[%s2754_s5 + $0x1a8] sm:$0xf]  ;;  %v2181_v42 = vor.u32 %v2335_v35, %v2180_v34 }
  0xd4   : > { %1363 = vmatpush.bf16.msrb.mxu0 %v1729_v48  ;;  %v2308_v8 = vld [vmem:[%s2754_s5 + $0x304] sm:$0xf]  ;;  %v2078_v9 = vld [vmem:[%s2754_s5 + $0x310] sm:$0xf0]  ;;  %v1953_v20 = vor.u32 %v2276_v4, %v1950_v7  ;;  %v2267_v43 = vld [vmem:[%s2754_s5 + $0x1b4] sm:$0xf0]  ;;  %v1781_v48 = vor.u32 %v2235_v40, %v1780_v39 }
  0xd5   : > { %1377 = vmatpush.bf16.msrb.mxu1 %v1857_v49  ;;  %v2081_v23 = vor.u32 %v2308_v8, %v2078_v9  ;;  %v2036_v44 = vld [vmem:[%s2754_s5 + $0x2a8] sm:$0xf]  ;;  %v2299_v45 = vld [vmem:[%s2754_s5 + $0x2b4] sm:$0xf0]  ;;  %v1909_v49 = vor.u32 %v2267_v43, %v1908_v41 }
  0xd6   : > { %1391 = vmatpush.bf16.msrb.mxu2 %v1985_v50  ;;  %v2164_v46 = vld [vmem:[%s2754_s5 + $0x3a8] sm:$0xf]  ;;  %v2331_v47 = vld [vmem:[%s2754_s5 + $0x3b4] sm:$0xf0]  ;;  %v2037_v50 = vor.u32 %v2299_v45, %v2036_v44 }
  0xd7   : > { %1405 = vmatpush.bf16.msrb.mxu3 %v2113_v54  ;;  %v1764_v51 = vld [vmem:[%s2754_s5 + $0x88] sm:$0xf]  ;;  %v2231_v52 = vld [vmem:[%s2754_s5 + $0x94] sm:$0xf0]  ;;  %v2165_v54 = vor.u32 %v2331_v47, %v2164_v46 }
  0xd8   : > { %1364 = vmatpush.bf16.msrb.mxu0 %v1713_v61  ;;  %v1892_v53 = vld [vmem:[%s2754_s5 + $0x188] sm:$0xf]  ;;  %v2263_v55 = vld [vmem:[%s2754_s5 + $0x194] sm:$0xf0]  ;;  %v1765_v61 = vor.u32 %v2231_v52, %v1764_v51  ;;  %v1942_v52 = vld [vmem:[%s2754_s5 + $0x1f8] sm:$0xf0] }
  0xd9   : > { %1378 = vmatpush.bf16.msrb.mxu1 %v1841_v0  ;;  %v2020_v56 = vld [vmem:[%s2754_s5 + $0x288] sm:$0xf]  ;;  %v2295_v57 = vld [vmem:[%s2754_s5 + $0x294] sm:$0xf0]  ;;  %v1893_v62 = vor.u32 %v2263_v55, %v1892_v53  ;;  %v2305_v53 = vld [vmem:[%s2754_s5 + $0x2ec] sm:$0xf] }
  0xda   : > { %1392 = vmatpush.bf16.msrb.mxu2 %v1969_v1  ;;  %v2148_v58 = vld [vmem:[%s2754_s5 + $0x388] sm:$0xf]  ;;  %v2327_v60 = vld [vmem:[%s2754_s5 + $0x394] sm:$0xf0]  ;;  %v2021_v63 = vor.u32 %v2295_v57, %v2020_v56  ;;  %v2337_v57 = vld [vmem:[%s2754_s5 + $0x3ec] sm:$0xf] }
  0xdb   : > { %1406 = vmatpush.bf16.msrb.mxu3 %v2097_v6  ;;  %v1748_v0 = vld [vmem:[%s2754_s5 + $0x68] sm:$0xf]  ;;  %v2227_v1 = vld [vmem:[%s2754_s5 + $0x74] sm:$0xf0]  ;;  %v2149_v3 = vor.u32 %v2327_v60, %v2148_v58  ;;  %v2198_v58 = vld [vmem:[%s2754_s5 + $0x3f8] sm:$0xf0] }
  0xdc   : > { %1365 = vmatpush.bf16.msrb.mxu0 %v1697_v14  ;;  %v1876_v2 = vld [vmem:[%s2754_s5 + $0x168] sm:$0xf]  ;;  %v2259_v4 = vld [vmem:[%s2754_s5 + $0x174] sm:$0xf0]  ;;  %v1749_v11 = vor.u32 %v2227_v1, %v1748_v0  ;;  %v2237_v0 = vld [vmem:[%s2754_s5 + $0xcc] sm:$0xf] }
  0xdd   : > { %1379 = vmatpush.bf16.msrb.mxu1 %v1825_v19  ;;  %v2004_v6 = vld [vmem:[%s2754_s5 + $0x268] sm:$0xf]  ;;  %v2291_v7 = vld [vmem:[%s2754_s5 + $0x274] sm:$0xf0]  ;;  %v1877_v12 = vor.u32 %v2259_v4, %v1876_v2  ;;  %v1798_v1 = vld [vmem:[%s2754_s5 + $0xd8] sm:$0xf0] }
  0xde   : > { %1393 = vmatpush.bf16.msrb.mxu2 %v1953_v20  ;;  %v2132_v8 = vld [vmem:[%s2754_s5 + $0x368] sm:$0xf]  ;;  %v2323_v9 = vld [vmem:[%s2754_s5 + $0x374] sm:$0xf0]  ;;  %v2005_v13 = vor.u32 %v2291_v7, %v2004_v6  ;;  %v2269_v2 = vld [vmem:[%s2754_s5 + $0x1cc] sm:$0xf] }
  0xdf   : > { %1407 = vmatpush.bf16.msrb.mxu3 %v2081_v23  ;;  %1366 = vmatmul.bf16.vlgmr.msrb.gmra.mxu0 %v2859_v5  ;;  %v1732_v14 = vld [vmem:[%s2754_s5 + $0x48] sm:$0xf]  ;;  %v2223_v15 = vld [vmem:[%s2754_s5 + $0x54] sm:$0xf0]  ;;  %v2133_v18 = vor.u32 %v2323_v9, %v2132_v8  ;;  %v1926_v4 = vld [vmem:[%s2754_s5 + $0x1d8] sm:$0xf0] }
  0xe0   : > { %1414 = vmatpush.bf16.msra.mxu0 %v1813_v24  ;;  %1380 = vmatmul.bf16.vlgmr.msrb.gmra.mxu1 %v2878_v17  ;;  %v1860_v16 = vld [vmem:[%s2754_s5 + $0x148] sm:$0xf]  ;;  %v2255_v19 = vld [vmem:[%s2754_s5 + $0x154] sm:$0xf0]  ;;  %v1733_v24 = vor.u32 %v2223_v15, %v1732_v14  ;;  %v2301_v6 = vld [vmem:[%s2754_s5 + $0x2cc] sm:$0xf] }
  0xe1   : > { %1428 = vmatpush.bf16.msra.mxu1 %v1941_v25  ;;  %1394 = vmatmul.bf16.vlgmr.msrb.gmra.mxu2 %v2846_v59  ;;  %v1988_v20 = vld [vmem:[%s2754_s5 + $0x248] sm:$0xf]  ;;  %v2287_v21 = vld [vmem:[%s2754_s5 + $0x254] sm:$0xf0]  ;;  %v1861_v25 = vor.u32 %v2255_v19, %v1860_v16  ;;  %v2054_v7 = vld [vmem:[%s2754_s5 + $0x2d8] sm:$0xf0] }
  0xe2   : > { %1442 = vmatpush.bf16.msra.mxu2 %v2069_v26  ;;  %1408 = vmatmul.bf16.vlgmr.msrb.gmra.mxu3 %v2870_v10  ;;  %v2116_v22 = vld [vmem:[%s2754_s5 + $0x348] sm:$0xf]  ;;  %v2319_v23 = vld [vmem:[%s2754_s5 + $0x354] sm:$0xf0]  ;;  %v1989_v26 = vor.u32 %v2287_v21, %v1988_v20  ;;  %v2333_v8 = vld [vmem:[%s2754_s5 + $0x3cc] sm:$0xf] }
  0xe3   : > { %1456 = vmatpush.bf16.msra.mxu3 %v2197_v30  ;;  %v1716_v27 = vld [vmem:[%s2754_s5 + $0x28] sm:$0xf]  ;;  %v2219_v28 = vld [vmem:[%s2754_s5 + $0x34] sm:$0xf0]  ;;  %v2117_v30 = vor.u32 %v2319_v23, %v2116_v22  ;;  %v2182_v9 = vld [vmem:[%s2754_s5 + $0x3d8] sm:$0xf0] }
  0xe4   : > { %1415 = vmatpush.bf16.msra.mxu0 %v1797_v36  ;;  %v1844_v29 = vld [vmem:[%s2754_s5 + $0x128] sm:$0xf]  ;;  %v2251_v31 = vld [vmem:[%s2754_s5 + $0x134] sm:$0xf0]  ;;  %v1717_v36 = vor.u32 %v2219_v28, %v1716_v27  ;;  %v2233_v14 = vld [vmem:[%s2754_s5 + $0xac] sm:$0xf] }
  0xe5   : > { %1429 = vmatpush.bf16.msra.mxu1 %v1925_v37  ;;  %v1972_v32 = vld [vmem:[%s2754_s5 + $0x228] sm:$0xf]  ;;  %v2283_v33 = vld [vmem:[%s2754_s5 + $0x234] sm:$0xf0]  ;;  %v1845_v39 = vor.u32 %v2251_v31, %v1844_v29  ;;  %v1782_v15 = vld [vmem:[%s2754_s5 + $0xb8] sm:$0xf0] }
  0xe6   : > { %1443 = vmatpush.bf16.msra.mxu2 %v2053_v38  ;;  %v2100_v34 = vld [vmem:[%s2754_s5 + $0x328] sm:$0xf]  ;;  %v2315_v35 = vld [vmem:[%s2754_s5 + $0x334] sm:$0xf0]  ;;  %v1973_v40 = vor.u32 %v2283_v33, %v1972_v32  ;;  %v2265_v16 = vld [vmem:[%s2754_s5 + $0x1ac] sm:$0xf] }
  0xe7   : > { %1457 = vmatpush.bf16.msra.mxu3 %v2181_v42  ;;  %v1700_v37 = vld [vmem:[%s2754_s5 + $0x8] sm:$0xf]  ;;  %v2215_v38 = vld [vmem:[%s2754_s5 + $0x14] sm:$0xf0]  ;;  %v2101_v44 = vor.u32 %v2315_v35, %v2100_v34  ;;  %v1910_v19 = vld [vmem:[%s2754_s5 + $0x1b8] sm:$0xf0] }
  0xe8   : > { %1416 = vmatpush.bf16.msra.mxu0 %v1781_v48  ;;  %v1828_v41 = vld [vmem:[%s2754_s5 + $0x108] sm:$0xf]  ;;  %v2247_v42 = vld [vmem:[%s2754_s5 + $0x114] sm:$0xf0]  ;;  %v2241_v48 = vld [vmem:[%s2754_s5 + $0xec] sm:$0xf]  ;;  %v1701_v51 = vor.u32 %v2215_v38, %v1700_v37 }
  0xe9   : > { %1430 = vmatpush.bf16.msra.mxu1 %v1909_v49  ;;  %v1956_v43 = vld [vmem:[%s2754_s5 + $0x208] sm:$0xf]  ;;  %v2279_v45 = vld [vmem:[%s2754_s5 + $0x214] sm:$0xf0]  ;;  %v1814_v49 = vld [vmem:[%s2754_s5 + $0xf8] sm:$0xf0]  ;;  %v1829_v55 = vor.u32 %v2247_v42, %v1828_v41 }
  0xea   : > { %1444 = vmatpush.bf16.msra.mxu2 %v2037_v50  ;;  %v2084_v46 = vld [vmem:[%s2754_s5 + $0x308] sm:$0xf]  ;;  %v2311_v47 = vld [vmem:[%s2754_s5 + $0x314] sm:$0xf0]  ;;  %v2273_v50 = vld [vmem:[%s2754_s5 + $0x1ec] sm:$0xf]  ;;  %v1957_v56 = vor.u32 %v2279_v45, %v1956_v43 }
  0xeb   : > { %1458 = vmatpush.bf16.msra.mxu3 %v2165_v54  ;;  %v2070_v54 = vld [vmem:[%s2754_s5 + $0x2f8] sm:$0xf0]  ;;  %v2085_v60 = vor.u32 %v2311_v47, %v2084_v46  ;;  %v2297_v20 = vld [vmem:[%s2754_s5 + $0x2ac] sm:$0xf] }
  0xec   : > { %1417 = vmatpush.bf16.msra.mxu0 %v1765_v61  ;;  %v1817_v61 = vor.u32 %v2241_v48, %v1814_v49  ;;  %v2038_v21 = vld [vmem:[%s2754_s5 + $0x2b8] sm:$0xf0]  ;;  %v2329_v22 = vld [vmem:[%s2754_s5 + $0x3ac] sm:$0xf] }
  0xed   : > { %1431 = vmatpush.bf16.msra.mxu1 %v1893_v62  ;;  %v1945_v62 = vor.u32 %v2273_v50, %v1942_v52  ;;  %v2166_v23 = vld [vmem:[%s2754_s5 + $0x3b8] sm:$0xf0]  ;;  %v2229_v27 = vld [vmem:[%s2754_s5 + $0x8c] sm:$0xf] }
  0xee   : > { %1445 = vmatpush.bf16.msra.mxu2 %v2021_v63  ;;  %v2073_v63 = vor.u32 %v2305_v53, %v2070_v54  ;;  %v1766_v28 = vld [vmem:[%s2754_s5 + $0x98] sm:$0xf0]  ;;  %v2261_v29 = vld [vmem:[%s2754_s5 + $0x18c] sm:$0xf] }
  0xef   : > { %1459 = vmatpush.bf16.msra.mxu3 %v2149_v3  ;;  %v2201_v3 = vor.u32 %v2337_v57, %v2198_v58  ;;  %v1894_v31 = vld [vmem:[%s2754_s5 + $0x198] sm:$0xf0]  ;;  %v2293_v32 = vld [vmem:[%s2754_s5 + $0x28c] sm:$0xf] }
  0xf0   : > { %1418 = vmatpush.bf16.msra.mxu0 %v1749_v11  ;;  %v1801_v11 = vor.u32 %v2237_v0, %v1798_v1  ;;  %v2022_v33 = vld [vmem:[%s2754_s5 + $0x298] sm:$0xf0]  ;;  %v2325_v34 = vld [vmem:[%s2754_s5 + $0x38c] sm:$0xf]  ;;  %v1897_v37 = vor.u32 %v2261_v29, %v1894_v31 }
  0xf1   : > { %1432 = vmatpush.bf16.msra.mxu1 %v1877_v12  ;;  %v1929_v12 = vor.u32 %v2269_v2, %v1926_v4  ;;  %v2150_v35 = vld [vmem:[%s2754_s5 + $0x398] sm:$0xf0]  ;;  %v2025_v38 = vor.u32 %v2293_v32, %v2022_v33  ;;  %v2257_v41 = vld [vmem:[%s2754_s5 + $0x16c] sm:$0xf]  ;;  %v3064_v32 = vld [vmem:[%s496_s7] sm:$0xf] }
  0xf2   : > { %1446 = vmatpush.bf16.msra.mxu2 %v2005_v13  ;;  %v2057_v13 = vor.u32 %v2301_v6, %v2054_v7  ;;  %v2153_v42 = vor.u32 %v2325_v34, %v2150_v35  ;;  %v1878_v43 = vld [vmem:[%s2754_s5 + $0x178] sm:$0xf0]  ;;  %v2321_v46 = vld [vmem:[%s2754_s5 + $0x36c] sm:$0xf]  ;;  %v635_v35 = vperm.slane %v3064_v32, 1 }
  0xf3   : > { %1460 = vmatpush.bf16.msra.mxu3 %v2133_v18  ;;  %v2185_v18 = vor.u32 %v2333_v8, %v2182_v9  ;;  %v2006_v45 = vld [vmem:[%s2754_s5 + $0x278] sm:$0xf0]  ;;  %v1881_v49 = vor.u32 %v2257_v41, %v1878_v43  ;;  %v2253_v53 = vld [vmem:[%s2754_s5 + $0x14c] sm:$0xf] }
  0xf4   : > { %1419 = vmatpush.bf16.msra.mxu0 %v1733_v24  ;;  %v1785_v24 = vor.u32 %v2233_v14, %v1782_v15  ;;  %v2134_v47 = vld [vmem:[%s2754_s5 + $0x378] sm:$0xf0]  ;;  %v2317_v58 = vld [vmem:[%s2754_s5 + $0x34c] sm:$0xf] }
  0xf5   : > { %1433 = vmatpush.bf16.msra.mxu1 %v1861_v25  ;;  %v1913_v25 = vor.u32 %v2265_v16, %v1910_v19  ;;  %v1734_v52 = vld [vmem:[%s2754_s5 + $0x58] sm:$0xf0]  ;;  %v2137_v54 = vor.u32 %v2321_v46, %v2134_v47  ;;  %v2217_v0 = vld [vmem:[%s2754_s5 + $0x2c] sm:$0xf] }
  0xf6   : > { %1447 = vmatpush.bf16.msra.mxu2 %v1989_v26  ;;  %v2041_v26 = vor.u32 %v2297_v20, %v2038_v21  ;;  %v1990_v57 = vld [vmem:[%s2754_s5 + $0x258] sm:$0xf0]  ;;  %v2249_v2 = vld [vmem:[%s2754_s5 + $0x12c] sm:$0xf] }
  0xf7   : > { %1461 = vmatpush.bf16.msra.mxu3 %v2117_v30  ;;  %v2169_v30 = vor.u32 %v2329_v22, %v2166_v23  ;;  %v1718_v1 = vld [vmem:[%s2754_s5 + $0x38] sm:$0xf0]  ;;  %v2281_v6 = vld [vmem:[%s2754_s5 + $0x22c] sm:$0xf] }
  0xf8   : > { %1420 = vmatpush.bf16.msra.mxu0 %v1717_v36  ;;  %v1769_v36 = vor.u32 %v2229_v27, %v1766_v28  ;;  %v1846_v4 = vld [vmem:[%s2754_s5 + $0x138] sm:$0xf0]  ;;  %v2313_v8 = vld [vmem:[%s2754_s5 + $0x32c] sm:$0xf] }
  0xf9   : > { %1434 = vmatpush.bf16.msra.mxu1 %v1845_v39  ;;  %v2225_v39 = vld [vmem:[%s2754_s5 + $0x6c] sm:$0xf]  ;;  %v1974_v7 = vld [vmem:[%s2754_s5 + $0x238] sm:$0xf0] }
  0xfa   : > { %1448 = vmatpush.bf16.msra.mxu2 %v1973_v40  ;;  %v1750_v40 = vld [vmem:[%s2754_s5 + $0x78] sm:$0xf0]  ;;  %v2213_v14 = vld [vmem:[%s2754_s5 + $0xc] sm:$0xf] }
  0xfb   : > { %1462 = vmatpush.bf16.msra.mxu3 %v2101_v44  ;;  %v2289_v44 = vld [vmem:[%s2754_s5 + $0x26c] sm:$0xf]  ;;  %v1753_v48 = vor.u32 %v2225_v39, %v1750_v40  ;;  %v2102_v9 = vld [vmem:[%s2754_s5 + $0x338] sm:$0xf0] }
  0xfc   : > { %1421 = vmatpush.bf16.msra.mxu0 %v1701_v51  ;;  %v2009_v50 = vor.u32 %v2289_v44, %v2006_v45  ;;  %v2221_v51 = vld [vmem:[%s2754_s5 + $0x4c] sm:$0xf]  ;;  %v1702_v15 = vld [vmem:[%s2754_s5 + $0x18] sm:$0xf0] }
  0xfd   : > { %1435 = vmatpush.bf16.msra.mxu1 %v1829_v55  ;;  %v1862_v55 = vld [vmem:[%s2754_s5 + $0x158] sm:$0xf0]  ;;  %v2245_v16 = vld [vmem:[%s2754_s5 + $0x10c] sm:$0xf] }
  0xfe   : > { %1449 = vmatpush.bf16.msra.mxu2 %v1957_v56  ;;  %v2285_v56 = vld [vmem:[%s2754_s5 + $0x24c] sm:$0xf]  ;;  %v1830_v19 = vld [vmem:[%s2754_s5 + $0x118] sm:$0xf0] }
  0xff   : > { %1463 = vmatpush.bf16.msra.mxu3 %v2085_v60  ;;  %1422 = vmatmul.bf16.vlgmr.msra.gmra.mxu0 %v2859_v5  ;;  %v2118_v60 = vld [vmem:[%s2754_s5 + $0x358] sm:$0xf0]  ;;  %v2277_v20 = vld [vmem:[%s2754_s5 + $0x20c] sm:$0xf] }
 0x100   : > { %1470 = vmatpush.bf16.msrb.mxu0 %v1817_v61  ;;  %1436 = vmatmul.bf16.vlgmr.msra.gmra.mxu1 %v2878_v17  ;;  %v1737_v61 = vor.u32 %v2221_v51, %v1734_v52  ;;  %v1958_v21 = vld [vmem:[%s2754_s5 + $0x218] sm:$0xf0]  ;;  %v2309_v22 = vld [vmem:[%s2754_s5 + $0x30c] sm:$0xf] }
 0x101   : > { %1484 = vmatpush.bf16.msrb.mxu1 %v1945_v62  ;;  %1450 = vmatmul.bf16.vlgmr.msra.gmra.mxu2 %v2846_v59  ;;  %v1865_v62 = vor.u32 %v2253_v53, %v1862_v55  ;;  %v2086_v23 = vld [vmem:[%s2754_s5 + $0x318] sm:$0xf0] }
 0x102   : > { %1498 = vmatpush.bf16.msrb.mxu2 %v2073_v63  ;;  %1464 = vmatmul.bf16.vlgmr.msra.gmra.mxu3 %v2870_v10  ;;  %v1993_v63 = vor.u32 %v2285_v56, %v1990_v57  ;;  %v2089_v27 = vor.u32 %v2309_v22, %v2086_v23 }
 0x103   : > { %1512 = vmatpush.bf16.msrb.mxu3 %v2201_v3  ;;  %v2121_v3 = vor.u32 %v2317_v58, %v2118_v60 }
 0x104   : > { %1471 = vmatpush.bf16.msrb.mxu0 %v1801_v11  ;;  %v1721_v11 = vor.u32 %v2217_v0, %v1718_v1 }
 0x105   : > { %1485 = vmatpush.bf16.msrb.mxu1 %v1929_v12  ;;  %v1849_v12 = vor.u32 %v2249_v2, %v1846_v4 }
 0x106   : > { %1499 = vmatpush.bf16.msrb.mxu2 %v2057_v13  ;;  %v1977_v13 = vor.u32 %v2281_v6, %v1974_v7  ;;  %v637_v6 = vperm.slane %v3064_v32, 3 }
 0x107   : > { %1513 = vmatpush.bf16.msrb.mxu3 %v2185_v18  ;;  %v2105_v18 = vor.u32 %v2313_v8, %v2102_v9 }
 0x108   : > { %1472 = vmatpush.bf16.msrb.mxu0 %v1785_v24  ;;  %v1705_v24 = vor.u32 %v2213_v14, %v1702_v15 }
 0x109   : > { %1486 = vmatpush.bf16.msrb.mxu1 %v1913_v25  ;;  %v1833_v25 = vor.u32 %v2245_v16, %v1830_v19 }
 0x10a   : > { %1500 = vmatpush.bf16.msrb.mxu2 %v2041_v26  ;;  %v1961_v26 = vor.u32 %v2277_v20, %v1958_v21 }
 0x10b   : > { %1514 = vmatpush.bf16.msrb.mxu3 %v2169_v30 }
 0x10c   : > { %1473 = vmatpush.bf16.msrb.mxu0 %v1769_v36 }
 0x10d   : > { %1487 = vmatpush.bf16.msrb.mxu1 %v1897_v37 }
 0x10e   : > { %1501 = vmatpush.bf16.msrb.mxu2 %v2025_v38 }
 0x10f   : > { %1515 = vmatpush.bf16.msrb.mxu3 %v2153_v42 }
 0x110   : > { %1474 = vmatpush.bf16.msrb.mxu0 %v1753_v48 }
 0x111   : > { %1488 = vmatpush.bf16.msrb.mxu1 %v1881_v49 }
 0x112   : > { %1502 = vmatpush.bf16.msrb.mxu2 %v2009_v50 }
 0x113   : > { %1516 = vmatpush.bf16.msrb.mxu3 %v2137_v54 }
 0x114   : > { %1475 = vmatpush.bf16.msrb.mxu0 %v1737_v61 }
 0x115   : > { %1489 = vmatpush.bf16.msrb.mxu1 %v1865_v62 }
 0x116   : > { %1503 = vmatpush.bf16.msrb.mxu2 %v1993_v63 }
 0x117   : > { %1517 = vmatpush.bf16.msrb.mxu3 %v2121_v3  ;;  %v636_v3 = vperm.slane %v3064_v32, 2 }
 0x118   : > { %1476 = vmatpush.bf16.msrb.mxu0 %v1721_v11 }
 0x119   : > { %1490 = vmatpush.bf16.msrb.mxu1 %v1849_v12 }
 0x11a   : > { %1504 = vmatpush.bf16.msrb.mxu2 %v1977_v13 }
 0x11b   : > { %1518 = vmatpush.bf16.msrb.mxu3 %v2105_v18 }
 0x11c   : > { %1477 = vmatpush.bf16.msrb.mxu0 %v1705_v24 }
 0x11d   : > { %1491 = vmatpush.bf16.msrb.mxu1 %v1833_v25 }
 0x11e   : > { %1505 = vmatpush.bf16.msrb.mxu2 %v1961_v26 }
 0x11f   : > { %1519 = vmatpush.bf16.msrb.mxu3 %v2089_v27  ;;  %1478 = vmatmul.bf16.vlgmr.msrb.gmra.mxu0 %v2859_v5 }
 0x120   : > { %1492 = vmatmul.bf16.vlgmr.msrb.gmra.mxu1 %v2878_v17 }
 0x121   : > { %1506 = vmatmul.bf16.vlgmr.msrb.gmra.mxu2 %v2846_v59  ;;  %v634_v59 = vperm.slane %v3064_v32, 0 }
 0x122   : > { %1520 = vmatmul.bf16.vlgmr.msrb.gmra.mxu3 %v2870_v10 }
 0x13f   : > { %v1311_v28 = vpop.f32.mrf.mxu0 }
 0x140   : > { %v1325_v29 = vpop.f32.mrf.mxu1  ;;  %v1312_v10 = vadd.f32 %v1311_v28, %v634_v59 }
 0x142   : > { %v1326_v36 = vadd.f32 %v1325_v29, %v1312_v10 }
 0x144   : > { %v1339_v30 = vpop.f32.mrf.mxu2 }
 0x145   : > { %v1340_v41 = vadd.f32 %v1339_v30, %v1326_v36 }
 0x147   : > { %v1353_v31 = vpop.f32.mrf.mxu3  ;;  %v1313_v5 = vpop.f32.mrf.mxu0 }
 0x148   : > { %v1327_v17 = vpop.f32.mrf.mxu1  ;;  %v1314_v42 = vadd.f32 %v1313_v5, %v634_v59  ;;  %v1354_v46 = vadd.f32 %v1353_v31, %v1340_v41 }
 0x14a   : > { %v1328_v47 = vadd.f32 %v1327_v17, %v1314_v42 }
 0x14c   : > { %v1341_v33 = vpop.f32.mrf.mxu2 }
 0x14d   : > { %v1342_v54 = vadd.f32 %v1341_v33, %v1328_v47 }
 0x14f   : > { %v1355_v34 = vpop.f32.mrf.mxu3 }
 0x150   : > { %v1356_v58 = vadd.f32 %v1355_v34, %v1342_v54 }
 0x15c   : > { %v1367_v37 = vpop.f32.mrf.mxu0 }
 0x15d   : > { %v1368_v38 = vadd.f32 %v1367_v37, %v635_v35  ;;  %v1381_v39 = vpop.f32.mrf.mxu1 }
 0x15f   : > { %v1382_v40 = vadd.f32 %v1381_v39, %v1368_v38 }
 0x164   : > { %v1395_v43 = vpop.f32.mrf.mxu2  ;;  %v1369_v49 = vpop.f32.mrf.mxu0 }
 0x165   : > { %v1396_v44 = vadd.f32 %v1395_v43, %v1382_v40  ;;  %v1409_v45 = vpop.f32.mrf.mxu3  ;;  %v1370_v50 = vadd.f32 %v1369_v49, %v635_v35  ;;  %v1383_v51 = vpop.f32.mrf.mxu1 }
 0x167   : > { %v1410_v48 = vadd.f32 %v1409_v45, %v1396_v44  ;;  %v1384_v53 = vadd.f32 %v1383_v51, %v1370_v50 }
 0x169   : > { %v1526_v52 = vpack.c.bf16 %v1410_v48, %v1354_v46 }
 0x16b   : > { %1530 = vst [vmem:[%s3070_s9] sm:$0xff] %v1526_v52 }
 0x16c   : > { %v1397_v55 = vpop.f32.mrf.mxu2 }
 0x16d   : > { %v1398_v56 = vadd.f32 %v1397_v55, %v1384_v53  ;;  %v1411_v57 = vpop.f32.mrf.mxu3 }
 0x16f   : > { %v1412_v60 = vadd.f32 %v1411_v57, %v1398_v56 }
 0x171   : > { %v1528_v61 = vpack.c.bf16 %v1412_v60, %v1356_v58 }
 0x172   : > { %v1559_v10 = vld [vmem:[%s3070_s9] sm:$0xff] (%p2476_p6) }
 0x173   : > { %1532 = vst [vmem:[%s3070_s9 + $0x10] sm:$0xff] %v1528_v61 }
 0x174   : > { %1560 = vst [vmem:[%s1546_s11] sm:$0xff] (%p2476_p6), %v1559_v10 }
 0x17a   : > { %v1563_v35 = vld [vmem:[%s3070_s9 + $0x10] sm:$0xff] (%p2476_p6) }
 0x17b   : > { %1564 = vst [vmem:[%s1546_s11 + $0x30] sm:$0xff] (%p2476_p6), %v1563_v35 }
 0x17c   : > { %v1423_v62 = vpop.f32.mrf.mxu0 }
 0x17d   : > { %v1437_v63 = vpop.f32.mrf.mxu1  ;;  %v1424_v7 = vadd.f32 %v1423_v62, %v636_v3 }
 0x17f   : > { %v1438_v13 = vadd.f32 %v1437_v63, %v1424_v7 }
 0x184   : > { %v1451_v0 = vpop.f32.mrf.mxu2  ;;  %v1425_v2 = vpop.f32.mrf.mxu0 }
 0x185   : > { %v1465_v1 = vpop.f32.mrf.mxu3  ;;  %v1439_v4 = vpop.f32.mrf.mxu1  ;;  %v1452_v16 = vadd.f32 %v1451_v0, %v1438_v13  ;;  %v1426_v18 = vadd.f32 %v1425_v2, %v636_v3 }
 0x187   : > { %v1466_v23 = vadd.f32 %v1465_v1, %v1452_v16  ;;  %v1440_v24 = vadd.f32 %v1439_v4, %v1426_v18 }
 0x18c   : > { %v1453_v8 = vpop.f32.mrf.mxu2 }
 0x18d   : > { %v1467_v9 = vpop.f32.mrf.mxu3  ;;  %v1454_v29 = vadd.f32 %v1453_v8, %v1440_v24 }
 0x18f   : > { %v1468_v17 = vadd.f32 %v1467_v9, %v1454_v29 }
 0x19c   : > { %v1479_v11 = vpop.f32.mrf.mxu0 }
 0x19d   : > { %v1480_v12 = vadd.f32 %v1479_v11, %v637_v6  ;;  %v1493_v14 = vpop.f32.mrf.mxu1 }
 0x19f   : > { %v1494_v15 = vadd.f32 %v1493_v14, %v1480_v12 }
 0x1a4   : > { %v1507_v19 = vpop.f32.mrf.mxu2  ;;  %v1481_v22 = vpop.f32.mrf.mxu0 }
 0x1a5   : > { %v1508_v20 = vadd.f32 %v1507_v19, %v1494_v15  ;;  %v1521_v21 = vpop.f32.mrf.mxu3  ;;  %v1482_v26 = vadd.f32 %v1481_v22, %v637_v6  ;;  %v1495_v28 = vpop.f32.mrf.mxu1 }
 0x1a7   : > { %v1522_v25 = vadd.f32 %v1521_v21, %v1508_v20  ;;  %v1496_v30 = vadd.f32 %v1495_v28, %v1482_v26 }
 0x1a9   : > { %v1527_v27 = vpack.c.bf16 %v1522_v25, %v1466_v23 }
 0x1ab   : > { %1531 = vst [vmem:[%s3070_s9 + $0x8] sm:$0xff] %v1527_v27 }
 0x1ac   : > { %v1509_v31 = vpop.f32.mrf.mxu2 }
 0x1ad   : > { %v1510_v32 = vadd.f32 %v1509_v31, %v1496_v30  ;;  %v1523_v5 = vpop.f32.mrf.mxu3 }
 0x1af   : > { %v1524_v59 = vadd.f32 %v1523_v5, %v1510_v32  ;;  %1540 = sbr.rel (!%p2476_p6) target bundleno = 444 (0x1bc), region = 59 }
 0x1b1   : > { %v1529_v33 = vpack.c.bf16 %v1524_v59, %v1468_v17 }
 0x1b2   : > { %v1561_v34 = vld [vmem:[%s3070_s9 + $0x8] sm:$0xff] (%p2476_p6) }
 0x1b3   : > { %1533 = vst [vmem:[%s3070_s9 + $0x18] sm:$0xff] %v1529_v33 }
 0x1b4   : > { %1562 = vst [vmem:[%s1546_s11 + $0x8] sm:$0xff] %v1561_v34 }
 0x1ba   : > { %v1565_v36 = vld [vmem:[%s3070_s9 + $0x18] sm:$0xff] }
 0x1bb   : > { %1566 = vst [vmem:[%s1546_s11 + $0x38] sm:$0xff] %v1565_v36 }
 0x1bc PF: > { %s13_s16 = sadd.s32 1, %s2419_s16   ;;  %s3108_s12 = smov %s2407_s13 }
 0x1bd   : > { %p10_p12 = scmp.ge.s32.totalorder %s13_s16, 5   ;;  %s3109_s13 = smov %s2481_s22 }
 0x1be   : > { %s3110_s14 = smov %s2415_s15  ;;  %s3111_s15 = smov %s3113_s17 }
 0x1bf   :  { %12 = sbr.rel (!%p10_p12) target bundleno = 3 (0x3), region = 119 }

// kernel: _lambda_.38
= control target key start
LH: loop header
LB: loop body
LE: loop exit
PB: predicated region body
PF: predicated region fallthrough
CT: control target
= control target key end

     0   :  { %s1097_s18 = smov 0   ;;  %s1099_s19 = smov 0   ;;  %s1233_s0 = inlined_call_operand.vmem [shape: bf16[2,8,8,64], index: 0, kind: input, shape index: {}]   ;;  %s1234_s1 = inlined_call_operand.vmem [shape: bf16[2,8,8,64], index: 1, kind: input, shape index: {}]   ;;  %s1235_s2 = inlined_call_operand.vmem [shape: bf16[2,8,8,64], index: 2, kind: input, shape index: {}]   ;;  %s1236_s3 = inlined_call_operand.vmem [shape: bf16[8,64,512], index: 3, kind: input, shape index: {}]   ;;  %s1237_s4 = inlined_call_operand.vmem [shape: f32[1,512], index: 4, kind: input, shape index: {}]   ;;  %s1238_s5 = inlined_call_operand.vmem [shape: bf16[2,8,512], index: 5, kind: output, shape index: {}]  }
   0x1   :  { %s1101_s20 = smov 0   ;;  %s1103_s21 = smov 0  }
   0x2   :  { %s1105_s22 = smov 0  }
   0x3 LB: > { %s33_s23 = sadd.s32 1, %s1053_s20  ;;  %s41_s24 = sadd.s32 1, %s1057_s21  ;;  %s1061_s22 = sphi %s1105_s22, %s15_s22   ;;  %s1057_s21 = sphi %s1103_s21, %s1242_s21   ;;  %s1053_s20 = sphi %s1101_s20, %s1241_s20   ;;  %s1049_s19 = sphi %s1099_s19, %s1240_s19   ;;  %s1045_s18 = sphi %s1097_s18, %s1239_s18  }
   0x4   : > { %p35_p0 = scmp.ge.s32.totalorder %s33_s23, 8  ;;  %p865_p1 = scmp.ge.s32.totalorder %s1061_s22, 1 }
   0x5   : > { %p275_p2 = scmp.lt.s32.totalorder %s1061_s22, 17 }
   0x6   : > { %s1244_s23 = smov (%p35_p0, %s33_s23), 0  ;;  %s1246_s24 = smov (!%p35_p0, %s41_s24), %s1057_s21 }
   0x7   : > { %p276_p3 = pnand %p865_p1, %p275_p2  ;;  %p43_p4 = scmp.ge.s32.totalorder %s1246_s24, 2 }
   0x8   : > { %p340_p5 = scmp.lt.s32.totalorder (!%p276_p3), %s1049_s19, 1  ;;  %p342_p6 = scmp.lt.s32.totalorder (!%p276_p3), %s1045_s18, 7 }
   0x9   : > { %s1248_s24 = smov (%p43_p4, %s1246_s24), 0  ;;  %279 = sbr.rel (%p276_p3) target bundleno = 784 (0x310), region = 40 }
   0xa   : > { %p397_p7 = scmp.eq.s32.totalorder (!%p276_p3), %s1045_s18, 0 }
   0xe   : > { %vm392_vm0 = vcmask 7168   ;;  %v1063_v0 = vmov -1e+30   ;;  %vm395_vm1 = vcmask 523264   ;;  %s1250_s19 = smov (!%p340_p5, %s1049_s19), 1  ;;  %v1064_v1 = vmov 0.0  }
   0xf   : > { %393 = vst.msk [vmem:[#allocation2] sm:$0xff] %vm392_vm0, %v1063_v0  ;;  %s343_s25 = scalar_select %p342_p6, %s1045_s18, 7  ;;  %v1065_v2 = vmov (%p397_p7), 0.0  }
  0x10   : > { %394 = vst.msk [vmem:[#allocation3] sm:$0xff] %vm392_vm0, %v1064_v1  ;;  %s866_s26 = sshll.u32 %s1250_s19, 3  ;;  %s951_s27 = sshll.u32 %s1250_s19, 4 }
  0x11   : > { %396 = vst.msk [vmem:[#allocation4] sm:$0xff] %vm395_vm1, %v1064_v1  ;;  %s348_s28 = sadd.s32 %s866_s26, %s343_s25  ;;  %s950_s29 = sshll.u32 %s343_s25, 7 }
  0x12   : > { %s1135_s30 = sshll.u32 %s348_s28, 2  ;;  %s1140_s8 = scalar_lea.vmem %s1236_s3, %s950_s29  ;;  %402 = vst [vmem:[#allocation5 + $0x10] sm:$0xff] (%p397_p7), %v1065_v2 }
  0x13   : > { %s350_s11 = scalar_lea.vmem %s1233_s0, %s1135_s30  ;;  %s361_s14 = scalar_lea.vmem %s1234_s1, %s1135_s30  ;;  %403 = vst [vmem:[#allocation5] sm:$0xff] (%p397_p7), %v1065_v2 }
  0x14   : > { %s372_s17 = scalar_lea.vmem %s1235_s2, %s1135_s30  ;;  %s1157_s26 = scalar_lea.vmem %s1238_s5, %s951_s27  ;;  %404 = vst [vmem:[#allocation5 + $0x18] sm:$0xff] (%p397_p7), %v1065_v2 }
  0x15   : > { %401 = sbr.rel (!%p397_p7) target bundleno = 26 (0x1a), region = 48  ;;  %405 = vst [vmem:[#allocation5 + $0x8] sm:$0xff] (%p397_p7), %v1065_v2 }
  0x1a PF: > { %v414_v3 = vld [vmem:[%s361_s14] sm:$0xf]  ;;  %v435_v6 = vlaneseq  ;;  %vm446_vm3 = vcmask 64512   ;;  %v1066_v13 = vmov 0   ;;  %vm482_vm4 = vcmask 1043456   ;;  %v462_v28 = vld [vmem:[#allocation3] sm:$0xff] }
  0x1b   : > { %v420_v4 = vsel %vm395_vm1, %v414_v3, 0  ;;  %v413_v5 = vld [vmem:[%s350_s11] sm:$0xf]  ;;  %1014 = vset.pattern.permute.xlu0 %v1066_v13  ;;  %1015 = vset.pattern.permute.xlu1 %v1066_v13  ;;  %v967_v30 = vld [vmem:[%s1140_s8 + $0x6c] sm:$0xf0]  ;;  %p679_p8 = scmp.eq.s32.totalorder %s1045_s18, 7 }
  0x1c   : > { %429 = vmatpush.bf16.xpose.msra.mxu0 %v420_v4  ;;  %v436_v7 = vshrl.u32 %v435_v6, 7  ;;  %v440_v8 = vand.u32 127, %v435_v6  ;;  %1016 = vset.pattern.permute.xlu2 %v1066_v13  ;;  %v445_v14 = vld [vmem:[#allocation2] sm:$0xff]  ;;  %v931_v33 = vld [vmem:[%s1140_s8 + $0x70] sm:$0xf0] }
  0x1d   : > { %v478_v18 = vld [vmem:[%s372_s17] sm:$0xf]  ;;  %v965_v31 = vld [vmem:[%s1140_s8 + $0x64] sm:$0xf]  ;;  %v937_v34 = vld [vmem:[%s1140_s8 + $0x68] sm:$0xf] }
  0x1e   : > { %vm443_vm2 = vcmp.le.s32.totalorder %v440_v8, %v436_v7  ;;  %v484_v19 = vsel %vm482_vm4, %v478_v18, 0  ;;  %v929_v29 = vld [vmem:[%s1140_s8 + $0x60] sm:$0xf]  ;;  %v968_v35 = vld [vmem:[%s1140_s8 + $0x74] sm:$0xf0]  ;;  %v934_v37 = vor.u32 %v965_v31, %v931_v33  ;;  %v470_v8 = vld [vmem:[#allocation4] sm:$0xff] }
  0x1f   : > { %493 = vmatpush.bf16.msra.mxu1 %v484_v19  ;;  %v930_v32 = vor.u32 %v967_v30, %v929_v29  ;;  %v938_v38 = vor.u32 %v968_v35, %v937_v34  ;;  %v966_v39 = vld [vmem:[%s1140_s8 + $0x6c] sm:$0xf]  ;;  %v939_v40 = vld [vmem:[%s1140_s8 + $0x78] sm:$0xf0]  ;;  %v913_v41 = vld [vmem:[%s1140_s8 + $0x40] sm:$0xf] }
  0x20   : > { %v942_v43 = vor.u32 %v966_v39, %v939_v40  ;;  %v963_v44 = vld [vmem:[%s1140_s8 + $0x4c] sm:$0xf0]  ;;  %v961_v45 = vld [vmem:[%s1140_s8 + $0x44] sm:$0xf]  ;;  %v915_v46 = vld [vmem:[%s1140_s8 + $0x50] sm:$0xf0]  ;;  %636 = vmatpush.bf16.msra.mxu3 %v934_v37 }
  0x21   : > { %623 = vmatpush.bf16.msra.mxu2 %v930_v32  ;;  %v914_v48 = vor.u32 %v963_v44, %v913_v41  ;;  %v918_v49 = vor.u32 %v961_v45, %v915_v46  ;;  %v921_v50 = vld [vmem:[%s1140_s8 + $0x48] sm:$0xf]  ;;  %v964_v51 = vld [vmem:[%s1140_s8 + $0x54] sm:$0xf0]  ;;  %v962_v52 = vld [vmem:[%s1140_s8 + $0x4c] sm:$0xf] }
  0x22   : > { %v922_v53 = vor.u32 %v964_v51, %v921_v50  ;;  %v923_v54 = vld [vmem:[%s1140_s8 + $0x58] sm:$0xf0]  ;;  %v897_v55 = vld [vmem:[%s1140_s8 + $0x20] sm:$0xf]  ;;  %v959_v56 = vld [vmem:[%s1140_s8 + $0x2c] sm:$0xf0] }
  0x23   : > { %877 = vmatmul.msk.bf16.vlgmr.msra.gmra.mxu0 %vm395_vm1, %v413_v5  ;;  %649 = vmatpush.bf16.msrb.mxu1 %v938_v38  ;;  %v926_v57 = vor.u32 %v962_v52, %v923_v54  ;;  %v957_v58 = vld [vmem:[%s1140_s8 + $0x24] sm:$0xf]  ;;  %v899_v59 = vld [vmem:[%s1140_s8 + $0x30] sm:$0xf0]  ;;  %v898_v60 = vor.u32 %v959_v56, %v897_v55  ;;  %v905_v61 = vld [vmem:[%s1140_s8 + $0x28] sm:$0xf] }
  0x24   : > { %662 = vmatpush.bf16.msrb.mxu0 %v942_v43  ;;  %v960_v62 = vld [vmem:[%s1140_s8 + $0x34] sm:$0xf0]  ;;  %v958_v63 = vld [vmem:[%s1140_s8 + $0x2c] sm:$0xf]  ;;  %637 = vmatpush.bf16.msra.mxu3 %v918_v49  ;;  %v902_v0 = vor.u32 %v957_v58, %v899_v59  ;;  %v907_v2 = vld [vmem:[%s1140_s8 + $0x38] sm:$0xf0] }
  0x25   : > { %624 = vmatpush.bf16.msra.mxu2 %v914_v48  ;;  %v906_v1 = vor.u32 %v960_v62, %v905_v61  ;;  %v910_v3 = vor.u32 %v958_v63, %v907_v2  ;;  %v955_v13 = vld [vmem:[%s1140_s8 + $0xc] sm:$0xf0]  ;;  %v956_v18 = vld [vmem:[%s1140_s8 + $0x14] sm:$0xf0]  ;;  %v518_v29 = vld [vmem:[#allocation5 + $0x8] sm:$0xff] }
  0x26   : > { %v515_v34 = vld [vmem:[#allocation5 + $0x10] sm:$0xff]  ;;  %v516_v35 = vld [vmem:[#allocation5] sm:$0xff]  ;;  %v688_v46 = vld [vmem:[%s1237_s4] sm:$0xf] (%p679_p8) }
  0x27   : > { %650 = vmatpush.bf16.msrb.mxu1 %v922_v53  ;;  %v691_v48 = vperm.slane (%p679_p8), %v688_v46, 1  ;;  %v692_v51 = vperm.slane (%p679_p8), %v688_v46, 2  ;;  %v693_v52 = vperm.slane (%p679_p8), %v688_v46, 3 }
  0x28   : > { %663 = vmatpush.bf16.msrb.mxu0 %v926_v57  ;;  %638 = vmatpush.bf16.msra.mxu3 %v902_v0 }
  0x29   : > { %625 = vmatpush.bf16.msra.mxu2 %v898_v60 }
  0x2b   : > { %651 = vmatpush.bf16.msrb.mxu1 %v906_v1 }
  0x2c   : > { %664 = vmatpush.bf16.msrb.mxu0 %v910_v3 }
  0xa0   : > { %v431_v9 = vpop.f32.mrf.mxu0 }
  0xa1   : > { %v444_v10 = vsel %vm443_vm2, %v431_v9, -1e+30 }
  0xa2   : > { %v447_v11 = vsel %vm446_vm3, %v444_v10, -inf }
  0xa3   : > { %448 = vmax.xlane.f32.xlu0 %v447_v11 }
  0xa8   : > { %v433_v12 = vpop.f32.mrf.mxu0 }
  0xa9   : > { %v881_v12 = vld [vmem:[%s1140_s8] sm:$0xf] }
 0x116   : > { %v449_v15 = vpop.xlane.xlu0 %448 }
 0x117   : > { %v450_v16 = vmax.f32 %v445_v14, %v449_v15  ;;  %v882_v15 = vor.u32 %v955_v13, %v881_v12 }
 0x119   : > { %v451_v17 = vsub.f32 %v445_v14, %v450_v16  ;;  %501 = vst.msk [vmem:[#allocation2] sm:$0xff] %vm392_vm0, %v450_v16  ;;  %456 = vperm.xlu0 %1014, %v450_v16   ;;  %v953_v14 = vld [vmem:[%s1140_s8 + $0x4] sm:$0xf]  ;;  %v883_v16 = vld [vmem:[%s1140_s8 + $0x10] sm:$0xf0]  ;;  %626 = vmatpush.bf16.msra.mxu2 %v882_v15 }
 0x11a   : > { %v886_v19 = vor.u32 %v953_v14, %v883_v16 }
 0x11b   : > { %v452_v26 = vmul.f32 1.442695, %v451_v17  ;;  %v889_v17 = vld [vmem:[%s1140_s8 + $0x8] sm:$0xf] }
 0x11c   : > { %639 = vmatpush.bf16.msra.mxu3 %v886_v19 }
 0x18b   : > { %v457_v20 = vpop.permute.xlu0 %456 }
 0x18c   : > { %v459_v21 = vsub.f32 %v444_v10, %v457_v20  ;;  %v890_v20 = vor.u32 %v956_v18, %v889_v17 }
 0x18e   : > { %v460_v22 = vmul.f32 1.442695, %v459_v21  ;;  %v954_v21 = vld [vmem:[%s1140_s8 + $0xc] sm:$0xf]  ;;  %652 = vmatpush.bf16.msrb.mxu1 %v890_v20 }
 0x190   : > { %1017 = vpow2.f32 %v460_v22  ;;  %v891_v22 = vld [vmem:[%s1140_s8 + $0x18] sm:$0xf0] }
 0x191   : > { %1019 = vpow2.f32 %v452_v26 }
 0x196   : > { %v1018_v23 = vpop.eup %1017 }
 0x197   : > { %v464_v24 = vsel %vm446_vm3, %v1018_v23, 0.0  ;;  %v477_v25 = vpack.c.bf16 %v1018_v23, %v1018_v23  ;;  %v1020_v27 = vpop.eup %1019  ;;  %v894_v23 = vor.u32 %v954_v21, %v891_v22 }
 0x198   : > { %465 = vadd.xlane.f32.xlu1 %v464_v24  ;;  %v463_v36 = vmul.f32 %v1020_v27, %v462_v28  ;;  %v517_v28 = vld [vmem:[#allocation5 + $0x18] sm:$0xff] }
 0x199   : > { %878 = vmatmul.msk.bf16.vlgmr.msra.gmra.mxu1 %vm446_vm3, %v477_v25  ;;  %665 = vmatpush.bf16.msrb.mxu0 %v894_v23 }
 0x1b1   : > { %473 = vperm.xlu1 %1015, %v1020_v27  }
 0x20b   : > { %v466_v42 = vpop.xlane.xlu1 %465 }
 0x20c   : > { %v467_v47 = vadd.f32 %v466_v42, %v463_v36 }
 0x20e   : > { %469 = vst.msk [vmem:[#allocation3] sm:$0xff] %vm392_vm0, %v467_v47  ;;  %v690_v47 = vperm.slane (%p679_p8), %v688_v46, 0 }
 0x215   : > { %v505_v4 = vld [vmem:[#allocation3] sm:$0xff] }
 0x216   : > { %v495_v5 = vpop.f32.mrf.mxu1  ;;  %1021 = vrcp.f32 %v505_v4 }
 0x21c   : > { %v1022_v6 = vpop.eup %1021 }
 0x21d   : > { %510 = vperm.xlu2 %1016, %v1022_v6  }
 0x21e   : > { %v497_v7 = vpop.f32.mrf.mxu1 }
 0x223   : > { %v474_v9 = vpop.permute.xlu1 %473 }
 0x224   : > { %v476_v10 = vmul.f32 %v474_v9, %v470_v8 }
 0x226   : > { %v499_v11 = vadd.f32 %v495_v5, %v476_v10 }
 0x228   : > { %500 = vst.msk [vmem:[#allocation4] sm:$0xff] %vm395_vm1, %v499_v11 }
 0x22f   : > { %v507_v24 = vld [vmem:[#allocation4] sm:$0xff] }
 0x277   : > { %v511_v25 = vpop.permute.xlu2 %510 }
 0x278   : > { %v513_v26 = vmul.f32 %v511_v25, %v507_v24 }
 0x27a   : > { %v514_v27 = vpack.c.bf16 %v513_v26, %v513_v26 }
 0x27c   : > { %943 = vmatmul.msk.bf16.vlgmr.msra.gmra.mxu2 %vm395_vm1, %v514_v27  ;;  %944 = vmatmul.msk.bf16.vlgmr.msra.gmra.mxu3 %vm395_vm1, %v514_v27 }
 0x27d   : > { %945 = vmatmul.msk.bf16.vlgmr.msrb.gmra.mxu1 %vm395_vm1, %v514_v27  ;;  %946 = vmatmul.msk.bf16.vlgmr.msrb.gmra.mxu0 %vm395_vm1, %v514_v27 }
 0x2fa   : > { %v654_v30 = vpop.f32.mrf.mxu1  ;;  %v667_v31 = vpop.f32.mrf.mxu0 }
 0x2fb   : > { %v673_v32 = vadd.f32 %v654_v30, %v517_v28  ;;  %v674_v33 = vadd.f32 %v667_v31, %v518_v29 }
 0x2fd   : > { %677 = vst [vmem:[#allocation5 + $0x18] sm:$0xff] %v673_v32 }
 0x2fe   : > { %678 = vst [vmem:[#allocation5 + $0x8] sm:$0xff] %v674_v33 }
 0x2ff   : > { %v628_v36 = vpop.f32.mrf.mxu2  ;;  %v641_v37 = vpop.f32.mrf.mxu3 }
 0x300   : > { %v671_v38 = vadd.f32 %v628_v36, %v515_v34  ;;  %v672_v39 = vadd.f32 %v641_v37, %v516_v35 }
 0x302   : > { %675 = vst [vmem:[#allocation5 + $0x10] sm:$0xff] %v671_v38  ;;  %v656_v40 = vpop.f32.mrf.mxu1  ;;  %v669_v41 = vpop.f32.mrf.mxu0 }
 0x303   : > { %676 = vst [vmem:[#allocation5] sm:$0xff] %v672_v39  ;;  %683 = sbr.rel (!%p679_p8) target bundleno = 784 (0x310), region = 60 }
 0x304   : > { %v686_v49 = vld [vmem:[#allocation5 + $0x18] sm:$0xff] (%p679_p8) }
 0x305   : > { %v687_v50 = vld [vmem:[#allocation5 + $0x8] sm:$0xff] (%p679_p8)  ;;  %v700_v55 = vadd.f32 (%p679_p8), %v692_v51, %v686_v49 }
 0x306   : > { %v701_v56 = vadd.f32 (%p679_p8), %v693_v52, %v687_v50 }
 0x307   : > { %v630_v42 = vpop.f32.mrf.mxu2  ;;  %v643_v43 = vpop.f32.mrf.mxu3 }
 0x308   : > { %v703_v58 = vpack.c.bf16 %v701_v56, %v700_v55 }
 0x309   : > { %v684_v44 = vld [vmem:[#allocation5 + $0x10] sm:$0xff] }
 0x30a   : > { %v685_v45 = vld [vmem:[#allocation5] sm:$0xff]  ;;  %v698_v53 = vadd.f32 %v690_v47, %v684_v44  ;;  %705 = vst [vmem:[%s1157_s26 + $0x8] sm:$0xff] %v703_v58 }
 0x30b   : > { %v699_v54 = vadd.f32 %v691_v48, %v685_v45 }
 0x30d   : > { %v702_v57 = vpack.c.bf16 %v699_v54, %v698_v53 }
 0x30f   : > { %704 = vst [vmem:[%s1157_s26] sm:$0xff] %v702_v57 }
 0x310 PF: > { %s15_s22 = sadd.s32 1, %s1061_s22   ;;  %s1239_s18 = smov %s1053_s20 }
 0x311   : > { %p12_p9 = scmp.ge.s32.totalorder %s15_s22, 18   ;;  %s1240_s19 = smov %s1057_s21 }
 0x312   : > { %s1241_s20 = smov %s1244_s23  ;;  %s1242_s21 = smov %s1248_s24 }
 0x313   :  { %14 = sbr.rel (!%p12_p9) target bundleno = 3 (0x3), region = 99 }

// kernel: _lambda_.39
= control target key start
LH: loop header
LB: loop body
LE: loop exit
PB: predicated region body
PF: predicated region fallthrough
CT: control target
= control target key end

     0   :  { %v181_v38 = vmov 512.0   ;;  %s269_s0 = inlined_call_operand.vmem [shape: bf16[16,512], index: 0, kind: input, shape index: {}]   ;;  %s270_s1 = inlined_call_operand.vmem [shape: bf16[16,512], index: 1, kind: input, shape index: {}]   ;;  %s271_s2 = inlined_call_operand.vmem [shape: f32[1,512], index: 2, kind: input, shape index: {}]   ;;  %s272_s3 = inlined_call_operand.vmem [shape: f32[1,512], index: 3, kind: input, shape index: {}]   ;;  %s273_s4 = inlined_call_operand.vmem [shape: bf16[16,512], index: 4, kind: output, shape index: {}]  }
   0x1   :  { %v17_v0 = vld [vmem:[%s269_s0] sm:$0xff]  ;;  %v18_v1 = vld [vmem:[%s269_s0 + $0x8] sm:$0xff]  ;;  %v19_v8 = vld [vmem:[%s269_s0 + $0x10] sm:$0xff]  ;;  %175 = vrcp.f32 %v181_v38 }
   0x2   :  { %v29_v2 = vld [vmem:[%s270_s1] sm:$0xff]  ;;  %v21_v3 = vunpack.c.l.bf16 %v17_v0  ;;  %v22_v4 = vunpack.c.h.bf16 %v17_v0  ;;  %v23_v5 = vunpack.c.l.bf16 %v18_v1  ;;  %v24_v6 = vunpack.c.h.bf16 %v18_v1  ;;  %v30_v7 = vld [vmem:[%s270_s1 + $0x8] sm:$0xff]  ;;  %v20_v9 = vld [vmem:[%s269_s0 + $0x18] sm:$0xff] }
   0x3   :  { %v33_v10 = vunpack.c.l.bf16 %v29_v2  ;;  %v34_v11 = vunpack.c.h.bf16 %v29_v2  ;;  %v35_v12 = vunpack.c.l.bf16 %v30_v7  ;;  %v36_v13 = vunpack.c.h.bf16 %v30_v7  ;;  %v31_v14 = vld [vmem:[%s270_s1 + $0x10] sm:$0xff]  ;;  %v32_v15 = vld [vmem:[%s270_s1 + $0x18] sm:$0xff] }
   0x4   :  { %v25_v16 = vunpack.c.l.bf16 %v19_v8  ;;  %v26_v17 = vunpack.c.h.bf16 %v19_v8  ;;  %v27_v21 = vunpack.c.l.bf16 %v20_v9  ;;  %v37_v22 = vunpack.c.l.bf16 %v31_v14 }
   0x5   :  { %v41_v18 = vadd.f32 %v33_v10, %v21_v3  ;;  %v42_v19 = vadd.f32 %v34_v11, %v22_v4  ;;  %v43_v20 = vadd.f32 %v35_v12, %v23_v5  ;;  %v38_v23 = vunpack.c.h.bf16 %v31_v14 }
   0x6   :  { %v39_v24 = vunpack.c.l.bf16 %v32_v15  ;;  %v44_v25 = vadd.f32 %v36_v13, %v24_v6  ;;  %v45_v27 = vadd.f32 %v37_v22, %v25_v16  ;;  %v28_v30 = vunpack.c.h.bf16 %v20_v9  ;;  %v126_v16 = vld [vmem:[%s271_s2] sm:$0xf] }
   0x7   :  { %v49_v26 = vadd.f32 %v42_v19, %v41_v18  ;;  %v46_v28 = vadd.f32 %v38_v23, %v26_v17  ;;  %v40_v31 = vunpack.c.h.bf16 %v32_v15  ;;  %v176_v39 = vpop.eup %175  ;;  %v129_v22 = vperm.slane %v126_v16, 1 }
   0x8   :  { %v47_v32 = vadd.f32 %v39_v24, %v27_v21  ;;  %v60_v40 = vmul.f32 512.0, %v176_v39  ;;  %vm64_vm0 = vweird.f32 %v176_v39  ;;  %v128_v21 = vperm.slane %v126_v16, 0 }
   0x9   :  { %v50_v29 = vadd.f32 %v49_v26, %v43_v20  ;;  %v54_v33 = vadd.f32 %v46_v28, %v45_v27  ;;  %v48_v35 = vadd.f32 %v40_v31, %v28_v30  ;;  %v131_v26 = vperm.slane %v126_v16, 3 }
   0xa   :  { %v61_v41 = vsub.f32 1.0, %v60_v40 }
   0xb   :  { %v51_v34 = vadd.f32 %v50_v29, %v44_v25  ;;  %v55_v36 = vadd.f32 %v54_v33, %v47_v32 }
   0xc   :  { %v62_v42 = vmul.f32 %v176_v39, %v61_v41 }
   0xd   :  { %52 = vadd.xlane.f32.xlu0 %v51_v34  ;;  %v56_v37 = vadd.f32 %v55_v36, %v48_v35 }
   0xe   :  { %v63_v43 = vadd.f32 %v176_v39, %v62_v42 }
  0x10   :  { %v65_v44 = vsel %vm64_vm0, %v176_v39, %v63_v43 }
  0x15   :  { %57 = vadd.xlane.f32.xlu0 %v56_v37 }
  0x80   :  { %v53_v45 = vpop.xlane.xlu0 %52 }
  0x81   :  { %v66_v46 = vmul.f32 %v65_v44, %v53_v45 }
  0x83   :  { %v68_v47 = vsub.f32 %v41_v18, %v66_v46  ;;  %v69_v48 = vsub.f32 %v42_v19, %v66_v46  ;;  %v70_v49 = vsub.f32 %v43_v20, %v66_v46  ;;  %v71_v50 = vsub.f32 %v44_v25, %v66_v46  ;;  %v144_v18 = vld [vmem:[%s272_s3] sm:$0xf] }
  0x84   :  { %v130_v25 = vperm.slane %v126_v16, 2  ;;  %v148_v29 = vperm.slane %v144_v18, 2  ;;  %v149_v30 = vperm.slane %v144_v18, 3 }
  0x85   :  { %v76_v51 = vmul.f32 %v68_v47, %v68_v47  ;;  %v77_v52 = vmul.f32 %v69_v48, %v69_v48  ;;  %v78_v53 = vmul.f32 %v70_v49, %v70_v49  ;;  %v79_v57 = vmul.f32 %v71_v50, %v71_v50 }
  0x87   :  { %v84_v54 = vadd.f32 %v77_v52, %v76_v51 }
  0x88   :  { %v58_v55 = vpop.xlane.xlu0 %57 }
  0x89   :  { %v67_v56 = vmul.f32 %v65_v44, %v58_v55  ;;  %v85_v58 = vadd.f32 %v84_v54, %v78_v53 }
  0x8b   :  { %v231_v59 = vsub.f32 %v45_v27, %v67_v56  ;;  %v233_v60 = vsub.f32 %v46_v28, %v67_v56  ;;  %v86_v61 = vadd.f32 %v85_v58, %v79_v57  ;;  %v235_v62 = vsub.f32 %v47_v32, %v67_v56 }
  0x8c   :  { %v237_v63 = vsub.f32 %v48_v35, %v67_v56  ;;  %v146_v27 = vperm.slane %v144_v18, 0  ;;  %v147_v28 = vperm.slane %v144_v18, 1 }
  0x8d   :  { %87 = vadd.xlane.f32.xlu1 %v86_v61  ;;  %v80_v0 = vmul.f32 %v231_v59, %v231_v59  ;;  %v81_v1 = vmul.f32 %v233_v60, %v233_v60  ;;  %v82_v2 = vmul.f32 %v235_v62, %v235_v62 }
  0x8e   :  { %v83_v4 = vmul.f32 %v237_v63, %v237_v63 }
  0x8f   :  { %v89_v3 = vadd.f32 %v81_v1, %v80_v0 }
  0x91   :  { %v90_v5 = vadd.f32 %v89_v3, %v82_v2 }
  0x93   :  { %v91_v6 = vadd.f32 %v90_v5, %v83_v4 }
  0x95   :  { %92 = vadd.xlane.f32.xlu1 %v91_v6 }
 0x100   :  { %v88_v7 = vpop.xlane.xlu1 %87 }
 0x101   :  { %v94_v8 = vmul.f32 %v88_v7, %v65_v44 }
 0x103   :  { %v96_v9 = vadd.f32 1e-05, %v94_v8 }
 0x105   :  { %177 = vrsqrt.f32 %v96_v9  ;;  %vm104_vm2 = vweird.f32 %v96_v9 }
 0x108   :  { %v93_v10 = vpop.xlane.xlu1 %92 }
 0x109   :  { %v95_v11 = vmul.f32 %v93_v10, %v65_v44 }
 0x10b   :  { %v178_v12 = vpop.eup %177  ;;  %v97_v13 = vadd.f32 1e-05, %v95_v11 }
 0x10c   :  { %v99_v14 = vmul.f32 %v178_v12, %v96_v9  ;;  %vm105_vm1 = vweird.f32 %v178_v12 }
 0x10d   :  { %179 = vrsqrt.f32 %v97_v13  ;;  %vm106_vm3 = vmor %vm104_vm2, %vm105_vm1  ;;  %vm114_vm5 = vweird.f32 %v97_v13 }
 0x10e   :  { %v100_v15 = vmul.f32 %v178_v12, %v99_v14 }
 0x110   :  { %v101_v17 = vmul.f32 0.5, %v100_v15 }
 0x112   :  { %v102_v19 = vsub.f32 1.5, %v101_v17 }
 0x113   :  { %v180_v20 = vpop.eup %179 }
 0x114   :  { %v103_v23 = vmul.f32 %v178_v12, %v102_v19  ;;  %v109_v24 = vmul.f32 %v180_v20, %v97_v13  ;;  %vm115_vm4 = vweird.f32 %v180_v20 }
 0x115   :  { %vm116_vm6 = vmor %vm114_vm5, %vm115_vm4 }
 0x116   :  { %v107_v31 = vsel %vm106_vm3, %v178_v12, %v103_v23  ;;  %v110_v32 = vmul.f32 %v180_v20, %v109_v24 }
 0x117   :  { %v118_v33 = vmul.f32 %v107_v31, %v68_v47  ;;  %v119_v34 = vmul.f32 %v107_v31, %v69_v48  ;;  %v120_v35 = vmul.f32 %v107_v31, %v70_v49  ;;  %v121_v36 = vmul.f32 %v107_v31, %v71_v50 }
 0x118   :  { %v111_v37 = vmul.f32 0.5, %v110_v32 }
 0x119   :  { %v136_v38 = vmul.f32 %v128_v21, %v118_v33  ;;  %v137_v39 = vmul.f32 %v129_v22, %v119_v34  ;;  %v138_v40 = vmul.f32 %v130_v25, %v120_v35  ;;  %v139_v41 = vmul.f32 %v131_v26, %v121_v36 }
 0x11a   :  { %v112_v42 = vsub.f32 1.5, %v111_v37 }
 0x11b   :  { %v154_v43 = vadd.f32 %v146_v27, %v136_v38  ;;  %v155_v44 = vadd.f32 %v147_v28, %v137_v39  ;;  %v156_v45 = vadd.f32 %v148_v29, %v138_v40  ;;  %v157_v46 = vadd.f32 %v149_v30, %v139_v41 }
 0x11c   :  { %v113_v51 = vmul.f32 %v180_v20, %v112_v42 }
 0x11d   :  { %v162_v52 = vpack.c.bf16 %v155_v44, %v154_v43  ;;  %v163_v53 = vpack.c.bf16 %v157_v46, %v156_v45 }
 0x11e   :  { %v117_v47 = vsel %vm116_vm6, %v180_v20, %v113_v51 }
 0x11f   :  { %166 = vst [vmem:[%s273_s4] sm:$0xff] %v162_v52  ;;  %v122_v48 = vmul.f32 %v117_v47, %v231_v59  ;;  %v123_v49 = vmul.f32 %v117_v47, %v233_v60  ;;  %v124_v50 = vmul.f32 %v117_v47, %v235_v62  ;;  %v125_v54 = vmul.f32 %v117_v47, %v237_v63 }
 0x120   :  { %167 = vst [vmem:[%s273_s4 + $0x8] sm:$0xff] %v163_v53 }
 0x121   :  { %v140_v55 = vmul.f32 %v128_v21, %v122_v48  ;;  %v141_v56 = vmul.f32 %v129_v22, %v123_v49  ;;  %v142_v57 = vmul.f32 %v130_v25, %v124_v50  ;;  %v143_v58 = vmul.f32 %v131_v26, %v125_v54 }
 0x123   :  { %v158_v61 = vadd.f32 %v146_v27, %v140_v55  ;;  %v159_v0 = vadd.f32 %v147_v28, %v141_v56  ;;  %v160_v1 = vadd.f32 %v148_v29, %v142_v57  ;;  %v161_v2 = vadd.f32 %v149_v30, %v143_v58 }
 0x125   :  { %v164_v3 = vpack.c.bf16 %v159_v0, %v158_v61  ;;  %v165_v59 = vpack.c.bf16 %v161_v2, %v160_v1 }
 0x127   :  { %168 = vst [vmem:[%s273_s4 + $0x10] sm:$0xff] %v164_v3 }
 0x128   :  { %169 = vst [vmem:[%s273_s4 + $0x18] sm:$0xff] %v165_v59 }

// kernel: _lambda_.73
= control target key start
LH: loop header
LB: loop body
LE: loop exit
PB: predicated region body
PF: predicated region fallthrough
CT: control target
= control target key end

     0   :  { %s480_s0 = inlined_call_operand.vmem [shape: bf16[16,512], index: 0, kind: input, shape index: {}]   ;;  %s481_s1 = inlined_call_operand.vmem [shape: bf16[64,512], index: 1, kind: input, shape index: {}]   ;;  %s482_s2 = inlined_call_operand.hbm [shape: f32[16,64], index: 2, kind: output, shape index: {}]  }
   0x1   :  { %v276_v0 = vld [vmem:[%s481_s1 + $0x60] sm:$0xf]  ;;  %v308_v1 = vld [vmem:[%s481_s1 + $0x6c] sm:$0xf0]  ;;  %v306_v2 = vld [vmem:[%s481_s1 + $0x64] sm:$0xf] }
   0x2   :  { %v277_v3 = vor.u32 %v308_v1, %v276_v0  ;;  %v278_v4 = vld [vmem:[%s481_s1 + $0x70] sm:$0xf0]  ;;  %v284_v5 = vld [vmem:[%s481_s1 + $0x68] sm:$0xf]  ;;  %v309_v6 = vld [vmem:[%s481_s1 + $0x74] sm:$0xf0] }
   0x3   :  { %v281_v7 = vor.u32 %v306_v2, %v278_v4  ;;  %v285_v8 = vor.u32 %v309_v6, %v284_v5  ;;  %v307_v9 = vld [vmem:[%s481_s1 + $0x6c] sm:$0xf]  ;;  %v286_v10 = vld [vmem:[%s481_s1 + $0x78] sm:$0xf0]  ;;  %v260_v12 = vld [vmem:[%s481_s1 + $0x40] sm:$0xf] }
   0x4   :  { %137 = vmatpush.bf16.xpose.msra.mxu0 %v277_v3  ;;  %v289_v11 = vor.u32 %v307_v9, %v286_v10  ;;  %v304_v13 = vld [vmem:[%s481_s1 + $0x4c] sm:$0xf0]  ;;  %v302_v14 = vld [vmem:[%s481_s1 + $0x44] sm:$0xf]  ;;  %v262_v15 = vld [vmem:[%s481_s1 + $0x50] sm:$0xf0] }
   0x5   :  { %151 = vmatpush.bf16.xpose.msra.mxu1 %v281_v7  ;;  %165 = vmatpush.bf16.xpose.msra.mxu2 %v285_v8  ;;  %v268_v16 = vld [vmem:[%s481_s1 + $0x48] sm:$0xf]  ;;  %v305_v17 = vld [vmem:[%s481_s1 + $0x54] sm:$0xf0]  ;;  %v303_v18 = vld [vmem:[%s481_s1 + $0x4c] sm:$0xf]  ;;  %v261_v20 = vor.u32 %v304_v13, %v260_v12  ;;  %v265_v21 = vor.u32 %v302_v14, %v262_v15 }
   0x6   :  { %179 = vmatpush.bf16.xpose.msra.mxu3 %v289_v11  ;;  %v270_v19 = vld [vmem:[%s481_s1 + $0x58] sm:$0xf0]  ;;  %v269_v22 = vor.u32 %v305_v17, %v268_v16  ;;  %v244_v24 = vld [vmem:[%s481_s1 + $0x20] sm:$0xf]  ;;  %v300_v25 = vld [vmem:[%s481_s1 + $0x2c] sm:$0xf0] }
   0x7   :  { %v273_v23 = vor.u32 %v303_v18, %v270_v19  ;;  %v298_v26 = vld [vmem:[%s481_s1 + $0x24] sm:$0xf]  ;;  %v246_v27 = vld [vmem:[%s481_s1 + $0x30] sm:$0xf0]  ;;  %v252_v28 = vld [vmem:[%s481_s1 + $0x28] sm:$0xf] }
   0x8   :  { %v301_v29 = vld [vmem:[%s481_s1 + $0x34] sm:$0xf0] }
   0xc   :  { %138 = vmatpush.bf16.xpose.msra.mxu0 %v261_v20 }
   0xd   :  { %152 = vmatpush.bf16.xpose.msra.mxu1 %v265_v21  ;;  %166 = vmatpush.bf16.xpose.msra.mxu2 %v269_v22 }
   0xe   :  { %180 = vmatpush.bf16.xpose.msra.mxu3 %v273_v23 }
   0xf   :  { %7 = vsyncpa [#allocation3], 0  ;;  %v299_v30 = vld [vmem:[%s481_s1 + $0x2c] sm:$0xf]  ;;  %v254_v31 = vld [vmem:[%s481_s1 + $0x38] sm:$0xf0]  ;;  %v245_v32 = vor.u32 %v300_v25, %v244_v24  ;;  %v249_v33 = vor.u32 %v298_v26, %v246_v27  ;;  %v253_v34 = vor.u32 %v301_v29, %v252_v28 }
  0x10   :  { %v257_v35 = vor.u32 %v299_v30, %v254_v31  ;;  %v228_v36 = vld [vmem:[%s481_s1] sm:$0xf]  ;;  %v296_v37 = vld [vmem:[%s481_s1 + $0xc] sm:$0xf0]  ;;  %v294_v38 = vld [vmem:[%s481_s1 + $0x4] sm:$0xf] }
  0x11   :  { %v230_v39 = vld [vmem:[%s481_s1 + $0x10] sm:$0xf0]  ;;  %v236_v40 = vld [vmem:[%s481_s1 + $0x8] sm:$0xf]  ;;  %v297_v41 = vld [vmem:[%s481_s1 + $0x14] sm:$0xf0]  ;;  %v229_v44 = vor.u32 %v296_v37, %v228_v36 }
  0x12   :  { %v295_v42 = vld [vmem:[%s481_s1 + $0xc] sm:$0xf]  ;;  %v238_v43 = vld [vmem:[%s481_s1 + $0x18] sm:$0xf0]  ;;  %v233_v45 = vor.u32 %v294_v38, %v230_v39  ;;  %v237_v46 = vor.u32 %v297_v41, %v236_v40  ;;  %v212_v48 = vld [vmem:[%s480_s0] sm:$0xf] }
  0x13   :  { %v241_v47 = vor.u32 %v295_v42, %v238_v43  ;;  %v292_v49 = vld [vmem:[%s480_s0 + $0xc] sm:$0xf0]  ;;  %v290_v50 = vld [vmem:[%s480_s0 + $0x4] sm:$0xf]  ;;  %v214_v51 = vld [vmem:[%s480_s0 + $0x10] sm:$0xf0] }
  0x14   :  { %139 = vmatpush.bf16.xpose.msra.mxu0 %v245_v32  ;;  %v220_v52 = vld [vmem:[%s480_s0 + $0x8] sm:$0xf]  ;;  %v293_v53 = vld [vmem:[%s480_s0 + $0x14] sm:$0xf0]  ;;  %v291_v54 = vld [vmem:[%s480_s0 + $0xc] sm:$0xf]  ;;  %v213_v56 = vor.u32 %v292_v49, %v212_v48  ;;  %v217_v57 = vor.u32 %v290_v50, %v214_v51 }
  0x15   :  { %153 = vmatpush.bf16.xpose.msra.mxu1 %v249_v33  ;;  %167 = vmatpush.bf16.xpose.msra.mxu2 %v253_v34  ;;  %v222_v55 = vld [vmem:[%s480_s0 + $0x18] sm:$0xf0]  ;;  %v221_v58 = vor.u32 %v293_v53, %v220_v52  ;;  %vm189_vm0 = vcmask 523264   ;;  %s339_s0 = smov [#allocation2]   ;;  %s198_s7 = sshll.u32 %s482_s2, 4  ;;  %s199_s7 = int_to_ptr.hbm [resolvable:$true] %s198_s7 }
  0x16   :  { %181 = vmatpush.bf16.xpose.msra.mxu3 %v257_v35  ;;  %v225_v59 = vor.u32 %v291_v54, %v222_v55  ;;  %s196_s4 = sshll.u32 %s339_s0, 4  ;;  %s340_s8 = smov 128   ;;  %s197_s4 = int_to_ptr.vmem [resolvable:$true] %s196_s4 }
  0x17   :  { %s341_s9 = smov 8  }
  0x1c   :  { %140 = vmatpush.bf16.xpose.msra.mxu0 %v229_v44 }
  0x1d   :  { %154 = vmatpush.bf16.xpose.msra.mxu1 %v233_v45  ;;  %168 = vmatpush.bf16.xpose.msra.mxu2 %v237_v46 }
  0x1e   :  { %182 = vmatpush.bf16.xpose.msra.mxu3 %v241_v47 }
  0x23   :  { %141 = vmatmul.bf16.vlgmr.msra.gmra.mxu0 %v213_v56 }
  0x24   :  { %155 = vmatmul.bf16.vlgmr.msra.gmra.mxu1 %v217_v57  ;;  %169 = vmatmul.bf16.vlgmr.msra.gmra.mxu2 %v221_v58 }
  0x25   :  { %183 = vmatmul.bf16.vlgmr.msra.gmra.mxu3 %v225_v59 }
  0xa0   :  { %v142_v60 = vpop.f32.mrf.mxu0 }
  0xa1   :  { %v156_v61 = vpop.f32.mrf.mxu1 }
  0xa2   :  { %v157_v62 = vadd.f32 %v156_v61, %v142_v60 }
  0xa7   :  { %v170_v63 = vpop.f32.mrf.mxu2 }
  0xa8   :  { %v171_v0 = vadd.f32 %v170_v63, %v157_v62  ;;  %v184_v1 = vpop.f32.mrf.mxu3  ;;  %v144_v3 = vpop.f32.mrf.mxu0 }
  0xa9   :  { %v158_v4 = vpop.f32.mrf.mxu1 }
  0xaa   :  { %v185_v2 = vadd.f32 %v184_v1, %v171_v0  ;;  %v159_v5 = vadd.f32 %v158_v4, %v144_v3 }
  0xac   :  { %190 = vst.msk [vmem:[#allocation2] sm:$0xff] %vm189_vm0, %v185_v2 }
  0xaf   :  { %v172_v6 = vpop.f32.mrf.mxu2 }
  0xb0   :  { %v173_v7 = vadd.f32 %v172_v6, %v159_v5  ;;  %v186_v8 = vpop.f32.mrf.mxu3 }
  0xb2   :  { %v187_v9 = vadd.f32 %v186_v8, %v173_v7 }
  0xb4   :  { %191 = vst.msk [vmem:[#allocation2 + $0x8] sm:$0xff] %vm189_vm0, %v187_v9 }
  0xb5   :  { %204 = dma.vmem_to_hbm [thread:$0]  %s197_s4, 256, %s199_s7, [#allocation3], %s340_s8, %s340_s8, %s341_s9  }
  0xb6   :  { %337 = dma.done.wait [#allocation3], 256  }
  0xb7   :  { %338 = vsyncadd [#allocation3], 4294967040 }
  0xb8   :  { %209 = vsyncpa [#allocation3], 1 }

// kernel: _lambda_.40
= control target key start
LH: loop header
LB: loop body
LE: loop exit
PB: predicated region body
PF: predicated region fallthrough
CT: control target
= control target key end

     0   :  { %s2449_s12 = smov 0   ;;  %s2451_s13 = smov 0   ;;  %s3111_s0 = inlined_call_operand.vmem [shape: bf16[16,512], index: 0, kind: input, shape index: {}]   ;;  %s3112_s1 = inlined_call_operand.vmem [shape: bf16[512,2048], index: 1, kind: input, shape index: {}]   ;;  %s3113_s2 = inlined_call_operand.vmem [shape: f32[1,2048], index: 2, kind: input, shape index: {}]   ;;  %s3114_s3 = inlined_call_operand.vmem [shape: bf16[16,2048], index: 3, kind: output, shape index: {}]  }
   0x1   :  { %s2453_s14 = smov 0   ;;  %s2455_s15 = smov 0  }
   0x2   :  { %s2457_s16 = smov 0  }
   0x3 LB: > { %s22_s17 = sadd.s32 1, %s2423_s15  ;;  %s1670_s18 = sadd.s32 4294967295, %s2427_s16   ;;  %s2427_s16 = sphi %s2457_s16, %s13_s16   ;;  %s2423_s15 = sphi %s2455_s15, %s3119_s15   ;;  %s2419_s14 = sphi %s2453_s14, %s3118_s14   ;;  %s2415_s13 = sphi %s2451_s13, %s3117_s13   ;;  %s2411_s12 = sphi %s2449_s12, %s3116_s12  }
   0x4   : > { %p23_p0 = scmp.ge.s32.totalorder %s22_s17, 4  ;;  %p65_p1 = scmp.ne.s32.totalorder %s2415_s13, %s2411_s12 }
   0x5   : > { %p66_p2 = scmp.eq.s32.totalorder %s2427_s16, 0  ;;  %p123_p4 = scmp.eq.s32.totalorder %s1670_s18, 3 }
   0x6   : > { %s3121_s17 = smov (%p23_p0, %s22_s17), 0  ;;  %s58_s20 = sadd.s32 1, %s2415_s13 }
   0x7   : > { %p67_p3 = por %p66_p2, %p65_p1  ;;  %s55_s19 = ssub.s32 %s2423_s15, %s3121_s17 }
   0x8   : > { %p56_p5 = scmp.eq.s32.totalorder %s55_s19, 0  ;;  %p2484_p6 = por %p123_p4, %p65_p1 }
   0x9   : > { %p1674_p7 = scmp.ge.s32.totalorder %s2427_s16, 4 }
   0xa   : > { %s2489_s22 = scalar_select %p56_p5, %s2415_s13, %s58_s20  }
   0xb   : > { %155 = sbr.rel (%p1674_p7) target bundleno = 148 (0x94), region = 20 }
  0x10   : > { %158 = sbr.rel (!%p67_p3) target bundleno = 148 (0x94), region = 24  ;;  %s160_s23 = sand.u32 (%p67_p3), 1, %s2415_s13  }
  0x11   : > { %s2215_s24 = sshll.u32 (%p67_p3), %s2423_s15, 4  ;;  %s1675_s25 = sshll.u32 (%p67_p3), %s160_s23, 10 }
  0x12   : > { %s2497_s28 = scalar_lea.vmem (%p67_p3), %s3112_s1, %s2215_s24  ;;  %s2502_s29 = scalar_lea.vmem (%p67_p3), [#allocation2], %s1675_s25 }
  0x13   : > { %v178_v0 = vld [vmem:[%s2497_s28] sm:$0xff] (%p67_p3)  ;;  %v180_v1 = vld [vmem:[%s2497_s28 + $0x8] sm:$0xff] (%p67_p3) }
  0x14   : > { %v182_v2 = vld [vmem:[%s2497_s28 + $0x40] sm:$0xff] (%p67_p3)  ;;  %179 = vst [vmem:[%s2502_s29] sm:$0xff] (%p67_p3), %v178_v0  ;;  %v184_v3 = vld [vmem:[%s2497_s28 + $0x48] sm:$0xff] (%p67_p3) }
  0x15   : > { %181 = vst [vmem:[%s2502_s29 + $0x8] sm:$0xff] %v180_v1  ;;  %v186_v4 = vld [vmem:[%s2497_s28 + $0x80] sm:$0xff]  ;;  %v188_v5 = vld [vmem:[%s2497_s28 + $0x88] sm:$0xff] }
  0x16   : > { %183 = vst [vmem:[%s2502_s29 + $0x10] sm:$0xff] %v182_v2  ;;  %v190_v6 = vld [vmem:[%s2497_s28 + $0xc0] sm:$0xff]  ;;  %v192_v7 = vld [vmem:[%s2497_s28 + $0xc8] sm:$0xff] }
  0x17   : > { %185 = vst [vmem:[%s2502_s29 + $0x18] sm:$0xff] %v184_v3  ;;  %v194_v8 = vld [vmem:[%s2497_s28 + $0x100] sm:$0xff]  ;;  %v196_v9 = vld [vmem:[%s2497_s28 + $0x108] sm:$0xff] }
  0x18   : > { %187 = vst [vmem:[%s2502_s29 + $0x20] sm:$0xff] %v186_v4  ;;  %v198_v10 = vld [vmem:[%s2497_s28 + $0x140] sm:$0xff]  ;;  %v200_v11 = vld [vmem:[%s2497_s28 + $0x148] sm:$0xff] }
  0x19   : > { %189 = vst [vmem:[%s2502_s29 + $0x28] sm:$0xff] %v188_v5  ;;  %v202_v12 = vld [vmem:[%s2497_s28 + $0x180] sm:$0xff]  ;;  %v204_v13 = vld [vmem:[%s2497_s28 + $0x188] sm:$0xff] }
  0x1a   : > { %191 = vst [vmem:[%s2502_s29 + $0x30] sm:$0xff] %v190_v6  ;;  %v206_v14 = vld [vmem:[%s2497_s28 + $0x1c0] sm:$0xff]  ;;  %v208_v15 = vld [vmem:[%s2497_s28 + $0x1c8] sm:$0xff] }
  0x1b   : > { %193 = vst [vmem:[%s2502_s29 + $0x38] sm:$0xff] %v192_v7  ;;  %v210_v16 = vld [vmem:[%s2497_s28 + $0x200] sm:$0xff]  ;;  %v212_v17 = vld [vmem:[%s2497_s28 + $0x208] sm:$0xff] }
  0x1c   : > { %195 = vst [vmem:[%s2502_s29 + $0x40] sm:$0xff] %v194_v8  ;;  %v214_v18 = vld [vmem:[%s2497_s28 + $0x240] sm:$0xff]  ;;  %v216_v19 = vld [vmem:[%s2497_s28 + $0x248] sm:$0xff] }
  0x1d   : > { %197 = vst [vmem:[%s2502_s29 + $0x48] sm:$0xff] %v196_v9  ;;  %v218_v20 = vld [vmem:[%s2497_s28 + $0x280] sm:$0xff]  ;;  %v220_v21 = vld [vmem:[%s2497_s28 + $0x288] sm:$0xff] }
  0x1e   : > { %199 = vst [vmem:[%s2502_s29 + $0x50] sm:$0xff] %v198_v10  ;;  %v222_v22 = vld [vmem:[%s2497_s28 + $0x2c0] sm:$0xff]  ;;  %v224_v23 = vld [vmem:[%s2497_s28 + $0x2c8] sm:$0xff] }
  0x1f   : > { %201 = vst [vmem:[%s2502_s29 + $0x58] sm:$0xff] %v200_v11  ;;  %v226_v24 = vld [vmem:[%s2497_s28 + $0x300] sm:$0xff]  ;;  %v228_v25 = vld [vmem:[%s2497_s28 + $0x308] sm:$0xff] }
  0x20   : > { %203 = vst [vmem:[%s2502_s29 + $0x60] sm:$0xff] %v202_v12  ;;  %v230_v26 = vld [vmem:[%s2497_s28 + $0x340] sm:$0xff]  ;;  %v232_v27 = vld [vmem:[%s2497_s28 + $0x348] sm:$0xff] }
  0x21   : > { %205 = vst [vmem:[%s2502_s29 + $0x68] sm:$0xff] %v204_v13  ;;  %v234_v28 = vld [vmem:[%s2497_s28 + $0x380] sm:$0xff]  ;;  %v236_v29 = vld [vmem:[%s2497_s28 + $0x388] sm:$0xff] }
  0x22   : > { %207 = vst [vmem:[%s2502_s29 + $0x70] sm:$0xff] %v206_v14  ;;  %v238_v30 = vld [vmem:[%s2497_s28 + $0x3c0] sm:$0xff]  ;;  %v240_v31 = vld [vmem:[%s2497_s28 + $0x3c8] sm:$0xff] }
  0x23   : > { %209 = vst [vmem:[%s2502_s29 + $0x78] sm:$0xff] %v208_v15  ;;  %v242_v32 = vld [vmem:[%s2497_s28 + $0x400] sm:$0xff]  ;;  %v244_v33 = vld [vmem:[%s2497_s28 + $0x408] sm:$0xff] }
  0x24   : > { %211 = vst [vmem:[%s2502_s29 + $0x80] sm:$0xff] %v210_v16  ;;  %v246_v34 = vld [vmem:[%s2497_s28 + $0x440] sm:$0xff]  ;;  %v248_v35 = vld [vmem:[%s2497_s28 + $0x448] sm:$0xff] }
  0x25   : > { %213 = vst [vmem:[%s2502_s29 + $0x88] sm:$0xff] %v212_v17  ;;  %v250_v36 = vld [vmem:[%s2497_s28 + $0x480] sm:$0xff]  ;;  %v252_v37 = vld [vmem:[%s2497_s28 + $0x488] sm:$0xff] }
  0x26   : > { %215 = vst [vmem:[%s2502_s29 + $0x90] sm:$0xff] %v214_v18  ;;  %v254_v38 = vld [vmem:[%s2497_s28 + $0x4c0] sm:$0xff]  ;;  %v256_v39 = vld [vmem:[%s2497_s28 + $0x4c8] sm:$0xff] }
  0x27   : > { %217 = vst [vmem:[%s2502_s29 + $0x98] sm:$0xff] %v216_v19  ;;  %v258_v40 = vld [vmem:[%s2497_s28 + $0x500] sm:$0xff]  ;;  %v260_v41 = vld [vmem:[%s2497_s28 + $0x508] sm:$0xff] }
  0x28   : > { %219 = vst [vmem:[%s2502_s29 + $0xa0] sm:$0xff] %v218_v20  ;;  %v262_v42 = vld [vmem:[%s2497_s28 + $0x540] sm:$0xff]  ;;  %v264_v43 = vld [vmem:[%s2497_s28 + $0x548] sm:$0xff] }
  0x29   : > { %221 = vst [vmem:[%s2502_s29 + $0xa8] sm:$0xff] %v220_v21  ;;  %v266_v44 = vld [vmem:[%s2497_s28 + $0x580] sm:$0xff]  ;;  %v268_v45 = vld [vmem:[%s2497_s28 + $0x588] sm:$0xff] }
  0x2a   : > { %223 = vst [vmem:[%s2502_s29 + $0xb0] sm:$0xff] %v222_v22  ;;  %v270_v46 = vld [vmem:[%s2497_s28 + $0x5c0] sm:$0xff]  ;;  %v272_v47 = vld [vmem:[%s2497_s28 + $0x5c8] sm:$0xff] }
  0x2b   : > { %225 = vst [vmem:[%s2502_s29 + $0xb8] sm:$0xff] %v224_v23  ;;  %v274_v48 = vld [vmem:[%s2497_s28 + $0x600] sm:$0xff]  ;;  %v276_v49 = vld [vmem:[%s2497_s28 + $0x608] sm:$0xff] }
  0x2c   : > { %227 = vst [vmem:[%s2502_s29 + $0xc0] sm:$0xff] %v226_v24  ;;  %v278_v50 = vld [vmem:[%s2497_s28 + $0x640] sm:$0xff]  ;;  %v280_v51 = vld [vmem:[%s2497_s28 + $0x648] sm:$0xff] }
  0x2d   : > { %229 = vst [vmem:[%s2502_s29 + $0xc8] sm:$0xff] %v228_v25  ;;  %v282_v52 = vld [vmem:[%s2497_s28 + $0x680] sm:$0xff]  ;;  %v284_v53 = vld [vmem:[%s2497_s28 + $0x688] sm:$0xff] }
  0x2e   : > { %231 = vst [vmem:[%s2502_s29 + $0xd0] sm:$0xff] %v230_v26  ;;  %v286_v54 = vld [vmem:[%s2497_s28 + $0x6c0] sm:$0xff]  ;;  %v288_v55 = vld [vmem:[%s2497_s28 + $0x6c8] sm:$0xff] }
  0x2f   : > { %233 = vst [vmem:[%s2502_s29 + $0xd8] sm:$0xff] %v232_v27  ;;  %v290_v56 = vld [vmem:[%s2497_s28 + $0x700] sm:$0xff]  ;;  %v292_v57 = vld [vmem:[%s2497_s28 + $0x708] sm:$0xff] }
  0x30   : > { %235 = vst [vmem:[%s2502_s29 + $0xe0] sm:$0xff] %v234_v28  ;;  %v294_v58 = vld [vmem:[%s2497_s28 + $0x740] sm:$0xff]  ;;  %v296_v59 = vld [vmem:[%s2497_s28 + $0x748] sm:$0xff] }
  0x31   : > { %237 = vst [vmem:[%s2502_s29 + $0xe8] sm:$0xff] %v236_v29  ;;  %v298_v60 = vld [vmem:[%s2497_s28 + $0x780] sm:$0xff]  ;;  %v300_v61 = vld [vmem:[%s2497_s28 + $0x788] sm:$0xff] }
  0x32   : > { %239 = vst [vmem:[%s2502_s29 + $0xf0] sm:$0xff] %v238_v30  ;;  %v302_v62 = vld [vmem:[%s2497_s28 + $0x7c0] sm:$0xff]  ;;  %v304_v63 = vld [vmem:[%s2497_s28 + $0x7c8] sm:$0xff] }
  0x33   : > { %241 = vst [vmem:[%s2502_s29 + $0xf8] sm:$0xff] %v240_v31  ;;  %v306_v0 = vld [vmem:[%s2497_s28 + $0x800] sm:$0xff]  ;;  %v308_v1 = vld [vmem:[%s2497_s28 + $0x808] sm:$0xff] }
  0x34   : > { %243 = vst [vmem:[%s2502_s29 + $0x100] sm:$0xff] %v242_v32  ;;  %v310_v2 = vld [vmem:[%s2497_s28 + $0x840] sm:$0xff]  ;;  %v312_v3 = vld [vmem:[%s2497_s28 + $0x848] sm:$0xff] }
  0x35   : > { %245 = vst [vmem:[%s2502_s29 + $0x108] sm:$0xff] %v244_v33  ;;  %v314_v4 = vld [vmem:[%s2497_s28 + $0x880] sm:$0xff]  ;;  %v316_v5 = vld [vmem:[%s2497_s28 + $0x888] sm:$0xff] }
  0x36   : > { %247 = vst [vmem:[%s2502_s29 + $0x110] sm:$0xff] %v246_v34  ;;  %v318_v6 = vld [vmem:[%s2497_s28 + $0x8c0] sm:$0xff]  ;;  %v320_v7 = vld [vmem:[%s2497_s28 + $0x8c8] sm:$0xff] }
  0x37   : > { %249 = vst [vmem:[%s2502_s29 + $0x118] sm:$0xff] %v248_v35  ;;  %v322_v8 = vld [vmem:[%s2497_s28 + $0x900] sm:$0xff]  ;;  %v324_v9 = vld [vmem:[%s2497_s28 + $0x908] sm:$0xff] }
  0x38   : > { %251 = vst [vmem:[%s2502_s29 + $0x120] sm:$0xff] %v250_v36  ;;  %v326_v10 = vld [vmem:[%s2497_s28 + $0x940] sm:$0xff]  ;;  %v328_v11 = vld [vmem:[%s2497_s28 + $0x948] sm:$0xff] }
  0x39   : > { %253 = vst [vmem:[%s2502_s29 + $0x128] sm:$0xff] %v252_v37  ;;  %v330_v12 = vld [vmem:[%s2497_s28 + $0x980] sm:$0xff]  ;;  %v332_v13 = vld [vmem:[%s2497_s28 + $0x988] sm:$0xff] }
  0x3a   : > { %255 = vst [vmem:[%s2502_s29 + $0x130] sm:$0xff] %v254_v38  ;;  %v334_v14 = vld [vmem:[%s2497_s28 + $0x9c0] sm:$0xff]  ;;  %v336_v15 = vld [vmem:[%s2497_s28 + $0x9c8] sm:$0xff] }
  0x3b   : > { %257 = vst [vmem:[%s2502_s29 + $0x138] sm:$0xff] %v256_v39  ;;  %v338_v16 = vld [vmem:[%s2497_s28 + $0xa00] sm:$0xff]  ;;  %v340_v17 = vld [vmem:[%s2497_s28 + $0xa08] sm:$0xff] }
  0x3c   : > { %259 = vst [vmem:[%s2502_s29 + $0x140] sm:$0xff] %v258_v40  ;;  %v342_v18 = vld [vmem:[%s2497_s28 + $0xa40] sm:$0xff]  ;;  %v344_v19 = vld [vmem:[%s2497_s28 + $0xa48] sm:$0xff] }
  0x3d   : > { %261 = vst [vmem:[%s2502_s29 + $0x148] sm:$0xff] %v260_v41  ;;  %v346_v20 = vld [vmem:[%s2497_s28 + $0xa80] sm:$0xff]  ;;  %v348_v21 = vld [vmem:[%s2497_s28 + $0xa88] sm:$0xff] }
  0x3e   : > { %263 = vst [vmem:[%s2502_s29 + $0x150] sm:$0xff] %v262_v42  ;;  %v350_v22 = vld [vmem:[%s2497_s28 + $0xac0] sm:$0xff]  ;;  %v352_v23 = vld [vmem:[%s2497_s28 + $0xac8] sm:$0xff] }
  0x3f   : > { %265 = vst [vmem:[%s2502_s29 + $0x158] sm:$0xff] %v264_v43  ;;  %v354_v24 = vld [vmem:[%s2497_s28 + $0xb00] sm:$0xff]  ;;  %v356_v25 = vld [vmem:[%s2497_s28 + $0xb08] sm:$0xff] }
  0x40   : > { %267 = vst [vmem:[%s2502_s29 + $0x160] sm:$0xff] %v266_v44  ;;  %v358_v26 = vld [vmem:[%s2497_s28 + $0xb40] sm:$0xff]  ;;  %v360_v27 = vld [vmem:[%s2497_s28 + $0xb48] sm:$0xff] }
  0x41   : > { %269 = vst [vmem:[%s2502_s29 + $0x168] sm:$0xff] %v268_v45  ;;  %v362_v28 = vld [vmem:[%s2497_s28 + $0xb80] sm:$0xff]  ;;  %v364_v29 = vld [vmem:[%s2497_s28 + $0xb88] sm:$0xff] }
  0x42   : > { %271 = vst [vmem:[%s2502_s29 + $0x170] sm:$0xff] %v270_v46  ;;  %v366_v30 = vld [vmem:[%s2497_s28 + $0xbc0] sm:$0xff]  ;;  %v368_v31 = vld [vmem:[%s2497_s28 + $0xbc8] sm:$0xff] }
  0x43   : > { %273 = vst [vmem:[%s2502_s29 + $0x178] sm:$0xff] %v272_v47  ;;  %v370_v32 = vld [vmem:[%s2497_s28 + $0xc00] sm:$0xff]  ;;  %v372_v33 = vld [vmem:[%s2497_s28 + $0xc08] sm:$0xff] }
  0x44   : > { %275 = vst [vmem:[%s2502_s29 + $0x180] sm:$0xff] %v274_v48  ;;  %v374_v34 = vld [vmem:[%s2497_s28 + $0xc40] sm:$0xff]  ;;  %v376_v35 = vld [vmem:[%s2497_s28 + $0xc48] sm:$0xff] }
  0x45   : > { %277 = vst [vmem:[%s2502_s29 + $0x188] sm:$0xff] %v276_v49  ;;  %v378_v36 = vld [vmem:[%s2497_s28 + $0xc80] sm:$0xff]  ;;  %v380_v37 = vld [vmem:[%s2497_s28 + $0xc88] sm:$0xff] }
  0x46   : > { %279 = vst [vmem:[%s2502_s29 + $0x190] sm:$0xff] %v278_v50  ;;  %v382_v38 = vld [vmem:[%s2497_s28 + $0xcc0] sm:$0xff]  ;;  %v384_v39 = vld [vmem:[%s2497_s28 + $0xcc8] sm:$0xff] }
  0x47   : > { %281 = vst [vmem:[%s2502_s29 + $0x198] sm:$0xff] %v280_v51  ;;  %v386_v40 = vld [vmem:[%s2497_s28 + $0xd00] sm:$0xff]  ;;  %v388_v41 = vld [vmem:[%s2497_s28 + $0xd08] sm:$0xff] }
  0x48   : > { %283 = vst [vmem:[%s2502_s29 + $0x1a0] sm:$0xff] %v282_v52  ;;  %v390_v42 = vld [vmem:[%s2497_s28 + $0xd40] sm:$0xff]  ;;  %v392_v43 = vld [vmem:[%s2497_s28 + $0xd48] sm:$0xff] }
  0x49   : > { %285 = vst [vmem:[%s2502_s29 + $0x1a8] sm:$0xff] %v284_v53  ;;  %v394_v44 = vld [vmem:[%s2497_s28 + $0xd80] sm:$0xff]  ;;  %v396_v45 = vld [vmem:[%s2497_s28 + $0xd88] sm:$0xff] }
  0x4a   : > { %287 = vst [vmem:[%s2502_s29 + $0x1b0] sm:$0xff] %v286_v54  ;;  %v398_v46 = vld [vmem:[%s2497_s28 + $0xdc0] sm:$0xff]  ;;  %v400_v47 = vld [vmem:[%s2497_s28 + $0xdc8] sm:$0xff] }
  0x4b   : > { %289 = vst [vmem:[%s2502_s29 + $0x1b8] sm:$0xff] %v288_v55  ;;  %v402_v48 = vld [vmem:[%s2497_s28 + $0xe00] sm:$0xff]  ;;  %v404_v49 = vld [vmem:[%s2497_s28 + $0xe08] sm:$0xff] }
  0x4c   : > { %291 = vst [vmem:[%s2502_s29 + $0x1c0] sm:$0xff] %v290_v56  ;;  %v406_v50 = vld [vmem:[%s2497_s28 + $0xe40] sm:$0xff]  ;;  %v408_v51 = vld [vmem:[%s2497_s28 + $0xe48] sm:$0xff] }
  0x4d   : > { %293 = vst [vmem:[%s2502_s29 + $0x1c8] sm:$0xff] %v292_v57  ;;  %v410_v52 = vld [vmem:[%s2497_s28 + $0xe80] sm:$0xff]  ;;  %v412_v53 = vld [vmem:[%s2497_s28 + $0xe88] sm:$0xff] }
  0x4e   : > { %295 = vst [vmem:[%s2502_s29 + $0x1d0] sm:$0xff] %v294_v58  ;;  %v414_v54 = vld [vmem:[%s2497_s28 + $0xec0] sm:$0xff]  ;;  %v416_v55 = vld [vmem:[%s2497_s28 + $0xec8] sm:$0xff] }
  0x4f   : > { %297 = vst [vmem:[%s2502_s29 + $0x1d8] sm:$0xff] %v296_v59  ;;  %v418_v56 = vld [vmem:[%s2497_s28 + $0xf00] sm:$0xff]  ;;  %v420_v57 = vld [vmem:[%s2497_s28 + $0xf08] sm:$0xff] }
  0x50   : > { %299 = vst [vmem:[%s2502_s29 + $0x1e0] sm:$0xff] %v298_v60  ;;  %v422_v58 = vld [vmem:[%s2497_s28 + $0xf40] sm:$0xff]  ;;  %v424_v59 = vld [vmem:[%s2497_s28 + $0xf48] sm:$0xff] }
  0x51   : > { %301 = vst [vmem:[%s2502_s29 + $0x1e8] sm:$0xff] %v300_v61  ;;  %v426_v60 = vld [vmem:[%s2497_s28 + $0xf80] sm:$0xff]  ;;  %v428_v61 = vld [vmem:[%s2497_s28 + $0xf88] sm:$0xff] }
  0x52   : > { %303 = vst [vmem:[%s2502_s29 + $0x1f0] sm:$0xff] %v302_v62  ;;  %v430_v62 = vld [vmem:[%s2497_s28 + $0xfc0] sm:$0xff] }
  0x53   : > { %305 = vst [vmem:[%s2502_s29 + $0x1f8] sm:$0xff] %v304_v63  ;;  %v432_v63 = vld [vmem:[%s2497_s28 + $0xfc8] sm:$0xff] }
  0x54   : > { %307 = vst [vmem:[%s2502_s29 + $0x200] sm:$0xff] %v306_v0 }
  0x55   : > { %309 = vst [vmem:[%s2502_s29 + $0x208] sm:$0xff] %v308_v1 }
  0x56   : > { %311 = vst [vmem:[%s2502_s29 + $0x210] sm:$0xff] %v310_v2 }
  0x57   : > { %313 = vst [vmem:[%s2502_s29 + $0x218] sm:$0xff] %v312_v3 }
  0x58   : > { %315 = vst [vmem:[%s2502_s29 + $0x220] sm:$0xff] %v314_v4 }
  0x59   : > { %317 = vst [vmem:[%s2502_s29 + $0x228] sm:$0xff] %v316_v5 }
  0x5a   : > { %319 = vst [vmem:[%s2502_s29 + $0x230] sm:$0xff] %v318_v6 }
  0x5b   : > { %321 = vst [vmem:[%s2502_s29 + $0x238] sm:$0xff] %v320_v7 }
  0x5c   : > { %323 = vst [vmem:[%s2502_s29 + $0x240] sm:$0xff] %v322_v8 }
  0x5d   : > { %325 = vst [vmem:[%s2502_s29 + $0x248] sm:$0xff] %v324_v9 }
  0x5e   : > { %327 = vst [vmem:[%s2502_s29 + $0x250] sm:$0xff] %v326_v10 }
  0x5f   : > { %329 = vst [vmem:[%s2502_s29 + $0x258] sm:$0xff] %v328_v11 }
  0x60   : > { %331 = vst [vmem:[%s2502_s29 + $0x260] sm:$0xff] %v330_v12 }
  0x61   : > { %333 = vst [vmem:[%s2502_s29 + $0x268] sm:$0xff] %v332_v13 }
  0x62   : > { %335 = vst [vmem:[%s2502_s29 + $0x270] sm:$0xff] %v334_v14 }
  0x63   : > { %337 = vst [vmem:[%s2502_s29 + $0x278] sm:$0xff] %v336_v15 }
  0x64   : > { %339 = vst [vmem:[%s2502_s29 + $0x280] sm:$0xff] %v338_v16 }
  0x65   : > { %341 = vst [vmem:[%s2502_s29 + $0x288] sm:$0xff] %v340_v17 }
  0x66   : > { %343 = vst [vmem:[%s2502_s29 + $0x290] sm:$0xff] %v342_v18 }
  0x67   : > { %345 = vst [vmem:[%s2502_s29 + $0x298] sm:$0xff] %v344_v19 }
  0x68   : > { %347 = vst [vmem:[%s2502_s29 + $0x2a0] sm:$0xff] %v346_v20 }
  0x69   : > { %349 = vst [vmem:[%s2502_s29 + $0x2a8] sm:$0xff] %v348_v21 }
  0x6a   : > { %351 = vst [vmem:[%s2502_s29 + $0x2b0] sm:$0xff] %v350_v22 }
  0x6b   : > { %353 = vst [vmem:[%s2502_s29 + $0x2b8] sm:$0xff] %v352_v23 }
  0x6c   : > { %355 = vst [vmem:[%s2502_s29 + $0x2c0] sm:$0xff] %v354_v24 }
  0x6d   : > { %357 = vst [vmem:[%s2502_s29 + $0x2c8] sm:$0xff] %v356_v25 }
  0x6e   : > { %359 = vst [vmem:[%s2502_s29 + $0x2d0] sm:$0xff] %v358_v26 }
  0x6f   : > { %361 = vst [vmem:[%s2502_s29 + $0x2d8] sm:$0xff] %v360_v27 }
  0x70   : > { %363 = vst [vmem:[%s2502_s29 + $0x2e0] sm:$0xff] %v362_v28 }
  0x71   : > { %365 = vst [vmem:[%s2502_s29 + $0x2e8] sm:$0xff] %v364_v29 }
  0x72   : > { %367 = vst [vmem:[%s2502_s29 + $0x2f0] sm:$0xff] %v366_v30 }
  0x73   : > { %369 = vst [vmem:[%s2502_s29 + $0x2f8] sm:$0xff] %v368_v31 }
  0x74   : > { %371 = vst [vmem:[%s2502_s29 + $0x300] sm:$0xff] %v370_v32 }
  0x75   : > { %373 = vst [vmem:[%s2502_s29 + $0x308] sm:$0xff] %v372_v33 }
  0x76   : > { %375 = vst [vmem:[%s2502_s29 + $0x310] sm:$0xff] %v374_v34 }
  0x77   : > { %377 = vst [vmem:[%s2502_s29 + $0x318] sm:$0xff] %v376_v35 }
  0x78   : > { %379 = vst [vmem:[%s2502_s29 + $0x320] sm:$0xff] %v378_v36 }
  0x79   : > { %381 = vst [vmem:[%s2502_s29 + $0x328] sm:$0xff] %v380_v37 }
  0x7a   : > { %383 = vst [vmem:[%s2502_s29 + $0x330] sm:$0xff] %v382_v38 }
  0x7b   : > { %385 = vst [vmem:[%s2502_s29 + $0x338] sm:$0xff] %v384_v39 }
  0x7c   : > { %387 = vst [vmem:[%s2502_s29 + $0x340] sm:$0xff] %v386_v40 }
  0x7d   : > { %389 = vst [vmem:[%s2502_s29 + $0x348] sm:$0xff] %v388_v41 }
  0x7e   : > { %391 = vst [vmem:[%s2502_s29 + $0x350] sm:$0xff] %v390_v42 }
  0x7f   : > { %393 = vst [vmem:[%s2502_s29 + $0x358] sm:$0xff] %v392_v43 }
  0x80   : > { %395 = vst [vmem:[%s2502_s29 + $0x360] sm:$0xff] %v394_v44 }
  0x81   : > { %397 = vst [vmem:[%s2502_s29 + $0x368] sm:$0xff] %v396_v45 }
  0x82   : > { %399 = vst [vmem:[%s2502_s29 + $0x370] sm:$0xff] %v398_v46 }
  0x83   : > { %401 = vst [vmem:[%s2502_s29 + $0x378] sm:$0xff] %v400_v47 }
  0x84   : > { %403 = vst [vmem:[%s2502_s29 + $0x380] sm:$0xff] %v402_v48 }
  0x85   : > { %405 = vst [vmem:[%s2502_s29 + $0x388] sm:$0xff] %v404_v49 }
  0x86   : > { %407 = vst [vmem:[%s2502_s29 + $0x390] sm:$0xff] %v406_v50 }
  0x87   : > { %409 = vst [vmem:[%s2502_s29 + $0x398] sm:$0xff] %v408_v51 }
  0x88   : > { %411 = vst [vmem:[%s2502_s29 + $0x3a0] sm:$0xff] %v410_v52 }
  0x89   : > { %413 = vst [vmem:[%s2502_s29 + $0x3a8] sm:$0xff] %v412_v53 }
  0x8a   : > { %415 = vst [vmem:[%s2502_s29 + $0x3b0] sm:$0xff] %v414_v54 }
  0x8b   : > { %417 = vst [vmem:[%s2502_s29 + $0x3b8] sm:$0xff] %v416_v55 }
  0x8c   : > { %419 = vst [vmem:[%s2502_s29 + $0x3c0] sm:$0xff] %v418_v56 }
  0x8d   : > { %421 = vst [vmem:[%s2502_s29 + $0x3c8] sm:$0xff] %v420_v57 }
  0x8e   : > { %423 = vst [vmem:[%s2502_s29 + $0x3d0] sm:$0xff] %v422_v58 }
  0x8f   : > { %425 = vst [vmem:[%s2502_s29 + $0x3d8] sm:$0xff] %v424_v59 }
  0x90   : > { %427 = vst [vmem:[%s2502_s29 + $0x3e0] sm:$0xff] %v426_v60 }
  0x91   : > { %429 = vst [vmem:[%s2502_s29 + $0x3e8] sm:$0xff] %v428_v61 }
  0x92   : > { %431 = vst [vmem:[%s2502_s29 + $0x3f0] sm:$0xff] %v430_v62 }
  0x93   : > { %433 = vst [vmem:[%s2502_s29 + $0x3f8] sm:$0xff] %v432_v63 }
  0x94 PF: > { %p1678_p8 = scmp.ge.s32.totalorder %s2427_s16, 1  ;;  %p446_p9 = scmp.lt.s32.totalorder %s2427_s16, 5 }
  0x96   : > { %p447_p10 = pnand %p1678_p8, %p446_p9 }
  0x97   : > { %s453_s30 = sand.u32 (!%p447_p10), 1, %s2411_s12  }
  0x98   : > { %450 = sbr.rel (%p447_p10) target bundleno = 446 (0x1be), region = 51  ;;  %s1679_s4 = sshll.u32 (!%p447_p10), %s453_s30, 10 }
  0x99   : > { %s2762_s5 = scalar_lea.vmem (!%p447_p10), [#allocation2], %s1679_s4  ;;  %s1681_s4 = sshll.u32 (!%p447_p10), %s2419_s14, 2 }
  0x9a   : > { %p494_p11 = scmp.lt.s32.totalorder (!%p447_p10), %s1681_s4, 15  ;;  %s1680_s8 = sshll.u32 (!%p447_p10), %s453_s30, 5 }
  0x9b   : > { %s3078_s9 = scalar_lea.vmem (!%p447_p10), [#allocation3], %s1680_s8 }
  0x9d   : > { %v1812_v0 = vld [vmem:[%s2762_s5 + $0xe0] sm:$0xf]  ;;  %v2250_v1 = vld [vmem:[%s2762_s5 + $0xec] sm:$0xf0]  ;;  %s3123_s4 = smov (!%p494_p11, %s1681_s4), 15  ;;  %s2348_s12 = sshll.u32 (%p2484_p6), %s2419_s14, 4 }
  0x9e   : > { %v1940_v2 = vld [vmem:[%s2762_s5 + $0x1e0] sm:$0xf]  ;;  %v1813_v3 = vor.u32 %v2250_v1, %v1812_v0  ;;  %v2282_v4 = vld [vmem:[%s2762_s5 + $0x1ec] sm:$0xf0]  ;;  %s496_s7 = scalar_lea.vmem %s3113_s2, %s3123_s4  ;;  %s1554_s11 = scalar_lea.vmem (%p2484_p6), %s3114_s3, %s2348_s12 }
  0x9f   : > { %v2068_v5 = vld [vmem:[%s2762_s5 + $0x2e0] sm:$0xf]  ;;  %v2314_v6 = vld [vmem:[%s2762_s5 + $0x2ec] sm:$0xf0]  ;;  %v1941_v7 = vor.u32 %v2282_v4, %v1940_v2 }
  0xa0   : > { %v2069_v8 = vor.u32 %v2314_v6, %v2068_v5  ;;  %v2196_v9 = vld [vmem:[%s2762_s5 + $0x3e0] sm:$0xf]  ;;  %v2346_v10 = vld [vmem:[%s2762_s5 + $0x3ec] sm:$0xf0]  ;;  %1302 = vmatpush.bf16.msra.mxu0 %v1813_v3 }
  0xa1   : > { %v1796_v11 = vld [vmem:[%s2762_s5 + $0xc0] sm:$0xf]  ;;  %v2197_v12 = vor.u32 %v2346_v10, %v2196_v9  ;;  %v2246_v13 = vld [vmem:[%s2762_s5 + $0xcc] sm:$0xf0]  ;;  %1316 = vmatpush.bf16.msra.mxu1 %v1941_v7 }
  0xa2   : > { %v1924_v14 = vld [vmem:[%s2762_s5 + $0x1c0] sm:$0xf]  ;;  %v2278_v15 = vld [vmem:[%s2762_s5 + $0x1cc] sm:$0xf0]  ;;  %1330 = vmatpush.bf16.msra.mxu2 %v2069_v8  ;;  %v1797_v16 = vor.u32 %v2246_v13, %v1796_v11 }
  0xa3   : > { %v1925_v17 = vor.u32 %v2278_v15, %v1924_v14  ;;  %v2052_v18 = vld [vmem:[%s2762_s5 + $0x2c0] sm:$0xf]  ;;  %v2310_v19 = vld [vmem:[%s2762_s5 + $0x2cc] sm:$0xf0]  ;;  %1344 = vmatpush.bf16.msra.mxu3 %v2197_v12 }
  0xa4   : > { %v2180_v20 = vld [vmem:[%s2762_s5 + $0x3c0] sm:$0xf]  ;;  %v2053_v21 = vor.u32 %v2310_v19, %v2052_v18  ;;  %v2342_v22 = vld [vmem:[%s2762_s5 + $0x3cc] sm:$0xf0]  ;;  %1303 = vmatpush.bf16.msra.mxu0 %v1797_v16 }
  0xa5   : > { %v1780_v23 = vld [vmem:[%s2762_s5 + $0xa0] sm:$0xf]  ;;  %v2242_v24 = vld [vmem:[%s2762_s5 + $0xac] sm:$0xf0]  ;;  %v2181_v25 = vor.u32 %v2342_v22, %v2180_v20  ;;  %1317 = vmatpush.bf16.msra.mxu1 %v1925_v17 }
  0xa6   : > { %v1908_v26 = vld [vmem:[%s2762_s5 + $0x1a0] sm:$0xf]  ;;  %v2274_v27 = vld [vmem:[%s2762_s5 + $0x1ac] sm:$0xf0]  ;;  %v1781_v29 = vor.u32 %v2242_v24, %v1780_v23  ;;  %1331 = vmatpush.bf16.msra.mxu2 %v2053_v21 }
  0xa7   : > { %v2036_v28 = vld [vmem:[%s2762_s5 + $0x2a0] sm:$0xf]  ;;  %v2306_v30 = vld [vmem:[%s2762_s5 + $0x2ac] sm:$0xf0]  ;;  %v1909_v33 = vor.u32 %v2274_v27, %v1908_v26  ;;  %1345 = vmatpush.bf16.msra.mxu3 %v2181_v25 }
  0xa8   : > { %v2164_v31 = vld [vmem:[%s2762_s5 + $0x3a0] sm:$0xf]  ;;  %v2338_v32 = vld [vmem:[%s2762_s5 + $0x3ac] sm:$0xf0]  ;;  %v2037_v34 = vor.u32 %v2306_v30, %v2036_v28  ;;  %1304 = vmatpush.bf16.msra.mxu0 %v1781_v29  ;;  %v2248_v28 = vld [vmem:[%s2762_s5 + $0xe4] sm:$0xf] }
  0xa9   : > { %v1764_v35 = vld [vmem:[%s2762_s5 + $0x80] sm:$0xf]  ;;  %v2238_v36 = vld [vmem:[%s2762_s5 + $0x8c] sm:$0xf0]  ;;  %v2165_v38 = vor.u32 %v2338_v32, %v2164_v31  ;;  %1318 = vmatpush.bf16.msra.mxu1 %v1909_v33  ;;  %v1814_v29 = vld [vmem:[%s2762_s5 + $0xf0] sm:$0xf0] }
  0xaa   : > { %v1892_v37 = vld [vmem:[%s2762_s5 + $0x180] sm:$0xf]  ;;  %v2270_v39 = vld [vmem:[%s2762_s5 + $0x18c] sm:$0xf0]  ;;  %v1765_v44 = vor.u32 %v2238_v36, %v1764_v35  ;;  %1332 = vmatpush.bf16.msra.mxu2 %v2037_v34  ;;  %v2280_v30 = vld [vmem:[%s2762_s5 + $0x1e4] sm:$0xf] }
  0xab   : > { %v2020_v40 = vld [vmem:[%s2762_s5 + $0x280] sm:$0xf]  ;;  %v2302_v41 = vld [vmem:[%s2762_s5 + $0x28c] sm:$0xf0]  ;;  %v1893_v45 = vor.u32 %v2270_v39, %v1892_v37  ;;  %1346 = vmatpush.bf16.msra.mxu3 %v2165_v38  ;;  %v1942_v32 = vld [vmem:[%s2762_s5 + $0x1f0] sm:$0xf0] }
  0xac   : > { %v2148_v42 = vld [vmem:[%s2762_s5 + $0x380] sm:$0xf]  ;;  %v2334_v43 = vld [vmem:[%s2762_s5 + $0x38c] sm:$0xf0]  ;;  %v2021_v46 = vor.u32 %v2302_v41, %v2020_v40  ;;  %1305 = vmatpush.bf16.msra.mxu0 %v1765_v44  ;;  %v2312_v33 = vld [vmem:[%s2762_s5 + $0x2e4] sm:$0xf]  ;;  %v1817_v40 = vor.u32 %v2248_v28, %v1814_v29 }
  0xad   : > { %v1748_v47 = vld [vmem:[%s2762_s5 + $0x60] sm:$0xf]  ;;  %v2234_v48 = vld [vmem:[%s2762_s5 + $0x6c] sm:$0xf0]  ;;  %v2149_v50 = vor.u32 %v2334_v43, %v2148_v42  ;;  %1319 = vmatpush.bf16.msra.mxu1 %v1893_v45  ;;  %v2070_v34 = vld [vmem:[%s2762_s5 + $0x2f0] sm:$0xf0]  ;;  %v1945_v43 = vor.u32 %v2280_v30, %v1942_v32 }
  0xae   : > { %v1876_v49 = vld [vmem:[%s2762_s5 + $0x160] sm:$0xf]  ;;  %v2266_v51 = vld [vmem:[%s2762_s5 + $0x16c] sm:$0xf0]  ;;  %v1749_v56 = vor.u32 %v2234_v48, %v1748_v47  ;;  %1333 = vmatpush.bf16.msra.mxu2 %v2021_v46  ;;  %v2344_v37 = vld [vmem:[%s2762_s5 + $0x3e4] sm:$0xf]  ;;  %v2073_v44 = vor.u32 %v2312_v33, %v2070_v34 }
  0xaf   : > { %v2004_v52 = vld [vmem:[%s2762_s5 + $0x260] sm:$0xf]  ;;  %v2298_v53 = vld [vmem:[%s2762_s5 + $0x26c] sm:$0xf0]  ;;  %v1877_v57 = vor.u32 %v2266_v51, %v1876_v49  ;;  %1347 = vmatpush.bf16.msra.mxu3 %v2149_v50  ;;  %v2198_v38 = vld [vmem:[%s2762_s5 + $0x3f0] sm:$0xf0] }
  0xb0   : > { %v2132_v54 = vld [vmem:[%s2762_s5 + $0x360] sm:$0xf]  ;;  %v2330_v55 = vld [vmem:[%s2762_s5 + $0x36c] sm:$0xf0]  ;;  %v2005_v58 = vor.u32 %v2298_v53, %v2004_v52  ;;  %1306 = vmatpush.bf16.msra.mxu0 %v1749_v56  ;;  %v2244_v41 = vld [vmem:[%s2762_s5 + $0xc4] sm:$0xf]  ;;  %v2201_v48 = vor.u32 %v2344_v37, %v2198_v38 }
  0xb1   : > { %v1732_v59 = vld [vmem:[%s2762_s5 + $0x40] sm:$0xf]  ;;  %v2230_v60 = vld [vmem:[%s2762_s5 + $0x4c] sm:$0xf0]  ;;  %v2133_v62 = vor.u32 %v2330_v55, %v2132_v54  ;;  %1320 = vmatpush.bf16.msra.mxu1 %v1877_v57  ;;  %v1798_v42 = vld [vmem:[%s2762_s5 + $0xd0] sm:$0xf0] }
  0xb2   : > { %v1860_v61 = vld [vmem:[%s2762_s5 + $0x140] sm:$0xf]  ;;  %v2262_v63 = vld [vmem:[%s2762_s5 + $0x14c] sm:$0xf0]  ;;  %v1733_v4 = vor.u32 %v2230_v60, %v1732_v59  ;;  %1334 = vmatpush.bf16.msra.mxu2 %v2005_v58  ;;  %v2276_v45 = vld [vmem:[%s2762_s5 + $0x1c4] sm:$0xf]  ;;  %v1801_v55 = vor.u32 %v2244_v41, %v1798_v42 }
  0xb3   : > { %v1988_v0 = vld [vmem:[%s2762_s5 + $0x240] sm:$0xf]  ;;  %v2294_v1 = vld [vmem:[%s2762_s5 + $0x24c] sm:$0xf0]  ;;  %v1861_v5 = vor.u32 %v2262_v63, %v1860_v61  ;;  %1348 = vmatpush.bf16.msra.mxu3 %v2133_v62  ;;  %v1926_v46 = vld [vmem:[%s2762_s5 + $0x1d0] sm:$0xf0] }
  0xb4   : > { %v2116_v2 = vld [vmem:[%s2762_s5 + $0x340] sm:$0xf]  ;;  %v2326_v3 = vld [vmem:[%s2762_s5 + $0x34c] sm:$0xf0]  ;;  %v1989_v6 = vor.u32 %v2294_v1, %v1988_v0  ;;  %1307 = vmatpush.bf16.msra.mxu0 %v1733_v4  ;;  %v2308_v47 = vld [vmem:[%s2762_s5 + $0x2c4] sm:$0xf]  ;;  %v1929_v60 = vor.u32 %v2276_v45, %v1926_v46 }
  0xb5   : > { %v1716_v7 = vld [vmem:[%s2762_s5 + $0x20] sm:$0xf]  ;;  %v2226_v8 = vld [vmem:[%s2762_s5 + $0x2c] sm:$0xf0]  ;;  %v2117_v10 = vor.u32 %v2326_v3, %v2116_v2  ;;  %1321 = vmatpush.bf16.msra.mxu1 %v1861_v5  ;;  %v2054_v49 = vld [vmem:[%s2762_s5 + $0x2d0] sm:$0xf0] }
  0xb6   : > { %v1844_v9 = vld [vmem:[%s2762_s5 + $0x120] sm:$0xf]  ;;  %v2258_v11 = vld [vmem:[%s2762_s5 + $0x12c] sm:$0xf0]  ;;  %v1717_v16 = vor.u32 %v2226_v8, %v1716_v7  ;;  %1335 = vmatpush.bf16.msra.mxu2 %v1989_v6  ;;  %v2340_v50 = vld [vmem:[%s2762_s5 + $0x3c4] sm:$0xf]  ;;  %v2057_v61 = vor.u32 %v2308_v47, %v2054_v49 }
  0xb7   : > { %v1972_v12 = vld [vmem:[%s2762_s5 + $0x220] sm:$0xf]  ;;  %v2290_v13 = vld [vmem:[%s2762_s5 + $0x22c] sm:$0xf0]  ;;  %v1845_v19 = vor.u32 %v2258_v11, %v1844_v9  ;;  %1349 = vmatpush.bf16.msra.mxu3 %v2117_v10  ;;  %v2182_v51 = vld [vmem:[%s2762_s5 + $0x3d0] sm:$0xf0] }
  0xb8   : > { %v2100_v14 = vld [vmem:[%s2762_s5 + $0x320] sm:$0xf]  ;;  %v2322_v15 = vld [vmem:[%s2762_s5 + $0x32c] sm:$0xf0]  ;;  %v1973_v20 = vor.u32 %v2290_v13, %v1972_v12  ;;  %1308 = vmatpush.bf16.msra.mxu0 %v1717_v16  ;;  %v2240_v52 = vld [vmem:[%s2762_s5 + $0xa4] sm:$0xf]  ;;  %v2185_v1 = vor.u32 %v2340_v50, %v2182_v51 }
  0xb9   : > { %v1700_v17 = vld [vmem:[%s2762_s5] sm:$0xf]  ;;  %v2222_v18 = vld [vmem:[%s2762_s5 + $0xc] sm:$0xf0]  ;;  %v2101_v24 = vor.u32 %v2322_v15, %v2100_v14  ;;  %1322 = vmatpush.bf16.msra.mxu1 %v1845_v19  ;;  %v1692_v53 = vld [vmem:[%s3111_s0 + $0x8] sm:$0xf] }
  0xba   : > { %v1828_v21 = vld [vmem:[%s2762_s5 + $0x100] sm:$0xf]  ;;  %v2254_v22 = vld [vmem:[%s2762_s5 + $0x10c] sm:$0xf0]  ;;  %v1701_v31 = vor.u32 %v2222_v18, %v1700_v17  ;;  %1336 = vmatpush.bf16.msra.mxu2 %v1973_v20  ;;  %v2219_v54 = vld [vmem:[%s3111_s0 + $0x14] sm:$0xf0] }
  0xbb   : > { %v1956_v23 = vld [vmem:[%s2762_s5 + $0x200] sm:$0xf]  ;;  %v2286_v25 = vld [vmem:[%s2762_s5 + $0x20c] sm:$0xf0]  ;;  %v1829_v35 = vor.u32 %v2254_v22, %v1828_v21  ;;  %1350 = vmatpush.bf16.msra.mxu3 %v2101_v24  ;;  %v1782_v56 = vld [vmem:[%s2762_s5 + $0xb0] sm:$0xf0]  ;;  %v2854_v59 = vor.u32 %v2219_v54, %v1692_v53 }
  0xbc   : > { %v2084_v26 = vld [vmem:[%s2762_s5 + $0x300] sm:$0xf]  ;;  %v2318_v27 = vld [vmem:[%s2762_s5 + $0x30c] sm:$0xf0]  ;;  %v1957_v36 = vor.u32 %v2286_v25, %v1956_v23  ;;  %1309 = vmatpush.bf16.msra.mxu0 %v1701_v31  ;;  %v2272_v57 = vld [vmem:[%s2762_s5 + $0x1a4] sm:$0xf]  ;;  %v1785_v9 = vor.u32 %v2240_v52, %v1782_v56 }
  0xbd   : > { %v2085_v39 = vor.u32 %v2318_v27, %v2084_v26  ;;  %1323 = vmatpush.bf16.msra.mxu1 %v1829_v35  ;;  %v1910_v58 = vld [vmem:[%s2762_s5 + $0x1b0] sm:$0xf0]  ;;  %v2304_v62 = vld [vmem:[%s2762_s5 + $0x2a4] sm:$0xf]  ;;  %v1684_v3 = vld [vmem:[%s3111_s0] sm:$0xf] }
  0xbe   : > { %1337 = vmatpush.bf16.msra.mxu2 %v1957_v36  ;;  %v2038_v63 = vld [vmem:[%s2762_s5 + $0x2b0] sm:$0xf0]  ;;  %v2336_v0 = vld [vmem:[%s2762_s5 + $0x3a4] sm:$0xf]  ;;  %v2218_v4 = vld [vmem:[%s3111_s0 + $0xc] sm:$0xf0]  ;;  %v1913_v12 = vor.u32 %v2272_v57, %v1910_v58 }
  0xbf   : > { %1351 = vmatpush.bf16.msra.mxu3 %v2085_v39  ;;  %v2166_v2 = vld [vmem:[%s2762_s5 + $0x3b0] sm:$0xf0]  ;;  %v2867_v5 = vor.u32 %v2218_v4, %v1684_v3  ;;  %v2217_v6 = vld [vmem:[%s3111_s0 + $0xc] sm:$0xf]  ;;  %v1694_v7 = vld [vmem:[%s3111_s0 + $0x18] sm:$0xf0]  ;;  %v2041_v13 = vor.u32 %v2304_v62, %v2038_v63 }
  0xc0   : > { %1358 = vmatpush.bf16.msrb.mxu0 %v1817_v40  ;;  %v2216_v8 = vld [vmem:[%s3111_s0 + $0x4] sm:$0xf]  ;;  %v2878_v10 = vor.u32 %v2217_v6, %v1694_v7  ;;  %v1686_v11 = vld [vmem:[%s3111_s0 + $0x10] sm:$0xf0]  ;;  %v2169_v18 = vor.u32 %v2336_v0, %v2166_v2 }
  0xc1   : > { %1372 = vmatpush.bf16.msrb.mxu1 %v1945_v43  ;;  %1338 = vmatmul.bf16.vlgmr.msra.gmra.mxu2 %v2854_v59  ;;  %v2236_v14 = vld [vmem:[%s2762_s5 + $0x84] sm:$0xf]  ;;  %v1766_v15 = vld [vmem:[%s2762_s5 + $0x90] sm:$0xf0]  ;;  %v2886_v17 = vor.u32 %v2216_v8, %v1686_v11  ;;  %v1820_v11 = vld [vmem:[%s2762_s5 + $0xe8] sm:$0xf] }
  0xc2   : > { %1386 = vmatpush.bf16.msrb.mxu2 %v2073_v44  ;;  %v2268_v16 = vld [vmem:[%s2762_s5 + $0x184] sm:$0xf]  ;;  %v1894_v19 = vld [vmem:[%s2762_s5 + $0x190] sm:$0xf0]  ;;  %1310 = vmatmul.bf16.vlgmr.msra.gmra.mxu0 %v2867_v5  ;;  %v1769_v24 = vor.u32 %v2236_v14, %v1766_v15  ;;  %v2283_v15 = vld [vmem:[%s2762_s5 + $0x1f4] sm:$0xf0] }
  0xc3   : > { %1400 = vmatpush.bf16.msrb.mxu3 %v2201_v48  ;;  %v2300_v20 = vld [vmem:[%s2762_s5 + $0x284] sm:$0xf]  ;;  %v2022_v21 = vld [vmem:[%s2762_s5 + $0x290] sm:$0xf0]  ;;  %1324 = vmatmul.bf16.vlgmr.msra.gmra.mxu1 %v2886_v17  ;;  %v1897_v25 = vor.u32 %v2268_v16, %v1894_v19  ;;  %v2076_v16 = vld [vmem:[%s2762_s5 + $0x2e8] sm:$0xf] }
  0xc4   : > { %1359 = vmatpush.bf16.msrb.mxu0 %v1801_v55  ;;  %v2332_v22 = vld [vmem:[%s2762_s5 + $0x384] sm:$0xf]  ;;  %v2150_v23 = vld [vmem:[%s2762_s5 + $0x390] sm:$0xf0]  ;;  %1352 = vmatmul.bf16.vlgmr.msra.gmra.mxu3 %v2878_v10  ;;  %v2025_v26 = vor.u32 %v2300_v20, %v2022_v21  ;;  %v2204_v21 = vld [vmem:[%s2762_s5 + $0x3e8] sm:$0xf] }
  0xc5   : > { %1373 = vmatpush.bf16.msrb.mxu1 %v1929_v60  ;;  %v2232_v27 = vld [vmem:[%s2762_s5 + $0x64] sm:$0xf]  ;;  %v1750_v28 = vld [vmem:[%s2762_s5 + $0x70] sm:$0xf0]  ;;  %v2153_v30 = vor.u32 %v2332_v22, %v2150_v23  ;;  %v2347_v22 = vld [vmem:[%s2762_s5 + $0x3f4] sm:$0xf0] }
  0xc6   : > { %1387 = vmatpush.bf16.msrb.mxu2 %v2057_v61  ;;  %v2264_v29 = vld [vmem:[%s2762_s5 + $0x164] sm:$0xf]  ;;  %v1878_v31 = vld [vmem:[%s2762_s5 + $0x170] sm:$0xf0]  ;;  %v1753_v36 = vor.u32 %v2232_v27, %v1750_v28  ;;  %v1804_v27 = vld [vmem:[%s2762_s5 + $0xc8] sm:$0xf] }
  0xc7   : > { %1401 = vmatpush.bf16.msrb.mxu3 %v2185_v1  ;;  %v2296_v32 = vld [vmem:[%s2762_s5 + $0x264] sm:$0xf]  ;;  %v2006_v33 = vld [vmem:[%s2762_s5 + $0x270] sm:$0xf0]  ;;  %v1881_v37 = vor.u32 %v2264_v29, %v1878_v31  ;;  %v2247_v28 = vld [vmem:[%s2762_s5 + $0xd4] sm:$0xf0] }
  0xc8   : > { %1360 = vmatpush.bf16.msrb.mxu0 %v1785_v9  ;;  %v2328_v34 = vld [vmem:[%s2762_s5 + $0x364] sm:$0xf]  ;;  %v2134_v35 = vld [vmem:[%s2762_s5 + $0x370] sm:$0xf0]  ;;  %v2009_v38 = vor.u32 %v2296_v32, %v2006_v33  ;;  %v1932_v29 = vld [vmem:[%s2762_s5 + $0x1c8] sm:$0xf] }
  0xc9   : > { %1374 = vmatpush.bf16.msrb.mxu1 %v1913_v12  ;;  %v2228_v39 = vld [vmem:[%s2762_s5 + $0x44] sm:$0xf]  ;;  %v1734_v40 = vld [vmem:[%s2762_s5 + $0x50] sm:$0xf0]  ;;  %v2137_v42 = vor.u32 %v2328_v34, %v2134_v35  ;;  %v2251_v12 = vld [vmem:[%s2762_s5 + $0xf4] sm:$0xf0] }
  0xca   : > { %1388 = vmatpush.bf16.msrb.mxu2 %v2041_v13  ;;  %v2260_v41 = vld [vmem:[%s2762_s5 + $0x144] sm:$0xf]  ;;  %v1862_v43 = vld [vmem:[%s2762_s5 + $0x150] sm:$0xf0]  ;;  %v1737_v48 = vor.u32 %v2228_v39, %v1734_v40  ;;  %v1948_v13 = vld [vmem:[%s2762_s5 + $0x1e8] sm:$0xf] }
  0xcb   : > { %1402 = vmatpush.bf16.msrb.mxu3 %v2169_v18  ;;  %v2292_v44 = vld [vmem:[%s2762_s5 + $0x244] sm:$0xf]  ;;  %v1990_v45 = vld [vmem:[%s2762_s5 + $0x250] sm:$0xf0]  ;;  %v1865_v49 = vor.u32 %v2260_v41, %v1862_v43  ;;  %v2315_v18 = vld [vmem:[%s2762_s5 + $0x2f4] sm:$0xf0] }
  0xcc   : > { %1361 = vmatpush.bf16.msrb.mxu0 %v1769_v24  ;;  %v2324_v46 = vld [vmem:[%s2762_s5 + $0x344] sm:$0xf]  ;;  %v2118_v47 = vld [vmem:[%s2762_s5 + $0x350] sm:$0xf0]  ;;  %v1993_v50 = vor.u32 %v2292_v44, %v1990_v45  ;;  %v1821_v24 = vor.u32 %v2251_v12, %v1820_v11  ;;  %v2279_v31 = vld [vmem:[%s2762_s5 + $0x1d4] sm:$0xf0] }
  0xcd   : > { %1375 = vmatpush.bf16.msrb.mxu1 %v1897_v25  ;;  %v2224_v51 = vld [vmem:[%s2762_s5 + $0x24] sm:$0xf]  ;;  %v1718_v52 = vld [vmem:[%s2762_s5 + $0x30] sm:$0xf0]  ;;  %v2121_v54 = vor.u32 %v2324_v46, %v2118_v47  ;;  %v1949_v25 = vor.u32 %v2283_v15, %v1948_v13  ;;  %v2060_v32 = vld [vmem:[%s2762_s5 + $0x2c8] sm:$0xf] }
  0xce   : > { %1389 = vmatpush.bf16.msrb.mxu2 %v2025_v26  ;;  %v2256_v53 = vld [vmem:[%s2762_s5 + $0x124] sm:$0xf]  ;;  %v1846_v55 = vld [vmem:[%s2762_s5 + $0x130] sm:$0xf0]  ;;  %v1721_v61 = vor.u32 %v2224_v51, %v1718_v52  ;;  %v2077_v26 = vor.u32 %v2315_v18, %v2076_v16  ;;  %v2311_v33 = vld [vmem:[%s2762_s5 + $0x2d4] sm:$0xf0] }
  0xcf   : > { %1403 = vmatpush.bf16.msrb.mxu3 %v2153_v30  ;;  %v2288_v56 = vld [vmem:[%s2762_s5 + $0x224] sm:$0xf]  ;;  %v1974_v57 = vld [vmem:[%s2762_s5 + $0x230] sm:$0xf0]  ;;  %v1849_v0 = vor.u32 %v2256_v53, %v1846_v55  ;;  %v2205_v30 = vor.u32 %v2347_v22, %v2204_v21  ;;  %v2188_v34 = vld [vmem:[%s2762_s5 + $0x3c8] sm:$0xf] }
  0xd0   : > { %1362 = vmatpush.bf16.msrb.mxu0 %v1753_v36  ;;  %v2320_v58 = vld [vmem:[%s2762_s5 + $0x324] sm:$0xf]  ;;  %v2102_v60 = vld [vmem:[%s2762_s5 + $0x330] sm:$0xf0]  ;;  %v1977_v1 = vor.u32 %v2288_v56, %v1974_v57  ;;  %v2343_v35 = vld [vmem:[%s2762_s5 + $0x3d4] sm:$0xf0]  ;;  %v1805_v36 = vor.u32 %v2247_v28, %v1804_v27 }
  0xd1   : > { %1376 = vmatpush.bf16.msrb.mxu1 %v1881_v37  ;;  %v2220_v62 = vld [vmem:[%s2762_s5 + $0x4] sm:$0xf]  ;;  %v1702_v63 = vld [vmem:[%s2762_s5 + $0x10] sm:$0xf0]  ;;  %v2105_v6 = vor.u32 %v2320_v58, %v2102_v60  ;;  %v1933_v37 = vor.u32 %v2279_v31, %v1932_v29  ;;  %v1788_v39 = vld [vmem:[%s2762_s5 + $0xa8] sm:$0xf] }
  0xd2   : > { %1390 = vmatpush.bf16.msrb.mxu2 %v2009_v38  ;;  %v2252_v2 = vld [vmem:[%s2762_s5 + $0x104] sm:$0xf]  ;;  %v1830_v3 = vld [vmem:[%s2762_s5 + $0x110] sm:$0xf0]  ;;  %v1705_v14 = vor.u32 %v2220_v62, %v1702_v63  ;;  %v2061_v38 = vor.u32 %v2311_v33, %v2060_v32  ;;  %v2243_v40 = vld [vmem:[%s2762_s5 + $0xb4] sm:$0xf0] }
  0xd3   : > { %1404 = vmatpush.bf16.msrb.mxu3 %v2137_v42  ;;  %v2284_v4 = vld [vmem:[%s2762_s5 + $0x204] sm:$0xf]  ;;  %v1958_v7 = vld [vmem:[%s2762_s5 + $0x210] sm:$0xf0]  ;;  %v1833_v19 = vor.u32 %v2252_v2, %v1830_v3  ;;  %v1916_v41 = vld [vmem:[%s2762_s5 + $0x1a8] sm:$0xf]  ;;  %v2189_v42 = vor.u32 %v2343_v35, %v2188_v34 }
  0xd4   : > { %1363 = vmatpush.bf16.msrb.mxu0 %v1737_v48  ;;  %v2316_v8 = vld [vmem:[%s2762_s5 + $0x304] sm:$0xf]  ;;  %v2086_v9 = vld [vmem:[%s2762_s5 + $0x310] sm:$0xf0]  ;;  %v1961_v20 = vor.u32 %v2284_v4, %v1958_v7  ;;  %v2275_v43 = vld [vmem:[%s2762_s5 + $0x1b4] sm:$0xf0]  ;;  %v1789_v48 = vor.u32 %v2243_v40, %v1788_v39 }
  0xd5   : > { %1377 = vmatpush.bf16.msrb.mxu1 %v1865_v49  ;;  %v2089_v23 = vor.u32 %v2316_v8, %v2086_v9  ;;  %v2044_v44 = vld [vmem:[%s2762_s5 + $0x2a8] sm:$0xf]  ;;  %v2307_v45 = vld [vmem:[%s2762_s5 + $0x2b4] sm:$0xf0]  ;;  %v1917_v49 = vor.u32 %v2275_v43, %v1916_v41 }
  0xd6   : > { %1391 = vmatpush.bf16.msrb.mxu2 %v1993_v50  ;;  %v2172_v46 = vld [vmem:[%s2762_s5 + $0x3a8] sm:$0xf]  ;;  %v2339_v47 = vld [vmem:[%s2762_s5 + $0x3b4] sm:$0xf0]  ;;  %v2045_v50 = vor.u32 %v2307_v45, %v2044_v44 }
  0xd7   : > { %1405 = vmatpush.bf16.msrb.mxu3 %v2121_v54  ;;  %v1772_v51 = vld [vmem:[%s2762_s5 + $0x88] sm:$0xf]  ;;  %v2239_v52 = vld [vmem:[%s2762_s5 + $0x94] sm:$0xf0]  ;;  %v2173_v54 = vor.u32 %v2339_v47, %v2172_v46 }
  0xd8   : > { %1364 = vmatpush.bf16.msrb.mxu0 %v1721_v61  ;;  %v1900_v53 = vld [vmem:[%s2762_s5 + $0x188] sm:$0xf]  ;;  %v2271_v55 = vld [vmem:[%s2762_s5 + $0x194] sm:$0xf0]  ;;  %v1773_v61 = vor.u32 %v2239_v52, %v1772_v51  ;;  %v1950_v52 = vld [vmem:[%s2762_s5 + $0x1f8] sm:$0xf0] }
  0xd9   : > { %1378 = vmatpush.bf16.msrb.mxu1 %v1849_v0  ;;  %v2028_v56 = vld [vmem:[%s2762_s5 + $0x288] sm:$0xf]  ;;  %v2303_v57 = vld [vmem:[%s2762_s5 + $0x294] sm:$0xf0]  ;;  %v1901_v62 = vor.u32 %v2271_v55, %v1900_v53  ;;  %v2313_v53 = vld [vmem:[%s2762_s5 + $0x2ec] sm:$0xf] }
  0xda   : > { %1392 = vmatpush.bf16.msrb.mxu2 %v1977_v1  ;;  %v2156_v58 = vld [vmem:[%s2762_s5 + $0x388] sm:$0xf]  ;;  %v2335_v60 = vld [vmem:[%s2762_s5 + $0x394] sm:$0xf0]  ;;  %v2029_v63 = vor.u32 %v2303_v57, %v2028_v56  ;;  %v2345_v57 = vld [vmem:[%s2762_s5 + $0x3ec] sm:$0xf] }
  0xdb   : > { %1406 = vmatpush.bf16.msrb.mxu3 %v2105_v6  ;;  %v1756_v0 = vld [vmem:[%s2762_s5 + $0x68] sm:$0xf]  ;;  %v2235_v1 = vld [vmem:[%s2762_s5 + $0x74] sm:$0xf0]  ;;  %v2157_v3 = vor.u32 %v2335_v60, %v2156_v58  ;;  %v2206_v58 = vld [vmem:[%s2762_s5 + $0x3f8] sm:$0xf0] }
  0xdc   : > { %1365 = vmatpush.bf16.msrb.mxu0 %v1705_v14  ;;  %v1884_v2 = vld [vmem:[%s2762_s5 + $0x168] sm:$0xf]  ;;  %v2267_v4 = vld [vmem:[%s2762_s5 + $0x174] sm:$0xf0]  ;;  %v1757_v11 = vor.u32 %v2235_v1, %v1756_v0  ;;  %v2245_v0 = vld [vmem:[%s2762_s5 + $0xcc] sm:$0xf] }
  0xdd   : > { %1379 = vmatpush.bf16.msrb.mxu1 %v1833_v19  ;;  %v2012_v6 = vld [vmem:[%s2762_s5 + $0x268] sm:$0xf]  ;;  %v2299_v7 = vld [vmem:[%s2762_s5 + $0x274] sm:$0xf0]  ;;  %v1885_v12 = vor.u32 %v2267_v4, %v1884_v2  ;;  %v1806_v1 = vld [vmem:[%s2762_s5 + $0xd8] sm:$0xf0] }
  0xde   : > { %1393 = vmatpush.bf16.msrb.mxu2 %v1961_v20  ;;  %v2140_v8 = vld [vmem:[%s2762_s5 + $0x368] sm:$0xf]  ;;  %v2331_v9 = vld [vmem:[%s2762_s5 + $0x374] sm:$0xf0]  ;;  %v2013_v13 = vor.u32 %v2299_v7, %v2012_v6  ;;  %v2277_v2 = vld [vmem:[%s2762_s5 + $0x1cc] sm:$0xf] }
  0xdf   : > { %1407 = vmatpush.bf16.msrb.mxu3 %v2089_v23  ;;  %1366 = vmatmul.bf16.vlgmr.msrb.gmra.mxu0 %v2867_v5  ;;  %v1740_v14 = vld [vmem:[%s2762_s5 + $0x48] sm:$0xf]  ;;  %v2231_v15 = vld [vmem:[%s2762_s5 + $0x54] sm:$0xf0]  ;;  %v2141_v18 = vor.u32 %v2331_v9, %v2140_v8  ;;  %v1934_v4 = vld [vmem:[%s2762_s5 + $0x1d8] sm:$0xf0] }
  0xe0   : > { %1414 = vmatpush.bf16.msra.mxu0 %v1821_v24  ;;  %1380 = vmatmul.bf16.vlgmr.msrb.gmra.mxu1 %v2886_v17  ;;  %v1868_v16 = vld [vmem:[%s2762_s5 + $0x148] sm:$0xf]  ;;  %v2263_v19 = vld [vmem:[%s2762_s5 + $0x154] sm:$0xf0]  ;;  %v1741_v24 = vor.u32 %v2231_v15, %v1740_v14  ;;  %v2309_v6 = vld [vmem:[%s2762_s5 + $0x2cc] sm:$0xf] }
  0xe1   : > { %1428 = vmatpush.bf16.msra.mxu1 %v1949_v25  ;;  %1394 = vmatmul.bf16.vlgmr.msrb.gmra.mxu2 %v2854_v59  ;;  %v1996_v20 = vld [vmem:[%s2762_s5 + $0x248] sm:$0xf]  ;;  %v2295_v21 = vld [vmem:[%s2762_s5 + $0x254] sm:$0xf0]  ;;  %v1869_v25 = vor.u32 %v2263_v19, %v1868_v16  ;;  %v2062_v7 = vld [vmem:[%s2762_s5 + $0x2d8] sm:$0xf0] }
  0xe2   : > { %1442 = vmatpush.bf16.msra.mxu2 %v2077_v26  ;;  %1408 = vmatmul.bf16.vlgmr.msrb.gmra.mxu3 %v2878_v10  ;;  %v2124_v22 = vld [vmem:[%s2762_s5 + $0x348] sm:$0xf]  ;;  %v2327_v23 = vld [vmem:[%s2762_s5 + $0x354] sm:$0xf0]  ;;  %v1997_v26 = vor.u32 %v2295_v21, %v1996_v20  ;;  %v2341_v8 = vld [vmem:[%s2762_s5 + $0x3cc] sm:$0xf] }
  0xe3   : > { %1456 = vmatpush.bf16.msra.mxu3 %v2205_v30  ;;  %v1724_v27 = vld [vmem:[%s2762_s5 + $0x28] sm:$0xf]  ;;  %v2227_v28 = vld [vmem:[%s2762_s5 + $0x34] sm:$0xf0]  ;;  %v2125_v30 = vor.u32 %v2327_v23, %v2124_v22  ;;  %v2190_v9 = vld [vmem:[%s2762_s5 + $0x3d8] sm:$0xf0] }
  0xe4   : > { %1415 = vmatpush.bf16.msra.mxu0 %v1805_v36  ;;  %v1852_v29 = vld [vmem:[%s2762_s5 + $0x128] sm:$0xf]  ;;  %v2259_v31 = vld [vmem:[%s2762_s5 + $0x134] sm:$0xf0]  ;;  %v1725_v36 = vor.u32 %v2227_v28, %v1724_v27  ;;  %v2241_v14 = vld [vmem:[%s2762_s5 + $0xac] sm:$0xf] }
  0xe5   : > { %1429 = vmatpush.bf16.msra.mxu1 %v1933_v37  ;;  %v1980_v32 = vld [vmem:[%s2762_s5 + $0x228] sm:$0xf]  ;;  %v2291_v33 = vld [vmem:[%s2762_s5 + $0x234] sm:$0xf0]  ;;  %v1853_v39 = vor.u32 %v2259_v31, %v1852_v29  ;;  %v1790_v15 = vld [vmem:[%s2762_s5 + $0xb8] sm:$0xf0] }
  0xe6   : > { %1443 = vmatpush.bf16.msra.mxu2 %v2061_v38  ;;  %v2108_v34 = vld [vmem:[%s2762_s5 + $0x328] sm:$0xf]  ;;  %v2323_v35 = vld [vmem:[%s2762_s5 + $0x334] sm:$0xf0]  ;;  %v1981_v40 = vor.u32 %v2291_v33, %v1980_v32  ;;  %v2273_v16 = vld [vmem:[%s2762_s5 + $0x1ac] sm:$0xf] }
  0xe7   : > { %1457 = vmatpush.bf16.msra.mxu3 %v2189_v42  ;;  %v1708_v37 = vld [vmem:[%s2762_s5 + $0x8] sm:$0xf]  ;;  %v2223_v38 = vld [vmem:[%s2762_s5 + $0x14] sm:$0xf0]  ;;  %v2109_v44 = vor.u32 %v2323_v35, %v2108_v34  ;;  %v1918_v19 = vld [vmem:[%s2762_s5 + $0x1b8] sm:$0xf0] }
  0xe8   : > { %1416 = vmatpush.bf16.msra.mxu0 %v1789_v48  ;;  %v1836_v41 = vld [vmem:[%s2762_s5 + $0x108] sm:$0xf]  ;;  %v2255_v42 = vld [vmem:[%s2762_s5 + $0x114] sm:$0xf0]  ;;  %v2249_v48 = vld [vmem:[%s2762_s5 + $0xec] sm:$0xf]  ;;  %v1709_v51 = vor.u32 %v2223_v38, %v1708_v37 }
  0xe9   : > { %1430 = vmatpush.bf16.msra.mxu1 %v1917_v49  ;;  %v1964_v43 = vld [vmem:[%s2762_s5 + $0x208] sm:$0xf]  ;;  %v2287_v45 = vld [vmem:[%s2762_s5 + $0x214] sm:$0xf0]  ;;  %v1822_v49 = vld [vmem:[%s2762_s5 + $0xf8] sm:$0xf0]  ;;  %v1837_v55 = vor.u32 %v2255_v42, %v1836_v41 }
  0xea   : > { %1444 = vmatpush.bf16.msra.mxu2 %v2045_v50  ;;  %v2092_v46 = vld [vmem:[%s2762_s5 + $0x308] sm:$0xf]  ;;  %v2319_v47 = vld [vmem:[%s2762_s5 + $0x314] sm:$0xf0]  ;;  %v2281_v50 = vld [vmem:[%s2762_s5 + $0x1ec] sm:$0xf]  ;;  %v1965_v56 = vor.u32 %v2287_v45, %v1964_v43 }
  0xeb   : > { %1458 = vmatpush.bf16.msra.mxu3 %v2173_v54  ;;  %v2078_v54 = vld [vmem:[%s2762_s5 + $0x2f8] sm:$0xf0]  ;;  %v2093_v60 = vor.u32 %v2319_v47, %v2092_v46  ;;  %v2305_v20 = vld [vmem:[%s2762_s5 + $0x2ac] sm:$0xf] }
  0xec   : > { %1417 = vmatpush.bf16.msra.mxu0 %v1773_v61  ;;  %v1825_v61 = vor.u32 %v2249_v48, %v1822_v49  ;;  %v2046_v21 = vld [vmem:[%s2762_s5 + $0x2b8] sm:$0xf0]  ;;  %v2337_v22 = vld [vmem:[%s2762_s5 + $0x3ac] sm:$0xf] }
  0xed   : > { %1431 = vmatpush.bf16.msra.mxu1 %v1901_v62  ;;  %v1953_v62 = vor.u32 %v2281_v50, %v1950_v52  ;;  %v2174_v23 = vld [vmem:[%s2762_s5 + $0x3b8] sm:$0xf0]  ;;  %v2237_v27 = vld [vmem:[%s2762_s5 + $0x8c] sm:$0xf] }
  0xee   : > { %1445 = vmatpush.bf16.msra.mxu2 %v2029_v63  ;;  %v2081_v63 = vor.u32 %v2313_v53, %v2078_v54  ;;  %v1774_v28 = vld [vmem:[%s2762_s5 + $0x98] sm:$0xf0]  ;;  %v2269_v29 = vld [vmem:[%s2762_s5 + $0x18c] sm:$0xf] }
  0xef   : > { %1459 = vmatpush.bf16.msra.mxu3 %v2157_v3  ;;  %v2209_v3 = vor.u32 %v2345_v57, %v2206_v58  ;;  %v1902_v31 = vld [vmem:[%s2762_s5 + $0x198] sm:$0xf0]  ;;  %v2301_v32 = vld [vmem:[%s2762_s5 + $0x28c] sm:$0xf] }
  0xf0   : > { %1418 = vmatpush.bf16.msra.mxu0 %v1757_v11  ;;  %v1809_v11 = vor.u32 %v2245_v0, %v1806_v1  ;;  %v2030_v33 = vld [vmem:[%s2762_s5 + $0x298] sm:$0xf0]  ;;  %v2333_v34 = vld [vmem:[%s2762_s5 + $0x38c] sm:$0xf]  ;;  %v1905_v37 = vor.u32 %v2269_v29, %v1902_v31 }
  0xf1   : > { %1432 = vmatpush.bf16.msra.mxu1 %v1885_v12  ;;  %v1937_v12 = vor.u32 %v2277_v2, %v1934_v4  ;;  %v2158_v35 = vld [vmem:[%s2762_s5 + $0x398] sm:$0xf0]  ;;  %v2033_v38 = vor.u32 %v2301_v32, %v2030_v33  ;;  %v2265_v41 = vld [vmem:[%s2762_s5 + $0x16c] sm:$0xf]  ;;  %v3072_v32 = vld [vmem:[%s496_s7] sm:$0xf] }
  0xf2   : > { %1446 = vmatpush.bf16.msra.mxu2 %v2013_v13  ;;  %v2065_v13 = vor.u32 %v2309_v6, %v2062_v7  ;;  %v2161_v42 = vor.u32 %v2333_v34, %v2158_v35  ;;  %v1886_v43 = vld [vmem:[%s2762_s5 + $0x178] sm:$0xf0]  ;;  %v2329_v46 = vld [vmem:[%s2762_s5 + $0x36c] sm:$0xf]  ;;  %v635_v35 = vperm.slane %v3072_v32, 1 }
  0xf3   : > { %1460 = vmatpush.bf16.msra.mxu3 %v2141_v18  ;;  %v2193_v18 = vor.u32 %v2341_v8, %v2190_v9  ;;  %v2014_v45 = vld [vmem:[%s2762_s5 + $0x278] sm:$0xf0]  ;;  %v1889_v49 = vor.u32 %v2265_v41, %v1886_v43  ;;  %v2261_v53 = vld [vmem:[%s2762_s5 + $0x14c] sm:$0xf] }
  0xf4   : > { %1419 = vmatpush.bf16.msra.mxu0 %v1741_v24  ;;  %v1793_v24 = vor.u32 %v2241_v14, %v1790_v15  ;;  %v2142_v47 = vld [vmem:[%s2762_s5 + $0x378] sm:$0xf0]  ;;  %v2325_v58 = vld [vmem:[%s2762_s5 + $0x34c] sm:$0xf] }
  0xf5   : > { %1433 = vmatpush.bf16.msra.mxu1 %v1869_v25  ;;  %v1921_v25 = vor.u32 %v2273_v16, %v1918_v19  ;;  %v1742_v52 = vld [vmem:[%s2762_s5 + $0x58] sm:$0xf0]  ;;  %v2145_v54 = vor.u32 %v2329_v46, %v2142_v47  ;;  %v2225_v0 = vld [vmem:[%s2762_s5 + $0x2c] sm:$0xf] }
  0xf6   : > { %1447 = vmatpush.bf16.msra.mxu2 %v1997_v26  ;;  %v2049_v26 = vor.u32 %v2305_v20, %v2046_v21  ;;  %v1998_v57 = vld [vmem:[%s2762_s5 + $0x258] sm:$0xf0]  ;;  %v2257_v2 = vld [vmem:[%s2762_s5 + $0x12c] sm:$0xf] }
  0xf7   : > { %1461 = vmatpush.bf16.msra.mxu3 %v2125_v30  ;;  %v2177_v30 = vor.u32 %v2337_v22, %v2174_v23  ;;  %v1726_v1 = vld [vmem:[%s2762_s5 + $0x38] sm:$0xf0]  ;;  %v2289_v6 = vld [vmem:[%s2762_s5 + $0x22c] sm:$0xf] }
  0xf8   : > { %1420 = vmatpush.bf16.msra.mxu0 %v1725_v36  ;;  %v1777_v36 = vor.u32 %v2237_v27, %v1774_v28  ;;  %v1854_v4 = vld [vmem:[%s2762_s5 + $0x138] sm:$0xf0]  ;;  %v2321_v8 = vld [vmem:[%s2762_s5 + $0x32c] sm:$0xf] }
  0xf9   : > { %1434 = vmatpush.bf16.msra.mxu1 %v1853_v39  ;;  %v2233_v39 = vld [vmem:[%s2762_s5 + $0x6c] sm:$0xf]  ;;  %v1982_v7 = vld [vmem:[%s2762_s5 + $0x238] sm:$0xf0] }
  0xfa   : > { %1448 = vmatpush.bf16.msra.mxu2 %v1981_v40  ;;  %v1758_v40 = vld [vmem:[%s2762_s5 + $0x78] sm:$0xf0]  ;;  %v2221_v14 = vld [vmem:[%s2762_s5 + $0xc] sm:$0xf] }
  0xfb   : > { %1462 = vmatpush.bf16.msra.mxu3 %v2109_v44  ;;  %v2297_v44 = vld [vmem:[%s2762_s5 + $0x26c] sm:$0xf]  ;;  %v1761_v48 = vor.u32 %v2233_v39, %v1758_v40  ;;  %v2110_v9 = vld [vmem:[%s2762_s5 + $0x338] sm:$0xf0] }
  0xfc   : > { %1421 = vmatpush.bf16.msra.mxu0 %v1709_v51  ;;  %v2017_v50 = vor.u32 %v2297_v44, %v2014_v45  ;;  %v2229_v51 = vld [vmem:[%s2762_s5 + $0x4c] sm:$0xf]  ;;  %v1710_v15 = vld [vmem:[%s2762_s5 + $0x18] sm:$0xf0] }
  0xfd   : > { %1435 = vmatpush.bf16.msra.mxu1 %v1837_v55  ;;  %v1870_v55 = vld [vmem:[%s2762_s5 + $0x158] sm:$0xf0]  ;;  %v2253_v16 = vld [vmem:[%s2762_s5 + $0x10c] sm:$0xf] }
  0xfe   : > { %1449 = vmatpush.bf16.msra.mxu2 %v1965_v56  ;;  %v2293_v56 = vld [vmem:[%s2762_s5 + $0x24c] sm:$0xf]  ;;  %v1838_v19 = vld [vmem:[%s2762_s5 + $0x118] sm:$0xf0] }
  0xff   : > { %1463 = vmatpush.bf16.msra.mxu3 %v2093_v60  ;;  %1422 = vmatmul.bf16.vlgmr.msra.gmra.mxu0 %v2867_v5  ;;  %v2126_v60 = vld [vmem:[%s2762_s5 + $0x358] sm:$0xf0]  ;;  %v2285_v20 = vld [vmem:[%s2762_s5 + $0x20c] sm:$0xf] }
 0x100   : > { %1470 = vmatpush.bf16.msrb.mxu0 %v1825_v61  ;;  %1436 = vmatmul.bf16.vlgmr.msra.gmra.mxu1 %v2886_v17  ;;  %v1745_v61 = vor.u32 %v2229_v51, %v1742_v52  ;;  %v1966_v21 = vld [vmem:[%s2762_s5 + $0x218] sm:$0xf0]  ;;  %v2317_v22 = vld [vmem:[%s2762_s5 + $0x30c] sm:$0xf] }
 0x101   : > { %1484 = vmatpush.bf16.msrb.mxu1 %v1953_v62  ;;  %1450 = vmatmul.bf16.vlgmr.msra.gmra.mxu2 %v2854_v59  ;;  %v1873_v62 = vor.u32 %v2261_v53, %v1870_v55  ;;  %v2094_v23 = vld [vmem:[%s2762_s5 + $0x318] sm:$0xf0] }
 0x102   : > { %1498 = vmatpush.bf16.msrb.mxu2 %v2081_v63  ;;  %1464 = vmatmul.bf16.vlgmr.msra.gmra.mxu3 %v2878_v10  ;;  %v2001_v63 = vor.u32 %v2293_v56, %v1998_v57  ;;  %v2097_v27 = vor.u32 %v2317_v22, %v2094_v23 }
 0x103   : > { %1512 = vmatpush.bf16.msrb.mxu3 %v2209_v3  ;;  %v2129_v3 = vor.u32 %v2325_v58, %v2126_v60 }
 0x104   : > { %1471 = vmatpush.bf16.msrb.mxu0 %v1809_v11  ;;  %v1729_v11 = vor.u32 %v2225_v0, %v1726_v1 }
 0x105   : > { %1485 = vmatpush.bf16.msrb.mxu1 %v1937_v12  ;;  %v1857_v12 = vor.u32 %v2257_v2, %v1854_v4 }
 0x106   : > { %1499 = vmatpush.bf16.msrb.mxu2 %v2065_v13  ;;  %v1985_v13 = vor.u32 %v2289_v6, %v1982_v7  ;;  %v636_v7 = vperm.slane %v3072_v32, 2 }
 0x107   : > { %1513 = vmatpush.bf16.msrb.mxu3 %v2193_v18  ;;  %v2113_v18 = vor.u32 %v2321_v8, %v2110_v9 }
 0x108   : > { %1472 = vmatpush.bf16.msrb.mxu0 %v1793_v24  ;;  %v1713_v24 = vor.u32 %v2221_v14, %v1710_v15 }
 0x109   : > { %1486 = vmatpush.bf16.msrb.mxu1 %v1921_v25  ;;  %v1841_v25 = vor.u32 %v2253_v16, %v1838_v19 }
 0x10a   : > { %1500 = vmatpush.bf16.msrb.mxu2 %v2049_v26  ;;  %v1969_v26 = vor.u32 %v2285_v20, %v1966_v21 }
 0x10b   : > { %1514 = vmatpush.bf16.msrb.mxu3 %v2177_v30 }
 0x10c   : > { %1473 = vmatpush.bf16.msrb.mxu0 %v1777_v36 }
 0x10d   : > { %1487 = vmatpush.bf16.msrb.mxu1 %v1905_v37 }
 0x10e   : > { %1501 = vmatpush.bf16.msrb.mxu2 %v2033_v38 }
 0x10f   : > { %1515 = vmatpush.bf16.msrb.mxu3 %v2161_v42 }
 0x110   : > { %1474 = vmatpush.bf16.msrb.mxu0 %v1761_v48 }
 0x111   : > { %1488 = vmatpush.bf16.msrb.mxu1 %v1889_v49 }
 0x112   : > { %1502 = vmatpush.bf16.msrb.mxu2 %v2017_v50 }
 0x113   : > { %1516 = vmatpush.bf16.msrb.mxu3 %v2145_v54 }
 0x114   : > { %1475 = vmatpush.bf16.msrb.mxu0 %v1745_v61 }
 0x115   : > { %1489 = vmatpush.bf16.msrb.mxu1 %v1873_v62 }
 0x116   : > { %1503 = vmatpush.bf16.msrb.mxu2 %v2001_v63 }
 0x117   : > { %1517 = vmatpush.bf16.msrb.mxu3 %v2129_v3 }
 0x118   : > { %1476 = vmatpush.bf16.msrb.mxu0 %v1729_v11 }
 0x119   : > { %1490 = vmatpush.bf16.msrb.mxu1 %v1857_v12  ;;  %v637_v12 = vperm.slane %v3072_v32, 3 }
 0x11a   : > { %1504 = vmatpush.bf16.msrb.mxu2 %v1985_v13 }
 0x11b   : > { %1518 = vmatpush.bf16.msrb.mxu3 %v2113_v18 }
 0x11c   : > { %1477 = vmatpush.bf16.msrb.mxu0 %v1713_v24 }
 0x11d   : > { %1491 = vmatpush.bf16.msrb.mxu1 %v1841_v25 }
 0x11e   : > { %1505 = vmatpush.bf16.msrb.mxu2 %v1969_v26 }
 0x11f   : > { %1519 = vmatpush.bf16.msrb.mxu3 %v2097_v27  ;;  %1478 = vmatmul.bf16.vlgmr.msrb.gmra.mxu0 %v2867_v5  ;;  %v634_v5 = vperm.slane %v3072_v32, 0 }
 0x120   : > { %1492 = vmatmul.bf16.vlgmr.msrb.gmra.mxu1 %v2886_v17 }
 0x121   : > { %1506 = vmatmul.bf16.vlgmr.msrb.gmra.mxu2 %v2854_v59 }
 0x122   : > { %1520 = vmatmul.bf16.vlgmr.msrb.gmra.mxu3 %v2878_v10 }
 0x13f   : > { %v1311_v28 = vpop.f32.mrf.mxu0 }
 0x140   : > { %v1325_v29 = vpop.f32.mrf.mxu1  ;;  %v1312_v59 = vadd.f32 %v1311_v28, %v634_v5 }
 0x142   : > { %v1326_v36 = vadd.f32 %v1325_v29, %v1312_v59 }
 0x144   : > { %v1339_v30 = vpop.f32.mrf.mxu2 }
 0x145   : > { %v1340_v40 = vadd.f32 %v1339_v30, %v1326_v36 }
 0x147   : > { %v1353_v31 = vpop.f32.mrf.mxu3  ;;  %v1313_v17 = vpop.f32.mrf.mxu0 }
 0x148   : > { %v1327_v33 = vpop.f32.mrf.mxu1  ;;  %v1314_v41 = vadd.f32 %v1313_v17, %v634_v5  ;;  %v1354_v44 = vadd.f32 %v1353_v31, %v1340_v40 }
 0x14a   : > { %v1328_v45 = vadd.f32 %v1327_v33, %v1314_v41  ;;  %v1526_v52 = vmax.f32 %v1354_v44, 0.0 }
 0x14c   : > { %v1341_v10 = vpop.f32.mrf.mxu2 }
 0x14d   : > { %v1342_v53 = vadd.f32 %v1341_v10, %v1328_v45 }
 0x14f   : > { %v1355_v34 = vpop.f32.mrf.mxu3 }
 0x150   : > { %v1356_v58 = vadd.f32 %v1355_v34, %v1342_v53 }
 0x152   : > { %v1530_v63 = vmax.f32 %v1356_v58, 0.0 }
 0x15c   : > { %v1367_v37 = vpop.f32.mrf.mxu0 }
 0x15d   : > { %v1368_v38 = vadd.f32 %v1367_v37, %v635_v35  ;;  %v1381_v39 = vpop.f32.mrf.mxu1 }
 0x15f   : > { %v1382_v42 = vadd.f32 %v1381_v39, %v1368_v38 }
 0x164   : > { %v1395_v43 = vpop.f32.mrf.mxu2  ;;  %v1369_v49 = vpop.f32.mrf.mxu0 }
 0x165   : > { %v1396_v46 = vadd.f32 %v1395_v43, %v1382_v42  ;;  %v1409_v47 = vpop.f32.mrf.mxu3  ;;  %v1370_v50 = vadd.f32 %v1369_v49, %v635_v35  ;;  %v1383_v51 = vpop.f32.mrf.mxu1 }
 0x167   : > { %v1410_v48 = vadd.f32 %v1409_v47, %v1396_v46  ;;  %v1384_v55 = vadd.f32 %v1383_v51, %v1370_v50 }
 0x169   : > { %v1527_v54 = vmax.f32 %v1410_v48, 0.0 }
 0x16b   : > { %v1534_v56 = vpack.c.bf16 %v1527_v54, %v1526_v52 }
 0x16c   : > { %v1397_v57 = vpop.f32.mrf.mxu2 }
 0x16d   : > { %1538 = vst [vmem:[%s3078_s9] sm:$0xff] %v1534_v56  ;;  %v1398_v60 = vadd.f32 %v1397_v57, %v1384_v55  ;;  %v1411_v61 = vpop.f32.mrf.mxu3 }
 0x16f   : > { %v1412_v62 = vadd.f32 %v1411_v61, %v1398_v60 }
 0x171   : > { %v1531_v0 = vmax.f32 %v1412_v62, 0.0 }
 0x173   : > { %v1536_v1 = vpack.c.bf16 %v1531_v0, %v1530_v63 }
 0x174   : > { %v1567_v41 = vld [vmem:[%s3078_s9] sm:$0xff] (%p2484_p6) }
 0x175   : > { %1540 = vst [vmem:[%s3078_s9 + $0x10] sm:$0xff] %v1536_v1 }
 0x176   : > { %1568 = vst [vmem:[%s1554_s11] sm:$0xff] (%p2484_p6), %v1567_v41 }
 0x17c   : > { %v1423_v2 = vpop.f32.mrf.mxu0  ;;  %v1571_v43 = vld [vmem:[%s3078_s9 + $0x10] sm:$0xff] (%p2484_p6) }
 0x17d   : > { %v1437_v3 = vpop.f32.mrf.mxu1  ;;  %v1424_v11 = vadd.f32 %v1423_v2, %v636_v7  ;;  %1572 = vst [vmem:[%s1554_s11 + $0x40] sm:$0xff] (%p2484_p6), %v1571_v43 }
 0x17f   : > { %v1438_v14 = vadd.f32 %v1437_v3, %v1424_v11 }
 0x184   : > { %v1451_v4 = vpop.f32.mrf.mxu2  ;;  %v1425_v8 = vpop.f32.mrf.mxu0 }
 0x185   : > { %v1465_v6 = vpop.f32.mrf.mxu3  ;;  %v1439_v9 = vpop.f32.mrf.mxu1  ;;  %v1452_v20 = vadd.f32 %v1451_v4, %v1438_v14  ;;  %v1426_v21 = vadd.f32 %v1425_v8, %v636_v7 }
 0x187   : > { %v1466_v24 = vadd.f32 %v1465_v6, %v1452_v20  ;;  %v1440_v25 = vadd.f32 %v1439_v9, %v1426_v21 }
 0x189   : > { %v1528_v31 = vmax.f32 %v1466_v24, 0.0 }
 0x18c   : > { %v1453_v13 = vpop.f32.mrf.mxu2 }
 0x18d   : > { %v1467_v15 = vpop.f32.mrf.mxu3  ;;  %v1454_v32 = vadd.f32 %v1453_v13, %v1440_v25 }
 0x18f   : > { %v1468_v34 = vadd.f32 %v1467_v15, %v1454_v32 }
 0x191   : > { %v1532_v38 = vmax.f32 %v1468_v34, 0.0 }
 0x19c   : > { %v1479_v16 = vpop.f32.mrf.mxu0 }
 0x19d   : > { %v1480_v18 = vadd.f32 %v1479_v16, %v637_v12  ;;  %v1493_v19 = vpop.f32.mrf.mxu1 }
 0x19f   : > { %v1494_v22 = vadd.f32 %v1493_v19, %v1480_v18 }
 0x1a4   : > { %v1507_v23 = vpop.f32.mrf.mxu2  ;;  %v1481_v28 = vpop.f32.mrf.mxu0 }
 0x1a5   : > { %v1508_v26 = vadd.f32 %v1507_v23, %v1494_v22  ;;  %v1521_v27 = vpop.f32.mrf.mxu3  ;;  %v1482_v30 = vadd.f32 %v1481_v28, %v637_v12  ;;  %v1495_v17 = vpop.f32.mrf.mxu1 }
 0x1a7   : > { %v1522_v29 = vadd.f32 %v1521_v27, %v1508_v26  ;;  %v1496_v59 = vadd.f32 %v1495_v17, %v1482_v30 }
 0x1a9   : > { %v1529_v5 = vmax.f32 %v1522_v29, 0.0 }
 0x1ab   : > { %v1535_v33 = vpack.c.bf16 %v1529_v5, %v1528_v31 }
 0x1ac   : > { %v1509_v10 = vpop.f32.mrf.mxu2 }
 0x1ad   : > { %1539 = vst [vmem:[%s3078_s9 + $0x8] sm:$0xff] %v1535_v33  ;;  %v1510_v35 = vadd.f32 %v1509_v10, %v1496_v59  ;;  %v1523_v36 = vpop.f32.mrf.mxu3 }
 0x1af   : > { %v1524_v37 = vadd.f32 %v1523_v36, %v1510_v35 }
 0x1b1   : > { %v1533_v39 = vmax.f32 %v1524_v37, 0.0  ;;  %1548 = sbr.rel (!%p2484_p6) target bundleno = 446 (0x1be), region = 59 }
 0x1b3   : > { %v1537_v40 = vpack.c.bf16 %v1533_v39, %v1532_v38 }
 0x1b4   : > { %v1569_v42 = vld [vmem:[%s3078_s9 + $0x8] sm:$0xff] (%p2484_p6) }
 0x1b5   : > { %1541 = vst [vmem:[%s3078_s9 + $0x18] sm:$0xff] %v1537_v40 }
 0x1b6   : > { %1570 = vst [vmem:[%s1554_s11 + $0x8] sm:$0xff] %v1569_v42 }
 0x1bc   : > { %v1573_v44 = vld [vmem:[%s3078_s9 + $0x18] sm:$0xff] }
 0x1bd   : > { %1574 = vst [vmem:[%s1554_s11 + $0x48] sm:$0xff] %v1573_v44 }
 0x1be PF: > { %s13_s16 = sadd.s32 1, %s2427_s16   ;;  %s3116_s12 = smov %s2415_s13 }
 0x1bf   : > { %p10_p12 = scmp.ge.s32.totalorder %s13_s16, 6   ;;  %s3117_s13 = smov %s2489_s22 }
 0x1c0   : > { %s3118_s14 = smov %s2423_s15  ;;  %s3119_s15 = smov %s3121_s17 }
 0x1c1   :  { %12 = sbr.rel (!%p10_p12) target bundleno = 3 (0x3), region = 119 }

// kernel: _lambda_.41
= control target key start
LH: loop header
LB: loop body
LE: loop exit
PB: predicated region body
PF: predicated region fallthrough
CT: control target
= control target key end

     0   :  { %s10191_s1 = inlined_call_operand.vmem [shape: bf16[2048,512], index: 1, kind: input, shape index: {}]   ;;  %s10192_s0 = inlined_call_operand.vmem [shape: bf16[16,2048], index: 0, kind: input, shape index: {}]   ;;  %s10193_s2 = inlined_call_operand.vmem [shape: f32[1,512], index: 2, kind: input, shape index: {}]   ;;  %s10194_s3 = inlined_call_operand.vmem [shape: bf16[16,512], index: 3, kind: output, shape index: {}]  }
   0x1   :  { %v4278_v0 = vld [vmem:[%s10191_s1 + $0xe0] sm:$0xf]  ;;  %v6258_v1 = vld [vmem:[%s10191_s1 + $0xec] sm:$0xf0] }
   0x2   :  { %v4406_v2 = vld [vmem:[%s10191_s1 + $0x1e0] sm:$0xf]  ;;  %v4279_v3 = vor.u32 %v6258_v1, %v4278_v0  ;;  %v6290_v4 = vld [vmem:[%s10191_s1 + $0x1ec] sm:$0xf0] }
   0x3   :  { %v4534_v5 = vld [vmem:[%s10191_s1 + $0x2e0] sm:$0xf]  ;;  %v6322_v6 = vld [vmem:[%s10191_s1 + $0x2ec] sm:$0xf0]  ;;  %v4407_v7 = vor.u32 %v6290_v4, %v4406_v2 }
   0x4   :  { %v4535_v8 = vor.u32 %v6322_v6, %v4534_v5  ;;  %v4662_v9 = vld [vmem:[%s10191_s1 + $0x3e0] sm:$0xf]  ;;  %v6354_v10 = vld [vmem:[%s10191_s1 + $0x3ec] sm:$0xf0]  ;;  %3192 = vmatpush.bf16.msra.mxu0 %v4279_v3 }
   0x5   :  { %v4262_v11 = vld [vmem:[%s10191_s1 + $0xc0] sm:$0xf]  ;;  %v4663_v12 = vor.u32 %v6354_v10, %v4662_v9  ;;  %v6254_v13 = vld [vmem:[%s10191_s1 + $0xcc] sm:$0xf0]  ;;  %3206 = vmatpush.bf16.msra.mxu1 %v4407_v7 }
   0x6   :  { %v4390_v14 = vld [vmem:[%s10191_s1 + $0x1c0] sm:$0xf]  ;;  %v6286_v15 = vld [vmem:[%s10191_s1 + $0x1cc] sm:$0xf0]  ;;  %3220 = vmatpush.bf16.msra.mxu2 %v4535_v8  ;;  %v4263_v16 = vor.u32 %v6254_v13, %v4262_v11 }
   0x7   :  { %v4391_v17 = vor.u32 %v6286_v15, %v4390_v14  ;;  %v4518_v18 = vld [vmem:[%s10191_s1 + $0x2c0] sm:$0xf]  ;;  %v6318_v19 = vld [vmem:[%s10191_s1 + $0x2cc] sm:$0xf0]  ;;  %3234 = vmatpush.bf16.msra.mxu3 %v4663_v12 }
   0x8   :  { %v4646_v20 = vld [vmem:[%s10191_s1 + $0x3c0] sm:$0xf]  ;;  %v4519_v21 = vor.u32 %v6318_v19, %v4518_v18  ;;  %v6350_v22 = vld [vmem:[%s10191_s1 + $0x3cc] sm:$0xf0]  ;;  %3193 = vmatpush.bf16.msra.mxu0 %v4263_v16 }
   0x9   :  { %v4246_v23 = vld [vmem:[%s10191_s1 + $0xa0] sm:$0xf]  ;;  %v6250_v24 = vld [vmem:[%s10191_s1 + $0xac] sm:$0xf0]  ;;  %v4647_v25 = vor.u32 %v6350_v22, %v4646_v20  ;;  %3207 = vmatpush.bf16.msra.mxu1 %v4391_v17 }
   0xa   :  { %v4374_v26 = vld [vmem:[%s10191_s1 + $0x1a0] sm:$0xf]  ;;  %v6282_v27 = vld [vmem:[%s10191_s1 + $0x1ac] sm:$0xf0]  ;;  %v4247_v29 = vor.u32 %v6250_v24, %v4246_v23  ;;  %3221 = vmatpush.bf16.msra.mxu2 %v4519_v21 }
   0xb   :  { %v4502_v28 = vld [vmem:[%s10191_s1 + $0x2a0] sm:$0xf]  ;;  %v6314_v30 = vld [vmem:[%s10191_s1 + $0x2ac] sm:$0xf0]  ;;  %v4375_v33 = vor.u32 %v6282_v27, %v4374_v26  ;;  %3235 = vmatpush.bf16.msra.mxu3 %v4647_v25 }
   0xc   :  { %v4630_v31 = vld [vmem:[%s10191_s1 + $0x3a0] sm:$0xf]  ;;  %v6346_v32 = vld [vmem:[%s10191_s1 + $0x3ac] sm:$0xf0]  ;;  %v4503_v34 = vor.u32 %v6314_v30, %v4502_v28  ;;  %3194 = vmatpush.bf16.msra.mxu0 %v4247_v29 }
   0xd   :  { %v4230_v35 = vld [vmem:[%s10191_s1 + $0x80] sm:$0xf]  ;;  %v6246_v36 = vld [vmem:[%s10191_s1 + $0x8c] sm:$0xf0]  ;;  %v4631_v38 = vor.u32 %v6346_v32, %v4630_v31  ;;  %3208 = vmatpush.bf16.msra.mxu1 %v4375_v33 }
   0xe   :  { %v4358_v37 = vld [vmem:[%s10191_s1 + $0x180] sm:$0xf]  ;;  %v6278_v39 = vld [vmem:[%s10191_s1 + $0x18c] sm:$0xf0]  ;;  %v4231_v44 = vor.u32 %v6246_v36, %v4230_v35  ;;  %3222 = vmatpush.bf16.msra.mxu2 %v4503_v34 }
   0xf   :  { %v4486_v40 = vld [vmem:[%s10191_s1 + $0x280] sm:$0xf]  ;;  %v6310_v41 = vld [vmem:[%s10191_s1 + $0x28c] sm:$0xf0]  ;;  %v4359_v45 = vor.u32 %v6278_v39, %v4358_v37  ;;  %3236 = vmatpush.bf16.msra.mxu3 %v4631_v38 }
  0x10   :  { %v4614_v42 = vld [vmem:[%s10191_s1 + $0x380] sm:$0xf]  ;;  %v6342_v43 = vld [vmem:[%s10191_s1 + $0x38c] sm:$0xf0]  ;;  %v4487_v46 = vor.u32 %v6310_v41, %v4486_v40  ;;  %3195 = vmatpush.bf16.msra.mxu0 %v4231_v44 }
  0x11   :  { %v4214_v47 = vld [vmem:[%s10191_s1 + $0x60] sm:$0xf]  ;;  %v6242_v48 = vld [vmem:[%s10191_s1 + $0x6c] sm:$0xf0]  ;;  %v4615_v50 = vor.u32 %v6342_v43, %v4614_v42  ;;  %3209 = vmatpush.bf16.msra.mxu1 %v4359_v45 }
  0x12   :  { %v4342_v49 = vld [vmem:[%s10191_s1 + $0x160] sm:$0xf]  ;;  %v6274_v51 = vld [vmem:[%s10191_s1 + $0x16c] sm:$0xf0]  ;;  %v4215_v56 = vor.u32 %v6242_v48, %v4214_v47  ;;  %3223 = vmatpush.bf16.msra.mxu2 %v4487_v46 }
  0x13   :  { %v4470_v52 = vld [vmem:[%s10191_s1 + $0x260] sm:$0xf]  ;;  %v6306_v53 = vld [vmem:[%s10191_s1 + $0x26c] sm:$0xf0]  ;;  %v4343_v57 = vor.u32 %v6274_v51, %v4342_v49  ;;  %3237 = vmatpush.bf16.msra.mxu3 %v4615_v50 }
  0x14   :  { %v4598_v54 = vld [vmem:[%s10191_s1 + $0x360] sm:$0xf]  ;;  %v6338_v55 = vld [vmem:[%s10191_s1 + $0x36c] sm:$0xf0]  ;;  %v4471_v58 = vor.u32 %v6306_v53, %v4470_v52  ;;  %3196 = vmatpush.bf16.msra.mxu0 %v4215_v56 }
  0x15   :  { %v4198_v59 = vld [vmem:[%s10191_s1 + $0x40] sm:$0xf]  ;;  %v6238_v60 = vld [vmem:[%s10191_s1 + $0x4c] sm:$0xf0]  ;;  %v4599_v62 = vor.u32 %v6338_v55, %v4598_v54  ;;  %3210 = vmatpush.bf16.msra.mxu1 %v4343_v57  ;;  %v4110_v54 = vld [vmem:[%s10192_s0 + $0x8] sm:$0xf] }
  0x16   :  { %v4326_v61 = vld [vmem:[%s10191_s1 + $0x140] sm:$0xf]  ;;  %v6270_v63 = vld [vmem:[%s10191_s1 + $0x14c] sm:$0xf0]  ;;  %v4199_v4 = vor.u32 %v6238_v60, %v4198_v59  ;;  %3224 = vmatpush.bf16.msra.mxu2 %v4471_v58  ;;  %v6221_v59 = vld [vmem:[%s10192_s0 + $0x44] sm:$0xf0] }
  0x17   :  { %v4454_v0 = vld [vmem:[%s10191_s1 + $0x240] sm:$0xf]  ;;  %v6302_v1 = vld [vmem:[%s10191_s1 + $0x24c] sm:$0xf0]  ;;  %v4327_v5 = vor.u32 %v6270_v63, %v4326_v61  ;;  %3238 = vmatpush.bf16.msra.mxu3 %v4599_v62 }
  0x18   :  { %v4582_v2 = vld [vmem:[%s10191_s1 + $0x340] sm:$0xf]  ;;  %v6334_v3 = vld [vmem:[%s10191_s1 + $0x34c] sm:$0xf0]  ;;  %v4455_v6 = vor.u32 %v6302_v1, %v4454_v0  ;;  %3197 = vmatpush.bf16.msra.mxu0 %v4199_v4  ;;  %v7031_v1 = vor.u32 %v6221_v59, %v4110_v54 }
  0x19   :  { %v4182_v7 = vld [vmem:[%s10191_s1 + $0x20] sm:$0xf]  ;;  %v6234_v8 = vld [vmem:[%s10191_s1 + $0x2c] sm:$0xf0]  ;;  %v4583_v10 = vor.u32 %v6334_v3, %v4582_v2  ;;  %3211 = vmatpush.bf16.msra.mxu1 %v4327_v5 }
  0x1a   :  { %v4310_v9 = vld [vmem:[%s10191_s1 + $0x120] sm:$0xf]  ;;  %v6266_v11 = vld [vmem:[%s10191_s1 + $0x12c] sm:$0xf0]  ;;  %v4183_v16 = vor.u32 %v6234_v8, %v4182_v7  ;;  %3225 = vmatpush.bf16.msra.mxu2 %v4455_v6  ;;  %v6212_v6 = vld [vmem:[%s10192_s0 + $0x4] sm:$0xf] }
  0x1b   :  { %v4438_v12 = vld [vmem:[%s10191_s1 + $0x220] sm:$0xf]  ;;  %v6298_v13 = vld [vmem:[%s10191_s1 + $0x22c] sm:$0xf0]  ;;  %v4311_v19 = vor.u32 %v6266_v11, %v4310_v9  ;;  %3239 = vmatpush.bf16.msra.mxu3 %v4583_v10  ;;  %v4104_v7 = vld [vmem:[%s10192_s0 + $0x40] sm:$0xf0] }
  0x1c   :  { %v4566_v14 = vld [vmem:[%s10191_s1 + $0x320] sm:$0xf]  ;;  %v6330_v15 = vld [vmem:[%s10191_s1 + $0x32c] sm:$0xf0]  ;;  %v4439_v20 = vor.u32 %v6298_v13, %v4438_v12  ;;  %3198 = vmatpush.bf16.msra.mxu0 %v4183_v16  ;;  %v6213_v8 = vld [vmem:[%s10192_s0 + $0xc] sm:$0xf]  ;;  %v7053_v10 = vor.u32 %v6212_v6, %v4104_v7 }
  0x1d   :  { %v4166_v17 = vld [vmem:[%s10191_s1] sm:$0xf]  ;;  %v6230_v18 = vld [vmem:[%s10191_s1 + $0xc] sm:$0xf0]  ;;  %v4567_v24 = vor.u32 %v6330_v15, %v4566_v14  ;;  %3212 = vmatpush.bf16.msra.mxu1 %v4311_v19  ;;  %v4112_v11 = vld [vmem:[%s10192_s0 + $0x48] sm:$0xf0] }
  0x1e   :  { %v4294_v21 = vld [vmem:[%s10191_s1 + $0x100] sm:$0xf]  ;;  %v6262_v22 = vld [vmem:[%s10191_s1 + $0x10c] sm:$0xf0]  ;;  %v4167_v31 = vor.u32 %v6230_v18, %v4166_v17  ;;  %3226 = vmatpush.bf16.msra.mxu2 %v4439_v20  ;;  %v7067_v17 = vor.u32 %v6213_v8, %v4112_v11 }
  0x1f   :  { %v4422_v23 = vld [vmem:[%s10191_s1 + $0x200] sm:$0xf]  ;;  %v6294_v25 = vld [vmem:[%s10191_s1 + $0x20c] sm:$0xf0]  ;;  %v4295_v35 = vor.u32 %v6262_v22, %v4294_v21  ;;  %3240 = vmatpush.bf16.msra.mxu3 %v4567_v24 }
  0x20   :  { %v4550_v26 = vld [vmem:[%s10191_s1 + $0x300] sm:$0xf]  ;;  %v6326_v27 = vld [vmem:[%s10191_s1 + $0x30c] sm:$0xf0]  ;;  %v4423_v36 = vor.u32 %v6294_v25, %v4422_v23  ;;  %3199 = vmatpush.bf16.msra.mxu0 %v4167_v31 }
  0x21   :  { %v4790_v28 = vld [vmem:[%s10191_s1 + $0x4e0] sm:$0xf]  ;;  %v6386_v29 = vld [vmem:[%s10191_s1 + $0x4ec] sm:$0xf0]  ;;  %v4551_v39 = vor.u32 %v6326_v27, %v4550_v26  ;;  %3213 = vmatpush.bf16.msra.mxu1 %v4295_v35 }
  0x22   :  { %v4918_v30 = vld [vmem:[%s10191_s1 + $0x5e0] sm:$0xf]  ;;  %v6418_v32 = vld [vmem:[%s10191_s1 + $0x5ec] sm:$0xf0]  ;;  %v4791_v40 = vor.u32 %v6386_v29, %v4790_v28  ;;  %3227 = vmatpush.bf16.msra.mxu2 %v4423_v36 }
  0x23   :  { %v5046_v33 = vld [vmem:[%s10191_s1 + $0x6e0] sm:$0xf]  ;;  %v6450_v34 = vld [vmem:[%s10191_s1 + $0x6ec] sm:$0xf0]  ;;  %v4919_v43 = vor.u32 %v6418_v32, %v4918_v30  ;;  %3241 = vmatpush.bf16.msra.mxu3 %v4551_v39 }
  0x24   :  { %v5174_v37 = vld [vmem:[%s10191_s1 + $0x7e0] sm:$0xf]  ;;  %v6482_v38 = vld [vmem:[%s10191_s1 + $0x7ec] sm:$0xf0]  ;;  %v5047_v44 = vor.u32 %v6450_v34, %v5046_v33  ;;  %3248 = vmatpush.bf16.msrb.mxu0 %v4791_v40  ;;  %3214 = vmatmul.bf16.vlgmr.msra.gmra.mxu1 %v7053_v10 }
  0x25   :  { %v4774_v41 = vld [vmem:[%s10191_s1 + $0x4c0] sm:$0xf]  ;;  %v6382_v42 = vld [vmem:[%s10191_s1 + $0x4cc] sm:$0xf0]  ;;  %v5175_v48 = vor.u32 %v6482_v38, %v5174_v37  ;;  %3262 = vmatpush.bf16.msrb.mxu1 %v4919_v43  ;;  %3228 = vmatmul.bf16.vlgmr.msra.gmra.mxu2 %v7031_v1 }
  0x26   :  { %v4902_v45 = vld [vmem:[%s10191_s1 + $0x5c0] sm:$0xf]  ;;  %v6414_v46 = vld [vmem:[%s10191_s1 + $0x5cc] sm:$0xf0]  ;;  %v4775_v55 = vor.u32 %v6382_v42, %v4774_v41  ;;  %3276 = vmatpush.bf16.msrb.mxu2 %v5047_v44  ;;  %3242 = vmatmul.bf16.vlgmr.msra.gmra.mxu3 %v7067_v17 }
  0x27   :  { %v5030_v47 = vld [vmem:[%s10191_s1 + $0x6c0] sm:$0xf]  ;;  %v6446_v49 = vld [vmem:[%s10191_s1 + $0x6cc] sm:$0xf0]  ;;  %v4903_v60 = vor.u32 %v6414_v46, %v4902_v45  ;;  %3290 = vmatpush.bf16.msrb.mxu3 %v5175_v48 }
  0x28   :  { %v5158_v50 = vld [vmem:[%s10191_s1 + $0x7c0] sm:$0xf]  ;;  %v6478_v51 = vld [vmem:[%s10191_s1 + $0x7cc] sm:$0xf0]  ;;  %v5031_v61 = vor.u32 %v6446_v49, %v5030_v47  ;;  %3249 = vmatpush.bf16.msrb.mxu0 %v4775_v55 }
  0x29   :  { %v4102_v52 = vld [vmem:[%s10192_s0] sm:$0xf]  ;;  %v6378_v57 = vld [vmem:[%s10191_s1 + $0x4ac] sm:$0xf0]  ;;  %v5159_v2 = vor.u32 %v6478_v51, %v5158_v50  ;;  %3263 = vmatpush.bf16.msrb.mxu1 %v4903_v60 }
  0x2a   :  { %v6220_v53 = vld [vmem:[%s10192_s0 + $0x3c] sm:$0xf0]  ;;  %v6410_v63 = vld [vmem:[%s10191_s1 + $0x5ac] sm:$0xf0]  ;;  %3277 = vmatpush.bf16.msrb.mxu2 %v5031_v61 }
  0x2b   :  { %v4758_v56 = vld [vmem:[%s10191_s1 + $0x4a0] sm:$0xf]  ;;  %v7017_v58 = vor.u32 %v6220_v53, %v4102_v52  ;;  %v6442_v3 = vld [vmem:[%s10191_s1 + $0x6ac] sm:$0xf0]  ;;  %3291 = vmatpush.bf16.msrb.mxu3 %v5159_v2 }
  0x2c   :  { %v4886_v62 = vld [vmem:[%s10191_s1 + $0x5a0] sm:$0xf]  ;;  %v6474_v5 = vld [vmem:[%s10191_s1 + $0x7ac] sm:$0xf0]  ;;  %v4759_v9 = vor.u32 %v6378_v57, %v4758_v56 }
  0x2d   :  { %v5014_v0 = vld [vmem:[%s10191_s1 + $0x6a0] sm:$0xf]  ;;  %3200 = vmatmul.bf16.vlgmr.msra.gmra.mxu0 %v7017_v58  ;;  %v4887_v12 = vor.u32 %v6410_v63, %v4886_v62  ;;  %v6374_v15 = vld [vmem:[%s10191_s1 + $0x48c] sm:$0xf0] }
  0x2e   :  { %v5142_v4 = vld [vmem:[%s10191_s1 + $0x7a0] sm:$0xf]  ;;  %v5015_v13 = vor.u32 %v6442_v3, %v5014_v0  ;;  %v6406_v19 = vld [vmem:[%s10191_s1 + $0x58c] sm:$0xf0]  ;;  %3250 = vmatpush.bf16.msrb.mxu0 %v4759_v9 }
  0x2f   :  { %v4742_v14 = vld [vmem:[%s10191_s1 + $0x480] sm:$0xf]  ;;  %v5143_v18 = vor.u32 %v6474_v5, %v5142_v4  ;;  %v6438_v21 = vld [vmem:[%s10191_s1 + $0x68c] sm:$0xf0]  ;;  %3264 = vmatpush.bf16.msrb.mxu1 %v4887_v12 }
  0x30   :  { %v4870_v16 = vld [vmem:[%s10191_s1 + $0x580] sm:$0xf]  ;;  %v6470_v23 = vld [vmem:[%s10191_s1 + $0x78c] sm:$0xf0]  ;;  %v4743_v24 = vor.u32 %v6374_v15, %v4742_v14  ;;  %3278 = vmatpush.bf16.msrb.mxu2 %v5015_v13 }
  0x31   :  { %v4998_v20 = vld [vmem:[%s10191_s1 + $0x680] sm:$0xf]  ;;  %v4871_v25 = vor.u32 %v6406_v19, %v4870_v16  ;;  %v6370_v28 = vld [vmem:[%s10191_s1 + $0x46c] sm:$0xf0]  ;;  %3292 = vmatpush.bf16.msrb.mxu3 %v5143_v18 }
  0x32   :  { %v5126_v22 = vld [vmem:[%s10191_s1 + $0x780] sm:$0xf]  ;;  %v4999_v26 = vor.u32 %v6438_v21, %v4998_v20  ;;  %v6402_v31 = vld [vmem:[%s10191_s1 + $0x56c] sm:$0xf0]  ;;  %3251 = vmatpush.bf16.msrb.mxu0 %v4743_v24 }
  0x33   :  { %v4726_v27 = vld [vmem:[%s10191_s1 + $0x460] sm:$0xf]  ;;  %v5127_v30 = vor.u32 %v6470_v23, %v5126_v22  ;;  %v6434_v33 = vld [vmem:[%s10191_s1 + $0x66c] sm:$0xf0]  ;;  %3265 = vmatpush.bf16.msrb.mxu1 %v4871_v25  ;;  %v4126_v25 = vld [vmem:[%s10192_s0 + $0x18] sm:$0xf] }
  0x34   :  { %v4854_v29 = vld [vmem:[%s10191_s1 + $0x560] sm:$0xf]  ;;  %v6466_v35 = vld [vmem:[%s10191_s1 + $0x76c] sm:$0xf0]  ;;  %v4727_v36 = vor.u32 %v6370_v28, %v4726_v27  ;;  %3279 = vmatpush.bf16.msrb.mxu2 %v4999_v26  ;;  %v6223_v26 = vld [vmem:[%s10192_s0 + $0x54] sm:$0xf0] }
  0x35   :  { %v4982_v32 = vld [vmem:[%s10191_s1 + $0x660] sm:$0xf]  ;;  %v4855_v37 = vor.u32 %v6402_v31, %v4854_v29  ;;  %v6366_v40 = vld [vmem:[%s10191_s1 + $0x44c] sm:$0xf0]  ;;  %3293 = vmatpush.bf16.msrb.mxu3 %v5127_v30  ;;  %v6214_v27 = vld [vmem:[%s10192_s0 + $0x14] sm:$0xf] }
  0x36   :  { %v5110_v34 = vld [vmem:[%s10191_s1 + $0x760] sm:$0xf]  ;;  %v4983_v38 = vor.u32 %v6434_v33, %v4982_v32  ;;  %v6398_v43 = vld [vmem:[%s10191_s1 + $0x54c] sm:$0xf0]  ;;  %3252 = vmatpush.bf16.msrb.mxu0 %v4727_v36  ;;  %v4120_v30 = vld [vmem:[%s10192_s0 + $0x50] sm:$0xf0] }
  0x37   :  { %v4710_v39 = vld [vmem:[%s10191_s1 + $0x440] sm:$0xf]  ;;  %v5111_v42 = vor.u32 %v6466_v35, %v5110_v34  ;;  %v6430_v45 = vld [vmem:[%s10191_s1 + $0x64c] sm:$0xf0]  ;;  %3266 = vmatpush.bf16.msrb.mxu1 %v4855_v37  ;;  %v6215_v31 = vld [vmem:[%s10192_s0 + $0x1c] sm:$0xf] }
  0x38   :  { %v4838_v41 = vld [vmem:[%s10191_s1 + $0x540] sm:$0xf]  ;;  %v6462_v47 = vld [vmem:[%s10191_s1 + $0x74c] sm:$0xf0]  ;;  %v4711_v48 = vor.u32 %v6366_v40, %v4710_v39  ;;  %3280 = vmatpush.bf16.msrb.mxu2 %v4983_v38  ;;  %v4128_v32 = vld [vmem:[%s10192_s0 + $0x58] sm:$0xf0] }
  0x39   :  { %v4966_v44 = vld [vmem:[%s10191_s1 + $0x640] sm:$0xf]  ;;  %v4839_v50 = vor.u32 %v6398_v43, %v4838_v41  ;;  %v6362_v52 = vld [vmem:[%s10191_s1 + $0x42c] sm:$0xf0]  ;;  %3294 = vmatpush.bf16.msrb.mxu3 %v5111_v42  ;;  %v7250_v43 = vor.u32 %v6223_v26, %v4126_v25 }
  0x3a   :  { %v5094_v46 = vld [vmem:[%s10191_s1 + $0x740] sm:$0xf]  ;;  %v4967_v51 = vor.u32 %v6430_v45, %v4966_v44  ;;  %v6394_v54 = vld [vmem:[%s10191_s1 + $0x52c] sm:$0xf0]  ;;  %3253 = vmatpush.bf16.msrb.mxu0 %v4711_v48  ;;  %v7252_v44 = vor.u32 %v6214_v27, %v4120_v30 }
  0x3b   :  { %v4694_v49 = vld [vmem:[%s10191_s1 + $0x420] sm:$0xf]  ;;  %v5095_v55 = vor.u32 %v6462_v47, %v5094_v46  ;;  %v6426_v57 = vld [vmem:[%s10191_s1 + $0x62c] sm:$0xf0]  ;;  %3267 = vmatpush.bf16.msrb.mxu1 %v4839_v50  ;;  %v7260_v47 = vor.u32 %v6215_v31, %v4128_v32 }
  0x3c   :  { %v4822_v53 = vld [vmem:[%s10191_s1 + $0x520] sm:$0xf]  ;;  %v6458_v60 = vld [vmem:[%s10191_s1 + $0x72c] sm:$0xf0]  ;;  %v4695_v63 = vor.u32 %v6362_v52, %v4694_v49  ;;  %3281 = vmatpush.bf16.msrb.mxu2 %v4967_v51  ;;  %10198 = vst [vmem:[#allocation2_spill] sm:$0xff] %v7252_v44 }
  0x3d   :  { %v4950_v56 = vld [vmem:[%s10191_s1 + $0x620] sm:$0xf]  ;;  %v6358_v62 = vld [vmem:[%s10191_s1 + $0x40c] sm:$0xf0]  ;;  %v4823_v5 = vor.u32 %v6394_v54, %v4822_v53  ;;  %3295 = vmatpush.bf16.msrb.mxu3 %v5095_v55  ;;  %10199 = vst [vmem:[#allocation3_spill] sm:$0xff] %v7260_v47 }
  0x3e   :  { %v5078_v59 = vld [vmem:[%s10191_s1 + $0x720] sm:$0xf]  ;;  %v6390_v2 = vld [vmem:[%s10191_s1 + $0x50c] sm:$0xf0]  ;;  %v4951_v6 = vor.u32 %v6426_v57, %v4950_v56  ;;  %3254 = vmatpush.bf16.msrb.mxu0 %v4695_v63 }
  0x3f   :  { %v4678_v61 = vld [vmem:[%s10191_s1 + $0x400] sm:$0xf]  ;;  %v6422_v4 = vld [vmem:[%s10191_s1 + $0x60c] sm:$0xf0]  ;;  %v5079_v11 = vor.u32 %v6458_v60, %v5078_v59  ;;  %3268 = vmatpush.bf16.msrb.mxu1 %v4823_v5 }
  0x40   :  { %v4806_v0 = vld [vmem:[%s10191_s1 + $0x500] sm:$0xf]  ;;  %v6454_v8 = vld [vmem:[%s10191_s1 + $0x70c] sm:$0xf0]  ;;  %v4679_v19 = vor.u32 %v6358_v62, %v4678_v61  ;;  %3282 = vmatpush.bf16.msrb.mxu2 %v4951_v6 }
  0x41   :  { %v4934_v3 = vld [vmem:[%s10191_s1 + $0x600] sm:$0xf]  ;;  %v6514_v12 = vld [vmem:[%s10191_s1 + $0x8ec] sm:$0xf0]  ;;  %v4807_v23 = vor.u32 %v6390_v2, %v4806_v0  ;;  %3296 = vmatpush.bf16.msrb.mxu3 %v5079_v11 }
  0x42   :  { %v5062_v7 = vld [vmem:[%s10191_s1 + $0x700] sm:$0xf]  ;;  %v6546_v14 = vld [vmem:[%s10191_s1 + $0x9ec] sm:$0xf0]  ;;  %v4935_v24 = vor.u32 %v6422_v4, %v4934_v3  ;;  %3255 = vmatpush.bf16.msrb.mxu0 %v4679_v19 }
  0x43   :  { %v5302_v9 = vld [vmem:[%s10191_s1 + $0x8e0] sm:$0xf]  ;;  %v6578_v16 = vld [vmem:[%s10191_s1 + $0xaec] sm:$0xf0]  ;;  %v5063_v28 = vor.u32 %v6454_v8, %v5062_v7  ;;  %3269 = vmatpush.bf16.msrb.mxu1 %v4807_v23 }
  0x44   :  { %v5430_v13 = vld [vmem:[%s10191_s1 + $0x9e0] sm:$0xf]  ;;  %v6610_v20 = vld [vmem:[%s10191_s1 + $0xbec] sm:$0xf0]  ;;  %v5303_v29 = vor.u32 %v6514_v12, %v5302_v9  ;;  %3283 = vmatpush.bf16.msrb.mxu2 %v4935_v24 }
  0x45   :  { %v5558_v15 = vld [vmem:[%s10191_s1 + $0xae0] sm:$0xf]  ;;  %v4118_v21 = vld [vmem:[%s10192_s0 + $0x10] sm:$0xf]  ;;  %v5431_v33 = vor.u32 %v6546_v14, %v5430_v13  ;;  %3297 = vmatpush.bf16.msrb.mxu3 %v5063_v28 }
  0x46   :  { %v5686_v18 = vld [vmem:[%s10191_s1 + $0xbe0] sm:$0xf]  ;;  %v6222_v22 = vld [vmem:[%s10192_s0 + $0x4c] sm:$0xf0]  ;;  %v5559_v34 = vor.u32 %v6578_v16, %v5558_v15  ;;  %3304 = vmatpush.bf16.msra.mxu0 %v5303_v29  ;;  %3270 = vmatmul.bf16.vlgmr.msrb.gmra.mxu1 %v7252_v44 }
  0x47   :  { %v5286_v35 = vld [vmem:[%s10191_s1 + $0x8c0] sm:$0xf]  ;;  %v6510_v36 = vld [vmem:[%s10191_s1 + $0x8cc] sm:$0xf0]  ;;  %v5687_v38 = vor.u32 %v6610_v20, %v5686_v18  ;;  %v7239_v39 = vor.u32 %v6222_v22, %v4118_v21  ;;  %3318 = vmatpush.bf16.msra.mxu1 %v5431_v33  ;;  %3284 = vmatmul.bf16.vlgmr.msrb.gmra.mxu2 %v7250_v43 }
  0x48   :  { %v5414_v37 = vld [vmem:[%s10191_s1 + $0x9c0] sm:$0xf]  ;;  %v6542_v40 = vld [vmem:[%s10191_s1 + $0x9cc] sm:$0xf0]  ;;  %v5287_v48 = vor.u32 %v6510_v36, %v5286_v35  ;;  %3332 = vmatpush.bf16.msra.mxu2 %v5559_v34  ;;  %3298 = vmatmul.bf16.vlgmr.msrb.gmra.mxu3 %v7260_v47 }
  0x49   :  { %v5542_v41 = vld [vmem:[%s10191_s1 + $0xac0] sm:$0xf]  ;;  %v6574_v42 = vld [vmem:[%s10191_s1 + $0xacc] sm:$0xf0]  ;;  %v5415_v49 = vor.u32 %v6542_v40, %v5414_v37  ;;  %3346 = vmatpush.bf16.msra.mxu3 %v5687_v38  ;;  %3256 = vmatmul.bf16.vlgmr.msrb.gmra.mxu0 %v7239_v39 }
  0x4a   :  { %v5670_v45 = vld [vmem:[%s10191_s1 + $0xbc0] sm:$0xf]  ;;  %v6606_v46 = vld [vmem:[%s10191_s1 + $0xbcc] sm:$0xf0]  ;;  %v5543_v50 = vor.u32 %v6574_v42, %v5542_v41  ;;  %3305 = vmatpush.bf16.msra.mxu0 %v5287_v48 }
  0x4b   :  { %v5270_v51 = vld [vmem:[%s10191_s1 + $0x8a0] sm:$0xf]  ;;  %v6506_v52 = vld [vmem:[%s10191_s1 + $0x8ac] sm:$0xf0]  ;;  %v5671_v54 = vor.u32 %v6606_v46, %v5670_v45  ;;  %3319 = vmatpush.bf16.msra.mxu1 %v5415_v49 }
  0x4c   :  { %v5398_v53 = vld [vmem:[%s10191_s1 + $0x9a0] sm:$0xf]  ;;  %v6538_v55 = vld [vmem:[%s10191_s1 + $0x9ac] sm:$0xf0]  ;;  %v5271_v61 = vor.u32 %v6506_v52, %v5270_v51  ;;  %3333 = vmatpush.bf16.msra.mxu2 %v5543_v50 }
  0x4d   :  { %v5526_v56 = vld [vmem:[%s10191_s1 + $0xaa0] sm:$0xf]  ;;  %v6570_v57 = vld [vmem:[%s10191_s1 + $0xaac] sm:$0xf0]  ;;  %v5399_v62 = vor.u32 %v6538_v55, %v5398_v53  ;;  %3347 = vmatpush.bf16.msra.mxu3 %v5671_v54 }
  0x4e   :  { %v5654_v59 = vld [vmem:[%s10191_s1 + $0xba0] sm:$0xf]  ;;  %v6602_v60 = vld [vmem:[%s10191_s1 + $0xbac] sm:$0xf0]  ;;  %v5527_v63 = vor.u32 %v6570_v57, %v5526_v56  ;;  %3306 = vmatpush.bf16.msra.mxu0 %v5271_v61 }
  0x4f   :  { %v5254_v0 = vld [vmem:[%s10191_s1 + $0x880] sm:$0xf]  ;;  %v6502_v2 = vld [vmem:[%s10191_s1 + $0x88c] sm:$0xf0]  ;;  %v5655_v4 = vor.u32 %v6602_v60, %v5654_v59  ;;  %3320 = vmatpush.bf16.msra.mxu1 %v5399_v62 }
  0x50   :  { %v5382_v3 = vld [vmem:[%s10191_s1 + $0x980] sm:$0xf]  ;;  %v6534_v5 = vld [vmem:[%s10191_s1 + $0x98c] sm:$0xf0]  ;;  %v5255_v11 = vor.u32 %v6502_v2, %v5254_v0  ;;  %3334 = vmatpush.bf16.msra.mxu2 %v5527_v63 }
  0x51   :  { %v5510_v6 = vld [vmem:[%s10191_s1 + $0xa80] sm:$0xf]  ;;  %v6566_v7 = vld [vmem:[%s10191_s1 + $0xa8c] sm:$0xf0]  ;;  %v5383_v12 = vor.u32 %v6534_v5, %v5382_v3  ;;  %3348 = vmatpush.bf16.msra.mxu3 %v5655_v4 }
  0x52   :  { %v5638_v8 = vld [vmem:[%s10191_s1 + $0xb80] sm:$0xf]  ;;  %v6598_v9 = vld [vmem:[%s10191_s1 + $0xb8c] sm:$0xf0]  ;;  %v5511_v13 = vor.u32 %v6566_v7, %v5510_v6  ;;  %3307 = vmatpush.bf16.msra.mxu0 %v5255_v11 }
  0x53   :  { %v5238_v14 = vld [vmem:[%s10191_s1 + $0x860] sm:$0xf]  ;;  %v6498_v15 = vld [vmem:[%s10191_s1 + $0x86c] sm:$0xf0]  ;;  %v5639_v18 = vor.u32 %v6598_v9, %v5638_v8  ;;  %3321 = vmatpush.bf16.msra.mxu1 %v5383_v12 }
  0x54   :  { %v5366_v16 = vld [vmem:[%s10191_s1 + $0x960] sm:$0xf]  ;;  %v6530_v19 = vld [vmem:[%s10191_s1 + $0x96c] sm:$0xf0]  ;;  %v5239_v24 = vor.u32 %v6498_v15, %v5238_v14  ;;  %3335 = vmatpush.bf16.msra.mxu2 %v5511_v13 }
  0x55   :  { %v5494_v20 = vld [vmem:[%s10191_s1 + $0xa60] sm:$0xf]  ;;  %v6562_v21 = vld [vmem:[%s10191_s1 + $0xa6c] sm:$0xf0]  ;;  %v5367_v25 = vor.u32 %v6530_v19, %v5366_v16  ;;  %3349 = vmatpush.bf16.msra.mxu3 %v5639_v18  ;;  %v4142_v16 = vld [vmem:[%s10192_s0 + $0x28] sm:$0xf] }
  0x56   :  { %v5622_v22 = vld [vmem:[%s10191_s1 + $0xb60] sm:$0xf]  ;;  %v6594_v23 = vld [vmem:[%s10191_s1 + $0xb6c] sm:$0xf0]  ;;  %v5495_v26 = vor.u32 %v6562_v21, %v5494_v20  ;;  %3308 = vmatpush.bf16.msra.mxu0 %v5239_v24  ;;  %v6225_v18 = vld [vmem:[%s10192_s0 + $0x64] sm:$0xf0] }
  0x57   :  { %v5222_v27 = vld [vmem:[%s10191_s1 + $0x840] sm:$0xf]  ;;  %v6494_v28 = vld [vmem:[%s10191_s1 + $0x84c] sm:$0xf0]  ;;  %v5623_v30 = vor.u32 %v6594_v23, %v5622_v22  ;;  %3322 = vmatpush.bf16.msra.mxu1 %v5367_v25  ;;  %v6216_v19 = vld [vmem:[%s10192_s0 + $0x24] sm:$0xf] }
  0x58   :  { %v5350_v29 = vld [vmem:[%s10191_s1 + $0x940] sm:$0xf]  ;;  %v6526_v31 = vld [vmem:[%s10191_s1 + $0x94c] sm:$0xf0]  ;;  %v5223_v36 = vor.u32 %v6494_v28, %v5222_v27  ;;  %3336 = vmatpush.bf16.msra.mxu2 %v5495_v26  ;;  %v4136_v22 = vld [vmem:[%s10192_s0 + $0x60] sm:$0xf0] }
  0x59   :  { %v5478_v32 = vld [vmem:[%s10191_s1 + $0xa40] sm:$0xf]  ;;  %v6558_v33 = vld [vmem:[%s10191_s1 + $0xa4c] sm:$0xf0]  ;;  %v5351_v38 = vor.u32 %v6526_v31, %v5350_v29  ;;  %3350 = vmatpush.bf16.msra.mxu3 %v5623_v30  ;;  %v6217_v23 = vld [vmem:[%s10192_s0 + $0x2c] sm:$0xf] }
  0x5a   :  { %v5606_v34 = vld [vmem:[%s10191_s1 + $0xb40] sm:$0xf]  ;;  %v6590_v35 = vld [vmem:[%s10191_s1 + $0xb4c] sm:$0xf0]  ;;  %v5479_v40 = vor.u32 %v6558_v33, %v5478_v32  ;;  %3309 = vmatpush.bf16.msra.mxu0 %v5223_v36  ;;  %v4144_v24 = vld [vmem:[%s10192_s0 + $0x68] sm:$0xf0]  ;;  %v7480_v36 = vor.u32 %v6216_v19, %v4136_v22 }
  0x5b   :  { %v5206_v37 = vld [vmem:[%s10191_s1 + $0x820] sm:$0xf]  ;;  %v6490_v41 = vld [vmem:[%s10191_s1 + $0x82c] sm:$0xf0]  ;;  %v5607_v46 = vor.u32 %v6590_v35, %v5606_v34  ;;  %3323 = vmatpush.bf16.msra.mxu1 %v5351_v38  ;;  %v7478_v35 = vor.u32 %v6225_v18, %v4142_v16 }
  0x5c   :  { %v5334_v42 = vld [vmem:[%s10191_s1 + $0x920] sm:$0xf]  ;;  %v6522_v45 = vld [vmem:[%s10191_s1 + $0x92c] sm:$0xf0]  ;;  %v5207_v54 = vor.u32 %v6490_v41, %v5206_v37  ;;  %3337 = vmatpush.bf16.msra.mxu2 %v5479_v40  ;;  %v7488_v40 = vor.u32 %v6217_v23, %v4144_v24 }
  0x5d   :  { %v5462_v48 = vld [vmem:[%s10191_s1 + $0xa20] sm:$0xf]  ;;  %v6554_v49 = vld [vmem:[%s10191_s1 + $0xa2c] sm:$0xf0]  ;;  %v5335_v60 = vor.u32 %v6522_v45, %v5334_v42  ;;  %3351 = vmatpush.bf16.msra.mxu3 %v5607_v46 }
  0x5e   :  { %v5590_v50 = vld [vmem:[%s10191_s1 + $0xb20] sm:$0xf]  ;;  %v6586_v51 = vld [vmem:[%s10191_s1 + $0xb2c] sm:$0xf0]  ;;  %v5463_v61 = vor.u32 %v6554_v49, %v5462_v48  ;;  %3310 = vmatpush.bf16.msra.mxu0 %v5207_v54 }
  0x5f   :  { %v5190_v52 = vld [vmem:[%s10191_s1 + $0x800] sm:$0xf]  ;;  %v6486_v53 = vld [vmem:[%s10191_s1 + $0x80c] sm:$0xf0]  ;;  %v5591_v2 = vor.u32 %v6586_v51, %v5590_v50  ;;  %3324 = vmatpush.bf16.msra.mxu1 %v5335_v60 }
  0x60   :  { %v5318_v55 = vld [vmem:[%s10191_s1 + $0x900] sm:$0xf]  ;;  %v6518_v56 = vld [vmem:[%s10191_s1 + $0x90c] sm:$0xf0]  ;;  %v5191_v9 = vor.u32 %v6486_v53, %v5190_v52  ;;  %3338 = vmatpush.bf16.msra.mxu2 %v5463_v61 }
  0x61   :  { %v5446_v57 = vld [vmem:[%s10191_s1 + $0xa00] sm:$0xf]  ;;  %v6550_v59 = vld [vmem:[%s10191_s1 + $0xa0c] sm:$0xf0]  ;;  %v5319_v14 = vor.u32 %v6518_v56, %v5318_v55  ;;  %3352 = vmatpush.bf16.msra.mxu3 %v5591_v2 }
  0x62   :  { %v5574_v62 = vld [vmem:[%s10191_s1 + $0xb00] sm:$0xf]  ;;  %v6582_v63 = vld [vmem:[%s10191_s1 + $0xb0c] sm:$0xf0]  ;;  %v5447_v15 = vor.u32 %v6550_v59, %v5446_v57  ;;  %3311 = vmatpush.bf16.msra.mxu0 %v5191_v9 }
  0x63   :  { %v5814_v0 = vld [vmem:[%s10191_s1 + $0xce0] sm:$0xf]  ;;  %v6642_v3 = vld [vmem:[%s10191_s1 + $0xcec] sm:$0xf0]  ;;  %v5575_v20 = vor.u32 %v6582_v63, %v5574_v62  ;;  %3325 = vmatpush.bf16.msra.mxu1 %v5319_v14 }
  0x64   :  { %v5942_v4 = vld [vmem:[%s10191_s1 + $0xde0] sm:$0xf]  ;;  %v6674_v5 = vld [vmem:[%s10191_s1 + $0xdec] sm:$0xf0]  ;;  %v5815_v21 = vor.u32 %v6642_v3, %v5814_v0  ;;  %3339 = vmatpush.bf16.msra.mxu2 %v5447_v15 }
  0x65   :  { %v6070_v6 = vld [vmem:[%s10191_s1 + $0xee0] sm:$0xf]  ;;  %v6706_v7 = vld [vmem:[%s10191_s1 + $0xeec] sm:$0xf0]  ;;  %v5943_v25 = vor.u32 %v6674_v5, %v5942_v4  ;;  %3353 = vmatpush.bf16.msra.mxu3 %v5575_v20 }
  0x66   :  { %v6198_v8 = vld [vmem:[%s10191_s1 + $0xfe0] sm:$0xf]  ;;  %v6738_v11 = vld [vmem:[%s10191_s1 + $0xfec] sm:$0xf0]  ;;  %v6071_v26 = vor.u32 %v6706_v7, %v6070_v6  ;;  %3360 = vmatpush.bf16.msrb.mxu0 %v5815_v21  ;;  %3326 = vmatmul.bf16.vlgmr.msra.gmra.mxu1 %v7480_v36 }
  0x67   :  { %v4134_v12 = vld [vmem:[%s10192_s0 + $0x20] sm:$0xf]  ;;  %v6638_v28 = vld [vmem:[%s10191_s1 + $0xccc] sm:$0xf0]  ;;  %v6199_v30 = vor.u32 %v6738_v11, %v6198_v8  ;;  %3374 = vmatpush.bf16.msrb.mxu1 %v5943_v25  ;;  %3340 = vmatmul.bf16.vlgmr.msra.gmra.mxu2 %v7478_v35 }
  0x68   :  { %v6224_v13 = vld [vmem:[%s10192_s0 + $0x5c] sm:$0xf0]  ;;  %v6670_v32 = vld [vmem:[%s10191_s1 + $0xdcc] sm:$0xf0]  ;;  %3388 = vmatpush.bf16.msrb.mxu2 %v6071_v26  ;;  %3354 = vmatmul.bf16.vlgmr.msra.gmra.mxu3 %v7488_v40 }
  0x69   :  { %v5798_v27 = vld [vmem:[%s10191_s1 + $0xcc0] sm:$0xf]  ;;  %v7467_v31 = vor.u32 %v6224_v13, %v4134_v12  ;;  %v6702_v34 = vld [vmem:[%s10191_s1 + $0xecc] sm:$0xf0]  ;;  %3402 = vmatpush.bf16.msrb.mxu3 %v6199_v30 }
  0x6a   :  { %v5926_v29 = vld [vmem:[%s10191_s1 + $0xdc0] sm:$0xf]  ;;  %v6734_v38 = vld [vmem:[%s10191_s1 + $0xfcc] sm:$0xf0]  ;;  %v5799_v41 = vor.u32 %v6638_v28, %v5798_v27 }
  0x6b   :  { %v6054_v33 = vld [vmem:[%s10191_s1 + $0xec0] sm:$0xf]  ;;  %v5927_v42 = vor.u32 %v6670_v32, %v5926_v29  ;;  %v6634_v48 = vld [vmem:[%s10191_s1 + $0xcac] sm:$0xf0]  ;;  %3312 = vmatmul.bf16.vlgmr.msra.gmra.mxu0 %v7467_v31 }
  0x6c   :  { %v6182_v37 = vld [vmem:[%s10191_s1 + $0xfc0] sm:$0xf]  ;;  %v6055_v45 = vor.u32 %v6702_v34, %v6054_v33  ;;  %v6666_v51 = vld [vmem:[%s10191_s1 + $0xdac] sm:$0xf0]  ;;  %3361 = vmatpush.bf16.msrb.mxu0 %v5799_v41 }
  0x6d   :  { %v5782_v46 = vld [vmem:[%s10191_s1 + $0xca0] sm:$0xf]  ;;  %v6183_v50 = vor.u32 %v6734_v38, %v6182_v37  ;;  %v6698_v53 = vld [vmem:[%s10191_s1 + $0xeac] sm:$0xf0]  ;;  %3375 = vmatpush.bf16.msrb.mxu1 %v5927_v42 }
  0x6e   :  { %v5910_v49 = vld [vmem:[%s10191_s1 + $0xda0] sm:$0xf]  ;;  %v6730_v55 = vld [vmem:[%s10191_s1 + $0xfac] sm:$0xf0]  ;;  %v5783_v56 = vor.u32 %v6634_v48, %v5782_v46  ;;  %3389 = vmatpush.bf16.msrb.mxu2 %v6055_v45 }
  0x6f   :  { %v6038_v52 = vld [vmem:[%s10191_s1 + $0xea0] sm:$0xf]  ;;  %v5911_v57 = vor.u32 %v6666_v51, %v5910_v49  ;;  %v6630_v61 = vld [vmem:[%s10191_s1 + $0xc8c] sm:$0xf0]  ;;  %3403 = vmatpush.bf16.msrb.mxu3 %v6183_v50 }
  0x70   :  { %v6166_v54 = vld [vmem:[%s10191_s1 + $0xfa0] sm:$0xf]  ;;  %v6039_v59 = vor.u32 %v6698_v53, %v6038_v52  ;;  %v6662_v0 = vld [vmem:[%s10191_s1 + $0xd8c] sm:$0xf0]  ;;  %3362 = vmatpush.bf16.msrb.mxu0 %v5783_v56 }
  0x71   :  { %v5766_v60 = vld [vmem:[%s10191_s1 + $0xc80] sm:$0xf]  ;;  %v6167_v63 = vor.u32 %v6730_v55, %v6166_v54  ;;  %v6694_v3 = vld [vmem:[%s10191_s1 + $0xe8c] sm:$0xf0]  ;;  %3376 = vmatpush.bf16.msrb.mxu1 %v5911_v57 }
  0x72   :  { %v5894_v62 = vld [vmem:[%s10191_s1 + $0xd80] sm:$0xf]  ;;  %v6726_v5 = vld [vmem:[%s10191_s1 + $0xf8c] sm:$0xf0]  ;;  %v5767_v6 = vor.u32 %v6630_v61, %v5766_v60  ;;  %3390 = vmatpush.bf16.msrb.mxu2 %v6039_v59 }
  0x73   :  { %v6022_v2 = vld [vmem:[%s10191_s1 + $0xe80] sm:$0xf]  ;;  %v5895_v7 = vor.u32 %v6662_v0, %v5894_v62  ;;  %v6626_v11 = vld [vmem:[%s10191_s1 + $0xc6c] sm:$0xf0]  ;;  %3404 = vmatpush.bf16.msrb.mxu3 %v6167_v63  ;;  %v6256_v0 = vld [vmem:[%s10191_s1 + $0xe4] sm:$0xf] }
  0x74   :  { %v6150_v4 = vld [vmem:[%s10191_s1 + $0xf80] sm:$0xf]  ;;  %v6023_v8 = vor.u32 %v6694_v3, %v6022_v2  ;;  %v6658_v14 = vld [vmem:[%s10191_s1 + $0xd6c] sm:$0xf0]  ;;  %3363 = vmatpush.bf16.msrb.mxu0 %v5767_v6  ;;  %v4280_v3 = vld [vmem:[%s10191_s1 + $0xf0] sm:$0xf0] }
  0x75   :  { %v5750_v9 = vld [vmem:[%s10191_s1 + $0xc60] sm:$0xf]  ;;  %v6151_v13 = vor.u32 %v6726_v5, %v6150_v4  ;;  %v6690_v16 = vld [vmem:[%s10191_s1 + $0xe6c] sm:$0xf0]  ;;  %3377 = vmatpush.bf16.msrb.mxu1 %v5895_v7  ;;  %v6288_v4 = vld [vmem:[%s10191_s1 + $0x1e4] sm:$0xf] }
  0x76   :  { %v5878_v12 = vld [vmem:[%s10191_s1 + $0xd60] sm:$0xf]  ;;  %v6722_v19 = vld [vmem:[%s10191_s1 + $0xf6c] sm:$0xf0]  ;;  %v5751_v20 = vor.u32 %v6626_v11, %v5750_v9  ;;  %3391 = vmatpush.bf16.msrb.mxu2 %v6023_v8  ;;  %v4408_v5 = vld [vmem:[%s10191_s1 + $0x1f0] sm:$0xf0] }
  0x77   :  { %v6006_v15 = vld [vmem:[%s10191_s1 + $0xe60] sm:$0xf]  ;;  %v5879_v21 = vor.u32 %v6658_v14, %v5878_v12  ;;  %v6622_v24 = vld [vmem:[%s10191_s1 + $0xc4c] sm:$0xf0]  ;;  %3405 = vmatpush.bf16.msrb.mxu3 %v6151_v13  ;;  %v6320_v6 = vld [vmem:[%s10191_s1 + $0x2e4] sm:$0xf] }
  0x78   :  { %v6134_v18 = vld [vmem:[%s10191_s1 + $0xf60] sm:$0xf]  ;;  %v6007_v22 = vor.u32 %v6690_v16, %v6006_v15  ;;  %v6654_v27 = vld [vmem:[%s10191_s1 + $0xd4c] sm:$0xf0]  ;;  %3364 = vmatpush.bf16.msrb.mxu0 %v5751_v20  ;;  %v4536_v7 = vld [vmem:[%s10191_s1 + $0x2f0] sm:$0xf0] }
  0x79   :  { %v5734_v23 = vld [vmem:[%s10191_s1 + $0xc40] sm:$0xf]  ;;  %v6135_v26 = vor.u32 %v6722_v19, %v6134_v18  ;;  %v6686_v29 = vld [vmem:[%s10191_s1 + $0xe4c] sm:$0xf0]  ;;  %3378 = vmatpush.bf16.msrb.mxu1 %v5879_v21  ;;  %v6352_v8 = vld [vmem:[%s10191_s1 + $0x3e4] sm:$0xf]  ;;  %v4283_v21 = vor.u32 %v6256_v0, %v4280_v3 }
  0x7a   :  { %v5862_v25 = vld [vmem:[%s10191_s1 + $0xd40] sm:$0xf]  ;;  %v6718_v32 = vld [vmem:[%s10191_s1 + $0xf4c] sm:$0xf0]  ;;  %v5735_v33 = vor.u32 %v6622_v24, %v5734_v23  ;;  %3392 = vmatpush.bf16.msrb.mxu2 %v6007_v22  ;;  %v4664_v11 = vld [vmem:[%s10191_s1 + $0x3f0] sm:$0xf0] }
  0x7b   :  { %v5990_v28 = vld [vmem:[%s10191_s1 + $0xe40] sm:$0xf]  ;;  %v5863_v37 = vor.u32 %v6654_v27, %v5862_v25  ;;  %v6618_v41 = vld [vmem:[%s10191_s1 + $0xc2c] sm:$0xf0]  ;;  %3406 = vmatpush.bf16.msrb.mxu3 %v6135_v26  ;;  %v4158_v16 = vld [vmem:[%s10192_s0 + $0x38] sm:$0xf]  ;;  %v4411_v25 = vor.u32 %v6288_v4, %v4408_v5  ;;  %v4539_v26 = vor.u32 %v6320_v6, %v4536_v7 }
  0x7c   :  { %v6118_v30 = vld [vmem:[%s10191_s1 + $0xf40] sm:$0xf]  ;;  %v5991_v38 = vor.u32 %v6686_v29, %v5990_v28  ;;  %v6650_v45 = vld [vmem:[%s10191_s1 + $0xd2c] sm:$0xf0]  ;;  %3365 = vmatpush.bf16.msrb.mxu0 %v5735_v33  ;;  %v6227_v18 = vld [vmem:[%s10192_s0 + $0x74] sm:$0xf0] }
  0x7d   :  { %v5718_v34 = vld [vmem:[%s10191_s1 + $0xc20] sm:$0xf]  ;;  %v6119_v46 = vor.u32 %v6718_v32, %v6118_v30  ;;  %v6682_v49 = vld [vmem:[%s10191_s1 + $0xe2c] sm:$0xf0]  ;;  %3379 = vmatpush.bf16.msrb.mxu1 %v5863_v37  ;;  %v6218_v19 = vld [vmem:[%s10192_s0 + $0x34] sm:$0xf]  ;;  %v4667_v30 = vor.u32 %v6352_v8, %v4664_v11 }
  0x7e   :  { %v5846_v42 = vld [vmem:[%s10191_s1 + $0xd20] sm:$0xf]  ;;  %v6714_v51 = vld [vmem:[%s10191_s1 + $0xf2c] sm:$0xf0]  ;;  %v5719_v54 = vor.u32 %v6618_v41, %v5718_v34  ;;  %3393 = vmatpush.bf16.msrb.mxu2 %v5991_v38  ;;  %v4152_v22 = vld [vmem:[%s10192_s0 + $0x70] sm:$0xf0]  ;;  %v7706_v38 = vor.u32 %v6227_v18, %v4158_v16 }
  0x7f   :  { %v5974_v48 = vld [vmem:[%s10191_s1 + $0xe20] sm:$0xf]  ;;  %v6614_v53 = vld [vmem:[%s10191_s1 + $0xc0c] sm:$0xf0]  ;;  %v5847_v60 = vor.u32 %v6650_v45, %v5846_v42  ;;  %3407 = vmatpush.bf16.msrb.mxu3 %v6119_v46  ;;  %v6219_v23 = vld [vmem:[%s10192_s0 + $0x3c] sm:$0xf]  ;;  %v7708_v41 = vor.u32 %v6218_v19, %v4152_v22 }
  0x80   :  { %v6102_v50 = vld [vmem:[%s10191_s1 + $0xf20] sm:$0xf]  ;;  %v6646_v56 = vld [vmem:[%s10191_s1 + $0xd0c] sm:$0xf0]  ;;  %v5975_v61 = vor.u32 %v6682_v49, %v5974_v48  ;;  %3366 = vmatpush.bf16.msrb.mxu0 %v5719_v54  ;;  %v4160_v24 = vld [vmem:[%s10192_s0 + $0x78] sm:$0xf0] }
  0x81   :  { %v5702_v52 = vld [vmem:[%s10191_s1 + $0xc00] sm:$0xf]  ;;  %v6678_v59 = vld [vmem:[%s10191_s1 + $0xe0c] sm:$0xf0]  ;;  %v6103_v2 = vor.u32 %v6714_v51, %v6102_v50  ;;  %3380 = vmatpush.bf16.msrb.mxu1 %v5847_v60  ;;  %v6252_v27 = vld [vmem:[%s10191_s1 + $0xc4] sm:$0xf]  ;;  %v7716_v46 = vor.u32 %v6219_v23, %v4160_v24 }
  0x82   :  { %v5830_v55 = vld [vmem:[%s10191_s1 + $0xd00] sm:$0xf]  ;;  %v6710_v63 = vld [vmem:[%s10191_s1 + $0xf0c] sm:$0xf0]  ;;  %v5703_v9 = vor.u32 %v6614_v53, %v5702_v52  ;;  %3394 = vmatpush.bf16.msrb.mxu2 %v5975_v61  ;;  %v4264_v28 = vld [vmem:[%s10191_s1 + $0xd0] sm:$0xf0] }
  0x83   :  { %v5958_v57 = vld [vmem:[%s10191_s1 + $0xe00] sm:$0xf]  ;;  %v4150_v12 = vld [vmem:[%s10192_s0 + $0x30] sm:$0xf]  ;;  %v5831_v14 = vor.u32 %v6646_v56, %v5830_v55  ;;  %3408 = vmatpush.bf16.msrb.mxu3 %v6103_v2  ;;  %v6284_v29 = vld [vmem:[%s10191_s1 + $0x1c4] sm:$0xf]  ;;  %v4267_v48 = vor.u32 %v6252_v27, %v4264_v28 }
  0x84   :  { %v6086_v62 = vld [vmem:[%s10191_s1 + $0xf00] sm:$0xf]  ;;  %v6226_v13 = vld [vmem:[%s10192_s0 + $0x6c] sm:$0xf0]  ;;  %v5959_v15 = vor.u32 %v6678_v59, %v5958_v57  ;;  %3367 = vmatpush.bf16.msrb.mxu0 %v5703_v9  ;;  %v4392_v33 = vld [vmem:[%s10191_s1 + $0x1d0] sm:$0xf0] }
  0x85   :  { %v6087_v20 = vor.u32 %v6710_v63, %v6086_v62  ;;  %v7695_v32 = vor.u32 %v6226_v13, %v4150_v12  ;;  %v6316_v34 = vld [vmem:[%s10191_s1 + $0x2c4] sm:$0xf]  ;;  %v4520_v37 = vld [vmem:[%s10191_s1 + $0x2d0] sm:$0xf0]  ;;  %3381 = vmatpush.bf16.msrb.mxu1 %v5831_v14  ;;  %v4395_v49 = vor.u32 %v6284_v29, %v4392_v33 }
  0x86   :  { %3395 = vmatpush.bf16.msrb.mxu2 %v5959_v15  ;;  %v6348_v42 = vld [vmem:[%s10191_s1 + $0x3c4] sm:$0xf]  ;;  %v4648_v45 = vld [vmem:[%s10191_s1 + $0x3d0] sm:$0xf0]  ;;  %v4523_v50 = vor.u32 %v6316_v34, %v4520_v37 }
  0x87   :  { %3409 = vmatpush.bf16.msrb.mxu3 %v6087_v20  ;;  %v6248_v51 = vld [vmem:[%s10191_s1 + $0xa4] sm:$0xf]  ;;  %v4248_v52 = vld [vmem:[%s10191_s1 + $0xb0] sm:$0xf0]  ;;  %3368 = vmatmul.bf16.vlgmr.msrb.gmra.mxu0 %v7695_v32  ;;  %v4651_v54 = vor.u32 %v6348_v42, %v4648_v45 }
  0x88   :  { %3416 = vmatpush.bf16.msra.mxu0 %v4283_v21  ;;  %v6280_v53 = vld [vmem:[%s10191_s1 + $0x1a4] sm:$0xf]  ;;  %v4376_v55 = vld [vmem:[%s10191_s1 + $0x1b0] sm:$0xf0]  ;;  %3382 = vmatmul.bf16.vlgmr.msrb.gmra.mxu1 %v7708_v41  ;;  %v4251_v61 = vor.u32 %v6248_v51, %v4248_v52 }
  0x89   :  { %3430 = vmatpush.bf16.msra.mxu1 %v4411_v25  ;;  %v6312_v56 = vld [vmem:[%s10191_s1 + $0x2a4] sm:$0xf]  ;;  %v4504_v57 = vld [vmem:[%s10191_s1 + $0x2b0] sm:$0xf0]  ;;  %3396 = vmatmul.bf16.vlgmr.msrb.gmra.mxu2 %v7706_v38  ;;  %v4379_v62 = vor.u32 %v6280_v53, %v4376_v55 }
  0x8a   :  { %3444 = vmatpush.bf16.msra.mxu2 %v4539_v26  ;;  %v6344_v59 = vld [vmem:[%s10191_s1 + $0x3a4] sm:$0xf]  ;;  %v4632_v60 = vld [vmem:[%s10191_s1 + $0x3b0] sm:$0xf0]  ;;  %3410 = vmatmul.bf16.vlgmr.msrb.gmra.mxu3 %v7716_v46  ;;  %v4507_v63 = vor.u32 %v6312_v56, %v4504_v57 }
  0x8b   :  { %3458 = vmatpush.bf16.msra.mxu3 %v4667_v30  ;;  %v6244_v0 = vld [vmem:[%s10191_s1 + $0x84] sm:$0xf]  ;;  %v4232_v2 = vld [vmem:[%s10191_s1 + $0x90] sm:$0xf0]  ;;  %v4635_v4 = vor.u32 %v6344_v59, %v4632_v60 }
  0x8c   :  { %3417 = vmatpush.bf16.msra.mxu0 %v4267_v48  ;;  %v6276_v3 = vld [vmem:[%s10191_s1 + $0x184] sm:$0xf]  ;;  %v4360_v5 = vld [vmem:[%s10191_s1 + $0x190] sm:$0xf0]  ;;  %v4235_v11 = vor.u32 %v6244_v0, %v4232_v2 }
  0x8d   :  { %3431 = vmatpush.bf16.msra.mxu1 %v4395_v49  ;;  %v6308_v6 = vld [vmem:[%s10191_s1 + $0x284] sm:$0xf]  ;;  %v4488_v7 = vld [vmem:[%s10191_s1 + $0x290] sm:$0xf0]  ;;  %v4363_v12 = vor.u32 %v6276_v3, %v4360_v5 }
  0x8e   :  { %3445 = vmatpush.bf16.msra.mxu2 %v4523_v50  ;;  %v6340_v8 = vld [vmem:[%s10191_s1 + $0x384] sm:$0xf]  ;;  %v4616_v9 = vld [vmem:[%s10191_s1 + $0x390] sm:$0xf0]  ;;  %v4491_v13 = vor.u32 %v6308_v6, %v4488_v7 }
  0x8f   :  { %3459 = vmatpush.bf16.msra.mxu3 %v4651_v54  ;;  %v6240_v14 = vld [vmem:[%s10191_s1 + $0x64] sm:$0xf]  ;;  %v4216_v15 = vld [vmem:[%s10191_s1 + $0x70] sm:$0xf0]  ;;  %v4619_v18 = vor.u32 %v6340_v8, %v4616_v9 }
  0x90   :  { %3418 = vmatpush.bf16.msra.mxu0 %v4251_v61  ;;  %v6272_v16 = vld [vmem:[%s10191_s1 + $0x164] sm:$0xf]  ;;  %v4344_v19 = vld [vmem:[%s10191_s1 + $0x170] sm:$0xf0]  ;;  %v4219_v24 = vor.u32 %v6240_v14, %v4216_v15 }
  0x91   :  { %3432 = vmatpush.bf16.msra.mxu1 %v4379_v62  ;;  %v6304_v20 = vld [vmem:[%s10191_s1 + $0x264] sm:$0xf]  ;;  %v4472_v21 = vld [vmem:[%s10191_s1 + $0x270] sm:$0xf0]  ;;  %v4347_v25 = vor.u32 %v6272_v16, %v4344_v19 }
  0x92   :  { %3446 = vmatpush.bf16.msra.mxu2 %v4507_v63  ;;  %v6336_v22 = vld [vmem:[%s10191_s1 + $0x364] sm:$0xf]  ;;  %v4600_v23 = vld [vmem:[%s10191_s1 + $0x370] sm:$0xf0]  ;;  %v4475_v26 = vor.u32 %v6304_v20, %v4472_v21 }
  0x93   :  { %3460 = vmatpush.bf16.msra.mxu3 %v4635_v4  ;;  %v6236_v27 = vld [vmem:[%s10191_s1 + $0x44] sm:$0xf]  ;;  %v4200_v28 = vld [vmem:[%s10191_s1 + $0x50] sm:$0xf0]  ;;  %v4603_v30 = vor.u32 %v6336_v22, %v4600_v23 }
  0x94   :  { %3419 = vmatpush.bf16.msra.mxu0 %v4235_v11  ;;  %v6268_v29 = vld [vmem:[%s10191_s1 + $0x144] sm:$0xf]  ;;  %v4328_v33 = vld [vmem:[%s10191_s1 + $0x150] sm:$0xf0]  ;;  %v4203_v48 = vor.u32 %v6236_v27, %v4200_v28 }
  0x95   :  { %3433 = vmatpush.bf16.msra.mxu1 %v4363_v12  ;;  %v6300_v34 = vld [vmem:[%s10191_s1 + $0x244] sm:$0xf]  ;;  %v4456_v37 = vld [vmem:[%s10191_s1 + $0x250] sm:$0xf0]  ;;  %v4331_v49 = vor.u32 %v6268_v29, %v4328_v33 }
  0x96   :  { %3447 = vmatpush.bf16.msra.mxu2 %v4491_v13  ;;  %v6332_v42 = vld [vmem:[%s10191_s1 + $0x344] sm:$0xf]  ;;  %v4584_v45 = vld [vmem:[%s10191_s1 + $0x350] sm:$0xf0]  ;;  %v4459_v50 = vor.u32 %v6300_v34, %v4456_v37 }
  0x97   :  { %3461 = vmatpush.bf16.msra.mxu3 %v4619_v18  ;;  %v6232_v51 = vld [vmem:[%s10191_s1 + $0x24] sm:$0xf]  ;;  %v4184_v52 = vld [vmem:[%s10191_s1 + $0x30] sm:$0xf0]  ;;  %v4587_v54 = vor.u32 %v6332_v42, %v4584_v45 }
  0x98   :  { %3420 = vmatpush.bf16.msra.mxu0 %v4219_v24  ;;  %v6264_v53 = vld [vmem:[%s10191_s1 + $0x124] sm:$0xf]  ;;  %v4312_v55 = vld [vmem:[%s10191_s1 + $0x130] sm:$0xf0]  ;;  %v4187_v61 = vor.u32 %v6232_v51, %v4184_v52 }
  0x99   :  { %3434 = vmatpush.bf16.msra.mxu1 %v4347_v25  ;;  %v6296_v56 = vld [vmem:[%s10191_s1 + $0x224] sm:$0xf]  ;;  %v4440_v57 = vld [vmem:[%s10191_s1 + $0x230] sm:$0xf0]  ;;  %v4315_v0 = vor.u32 %v6264_v53, %v4312_v55 }
  0x9a   :  { %3448 = vmatpush.bf16.msra.mxu2 %v4475_v26  ;;  %v6328_v59 = vld [vmem:[%s10191_s1 + $0x324] sm:$0xf]  ;;  %v4568_v60 = vld [vmem:[%s10191_s1 + $0x330] sm:$0xf0]  ;;  %v4443_v2 = vor.u32 %v6296_v56, %v4440_v57 }
  0x9b   :  { %3462 = vmatpush.bf16.msra.mxu3 %v4603_v30  ;;  %v6228_v62 = vld [vmem:[%s10191_s1 + $0x4] sm:$0xf]  ;;  %v4168_v63 = vld [vmem:[%s10191_s1 + $0x10] sm:$0xf0]  ;;  %v4571_v6 = vor.u32 %v6328_v59, %v4568_v60 }
  0x9c   :  { %3421 = vmatpush.bf16.msra.mxu0 %v4203_v48  ;;  %v6260_v3 = vld [vmem:[%s10191_s1 + $0x104] sm:$0xf]  ;;  %v4296_v4 = vld [vmem:[%s10191_s1 + $0x110] sm:$0xf0]  ;;  %v4171_v14 = vor.u32 %v6228_v62, %v4168_v63 }
  0x9d   :  { %3435 = vmatpush.bf16.msra.mxu1 %v4331_v49  ;;  %v6292_v5 = vld [vmem:[%s10191_s1 + $0x204] sm:$0xf]  ;;  %v4424_v7 = vld [vmem:[%s10191_s1 + $0x210] sm:$0xf0]  ;;  %v4299_v19 = vor.u32 %v6260_v3, %v4296_v4 }
  0x9e   :  { %3449 = vmatpush.bf16.msra.mxu2 %v4459_v50  ;;  %v6324_v8 = vld [vmem:[%s10191_s1 + $0x304] sm:$0xf]  ;;  %v4552_v9 = vld [vmem:[%s10191_s1 + $0x310] sm:$0xf0]  ;;  %v4427_v20 = vor.u32 %v6292_v5, %v4424_v7 }
  0x9f   :  { %3463 = vmatpush.bf16.msra.mxu3 %v4587_v54  ;;  %v6384_v11 = vld [vmem:[%s10191_s1 + $0x4e4] sm:$0xf]  ;;  %v4792_v12 = vld [vmem:[%s10191_s1 + $0x4f0] sm:$0xf0]  ;;  %v4555_v23 = vor.u32 %v6324_v8, %v4552_v9  ;;  %v7926_v54 = vld [vmem:[%s10193_s2] sm:$0xf] }
  0xa0   :  { %v6416_v13 = vld [vmem:[%s10191_s1 + $0x5e4] sm:$0xf]  ;;  %3422 = vmatpush.bf16.msra.mxu0 %v4187_v61  ;;  %v4920_v15 = vld [vmem:[%s10191_s1 + $0x5f0] sm:$0xf0]  ;;  %v4795_v24 = vor.u32 %v6384_v11, %v4792_v12  ;;  %v10195_v63 = vperm.slane %v7926_v54, 0 }
  0xa1   :  { %v6448_v16 = vld [vmem:[%s10191_s1 + $0x6e4] sm:$0xf]  ;;  %v5048_v18 = vld [vmem:[%s10191_s1 + $0x6f0] sm:$0xf0]  ;;  %3436 = vmatpush.bf16.msra.mxu1 %v4315_v0  ;;  %v4923_v25 = vor.u32 %v6416_v13, %v4920_v15 }
  0xa2   :  { %3450 = vmatpush.bf16.msra.mxu2 %v4443_v2  ;;  %v6480_v21 = vld [vmem:[%s10191_s1 + $0x7e4] sm:$0xf]  ;;  %v5176_v22 = vld [vmem:[%s10191_s1 + $0x7f0] sm:$0xf0]  ;;  %v5051_v26 = vor.u32 %v6448_v16, %v5048_v18 }
  0xa3   :  { %3464 = vmatpush.bf16.msra.mxu3 %v4571_v6  ;;  %v6380_v27 = vld [vmem:[%s10191_s1 + $0x4c4] sm:$0xf]  ;;  %v4776_v28 = vld [vmem:[%s10191_s1 + $0x4d0] sm:$0xf0]  ;;  %v5179_v30 = vor.u32 %v6480_v21, %v5176_v22 }
  0xa4   :  { %v6412_v29 = vld [vmem:[%s10191_s1 + $0x5c4] sm:$0xf]  ;;  %3423 = vmatpush.bf16.msra.mxu0 %v4171_v14  ;;  %v4904_v33 = vld [vmem:[%s10191_s1 + $0x5d0] sm:$0xf0]  ;;  %v4779_v48 = vor.u32 %v6380_v27, %v4776_v28  ;;  %v3215_v28 = vpop.f32.mrf.mxu1 }
  0xa5   :  { %v6444_v34 = vld [vmem:[%s10191_s1 + $0x6c4] sm:$0xf]  ;;  %v5032_v37 = vld [vmem:[%s10191_s1 + $0x6d0] sm:$0xf0]  ;;  %3437 = vmatpush.bf16.msra.mxu1 %v4299_v19  ;;  %v4907_v50 = vor.u32 %v6412_v29, %v4904_v33 }
  0xa6   :  { %3451 = vmatpush.bf16.msra.mxu2 %v4427_v20  ;;  %v6476_v42 = vld [vmem:[%s10191_s1 + $0x7c4] sm:$0xf]  ;;  %v5160_v45 = vld [vmem:[%s10191_s1 + $0x7d0] sm:$0xf0]  ;;  %v5035_v51 = vor.u32 %v6444_v34, %v5032_v37 }
  0xa7   :  { %3465 = vmatpush.bf16.msra.mxu3 %v4555_v23  ;;  %v6376_v49 = vld [vmem:[%s10191_s1 + $0x4a4] sm:$0xf]  ;;  %v4760_v52 = vld [vmem:[%s10191_s1 + $0x4b0] sm:$0xf0]  ;;  %v5163_v55 = vor.u32 %v6476_v42, %v5160_v45  ;;  %3424 = vmatmul.bf16.vlgmr.msra.gmra.mxu0 %v7017_v58 }
  0xa8   :  { %3472 = vmatpush.bf16.msrb.mxu0 %v4795_v24  ;;  %v6408_v53 = vld [vmem:[%s10191_s1 + $0x5a4] sm:$0xf]  ;;  %v4888_v56 = vld [vmem:[%s10191_s1 + $0x5b0] sm:$0xf0]  ;;  %3438 = vmatmul.bf16.vlgmr.msra.gmra.mxu1 %v7053_v10  ;;  %v4763_v62 = vor.u32 %v6376_v49, %v4760_v52  ;;  %v3229_v52 = vpop.f32.mrf.mxu2 }
  0xa9   :  { %3486 = vmatpush.bf16.msrb.mxu1 %v4923_v25  ;;  %v6440_v57 = vld [vmem:[%s10191_s1 + $0x6a4] sm:$0xf]  ;;  %v5016_v59 = vld [vmem:[%s10191_s1 + $0x6b0] sm:$0xf0]  ;;  %3452 = vmatmul.bf16.vlgmr.msra.gmra.mxu2 %v7031_v1  ;;  %v4891_v0 = vor.u32 %v6408_v53, %v4888_v56 }
  0xaa   :  { %3500 = vmatpush.bf16.msrb.mxu2 %v5051_v26  ;;  %v6472_v60 = vld [vmem:[%s10191_s1 + $0x7a4] sm:$0xf]  ;;  %v5144_v61 = vld [vmem:[%s10191_s1 + $0x7b0] sm:$0xf0]  ;;  %3466 = vmatmul.bf16.vlgmr.msra.gmra.mxu3 %v7067_v17  ;;  %v5019_v2 = vor.u32 %v6440_v57, %v5016_v59  ;;  %v3201_v13 = vpop.f32.mrf.mxu0 }
  0xab   :  { %3514 = vmatpush.bf16.msrb.mxu3 %v5179_v30  ;;  %v6372_v3 = vld [vmem:[%s10191_s1 + $0x484] sm:$0xf]  ;;  %v4744_v4 = vld [vmem:[%s10191_s1 + $0x490] sm:$0xf0]  ;;  %v5147_v6 = vor.u32 %v6472_v60, %v5144_v61  ;;  %v3202_v15 = vadd.f32 %v3201_v13, %v10195_v63 }
  0xac   :  { %3473 = vmatpush.bf16.msrb.mxu0 %v4779_v48  ;;  %v6404_v5 = vld [vmem:[%s10191_s1 + $0x584] sm:$0xf]  ;;  %v4872_v7 = vld [vmem:[%s10191_s1 + $0x590] sm:$0xf0]  ;;  %v4747_v14 = vor.u32 %v6372_v3, %v4744_v4 }
  0xad   :  { %3487 = vmatpush.bf16.msrb.mxu1 %v4907_v50  ;;  %v6436_v8 = vld [vmem:[%s10191_s1 + $0x684] sm:$0xf]  ;;  %v5000_v9 = vld [vmem:[%s10191_s1 + $0x690] sm:$0xf0]  ;;  %v4875_v16 = vor.u32 %v6404_v5, %v4872_v7  ;;  %v3216_v30 = vadd.f32 %v3215_v28, %v3202_v15 }
  0xae   :  { %3501 = vmatpush.bf16.msrb.mxu2 %v5035_v51  ;;  %v6468_v11 = vld [vmem:[%s10191_s1 + $0x784] sm:$0xf]  ;;  %v5128_v12 = vld [vmem:[%s10191_s1 + $0x790] sm:$0xf0]  ;;  %v5003_v18 = vor.u32 %v6436_v8, %v5000_v9 }
  0xaf   :  { %3515 = vmatpush.bf16.msrb.mxu3 %v5163_v55  ;;  %v6368_v19 = vld [vmem:[%s10191_s1 + $0x464] sm:$0xf]  ;;  %v4728_v20 = vld [vmem:[%s10191_s1 + $0x470] sm:$0xf0]  ;;  %v5131_v22 = vor.u32 %v6468_v11, %v5128_v12  ;;  %v3230_v56 = vadd.f32 %v3229_v52, %v3216_v30 }
  0xb0   :  { %3474 = vmatpush.bf16.msrb.mxu0 %v4763_v62  ;;  %v6400_v21 = vld [vmem:[%s10191_s1 + $0x564] sm:$0xf]  ;;  %v4856_v23 = vld [vmem:[%s10191_s1 + $0x570] sm:$0xf0]  ;;  %v4731_v29 = vor.u32 %v6368_v19, %v4728_v20 }
  0xb1   :  { %3488 = vmatpush.bf16.msrb.mxu1 %v4891_v0  ;;  %v6432_v24 = vld [vmem:[%s10191_s1 + $0x664] sm:$0xf]  ;;  %v4984_v25 = vld [vmem:[%s10191_s1 + $0x670] sm:$0xf0]  ;;  %v4859_v33 = vor.u32 %v6400_v21, %v4856_v23 }
  0xb2   :  { %3502 = vmatpush.bf16.msrb.mxu2 %v5019_v2  ;;  %v6464_v26 = vld [vmem:[%s10191_s1 + $0x764] sm:$0xf]  ;;  %v5112_v27 = vld [vmem:[%s10191_s1 + $0x770] sm:$0xf0]  ;;  %v4987_v34 = vor.u32 %v6432_v24, %v4984_v25 }
  0xb3   :  { %3516 = vmatpush.bf16.msrb.mxu3 %v5147_v6  ;;  %v6364_v37 = vld [vmem:[%s10191_s1 + $0x444] sm:$0xf]  ;;  %v4712_v42 = vld [vmem:[%s10191_s1 + $0x450] sm:$0xf0]  ;;  %v5115_v48 = vor.u32 %v6464_v26, %v5112_v27  ;;  %v3243_v6 = vpop.f32.mrf.mxu3 }
  0xb4   :  { %3475 = vmatpush.bf16.msrb.mxu0 %v4747_v14  ;;  %v6396_v45 = vld [vmem:[%s10191_s1 + $0x544] sm:$0xf]  ;;  %v4840_v49 = vld [vmem:[%s10191_s1 + $0x550] sm:$0xf0]  ;;  %v4715_v57 = vor.u32 %v6364_v37, %v4712_v42  ;;  %v8046_v9 = vadd.f32 %v3243_v6, %v3230_v56 }
  0xb5   :  { %3489 = vmatpush.bf16.msrb.mxu1 %v4875_v16  ;;  %v6428_v50 = vld [vmem:[%s10191_s1 + $0x644] sm:$0xf]  ;;  %v4968_v51 = vld [vmem:[%s10191_s1 + $0x650] sm:$0xf0]  ;;  %v4843_v59 = vor.u32 %v6396_v45, %v4840_v49 }
  0xb6   :  { %3503 = vmatpush.bf16.msrb.mxu2 %v5003_v18  ;;  %v6460_v53 = vld [vmem:[%s10191_s1 + $0x744] sm:$0xf]  ;;  %v5096_v55 = vld [vmem:[%s10191_s1 + $0x750] sm:$0xf0]  ;;  %v4971_v60 = vor.u32 %v6428_v50, %v4968_v51  ;;  %v8096_v51 = vpop.f32.mrf.mxu0 }
  0xb7   :  { %3517 = vmatpush.bf16.msrb.mxu3 %v5131_v22  ;;  %v6360_v61 = vld [vmem:[%s10191_s1 + $0x424] sm:$0xf]  ;;  %v4696_v62 = vld [vmem:[%s10191_s1 + $0x430] sm:$0xf0]  ;;  %v5099_v2 = vor.u32 %v6460_v53, %v5096_v55 }
  0xb8   :  { %3476 = vmatpush.bf16.msrb.mxu0 %v4731_v29  ;;  %v6392_v0 = vld [vmem:[%s10191_s1 + $0x524] sm:$0xf]  ;;  %v4824_v3 = vld [vmem:[%s10191_s1 + $0x530] sm:$0xf0]  ;;  %v4699_v11 = vor.u32 %v6360_v61, %v4696_v62 }
  0xb9   :  { %3490 = vmatpush.bf16.msrb.mxu1 %v4859_v33  ;;  %v6424_v4 = vld [vmem:[%s10191_s1 + $0x624] sm:$0xf]  ;;  %v4952_v5 = vld [vmem:[%s10191_s1 + $0x630] sm:$0xf0]  ;;  %v4827_v14 = vor.u32 %v6392_v0, %v4824_v3  ;;  %v8122_v0 = vpop.f32.mrf.mxu1 }
  0xba   :  { %3504 = vmatpush.bf16.msrb.mxu2 %v4987_v34  ;;  %v6456_v7 = vld [vmem:[%s10191_s1 + $0x724] sm:$0xf]  ;;  %v5080_v8 = vld [vmem:[%s10191_s1 + $0x730] sm:$0xf0]  ;;  %v4955_v15 = vor.u32 %v6424_v4, %v4952_v5 }
  0xbb   :  { %3518 = vmatpush.bf16.msrb.mxu3 %v5115_v48  ;;  %v6356_v12 = vld [vmem:[%s10191_s1 + $0x404] sm:$0xf]  ;;  %v4680_v13 = vld [vmem:[%s10191_s1 + $0x410] sm:$0xf0]  ;;  %v5083_v20 = vor.u32 %v6456_v7, %v5080_v8 }
  0xbc   :  { %3477 = vmatpush.bf16.msrb.mxu0 %v4715_v57  ;;  %v6388_v16 = vld [vmem:[%s10191_s1 + $0x504] sm:$0xf]  ;;  %v4808_v18 = vld [vmem:[%s10191_s1 + $0x510] sm:$0xf0]  ;;  %v4683_v27 = vor.u32 %v6356_v12, %v4680_v13 }
  0xbd   :  { %3491 = vmatpush.bf16.msrb.mxu1 %v4843_v59  ;;  %v6420_v19 = vld [vmem:[%s10191_s1 + $0x604] sm:$0xf]  ;;  %v4936_v21 = vld [vmem:[%s10191_s1 + $0x610] sm:$0xf0]  ;;  %v4811_v33 = vor.u32 %v6388_v16, %v4808_v18  ;;  %v8152_v18 = vpop.f32.mrf.mxu2 }
  0xbe   :  { %3505 = vmatpush.bf16.msrb.mxu2 %v4971_v60  ;;  %v6452_v22 = vld [vmem:[%s10191_s1 + $0x704] sm:$0xf]  ;;  %v5064_v23 = vld [vmem:[%s10191_s1 + $0x710] sm:$0xf0]  ;;  %v4939_v34 = vor.u32 %v6420_v19, %v4936_v21 }
  0xbf   :  { %3519 = vmatpush.bf16.msrb.mxu3 %v5099_v2  ;;  %v6512_v24 = vld [vmem:[%s10191_s1 + $0x8e4] sm:$0xf]  ;;  %v5304_v25 = vld [vmem:[%s10191_s1 + $0x8f0] sm:$0xf0]  ;;  %v5067_v45 = vor.u32 %v6452_v22, %v5064_v23 }
  0xc0   :  { %v6544_v26 = vld [vmem:[%s10191_s1 + $0x9e4] sm:$0xf]  ;;  %3478 = vmatpush.bf16.msrb.mxu0 %v4699_v11  ;;  %v5432_v28 = vld [vmem:[%s10191_s1 + $0x9f0] sm:$0xf0]  ;;  %v5307_v48 = vor.u32 %v6512_v24, %v5304_v25  ;;  %v8163_v25 = vpop.f32.mrf.mxu3 }
  0xc1   :  { %v6576_v29 = vld [vmem:[%s10191_s1 + $0xae4] sm:$0xf]  ;;  %v5560_v30 = vld [vmem:[%s10191_s1 + $0xaf0] sm:$0xf0]  ;;  %3492 = vmatpush.bf16.msrb.mxu1 %v4827_v14  ;;  %v5435_v49 = vor.u32 %v6544_v26, %v5432_v28 }
  0xc2   :  { %3506 = vmatpush.bf16.msrb.mxu2 %v4955_v15  ;;  %v6608_v37 = vld [vmem:[%s10191_s1 + $0xbe4] sm:$0xf]  ;;  %v5688_v42 = vld [vmem:[%s10191_s1 + $0xbf0] sm:$0xf0]  ;;  %v5563_v50 = vor.u32 %v6576_v29, %v5560_v30 }
  0xc3   :  { %3520 = vmatpush.bf16.msrb.mxu3 %v5083_v20  ;;  %v6508_v52 = vld [vmem:[%s10191_s1 + $0x8c4] sm:$0xf]  ;;  %v5288_v53 = vld [vmem:[%s10191_s1 + $0x8d0] sm:$0xf0]  ;;  %v5691_v56 = vor.u32 %v6608_v37, %v5688_v42 }
  0xc4   :  { %v6540_v55 = vld [vmem:[%s10191_s1 + $0x9c4] sm:$0xf]  ;;  %3479 = vmatpush.bf16.msrb.mxu0 %v4683_v27  ;;  %v5416_v57 = vld [vmem:[%s10191_s1 + $0x9d0] sm:$0xf0]  ;;  %v5291_v2 = vor.u32 %v6508_v52, %v5288_v53 }
  0xc5   :  { %v6572_v59 = vld [vmem:[%s10191_s1 + $0xac4] sm:$0xf]  ;;  %v5544_v60 = vld [vmem:[%s10191_s1 + $0xad0] sm:$0xf0]  ;;  %3493 = vmatpush.bf16.msrb.mxu1 %v4811_v33  ;;  %v5419_v3 = vor.u32 %v6540_v55, %v5416_v57 }
  0xc6   :  { %3507 = vmatpush.bf16.msrb.mxu2 %v4939_v34  ;;  %v6604_v61 = vld [vmem:[%s10191_s1 + $0xbc4] sm:$0xf]  ;;  %v5672_v62 = vld [vmem:[%s10191_s1 + $0xbd0] sm:$0xf0]  ;;  %v5547_v4 = vor.u32 %v6572_v59, %v5544_v60  ;;  %v3257_v29 = vpop.f32.mrf.mxu0 }
  0xc7   :  { %3521 = vmatpush.bf16.msrb.mxu3 %v5067_v45  ;;  %v6504_v5 = vld [vmem:[%s10191_s1 + $0x8a4] sm:$0xf]  ;;  %v5272_v6 = vld [vmem:[%s10191_s1 + $0x8b0] sm:$0xf0]  ;;  %3480 = vmatmul.bf16.vlgmr.msrb.gmra.mxu0 %v7239_v39  ;;  %v5675_v8 = vor.u32 %v6604_v61, %v5672_v62  ;;  %v3258_v34 = vadd.f32 %v3257_v29, %v8046_v9 }
  0xc8   :  { %3528 = vmatpush.bf16.msra.mxu0 %v5307_v48  ;;  %v6536_v7 = vld [vmem:[%s10191_s1 + $0x9a4] sm:$0xf]  ;;  %v5400_v11 = vld [vmem:[%s10191_s1 + $0x9b0] sm:$0xf0]  ;;  %3494 = vmatmul.bf16.vlgmr.msrb.gmra.mxu1 %v7252_v44  ;;  %v5275_v16 = vor.u32 %v6504_v5, %v5272_v6  ;;  %v3271_v48 = vpop.f32.mrf.mxu1 }
  0xc9   :  { %3542 = vmatpush.bf16.msra.mxu1 %v5435_v49  ;;  %v6568_v12 = vld [vmem:[%s10191_s1 + $0xaa4] sm:$0xf]  ;;  %v5528_v13 = vld [vmem:[%s10191_s1 + $0xab0] sm:$0xf0]  ;;  %3508 = vmatmul.bf16.vlgmr.msrb.gmra.mxu2 %v7250_v43  ;;  %v5403_v19 = vor.u32 %v6536_v7, %v5400_v11  ;;  %v3272_v53 = vadd.f32 %v3271_v48, %v3258_v34 }
  0xca   :  { %3556 = vmatpush.bf16.msra.mxu2 %v5563_v50  ;;  %v6600_v14 = vld [vmem:[%s10191_s1 + $0xba4] sm:$0xf]  ;;  %v5656_v15 = vld [vmem:[%s10191_s1 + $0xbb0] sm:$0xf0]  ;;  %3522 = vmatmul.bf16.vlgmr.msrb.gmra.mxu3 %v7260_v47  ;;  %v5531_v20 = vor.u32 %v6568_v12, %v5528_v13  ;;  %v3285_v7 = vpop.f32.mrf.mxu2 }
  0xcb   :  { %3570 = vmatpush.bf16.msra.mxu3 %v5691_v56  ;;  %v6500_v21 = vld [vmem:[%s10191_s1 + $0x884] sm:$0xf]  ;;  %v5256_v22 = vld [vmem:[%s10191_s1 + $0x890] sm:$0xf0]  ;;  %v5659_v24 = vor.u32 %v6600_v14, %v5656_v15  ;;  %v3286_v13 = vadd.f32 %v3285_v7, %v3272_v53 }
  0xcc   :  { %3529 = vmatpush.bf16.msra.mxu0 %v5291_v2  ;;  %v6532_v23 = vld [vmem:[%s10191_s1 + $0x984] sm:$0xf]  ;;  %v5384_v26 = vld [vmem:[%s10191_s1 + $0x990] sm:$0xf0]  ;;  %v5259_v37 = vor.u32 %v6500_v21, %v5256_v22 }
  0xcd   :  { %3543 = vmatpush.bf16.msra.mxu1 %v5419_v3  ;;  %v6564_v27 = vld [vmem:[%s10191_s1 + $0xa84] sm:$0xf]  ;;  %v5512_v28 = vld [vmem:[%s10191_s1 + $0xa90] sm:$0xf0]  ;;  %v5387_v42 = vor.u32 %v6532_v23, %v5384_v26 }
  0xce   :  { %3557 = vmatpush.bf16.msra.mxu2 %v5547_v4  ;;  %v6596_v30 = vld [vmem:[%s10191_s1 + $0xb84] sm:$0xf]  ;;  %v5640_v33 = vld [vmem:[%s10191_s1 + $0xb90] sm:$0xf0]  ;;  %v5515_v45 = vor.u32 %v6564_v27, %v5512_v28 }
  0xcf   :  { %3571 = vmatpush.bf16.msra.mxu3 %v5675_v8  ;;  %v6496_v49 = vld [vmem:[%s10191_s1 + $0x864] sm:$0xf]  ;;  %v5240_v50 = vld [vmem:[%s10191_s1 + $0x870] sm:$0xf0]  ;;  %v5643_v9 = vor.u32 %v6596_v30, %v5640_v33 }
  0xd0   :  { %3530 = vmatpush.bf16.msra.mxu0 %v5275_v16  ;;  %v6528_v52 = vld [vmem:[%s10191_s1 + $0x964] sm:$0xf]  ;;  %v5368_v55 = vld [vmem:[%s10191_s1 + $0x970] sm:$0xf0]  ;;  %v5243_v61 = vor.u32 %v6496_v49, %v5240_v50  ;;  %v3299_v16 = vpop.f32.mrf.mxu3 }
  0xd1   :  { %3544 = vmatpush.bf16.msra.mxu1 %v5403_v19  ;;  %v6560_v56 = vld [vmem:[%s10191_s1 + $0xa64] sm:$0xf]  ;;  %v5496_v57 = vld [vmem:[%s10191_s1 + $0xa70] sm:$0xf0]  ;;  %v5371_v62 = vor.u32 %v6528_v52, %v5368_v55 }
  0xd2   :  { %3558 = vmatpush.bf16.msra.mxu2 %v5531_v20  ;;  %v6592_v59 = vld [vmem:[%s10191_s1 + $0xb64] sm:$0xf]  ;;  %v5624_v60 = vld [vmem:[%s10191_s1 + $0xb70] sm:$0xf0]  ;;  %v5499_v2 = vor.u32 %v6560_v56, %v5496_v57  ;;  %v8229_v20 = vadd.f32 %v3299_v16, %v3286_v13 }
  0xd3   :  { %3572 = vmatpush.bf16.msra.mxu3 %v5659_v24  ;;  %v6492_v3 = vld [vmem:[%s10191_s1 + $0x844] sm:$0xf]  ;;  %v5224_v4 = vld [vmem:[%s10191_s1 + $0x850] sm:$0xf0]  ;;  %v5627_v6 = vor.u32 %v6592_v59, %v5624_v60 }
  0xd4   :  { %3531 = vmatpush.bf16.msra.mxu0 %v5259_v37  ;;  %v6524_v5 = vld [vmem:[%s10191_s1 + $0x944] sm:$0xf]  ;;  %v5352_v8 = vld [vmem:[%s10191_s1 + $0x950] sm:$0xf0]  ;;  %v5227_v19 = vor.u32 %v6492_v3, %v5224_v4 }
  0xd5   :  { %3545 = vmatpush.bf16.msra.mxu1 %v5387_v42  ;;  %v6556_v11 = vld [vmem:[%s10191_s1 + $0xa44] sm:$0xf]  ;;  %v5480_v12 = vld [vmem:[%s10191_s1 + $0xa50] sm:$0xf0]  ;;  %v5355_v21 = vor.u32 %v6524_v5, %v5352_v8 }
  0xd6   :  { %3559 = vmatpush.bf16.msra.mxu2 %v5515_v45  ;;  %v6588_v14 = vld [vmem:[%s10191_s1 + $0xb44] sm:$0xf]  ;;  %v5608_v15 = vld [vmem:[%s10191_s1 + $0xb50] sm:$0xf0]  ;;  %v5483_v22 = vor.u32 %v6556_v11, %v5480_v12 }
  0xd7   :  { %3573 = vmatpush.bf16.msra.mxu3 %v5643_v9  ;;  %v6488_v23 = vld [vmem:[%s10191_s1 + $0x824] sm:$0xf]  ;;  %v5208_v24 = vld [vmem:[%s10191_s1 + $0x830] sm:$0xf0]  ;;  %v5611_v27 = vor.u32 %v6588_v14, %v5608_v15 }
  0xd8   :  { %3532 = vmatpush.bf16.msra.mxu0 %v5243_v61  ;;  %v6520_v26 = vld [vmem:[%s10191_s1 + $0x924] sm:$0xf]  ;;  %v5336_v28 = vld [vmem:[%s10191_s1 + $0x930] sm:$0xf0]  ;;  %v5211_v37 = vor.u32 %v6488_v23, %v5208_v24 }
  0xd9   :  { %3546 = vmatpush.bf16.msra.mxu1 %v5371_v62  ;;  %v6552_v29 = vld [vmem:[%s10191_s1 + $0xa24] sm:$0xf]  ;;  %v5464_v30 = vld [vmem:[%s10191_s1 + $0xa30] sm:$0xf0]  ;;  %v5339_v48 = vor.u32 %v6520_v26, %v5336_v28  ;;  %v8321_v26 = vpop.f32.mrf.mxu0 }
  0xda   :  { %3560 = vmatpush.bf16.msra.mxu2 %v5499_v2  ;;  %v6584_v33 = vld [vmem:[%s10191_s1 + $0xb24] sm:$0xf]  ;;  %v5592_v34 = vld [vmem:[%s10191_s1 + $0xb30] sm:$0xf0]  ;;  %v5467_v49 = vor.u32 %v6552_v29, %v5464_v30  ;;  %v8329_v29 = vpop.f32.mrf.mxu1 }
  0xdb   :  { %3574 = vmatpush.bf16.msra.mxu3 %v5627_v6  ;;  %v6484_v42 = vld [vmem:[%s10191_s1 + $0x804] sm:$0xf]  ;;  %v5192_v45 = vld [vmem:[%s10191_s1 + $0x810] sm:$0xf0]  ;;  %v5595_v53 = vor.u32 %v6584_v33, %v5592_v34 }
  0xdc   :  { %3533 = vmatpush.bf16.msra.mxu0 %v5227_v19  ;;  %v6516_v50 = vld [vmem:[%s10191_s1 + $0x904] sm:$0xf]  ;;  %v5320_v52 = vld [vmem:[%s10191_s1 + $0x910] sm:$0xf0]  ;;  %v5195_v62 = vor.u32 %v6484_v42, %v5192_v45 }
  0xdd   :  { %3547 = vmatpush.bf16.msra.mxu1 %v5355_v21  ;;  %v6548_v9 = vld [vmem:[%s10191_s1 + $0xa04] sm:$0xf]  ;;  %v5448_v55 = vld [vmem:[%s10191_s1 + $0xa10] sm:$0xf0]  ;;  %v5323_v5 = vor.u32 %v6516_v50, %v5320_v52 }
  0xde   :  { %3561 = vmatpush.bf16.msra.mxu2 %v5483_v22  ;;  %v6580_v56 = vld [vmem:[%s10191_s1 + $0xb04] sm:$0xf]  ;;  %v5576_v57 = vld [vmem:[%s10191_s1 + $0xb10] sm:$0xf0]  ;;  %v5451_v6 = vor.u32 %v6548_v9, %v5448_v55 }
  0xdf   :  { %3575 = vmatpush.bf16.msra.mxu3 %v5611_v27  ;;  %v6640_v59 = vld [vmem:[%s10191_s1 + $0xce4] sm:$0xf]  ;;  %v5816_v60 = vld [vmem:[%s10191_s1 + $0xcf0] sm:$0xf0]  ;;  %v5579_v11 = vor.u32 %v6580_v56, %v5576_v57 }
  0xe0   :  { %v6672_v61 = vld [vmem:[%s10191_s1 + $0xde4] sm:$0xf]  ;;  %3534 = vmatpush.bf16.msra.mxu0 %v5211_v37  ;;  %v5944_v2 = vld [vmem:[%s10191_s1 + $0xdf0] sm:$0xf0]  ;;  %v5819_v12 = vor.u32 %v6640_v59, %v5816_v60 }
  0xe1   :  { %v6704_v3 = vld [vmem:[%s10191_s1 + $0xee4] sm:$0xf]  ;;  %v6072_v4 = vld [vmem:[%s10191_s1 + $0xef0] sm:$0xf0]  ;;  %3548 = vmatpush.bf16.msra.mxu1 %v5339_v48  ;;  %v5947_v13 = vor.u32 %v6672_v61, %v5944_v2 }
  0xe2   :  { %3562 = vmatpush.bf16.msra.mxu2 %v5467_v49  ;;  %v6736_v7 = vld [vmem:[%s10191_s1 + $0xfe4] sm:$0xf]  ;;  %v6200_v8 = vld [vmem:[%s10191_s1 + $0xff0] sm:$0xf0]  ;;  %v6075_v14 = vor.u32 %v6704_v3, %v6072_v4 }
  0xe3   :  { %3576 = vmatpush.bf16.msra.mxu3 %v5595_v53  ;;  %v6636_v15 = vld [vmem:[%s10191_s1 + $0xcc4] sm:$0xf]  ;;  %v5800_v16 = vld [vmem:[%s10191_s1 + $0xcd0] sm:$0xf0]  ;;  %v6203_v21 = vor.u32 %v6736_v7, %v6200_v8 }
  0xe4   :  { %v6668_v19 = vld [vmem:[%s10191_s1 + $0xdc4] sm:$0xf]  ;;  %3535 = vmatpush.bf16.msra.mxu0 %v5195_v62  ;;  %v5928_v22 = vld [vmem:[%s10191_s1 + $0xdd0] sm:$0xf0]  ;;  %v5803_v30 = vor.u32 %v6636_v15, %v5800_v16  ;;  %v8368_v62 = vpop.f32.mrf.mxu2 }
  0xe5   :  { %v6700_v23 = vld [vmem:[%s10191_s1 + $0xec4] sm:$0xf]  ;;  %v6056_v24 = vld [vmem:[%s10191_s1 + $0xed0] sm:$0xf0]  ;;  %3549 = vmatpush.bf16.msra.mxu1 %v5323_v5  ;;  %v5931_v33 = vor.u32 %v6668_v19, %v5928_v22 }
  0xe6   :  { %3563 = vmatpush.bf16.msra.mxu2 %v5451_v6  ;;  %v6732_v27 = vld [vmem:[%s10191_s1 + $0xfc4] sm:$0xf]  ;;  %v6184_v28 = vld [vmem:[%s10191_s1 + $0xfd0] sm:$0xf0]  ;;  %v6059_v34 = vor.u32 %v6700_v23, %v6056_v24  ;;  %v8379_v6 = vpop.f32.mrf.mxu3 }
  0xe7   :  { %3577 = vmatpush.bf16.msra.mxu3 %v5579_v11  ;;  %v6632_v37 = vld [vmem:[%s10191_s1 + $0xca4] sm:$0xf]  ;;  %v5784_v42 = vld [vmem:[%s10191_s1 + $0xcb0] sm:$0xf0]  ;;  %3536 = vmatmul.bf16.vlgmr.msra.gmra.mxu0 %v7467_v31  ;;  %v6187_v48 = vor.u32 %v6732_v27, %v6184_v28 }
  0xe8   :  { %3584 = vmatpush.bf16.msrb.mxu0 %v5819_v12  ;;  %v6664_v45 = vld [vmem:[%s10191_s1 + $0xda4] sm:$0xf]  ;;  %v5912_v49 = vld [vmem:[%s10191_s1 + $0xdb0] sm:$0xf0]  ;;  %3550 = vmatmul.bf16.vlgmr.msra.gmra.mxu1 %v7480_v36  ;;  %v5787_v55 = vor.u32 %v6632_v37, %v5784_v42  ;;  %v3313_v7 = vpop.f32.mrf.mxu0 }
  0xe9   :  { %3598 = vmatpush.bf16.msrb.mxu1 %v5947_v13  ;;  %v6696_v50 = vld [vmem:[%s10191_s1 + $0xea4] sm:$0xf]  ;;  %v6040_v52 = vld [vmem:[%s10191_s1 + $0xeb0] sm:$0xf0]  ;;  %3564 = vmatmul.bf16.vlgmr.msra.gmra.mxu2 %v7478_v35  ;;  %v5915_v56 = vor.u32 %v6664_v45, %v5912_v49  ;;  %v3314_v12 = vadd.f32 %v3313_v7, %v8229_v20 }
  0xea   :  { %3612 = vmatpush.bf16.msrb.mxu2 %v6075_v14  ;;  %v6728_v9 = vld [vmem:[%s10191_s1 + $0xfa4] sm:$0xf]  ;;  %v6168_v53 = vld [vmem:[%s10191_s1 + $0xfb0] sm:$0xf0]  ;;  %3578 = vmatmul.bf16.vlgmr.msra.gmra.mxu3 %v7488_v40  ;;  %v6043_v57 = vor.u32 %v6696_v50, %v6040_v52  ;;  %v3327_v14 = vpop.f32.mrf.mxu1 }
  0xeb   :  { %3626 = vmatpush.bf16.msrb.mxu3 %v6203_v21  ;;  %v6628_v59 = vld [vmem:[%s10191_s1 + $0xc84] sm:$0xf]  ;;  %v5768_v60 = vld [vmem:[%s10191_s1 + $0xc90] sm:$0xf0]  ;;  %v6171_v2 = vor.u32 %v6728_v9, %v6168_v53  ;;  %v3328_v23 = vadd.f32 %v3327_v14, %v3314_v12 }
  0xec   :  { %3585 = vmatpush.bf16.msrb.mxu0 %v5803_v30  ;;  %v6660_v61 = vld [vmem:[%s10191_s1 + $0xd84] sm:$0xf]  ;;  %v5896_v3 = vld [vmem:[%s10191_s1 + $0xd90] sm:$0xf0]  ;;  %v5771_v13 = vor.u32 %v6628_v59, %v5768_v60  ;;  %v3341_v52 = vpop.f32.mrf.mxu2 }
  0xed   :  { %3599 = vmatpush.bf16.msrb.mxu1 %v5931_v33  ;;  %v6692_v4 = vld [vmem:[%s10191_s1 + $0xe84] sm:$0xf]  ;;  %v6024_v5 = vld [vmem:[%s10191_s1 + $0xe90] sm:$0xf0]  ;;  %v5899_v15 = vor.u32 %v6660_v61, %v5896_v3 }
  0xee   :  { %3613 = vmatpush.bf16.msrb.mxu2 %v6059_v34  ;;  %v6724_v8 = vld [vmem:[%s10191_s1 + $0xf84] sm:$0xf]  ;;  %v6152_v11 = vld [vmem:[%s10191_s1 + $0xf90] sm:$0xf0]  ;;  %v6027_v16 = vor.u32 %v6692_v4, %v6024_v5 }
  0xef   :  { %3627 = vmatpush.bf16.msrb.mxu3 %v6187_v48  ;;  %v6624_v19 = vld [vmem:[%s10191_s1 + $0xc64] sm:$0xf]  ;;  %v5752_v21 = vld [vmem:[%s10191_s1 + $0xc70] sm:$0xf0]  ;;  %v6155_v20 = vor.u32 %v6724_v8, %v6152_v11 }
  0xf0   :  { %3586 = vmatpush.bf16.msrb.mxu0 %v5787_v55  ;;  %v6656_v22 = vld [vmem:[%s10191_s1 + $0xd64] sm:$0xf]  ;;  %v5880_v24 = vld [vmem:[%s10191_s1 + $0xd70] sm:$0xf0]  ;;  %v5755_v34 = vor.u32 %v6624_v19, %v5752_v21 }
  0xf1   :  { %3600 = vmatpush.bf16.msrb.mxu1 %v5915_v56  ;;  %v6688_v27 = vld [vmem:[%s10191_s1 + $0xe64] sm:$0xf]  ;;  %v6008_v28 = vld [vmem:[%s10191_s1 + $0xe70] sm:$0xf0]  ;;  %v5883_v37 = vor.u32 %v6656_v22, %v5880_v24  ;;  %v3342_v56 = vadd.f32 %v3341_v52, %v3328_v23  ;;  %v4542_v52 = vld [vmem:[%s10191_s1 + $0x2e8] sm:$0xf] }
  0xf2   :  { %3614 = vmatpush.bf16.msrb.mxu2 %v6043_v57  ;;  %v6720_v30 = vld [vmem:[%s10191_s1 + $0xf64] sm:$0xf]  ;;  %v6136_v33 = vld [vmem:[%s10191_s1 + $0xf70] sm:$0xf0]  ;;  %v6011_v42 = vor.u32 %v6688_v27, %v6008_v28  ;;  %v3355_v57 = vpop.f32.mrf.mxu3 }
  0xf3   :  { %3628 = vmatpush.bf16.msrb.mxu3 %v6171_v2  ;;  %v6620_v45 = vld [vmem:[%s10191_s1 + $0xc44] sm:$0xf]  ;;  %v5736_v48 = vld [vmem:[%s10191_s1 + $0xc50] sm:$0xf0]  ;;  %v6139_v50 = vor.u32 %v6720_v30, %v6136_v33  ;;  %v8436_v2 = vadd.f32 %v3355_v57, %v3342_v56  ;;  %v4670_v56 = vld [vmem:[%s10191_s1 + $0x3e8] sm:$0xf] }
  0xf4   :  { %3587 = vmatpush.bf16.msrb.mxu0 %v5771_v13  ;;  %v6652_v49 = vld [vmem:[%s10191_s1 + $0xd44] sm:$0xf]  ;;  %v5864_v9 = vld [vmem:[%s10191_s1 + $0xd50] sm:$0xf0]  ;;  %v5739_v61 = vor.u32 %v6620_v45, %v5736_v48  ;;  %v6259_v45 = vld [vmem:[%s10191_s1 + $0xf4] sm:$0xf0] }
  0xf5   :  { %3601 = vmatpush.bf16.msrb.mxu1 %v5899_v15  ;;  %v6684_v53 = vld [vmem:[%s10191_s1 + $0xe44] sm:$0xf]  ;;  %v5992_v55 = vld [vmem:[%s10191_s1 + $0xe50] sm:$0xf0]  ;;  %v5867_v3 = vor.u32 %v6652_v49, %v5864_v9  ;;  %v4414_v48 = vld [vmem:[%s10191_s1 + $0x1e8] sm:$0xf] }
  0xf6   :  { %3615 = vmatpush.bf16.msrb.mxu2 %v6027_v16  ;;  %v6716_v59 = vld [vmem:[%s10191_s1 + $0xf44] sm:$0xf]  ;;  %v6120_v60 = vld [vmem:[%s10191_s1 + $0xf50] sm:$0xf0]  ;;  %v5995_v4 = vor.u32 %v6684_v53, %v5992_v55  ;;  %v6323_v9 = vld [vmem:[%s10191_s1 + $0x2f4] sm:$0xf0] }
  0xf7   :  { %3629 = vmatpush.bf16.msrb.mxu3 %v6155_v20  ;;  %v6616_v5 = vld [vmem:[%s10191_s1 + $0xc24] sm:$0xf]  ;;  %v5720_v7 = vld [vmem:[%s10191_s1 + $0xc30] sm:$0xf0]  ;;  %v6123_v11 = vor.u32 %v6716_v59, %v6120_v60  ;;  %v6355_v57 = vld [vmem:[%s10191_s1 + $0x3f4] sm:$0xf0] }
  0xf8   :  { %3588 = vmatpush.bf16.msrb.mxu0 %v5755_v34  ;;  %v6648_v8 = vld [vmem:[%s10191_s1 + $0xd24] sm:$0xf]  ;;  %v5848_v12 = vld [vmem:[%s10191_s1 + $0xd30] sm:$0xf0]  ;;  %v5723_v19 = vor.u32 %v6616_v5, %v5720_v7  ;;  %v6255_v5 = vld [vmem:[%s10191_s1 + $0xd4] sm:$0xf0] }
  0xf9   :  { %3602 = vmatpush.bf16.msrb.mxu1 %v5883_v37  ;;  %v6680_v13 = vld [vmem:[%s10191_s1 + $0xe24] sm:$0xf]  ;;  %v5976_v14 = vld [vmem:[%s10191_s1 + $0xe30] sm:$0xf0]  ;;  %v5851_v20 = vor.u32 %v6648_v8, %v5848_v12  ;;  %v4398_v7 = vld [vmem:[%s10191_s1 + $0x1c8] sm:$0xf]  ;;  %v4671_v8 = vor.u32 %v6355_v57, %v4670_v56 }
  0xfa   :  { %3616 = vmatpush.bf16.msrb.mxu2 %v6011_v42  ;;  %v6712_v15 = vld [vmem:[%s10191_s1 + $0xf24] sm:$0xf]  ;;  %v6104_v16 = vld [vmem:[%s10191_s1 + $0xf30] sm:$0xf0]  ;;  %v5979_v23 = vor.u32 %v6680_v13, %v5976_v14  ;;  %v4286_v42 = vld [vmem:[%s10191_s1 + $0xe8] sm:$0xf]  ;;  %v8528_v14 = vpop.f32.mrf.mxu0 }
  0xfb   :  { %3630 = vmatpush.bf16.msrb.mxu3 %v6139_v50  ;;  %v6612_v21 = vld [vmem:[%s10191_s1 + $0xc04] sm:$0xf]  ;;  %v5704_v22 = vld [vmem:[%s10191_s1 + $0xc10] sm:$0xf0]  ;;  %v6107_v30 = vor.u32 %v6712_v15, %v6104_v16  ;;  %v6291_v50 = vld [vmem:[%s10191_s1 + $0x1f4] sm:$0xf0]  ;;  %v4287_v60 = vor.u32 %v6259_v45, %v4286_v42 }
  0xfc   :  { %3589 = vmatpush.bf16.msrb.mxu0 %v5739_v61  ;;  %v6644_v24 = vld [vmem:[%s10191_s1 + $0xd04] sm:$0xf]  ;;  %v5832_v27 = vld [vmem:[%s10191_s1 + $0xd10] sm:$0xf0]  ;;  %v5707_v49 = vor.u32 %v6612_v21, %v5704_v22  ;;  %v4415_v61 = vor.u32 %v6291_v50, %v4414_v48  ;;  %v4526_v12 = vld [vmem:[%s10191_s1 + $0x2c8] sm:$0xf] }
  0xfd   :  { %3603 = vmatpush.bf16.msrb.mxu1 %v5867_v3  ;;  %v6676_v28 = vld [vmem:[%s10191_s1 + $0xe04] sm:$0xf]  ;;  %v5960_v33 = vld [vmem:[%s10191_s1 + $0xe10] sm:$0xf0]  ;;  %v5835_v53 = vor.u32 %v6644_v24, %v5832_v27  ;;  %v4543_v3 = vor.u32 %v6323_v9, %v4542_v52  ;;  %v6319_v13 = vld [vmem:[%s10191_s1 + $0x2d4] sm:$0xf0] }
  0xfe   :  { %3617 = vmatpush.bf16.msrb.mxu2 %v5995_v4  ;;  %v6708_v34 = vld [vmem:[%s10191_s1 + $0xf04] sm:$0xf]  ;;  %v6088_v37 = vld [vmem:[%s10191_s1 + $0xf10] sm:$0xf0]  ;;  %v5963_v55 = vor.u32 %v6676_v28, %v5960_v33  ;;  %v4270_v4 = vld [vmem:[%s10191_s1 + $0xc8] sm:$0xf] }
  0xff   :  { %3631 = vmatpush.bf16.msrb.mxu3 %v6123_v11  ;;  %v6091_v59 = vor.u32 %v6708_v34, %v6088_v37  ;;  %v6287_v11 = vld [vmem:[%s10191_s1 + $0x1d4] sm:$0xf0]  ;;  %v4654_v15 = vld [vmem:[%s10191_s1 + $0x3c8] sm:$0xf]  ;;  %v4271_v21 = vor.u32 %v6255_v5, %v4270_v4 }
 0x100   :  { %3590 = vmatpush.bf16.msrb.mxu0 %v5723_v19  ;;  %v6351_v16 = vld [vmem:[%s10191_s1 + $0x3d4] sm:$0xf0]  ;;  %v8536_v19 = vpop.f32.mrf.mxu1  ;;  %v4399_v22 = vor.u32 %v6287_v11, %v4398_v7  ;;  %v4382_v27 = vld [vmem:[%s10191_s1 + $0x1a8] sm:$0xf] }
 0x101   :  { %3604 = vmatpush.bf16.msrb.mxu1 %v5851_v20  ;;  %v4527_v20 = vor.u32 %v6319_v13, %v4526_v12  ;;  %v6251_v24 = vld [vmem:[%s10191_s1 + $0xb4] sm:$0xf0]  ;;  %v4655_v28 = vor.u32 %v6351_v16, %v4654_v15  ;;  %v4510_v33 = vld [vmem:[%s10191_s1 + $0x2a8] sm:$0xf] }
 0x102   :  { %3618 = vmatpush.bf16.msrb.mxu2 %v5979_v23  ;;  %v4254_v23 = vld [vmem:[%s10191_s1 + $0xa8] sm:$0xf]  ;;  %v6315_v34 = vld [vmem:[%s10191_s1 + $0x2b4] sm:$0xf0] }
 0x103   :  { %3632 = vmatpush.bf16.msrb.mxu3 %v6107_v30  ;;  %v6283_v30 = vld [vmem:[%s10191_s1 + $0x1b4] sm:$0xf0]  ;;  %v4638_v37 = vld [vmem:[%s10191_s1 + $0x3a8] sm:$0xf]  ;;  %v4255_v45 = vor.u32 %v6251_v24, %v4254_v23 }
 0x104   :  { %3591 = vmatpush.bf16.msrb.mxu0 %v5707_v49  ;;  %v6347_v42 = vld [vmem:[%s10191_s1 + $0x3b4] sm:$0xf0]  ;;  %v4383_v48 = vor.u32 %v6283_v30, %v4382_v27  ;;  %v4511_v49 = vor.u32 %v6315_v34, %v4510_v33  ;;  %v4238_v50 = vld [vmem:[%s10191_s1 + $0x88] sm:$0xf] }
 0x105   :  { %3605 = vmatpush.bf16.msrb.mxu1 %v5835_v53  ;;  %v6247_v52 = vld [vmem:[%s10191_s1 + $0x94] sm:$0xf0]  ;;  %v4366_v9 = vld [vmem:[%s10191_s1 + $0x188] sm:$0xf]  ;;  %v8575_v53 = vpop.f32.mrf.mxu2 }
 0x106   :  { %3619 = vmatpush.bf16.msrb.mxu2 %v5963_v55  ;;  %v4639_v55 = vor.u32 %v6347_v42, %v4638_v37  ;;  %v6279_v56 = vld [vmem:[%s10191_s1 + $0x194] sm:$0xf0]  ;;  %v4494_v57 = vld [vmem:[%s10191_s1 + $0x288] sm:$0xf]  ;;  %v4239_v7 = vor.u32 %v6247_v52, %v4238_v50 }
 0x107   :  { %3633 = vmatpush.bf16.msrb.mxu3 %v6091_v59  ;;  %3592 = vmatmul.bf16.vlgmr.msrb.gmra.mxu0 %v7695_v32  ;;  %v6311_v59 = vld [vmem:[%s10191_s1 + $0x294] sm:$0xf0]  ;;  %v4367_v11 = vor.u32 %v6279_v56, %v4366_v9  ;;  %v4222_v13 = vld [vmem:[%s10191_s1 + $0x68] sm:$0xf] }
 0x108   :  { %3640 = vmatpush.bf16.msra.mxu0 %v4287_v60  ;;  %3606 = vmatmul.bf16.vlgmr.msrb.gmra.mxu1 %v7708_v41  ;;  %v8586_v60 = vpop.f32.mrf.mxu3  ;;  %v6343_v4 = vld [vmem:[%s10191_s1 + $0x394] sm:$0xf0]  ;;  %v4495_v12 = vor.u32 %v6311_v59, %v4494_v57  ;;  %v4350_v16 = vld [vmem:[%s10191_s1 + $0x168] sm:$0xf] }
 0x109   :  { %3654 = vmatpush.bf16.msra.mxu1 %v4415_v61  ;;  %3620 = vmatmul.bf16.vlgmr.msrb.gmra.mxu2 %v7706_v38  ;;  %v3369_v61 = vpop.f32.mrf.mxu0  ;;  %v6243_v15 = vld [vmem:[%s10191_s1 + $0x74] sm:$0xf0]  ;;  %v4606_v24 = vld [vmem:[%s10191_s1 + $0x368] sm:$0xf] }
 0x10a   :  { %3668 = vmatpush.bf16.msra.mxu2 %v4543_v3  ;;  %3634 = vmatmul.bf16.vlgmr.msrb.gmra.mxu3 %v7716_v46  ;;  %v4622_v3 = vld [vmem:[%s10191_s1 + $0x388] sm:$0xf]  ;;  %v3370_v5 = vadd.f32 %v3369_v61, %v8436_v2  ;;  %v6307_v23 = vld [vmem:[%s10191_s1 + $0x274] sm:$0xf0] }
 0x10b   :  { %3682 = vmatpush.bf16.msra.mxu3 %v4671_v8  ;;  %v3383_v8 = vpop.f32.mrf.mxu1  ;;  %v4623_v2 = vor.u32 %v6343_v4, %v4622_v3  ;;  %v6339_v27 = vld [vmem:[%s10191_s1 + $0x374] sm:$0xf0]  ;;  %v4206_v34 = vld [vmem:[%s10191_s1 + $0x48] sm:$0xf] }
 0x10c   :  { %3641 = vmatpush.bf16.msra.mxu0 %v4271_v21  ;;  %v3384_v21 = vadd.f32 %v3383_v8, %v3370_v5  ;;  %v6239_v37 = vld [vmem:[%s10191_s1 + $0x54] sm:$0xf0]  ;;  %v4334_v42 = vld [vmem:[%s10191_s1 + $0x148] sm:$0xf] }
 0x10d   :  { %3655 = vmatpush.bf16.msra.mxu1 %v4399_v22  ;;  %v6275_v22 = vld [vmem:[%s10191_s1 + $0x174] sm:$0xf0]  ;;  %v4462_v50 = vld [vmem:[%s10191_s1 + $0x248] sm:$0xf]  ;;  %v4207_v59 = vor.u32 %v6239_v37, %v4206_v34 }
 0x10e   :  { %3669 = vmatpush.bf16.msra.mxu2 %v4527_v20  ;;  %v4478_v20 = vld [vmem:[%s10191_s1 + $0x268] sm:$0xf]  ;;  %v4351_v30 = vor.u32 %v6275_v22, %v4350_v16  ;;  %v6303_v52 = vld [vmem:[%s10191_s1 + $0x254] sm:$0xf0] }
 0x10f   :  { %3683 = vmatpush.bf16.msra.mxu3 %v4655_v28  ;;  %v4223_v28 = vor.u32 %v6243_v15, %v4222_v13  ;;  %v4479_v33 = vor.u32 %v6307_v23, %v4478_v20  ;;  %v4590_v56 = vld [vmem:[%s10191_s1 + $0x348] sm:$0xf]  ;;  %v6335_v57 = vld [vmem:[%s10191_s1 + $0x354] sm:$0xf0]  ;;  %v4463_v4 = vor.u32 %v6303_v52, %v4462_v50 }
 0x110   :  { %3642 = vmatpush.bf16.msra.mxu0 %v4255_v45  ;;  %v4607_v45 = vor.u32 %v6339_v27, %v4606_v24  ;;  %v4190_v5 = vld [vmem:[%s10191_s1 + $0x28] sm:$0xf]  ;;  %v6299_v15 = vld [vmem:[%s10191_s1 + $0x234] sm:$0xf0] }
 0x111   :  { %3656 = vmatpush.bf16.msra.mxu1 %v4383_v48  ;;  %v3397_v48 = vpop.f32.mrf.mxu2  ;;  %v4318_v8 = vld [vmem:[%s10191_s1 + $0x128] sm:$0xf]  ;;  %v6231_v20 = vld [vmem:[%s10191_s1 + $0x14] sm:$0xf0] }
 0x112   :  { %3670 = vmatpush.bf16.msra.mxu2 %v4511_v49  ;;  %v6271_v49 = vld [vmem:[%s10191_s1 + $0x154] sm:$0xf0]  ;;  %v3398_v9 = vadd.f32 %v3397_v48, %v3384_v21  ;;  %v4446_v13 = vld [vmem:[%s10191_s1 + $0x228] sm:$0xf] }
 0x113   :  { %3684 = vmatpush.bf16.msra.mxu3 %v4639_v55  ;;  %v3411_v55 = vpop.f32.mrf.mxu3  ;;  %v4335_v3 = vor.u32 %v6271_v49, %v4334_v42  ;;  %v4574_v16 = vld [vmem:[%s10191_s1 + $0x328] sm:$0xf]  ;;  %v4447_v24 = vor.u32 %v6299_v15, %v4446_v13  ;;  %v6295_v34 = vld [vmem:[%s10191_s1 + $0x214] sm:$0xf0] }
 0x114   :  { %3643 = vmatpush.bf16.msra.mxu0 %v4239_v7  ;;  %v8643_v61 = vadd.f32 %v3411_v55, %v3398_v9  ;;  %v6235_v7 = vld [vmem:[%s10191_s1 + $0x34] sm:$0xf0]  ;;  %v4174_v22 = vld [vmem:[%s10191_s1 + $0x8] sm:$0xf] }
 0x115   :  { %3657 = vmatpush.bf16.msra.mxu1 %v4367_v11  ;;  %v4591_v11 = vor.u32 %v6335_v57, %v4590_v56  ;;  %v4191_v21 = vor.u32 %v6235_v7, %v4190_v5  ;;  %v4302_v27 = vld [vmem:[%s10191_s1 + $0x108] sm:$0xf]  ;;  %v6327_v42 = vld [vmem:[%s10191_s1 + $0x314] sm:$0xf0]  ;;  %v4175_v50 = vor.u32 %v6231_v20, %v4174_v22 }
 0x116   :  { %3671 = vmatpush.bf16.msra.mxu2 %v4495_v12  ;;  %v6267_v12 = vld [vmem:[%s10191_s1 + $0x134] sm:$0xf0]  ;;  %v4558_v37 = vld [vmem:[%s10191_s1 + $0x308] sm:$0xf] }
 0x117   :  { %3685 = vmatpush.bf16.msra.mxu3 %v4623_v2  ;;  %v6331_v2 = vld [vmem:[%s10191_s1 + $0x334] sm:$0xf0]  ;;  %v4319_v23 = vor.u32 %v6267_v12, %v4318_v8  ;;  %v4926_v49 = vld [vmem:[%s10191_s1 + $0x5e8] sm:$0xf] }
 0x118   :  { %3644 = vmatpush.bf16.msra.mxu0 %v4223_v28  ;;  %v6263_v28 = vld [vmem:[%s10191_s1 + $0x114] sm:$0xf0]  ;;  %v5054_v9 = vld [vmem:[%s10191_s1 + $0x6e8] sm:$0xf] }
 0x119   :  { %3658 = vmatpush.bf16.msra.mxu1 %v4351_v30  ;;  %v4430_v30 = vld [vmem:[%s10191_s1 + $0x208] sm:$0xf]  ;;  %v6387_v48 = vld [vmem:[%s10191_s1 + $0x4f4] sm:$0xf0]  ;;  %v4303_v56 = vor.u32 %v6263_v28, %v4302_v27 }
 0x11a   :  { %3672 = vmatpush.bf16.msra.mxu2 %v4479_v33  ;;  %v4575_v33 = vor.u32 %v6331_v2, %v4574_v16  ;;  %v6419_v52 = vld [vmem:[%s10191_s1 + $0x5f4] sm:$0xf0]  ;;  %v4431_v57 = vor.u32 %v6295_v34, %v4430_v30  ;;  %v4910_v13 = vld [vmem:[%s10191_s1 + $0x5c8] sm:$0xf] }
 0x11b   :  { %3686 = vmatpush.bf16.msra.mxu3 %v4607_v45  ;;  %v4798_v45 = vld [vmem:[%s10191_s1 + $0x4e8] sm:$0xf]  ;;  %v6451_v55 = vld [vmem:[%s10191_s1 + $0x6f4] sm:$0xf0]  ;;  %v4927_v7 = vor.u32 %v6419_v52, %v4926_v49 }
 0x11c   :  { %3645 = vmatpush.bf16.msra.mxu0 %v4207_v59  ;;  %v5182_v59 = vld [vmem:[%s10191_s1 + $0x7e8] sm:$0xf]  ;;  %v4799_v5 = vor.u32 %v6387_v48, %v4798_v45  ;;  %v5055_v8 = vor.u32 %v6451_v55, %v5054_v9  ;;  %v6383_v12 = vld [vmem:[%s10191_s1 + $0x4d4] sm:$0xf0] }
 0x11d   :  { %3659 = vmatpush.bf16.msra.mxu1 %v4335_v3  ;;  %v6483_v3 = vld [vmem:[%s10191_s1 + $0x7f4] sm:$0xf0]  ;;  %v5038_v2 = vld [vmem:[%s10191_s1 + $0x6c8] sm:$0xf] }
 0x11e   :  { %3673 = vmatpush.bf16.msra.mxu2 %v4463_v4  ;;  %v4559_v4 = vor.u32 %v6327_v42, %v4558_v37  ;;  %v5183_v15 = vor.u32 %v6483_v3, %v5182_v59  ;;  %v6415_v16 = vld [vmem:[%s10191_s1 + $0x5d4] sm:$0xf0]  ;;  %v5166_v22 = vld [vmem:[%s10191_s1 + $0x7c8] sm:$0xf] }
 0x11f   :  { %3687 = vmatpush.bf16.msra.mxu3 %v4591_v11  ;;  %v4782_v11 = vld [vmem:[%s10191_s1 + $0x4c8] sm:$0xf]  ;;  %v6479_v20 = vld [vmem:[%s10191_s1 + $0x7d4] sm:$0xf0] }
 0x120   :  { %3646 = vmatpush.bf16.msra.mxu0 %v4191_v21  ;;  %v6447_v21 = vld [vmem:[%s10191_s1 + $0x6d4] sm:$0xf0]  ;;  %v4766_v28 = vld [vmem:[%s10191_s1 + $0x4a8] sm:$0xf]  ;;  %v5167_v34 = vor.u32 %v6479_v20, %v5166_v22 }
 0x121   :  { %3660 = vmatpush.bf16.msra.mxu1 %v4319_v23  ;;  %v4783_v23 = vor.u32 %v6383_v12, %v4782_v11  ;;  %v5039_v27 = vor.u32 %v6447_v21, %v5038_v2  ;;  %v6379_v30 = vld [vmem:[%s10191_s1 + $0x4b4] sm:$0xf0]  ;;  %v5022_v42 = vld [vmem:[%s10191_s1 + $0x6a8] sm:$0xf] }
 0x122   :  { %3674 = vmatpush.bf16.msra.mxu2 %v4447_v24  ;;  %v4911_v24 = vor.u32 %v6415_v16, %v4910_v13  ;;  %v6411_v37 = vld [vmem:[%s10191_s1 + $0x5b4] sm:$0xf0]  ;;  %v5150_v48 = vld [vmem:[%s10191_s1 + $0x7a8] sm:$0xf] }
 0x123   :  { %3688 = vmatpush.bf16.msra.mxu3 %v4575_v33  ;;  %v4894_v33 = vld [vmem:[%s10191_s1 + $0x5a8] sm:$0xf]  ;;  %v6443_v45 = vld [vmem:[%s10191_s1 + $0x6b4] sm:$0xf0] }
 0x124   :  { %3647 = vmatpush.bf16.msra.mxu0 %v4175_v50  ;;  %v6475_v49 = vld [vmem:[%s10191_s1 + $0x7b4] sm:$0xf0]  ;;  %v4767_v50 = vor.u32 %v6379_v30, %v4766_v28  ;;  %v4895_v52 = vor.u32 %v6411_v37, %v4894_v33  ;;  %v5023_v9 = vor.u32 %v6443_v45, %v5022_v42  ;;  %v4750_v55 = vld [vmem:[%s10191_s1 + $0x488] sm:$0xf] }
 0x125   :  { %3661 = vmatpush.bf16.msra.mxu1 %v4303_v56  ;;  %v6375_v56 = vld [vmem:[%s10191_s1 + $0x494] sm:$0xf0]  ;;  %v5151_v59 = vor.u32 %v6475_v49, %v5150_v48  ;;  %v4862_v2 = vld [vmem:[%s10191_s1 + $0x568] sm:$0xf] }
 0x126   :  { %3675 = vmatpush.bf16.msra.mxu2 %v4431_v57  ;;  %v4878_v57 = vld [vmem:[%s10191_s1 + $0x588] sm:$0xf]  ;;  %v6407_v3 = vld [vmem:[%s10191_s1 + $0x594] sm:$0xf0]  ;;  %v4751_v11 = vor.u32 %v6375_v56, %v4750_v55 }
 0x127   :  { %3689 = vmatpush.bf16.msra.mxu3 %v4559_v4  ;;  %3648 = vmatmul.bf16.vlgmr.msra.gmra.mxu0 %v7017_v58  ;;  %v5006_v4 = vld [vmem:[%s10191_s1 + $0x688] sm:$0xf]  ;;  %v4879_v12 = vor.u32 %v6407_v3, %v4878_v57  ;;  %v6371_v16 = vld [vmem:[%s10191_s1 + $0x474] sm:$0xf0] }
 0x128   :  { %3696 = vmatpush.bf16.msrb.mxu0 %v4799_v5  ;;  %3662 = vmatmul.bf16.vlgmr.msra.gmra.mxu1 %v7053_v10  ;;  %v6439_v5 = vld [vmem:[%s10191_s1 + $0x694] sm:$0xf0]  ;;  %v4990_v20 = vld [vmem:[%s10191_s1 + $0x668] sm:$0xf] }
 0x129   :  { %3710 = vmatpush.bf16.msrb.mxu1 %v4927_v7  ;;  %3676 = vmatmul.bf16.vlgmr.msra.gmra.mxu2 %v7031_v1  ;;  %v5134_v7 = vld [vmem:[%s10191_s1 + $0x788] sm:$0xf]  ;;  %v5007_v13 = vor.u32 %v6439_v5, %v5006_v4  ;;  %v6403_v22 = vld [vmem:[%s10191_s1 + $0x574] sm:$0xf0] }
 0x12a   :  { %3724 = vmatpush.bf16.msrb.mxu2 %v5055_v8  ;;  %3690 = vmatmul.bf16.vlgmr.msra.gmra.mxu3 %v7067_v17  ;;  %v6471_v8 = vld [vmem:[%s10191_s1 + $0x794] sm:$0xf0]  ;;  %v4863_v30 = vor.u32 %v6403_v22, %v4862_v2  ;;  %v4846_v42 = vld [vmem:[%s10191_s1 + $0x548] sm:$0xf] }
 0x12b   :  { %3738 = vmatpush.bf16.msrb.mxu3 %v5183_v15  ;;  %v4734_v15 = vld [vmem:[%s10191_s1 + $0x468] sm:$0xf]  ;;  %v5135_v21 = vor.u32 %v6471_v8, %v5134_v7  ;;  %v6367_v37 = vld [vmem:[%s10191_s1 + $0x454] sm:$0xf0] }
 0x12c   :  { %3697 = vmatpush.bf16.msrb.mxu0 %v4783_v23  ;;  %v6435_v23 = vld [vmem:[%s10191_s1 + $0x674] sm:$0xf0]  ;;  %v4735_v28 = vor.u32 %v6371_v16, %v4734_v15  ;;  %v4974_v49 = vld [vmem:[%s10191_s1 + $0x648] sm:$0xf] }
 0x12d   :  { %3711 = vmatpush.bf16.msrb.mxu1 %v4911_v24  ;;  %v5118_v24 = vld [vmem:[%s10191_s1 + $0x768] sm:$0xf]  ;;  %v4991_v33 = vor.u32 %v6435_v23, %v4990_v20  ;;  %v6399_v48 = vld [vmem:[%s10191_s1 + $0x554] sm:$0xf0] }
 0x12e   :  { %3725 = vmatpush.bf16.msrb.mxu2 %v5039_v27  ;;  %v6467_v27 = vld [vmem:[%s10191_s1 + $0x774] sm:$0xf0]  ;;  %v4847_v56 = vor.u32 %v6399_v48, %v4846_v42  ;;  %v4830_v4 = vld [vmem:[%s10191_s1 + $0x528] sm:$0xf] }
 0x12f   :  { %3739 = vmatpush.bf16.msrb.mxu3 %v5167_v34  ;;  %v4718_v34 = vld [vmem:[%s10191_s1 + $0x448] sm:$0xf]  ;;  %v5119_v45 = vor.u32 %v6467_v27, %v5118_v24  ;;  %v6363_v3 = vld [vmem:[%s10191_s1 + $0x434] sm:$0xf0] }
 0x130   :  { %3698 = vmatpush.bf16.msrb.mxu0 %v4767_v50  ;;  %v6431_v50 = vld [vmem:[%s10191_s1 + $0x654] sm:$0xf0]  ;;  %v4719_v55 = vor.u32 %v6367_v37, %v4718_v34  ;;  %v4958_v8 = vld [vmem:[%s10191_s1 + $0x628] sm:$0xf] }
 0x131   :  { %3712 = vmatpush.bf16.msrb.mxu1 %v4895_v52  ;;  %v5102_v52 = vld [vmem:[%s10191_s1 + $0x748] sm:$0xf]  ;;  %v4975_v57 = vor.u32 %v6431_v50, %v4974_v49  ;;  %v6395_v7 = vld [vmem:[%s10191_s1 + $0x534] sm:$0xf0] }
 0x132   :  { %3726 = vmatpush.bf16.msrb.mxu2 %v5023_v9  ;;  %v6463_v9 = vld [vmem:[%s10191_s1 + $0x754] sm:$0xf0]  ;;  %v4686_v16 = vld [vmem:[%s10191_s1 + $0x408] sm:$0xf] }
 0x133   :  { %3740 = vmatpush.bf16.msrb.mxu3 %v5151_v59  ;;  %v4702_v59 = vld [vmem:[%s10191_s1 + $0x428] sm:$0xf]  ;;  %v5103_v5 = vor.u32 %v6463_v9, %v5102_v52  ;;  %v6359_v2 = vld [vmem:[%s10191_s1 + $0x414] sm:$0xf0] }
 0x134   :  { %3699 = vmatpush.bf16.msrb.mxu0 %v4751_v11  ;;  %v6427_v11 = vld [vmem:[%s10191_s1 + $0x634] sm:$0xf0]  ;;  %v4703_v15 = vor.u32 %v6363_v3, %v4702_v59  ;;  %v4814_v20 = vld [vmem:[%s10191_s1 + $0x508] sm:$0xf] }
 0x135   :  { %3713 = vmatpush.bf16.msrb.mxu1 %v4879_v12  ;;  %v5086_v12 = vld [vmem:[%s10191_s1 + $0x728] sm:$0xf]  ;;  %v4959_v22 = vor.u32 %v6427_v11, %v4958_v8  ;;  %v6391_v23 = vld [vmem:[%s10191_s1 + $0x514] sm:$0xf0] }
 0x136   :  { %3727 = vmatpush.bf16.msrb.mxu2 %v5007_v13  ;;  %v6459_v13 = vld [vmem:[%s10191_s1 + $0x734] sm:$0xf0]  ;;  %v4942_v24 = vld [vmem:[%s10191_s1 + $0x608] sm:$0xf]  ;;  %v4815_v52 = vor.u32 %v6391_v23, %v4814_v20 }
 0x137   :  { %3741 = vmatpush.bf16.msrb.mxu3 %v5135_v21  ;;  %v4831_v21 = vor.u32 %v6395_v7, %v4830_v4  ;;  %v5087_v27 = vor.u32 %v6459_v13, %v5086_v12  ;;  %v5310_v34 = vld [vmem:[%s10191_s1 + $0x8e8] sm:$0xf]  ;;  %v6515_v37 = vld [vmem:[%s10191_s1 + $0x8f4] sm:$0xf0] }
 0x138   :  { %3700 = vmatpush.bf16.msrb.mxu0 %v4735_v28  ;;  %v6423_v28 = vld [vmem:[%s10191_s1 + $0x614] sm:$0xf0]  ;;  %v5438_v42 = vld [vmem:[%s10191_s1 + $0x9e8] sm:$0xf]  ;;  %v5311_v59 = vor.u32 %v6515_v37, %v5310_v34  ;;  %v8956_v37 = vpop.f32.mrf.mxu0 }
 0x139   :  { %3714 = vmatpush.bf16.msrb.mxu1 %v4863_v30  ;;  %v5070_v30 = vld [vmem:[%s10191_s1 + $0x708] sm:$0xf]  ;;  %v6547_v48 = vld [vmem:[%s10191_s1 + $0x9f4] sm:$0xf0]  ;;  %v4943_v9 = vor.u32 %v6423_v28, %v4942_v24 }
 0x13a   :  { %3728 = vmatpush.bf16.msrb.mxu2 %v4991_v33  ;;  %v6455_v33 = vld [vmem:[%s10191_s1 + $0x714] sm:$0xf0]  ;;  %v5566_v49 = vld [vmem:[%s10191_s1 + $0xae8] sm:$0xf]  ;;  %v5439_v3 = vor.u32 %v6547_v48, %v5438_v42  ;;  %v8966_v48 = vpop.f32.mrf.mxu1 }
 0x13b   :  { %3742 = vmatpush.bf16.msrb.mxu3 %v5119_v45  ;;  %v4687_v45 = vor.u32 %v6359_v2, %v4686_v16  ;;  %v6579_v50 = vld [vmem:[%s10191_s1 + $0xaf4] sm:$0xf0]  ;;  %v5422_v8 = vld [vmem:[%s10191_s1 + $0x9c8] sm:$0xf] }
 0x13c   :  { %3701 = vmatpush.bf16.msrb.mxu0 %v4719_v55  ;;  %v5694_v55 = vld [vmem:[%s10191_s1 + $0xbe8] sm:$0xf]  ;;  %v5567_v4 = vor.u32 %v6579_v50, %v5566_v49  ;;  %v6511_v7 = vld [vmem:[%s10191_s1 + $0x8d4] sm:$0xf0] }
 0x13d   :  { %3715 = vmatpush.bf16.msrb.mxu1 %v4847_v56  ;;  %v6611_v56 = vld [vmem:[%s10191_s1 + $0xbf4] sm:$0xf0]  ;;  %v5550_v13 = vld [vmem:[%s10191_s1 + $0xac8] sm:$0xf] }
 0x13e   :  { %3729 = vmatpush.bf16.msrb.mxu2 %v4975_v57  ;;  %v5071_v57 = vor.u32 %v6455_v33, %v5070_v30  ;;  %v5695_v11 = vor.u32 %v6611_v56, %v5694_v55  ;;  %v6543_v12 = vld [vmem:[%s10191_s1 + $0x9d4] sm:$0xf0]  ;;  %v5678_v16 = vld [vmem:[%s10191_s1 + $0xbc8] sm:$0xf] }
 0x13f   :  { %3743 = vmatpush.bf16.msrb.mxu3 %v5103_v5  ;;  %v5294_v5 = vld [vmem:[%s10191_s1 + $0x8c8] sm:$0xf]  ;;  %v6607_v2 = vld [vmem:[%s10191_s1 + $0xbd4] sm:$0xf0] }
 0x140   :  { %3702 = vmatpush.bf16.msrb.mxu0 %v4703_v15  ;;  %v6575_v15 = vld [vmem:[%s10191_s1 + $0xad4] sm:$0xf0]  ;;  %v5278_v23 = vld [vmem:[%s10191_s1 + $0x8a8] sm:$0xf]  ;;  %v5679_v28 = vor.u32 %v6607_v2, %v5678_v16  ;;  %v9002_v2 = vpop.f32.mrf.mxu2 }
 0x141   :  { %3716 = vmatpush.bf16.msrb.mxu1 %v4831_v21  ;;  %v5295_v21 = vor.u32 %v6511_v7, %v5294_v5  ;;  %v5551_v20 = vor.u32 %v6575_v15, %v5550_v13  ;;  %v6507_v24 = vld [vmem:[%s10191_s1 + $0x8b4] sm:$0xf0]  ;;  %v5534_v33 = vld [vmem:[%s10191_s1 + $0xaa8] sm:$0xf] }
 0x142   :  { %3730 = vmatpush.bf16.msrb.mxu2 %v4959_v22  ;;  %v5423_v22 = vor.u32 %v6543_v12, %v5422_v8  ;;  %v6539_v30 = vld [vmem:[%s10191_s1 + $0x9b4] sm:$0xf0]  ;;  %v5662_v42 = vld [vmem:[%s10191_s1 + $0xba8] sm:$0xf]  ;;  %v5279_v49 = vor.u32 %v6507_v24, %v5278_v23  ;;  %v9013_v24 = vpop.f32.mrf.mxu3 }
 0x143   :  { %3744 = vmatpush.bf16.msrb.mxu3 %v5087_v27  ;;  %v5406_v27 = vld [vmem:[%s10191_s1 + $0x9a8] sm:$0xf]  ;;  %v6571_v34 = vld [vmem:[%s10191_s1 + $0xab4] sm:$0xf0] }
 0x144   :  { %3703 = vmatpush.bf16.msrb.mxu0 %v4687_v45  ;;  %v6603_v45 = vld [vmem:[%s10191_s1 + $0xbb4] sm:$0xf0]  ;;  %v5407_v50 = vor.u32 %v6539_v30, %v5406_v27  ;;  %v5390_v56 = vld [vmem:[%s10191_s1 + $0x988] sm:$0xf]  ;;  %v9015_v27 = vpop.f32.mrf.mxu0 }
 0x145   :  { %3717 = vmatpush.bf16.msrb.mxu1 %v4815_v52  ;;  %v5535_v52 = vor.u32 %v6571_v34, %v5534_v33  ;;  %v6503_v55 = vld [vmem:[%s10191_s1 + $0x894] sm:$0xf0]  ;;  %v5646_v5 = vld [vmem:[%s10191_s1 + $0xb88] sm:$0xf]  ;;  %v9023_v33 = vpop.f32.mrf.mxu1 }
 0x146   :  { %3731 = vmatpush.bf16.msrb.mxu2 %v4943_v9  ;;  %v5262_v9 = vld [vmem:[%s10191_s1 + $0x888] sm:$0xf]  ;;  %v6599_v7 = vld [vmem:[%s10191_s1 + $0xb94] sm:$0xf0] }
 0x147   :  { %3745 = vmatpush.bf16.msrb.mxu3 %v5071_v57  ;;  %3704 = vmatmul.bf16.vlgmr.msrb.gmra.mxu0 %v7239_v39  ;;  %v5663_v57 = vor.u32 %v6603_v45, %v5662_v42  ;;  %v5263_v8 = vor.u32 %v6503_v55, %v5262_v9  ;;  %v5246_v13 = vld [vmem:[%s10191_s1 + $0x868] sm:$0xf]  ;;  %v6499_v15 = vld [vmem:[%s10191_s1 + $0x874] sm:$0xf0] }
 0x148   :  { %3752 = vmatpush.bf16.msra.mxu0 %v5311_v59  ;;  %3718 = vmatmul.bf16.vlgmr.msrb.gmra.mxu1 %v7252_v44  ;;  %v6535_v59 = vld [vmem:[%s10191_s1 + $0x994] sm:$0xf0]  ;;  %v5374_v16 = vld [vmem:[%s10191_s1 + $0x968] sm:$0xf]  ;;  %v5247_v34 = vor.u32 %v6499_v15, %v5246_v13  ;;  %v9058_v13 = vpop.f32.mrf.mxu2 }
 0x149   :  { %3766 = vmatpush.bf16.msra.mxu1 %v5439_v3  ;;  %3732 = vmatmul.bf16.vlgmr.msrb.gmra.mxu2 %v7250_v43  ;;  %v5518_v3 = vld [vmem:[%s10191_s1 + $0xa88] sm:$0xf]  ;;  %v6563_v23 = vld [vmem:[%s10191_s1 + $0xa74] sm:$0xf0] }
 0x14a   :  { %3780 = vmatpush.bf16.msra.mxu2 %v5567_v4  ;;  %3746 = vmatmul.bf16.vlgmr.msrb.gmra.mxu3 %v7260_v47  ;;  %v6567_v4 = vld [vmem:[%s10191_s1 + $0xa94] sm:$0xf0] }
 0x14b   :  { %3794 = vmatpush.bf16.msra.mxu3 %v5695_v11  ;;  %v5391_v11 = vor.u32 %v6535_v59, %v5390_v56  ;;  %v5519_v12 = vor.u32 %v6567_v4, %v5518_v3  ;;  %v6595_v30 = vld [vmem:[%s10191_s1 + $0xb74] sm:$0xf0]  ;;  %v5486_v56 = vld [vmem:[%s10191_s1 + $0xa48] sm:$0xf] }
 0x14c   :  { %3753 = vmatpush.bf16.msra.mxu0 %v5295_v21  ;;  %v5647_v21 = vor.u32 %v6599_v7, %v5646_v5  ;;  %v6527_v55 = vld [vmem:[%s10191_s1 + $0x954] sm:$0xf0]  ;;  %v5614_v59 = vld [vmem:[%s10191_s1 + $0xb48] sm:$0xf] }
 0x14d   :  { %3767 = vmatpush.bf16.msra.mxu1 %v5423_v22  ;;  %v6531_v22 = vld [vmem:[%s10191_s1 + $0x974] sm:$0xf0] }
 0x14e   :  { %3781 = vmatpush.bf16.msra.mxu2 %v5551_v20  ;;  %v5502_v20 = vld [vmem:[%s10191_s1 + $0xa68] sm:$0xf]  ;;  %v5375_v42 = vor.u32 %v6531_v22, %v5374_v16  ;;  %v6591_v3 = vld [vmem:[%s10191_s1 + $0xb54] sm:$0xf0] }
 0x14f   :  { %3795 = vmatpush.bf16.msra.mxu3 %v5679_v28  ;;  %v5630_v28 = vld [vmem:[%s10191_s1 + $0xb68] sm:$0xf]  ;;  %v5503_v45 = vor.u32 %v6563_v23, %v5502_v20  ;;  %v5615_v15 = vor.u32 %v6591_v3, %v5614_v59  ;;  %v6523_v16 = vld [vmem:[%s10191_s1 + $0x934] sm:$0xf0]  ;;  %v9069_v20 = vpop.f32.mrf.mxu3  ;;  %v9100_v59 = vpop.f32.mrf.mxu1 }
 0x150   :  { %3754 = vmatpush.bf16.msra.mxu0 %v5279_v49  ;;  %v5230_v49 = vld [vmem:[%s10191_s1 + $0x848] sm:$0xf]  ;;  %v5631_v9 = vor.u32 %v6595_v30, %v5630_v28  ;;  %v6555_v22 = vld [vmem:[%s10191_s1 + $0xa34] sm:$0xf0]  ;;  %v9080_v30 = vld [vmem:[%s10193_s2] sm:$0xf] }
 0x151   :  { %3768 = vmatpush.bf16.msra.mxu1 %v5407_v50  ;;  %v6495_v50 = vld [vmem:[%s10191_s1 + $0x854] sm:$0xf0]  ;;  %v5598_v23 = vld [vmem:[%s10191_s1 + $0xb28] sm:$0xf] }
 0x152   :  { %3782 = vmatpush.bf16.msra.mxu2 %v5535_v52  ;;  %v5358_v52 = vld [vmem:[%s10191_s1 + $0x948] sm:$0xf]  ;;  %v5231_v4 = vor.u32 %v6495_v50, %v5230_v49  ;;  %v6587_v28 = vld [vmem:[%s10191_s1 + $0xb34] sm:$0xf0]  ;;  %v9089_v50 = vpop.f32.mrf.mxu0 }
 0x153   :  { %3796 = vmatpush.bf16.msra.mxu3 %v5663_v57  ;;  %v6559_v57 = vld [vmem:[%s10191_s1 + $0xa54] sm:$0xf0]  ;;  %v5359_v5 = vor.u32 %v6527_v55, %v5358_v52  ;;  %v5326_v55 = vld [vmem:[%s10191_s1 + $0x908] sm:$0xf]  ;;  %v5599_v3 = vor.u32 %v6587_v28, %v5598_v23 }
 0x154   :  { %3755 = vmatpush.bf16.msra.mxu0 %v5263_v8  ;;  %v5487_v7 = vor.u32 %v6559_v57, %v5486_v56  ;;  %v5214_v8 = vld [vmem:[%s10191_s1 + $0x828] sm:$0xf]  ;;  %v6487_v49 = vld [vmem:[%s10191_s1 + $0x814] sm:$0xf0] }
 0x155   :  { %3769 = vmatpush.bf16.msra.mxu1 %v5391_v11  ;;  %v6491_v11 = vld [vmem:[%s10191_s1 + $0x834] sm:$0xf0]  ;;  %v5454_v57 = vld [vmem:[%s10191_s1 + $0xa08] sm:$0xf] }
 0x156   :  { %3783 = vmatpush.bf16.msra.mxu2 %v5519_v12  ;;  %v5342_v12 = vld [vmem:[%s10191_s1 + $0x928] sm:$0xf]  ;;  %v6519_v56 = vld [vmem:[%s10191_s1 + $0x914] sm:$0xf0] }
 0x157   :  { %3797 = vmatpush.bf16.msra.mxu3 %v5647_v21  ;;  %v5470_v21 = vld [vmem:[%s10191_s1 + $0xa28] sm:$0xf]  ;;  %v5343_v52 = vor.u32 %v6523_v16, %v5342_v12  ;;  %v6675_v16 = vld [vmem:[%s10191_s1 + $0xdf4] sm:$0xf0]  ;;  %v5327_v23 = vor.u32 %v6519_v56, %v5326_v55 }
 0x158   :  { %3756 = vmatpush.bf16.msra.mxu0 %v5247_v34  ;;  %v545_v34 = vperm.slane %v9080_v30, 1  ;;  %v5950_v12 = vld [vmem:[%s10191_s1 + $0xde8] sm:$0xf]  ;;  %v6639_v55 = vld [vmem:[%s10191_s1 + $0xcd4] sm:$0xf0] }
 0x159   :  { %3770 = vmatpush.bf16.msra.mxu1 %v5375_v42  ;;  %v5215_v42 = vor.u32 %v6491_v11, %v5214_v8  ;;  %v5822_v8 = vld [vmem:[%s10191_s1 + $0xce8] sm:$0xf]  ;;  %v6643_v11 = vld [vmem:[%s10191_s1 + $0xcf4] sm:$0xf0]  ;;  %v5951_v44 = vor.u32 %v6675_v16, %v5950_v12 }
 0x15a   :  { %3784 = vmatpush.bf16.msra.mxu2 %v5503_v45  ;;  %v5198_v45 = vld [vmem:[%s10191_s1 + $0x808] sm:$0xf]  ;;  %v5823_v63 = vor.u32 %v6643_v11, %v5822_v8  ;;  %v3426_v47 = vadd.f32 %v9015_v27, %v545_v34  ;;  %v6671_v27 = vld [vmem:[%s10191_s1 + $0xdd4] sm:$0xf0]  ;;  %v9167_v16 = vpop.f32.mrf.mxu0 }
 0x15b   :  { %3798 = vmatpush.bf16.msra.mxu3 %v5631_v9  ;;  %v5471_v9 = vor.u32 %v6555_v22, %v5470_v21  ;;  %v6078_v21 = vld [vmem:[%s10191_s1 + $0xee8] sm:$0xf]  ;;  %v6707_v22 = vld [vmem:[%s10191_s1 + $0xef4] sm:$0xf0] }
 0x15c   :  { %3757 = vmatpush.bf16.msra.mxu0 %v5231_v4  ;;  %v6551_v4 = vld [vmem:[%s10191_s1 + $0xa14] sm:$0xf0]  ;;  %v5934_v56 = vld [vmem:[%s10191_s1 + $0xdc8] sm:$0xf] }
 0x15d   :  { %3771 = vmatpush.bf16.msra.mxu1 %v5359_v5  ;;  %v5582_v5 = vld [vmem:[%s10191_s1 + $0xb08] sm:$0xf]  ;;  %v5455_v28 = vor.u32 %v6551_v4, %v5454_v57  ;;  %v9147_v57 = vpop.f32.mrf.mxu2  ;;  %v6735_v11 = vld [vmem:[%s10191_s1 + $0xfd4] sm:$0xf0] }
 0x15e   :  { %3785 = vmatpush.bf16.msra.mxu2 %v5487_v7  ;;  %v6583_v7 = vld [vmem:[%s10191_s1 + $0xb14] sm:$0xf0]  ;;  %v6062_v4 = vld [vmem:[%s10191_s1 + $0xec8] sm:$0xf] }
 0x15f   :  { %3799 = vmatpush.bf16.msra.mxu3 %v5615_v15  ;;  %v5199_v15 = vor.u32 %v6487_v49, %v5198_v45  ;;  %v6739_v45 = vld [vmem:[%s10191_s1 + $0xff4] sm:$0xf0]  ;;  %v5583_v49 = vor.u32 %v6583_v7, %v5582_v5  ;;  %v9158_v7 = vpop.f32.mrf.mxu3  ;;  %v6190_v8 = vld [vmem:[%s10191_s1 + $0xfc8] sm:$0xf] }
 0x160   :  { %3758 = vmatpush.bf16.msra.mxu0 %v5215_v42  ;;  %v6206_v42 = vld [vmem:[%s10191_s1 + $0xfe8] sm:$0xf]  ;;  %v6703_v5 = vld [vmem:[%s10191_s1 + $0xed4] sm:$0xf0] }
 0x161   :  { %3772 = vmatpush.bf16.msra.mxu1 %v5343_v52  ;;  %v6079_v52 = vor.u32 %v6707_v22, %v6078_v21  ;;  %v5935_v21 = vor.u32 %v6671_v27, %v5934_v56  ;;  %v6063_v22 = vor.u32 %v6703_v5, %v6062_v4  ;;  %v5774_v5 = vld [vmem:[%s10191_s1 + $0xc88] sm:$0xf] }
 0x162   :  { %3786 = vmatpush.bf16.msra.mxu2 %v5471_v9  ;;  %v5806_v9 = vld [vmem:[%s10191_s1 + $0xcc8] sm:$0xf] }
 0x163   :  { %3800 = vmatpush.bf16.msra.mxu3 %v5599_v3  ;;  %v6207_v3 = vor.u32 %v6739_v45, %v6206_v42  ;;  %v5807_v12 = vor.u32 %v6639_v55, %v5806_v9  ;;  %v9178_v42 = vpop.f32.mrf.mxu1  ;;  %v6699_v45 = vld [vmem:[%s10191_s1 + $0xeb4] sm:$0xf0]  ;;  %v10200_v9 = vperm.slane %v7926_v54, 0 }
 0x164   :  { %3759 = vmatpush.bf16.msra.mxu0 %v5199_v15  ;;  %v3440_v15 = vadd.f32 %v9023_v33, %v3426_v47  ;;  %v6667_v47 = vld [vmem:[%s10191_s1 + $0xdb4] sm:$0xf0]  ;;  %v6046_v33 = vld [vmem:[%s10191_s1 + $0xea8] sm:$0xf] }
 0x165   :  { %3773 = vmatpush.bf16.msra.mxu1 %v5327_v23  ;;  %v5790_v23 = vld [vmem:[%s10191_s1 + $0xca8] sm:$0xf]  ;;  %v3204_v55 = vadd.f32 %v8096_v51, %v10200_v9  ;;  %v6047_v4 = vor.u32 %v6699_v45, %v6046_v33  ;;  %v6631_v54 = vld [vmem:[%s10191_s1 + $0xc94] sm:$0xf0] }
 0x166   :  { %3787 = vmatpush.bf16.msra.mxu2 %v5455_v28  ;;  %v6635_v28 = vld [vmem:[%s10191_s1 + $0xcb4] sm:$0xf0]  ;;  %v5902_v51 = vld [vmem:[%s10191_s1 + $0xd88] sm:$0xf] }
 0x167   :  { %3801 = vmatpush.bf16.msra.mxu3 %v5583_v49  ;;  %3760 = vmatmul.bf16.vlgmr.msra.gmra.mxu0 %v7467_v31  ;;  %v6174_v49 = vld [vmem:[%s10191_s1 + $0xfa8] sm:$0xf]  ;;  %v5791_v56 = vor.u32 %v6635_v28, %v5790_v23  ;;  %v3218_v23 = vadd.f32 %v8122_v0, %v3204_v55  ;;  %v9231_v28 = vpop.f32.mrf.mxu2  ;;  %v6627_v0 = vld [vmem:[%s10191_s1 + $0xc74] sm:$0xf0] }
 0x168   :  { %3808 = vmatpush.bf16.msrb.mxu0 %v5823_v63  ;;  %v5918_v63 = vld [vmem:[%s10191_s1 + $0xda8] sm:$0xf]  ;;  %3774 = vmatmul.bf16.vlgmr.msra.gmra.mxu1 %v7480_v36  ;;  %v6691_v9 = vld [vmem:[%s10191_s1 + $0xe74] sm:$0xf0] }
 0x169   :  { %3822 = vmatpush.bf16.msrb.mxu1 %v5951_v44  ;;  %v6191_v44 = vor.u32 %v6735_v11, %v6190_v8  ;;  %3788 = vmatmul.bf16.vlgmr.msra.gmra.mxu2 %v7478_v35  ;;  %v5919_v27 = vor.u32 %v6667_v47, %v5918_v63  ;;  %v6030_v11 = vld [vmem:[%s10191_s1 + $0xe88] sm:$0xf]  ;;  %v5775_v63 = vor.u32 %v6631_v54, %v5774_v5  ;;  %v9234_v47 = vpop.f32.mrf.mxu3 }
 0x16a   :  { %3836 = vmatpush.bf16.msrb.mxu2 %v6079_v52  ;;  %v6731_v52 = vld [vmem:[%s10191_s1 + $0xfb4] sm:$0xf0]  ;;  %3802 = vmatmul.bf16.vlgmr.msra.gmra.mxu3 %v7488_v40  ;;  %v5758_v33 = vld [vmem:[%s10191_s1 + $0xc68] sm:$0xf] }
 0x16b   :  { %3850 = vmatpush.bf16.msrb.mxu3 %v6207_v3  ;;  %v3454_v3 = vadd.f32 %v9058_v13, %v3440_v15  ;;  %v6175_v8 = vor.u32 %v6731_v52, %v6174_v49  ;;  %v6663_v13 = vld [vmem:[%s10191_s1 + $0xd94] sm:$0xf0]  ;;  %v3428_v15 = vadd.f32 %v9089_v50, %v545_v34  ;;  %v5886_v45 = vld [vmem:[%s10191_s1 + $0xd68] sm:$0xf]  ;;  %v9264_v5 = vpop.f32.mrf.mxu1  ;;  %v5759_v54 = vor.u32 %v6627_v0, %v5758_v33 }
 0x16c   :  { %3809 = vmatpush.bf16.msrb.mxu0 %v5807_v12  ;;  %v6695_v12 = vld [vmem:[%s10191_s1 + $0xe94] sm:$0xf0]  ;;  %v5903_v34 = vor.u32 %v6663_v13, %v5902_v51  ;;  %v6014_v52 = vld [vmem:[%s10191_s1 + $0xe68] sm:$0xf] }
 0x16d   :  { %3823 = vmatpush.bf16.msrb.mxu1 %v5935_v21  ;;  %v6158_v21 = vld [vmem:[%s10191_s1 + $0xf88] sm:$0xf]  ;;  %v6031_v50 = vor.u32 %v6695_v12, %v6030_v11  ;;  %v6659_v49 = vld [vmem:[%s10191_s1 + $0xd74] sm:$0xf0]  ;;  %v3442_v55 = vadd.f32 %v9100_v59, %v3428_v15 }
 0x16e   :  { %3837 = vmatpush.bf16.msrb.mxu2 %v6063_v22  ;;  %v6727_v22 = vld [vmem:[%s10191_s1 + $0xf94] sm:$0xf0]  ;;  %v5887_v59 = vor.u32 %v6659_v49, %v5886_v45  ;;  %v5742_v13 = vld [vmem:[%s10191_s1 + $0xc48] sm:$0xf] }
 0x16f   :  { %3851 = vmatpush.bf16.msrb.mxu3 %v6191_v44  ;;  %v3468_v44 = vadd.f32 %v9069_v20, %v3454_v3  ;;  %v6159_v20 = vor.u32 %v6727_v22, %v6158_v21  ;;  %v6142_v3 = vld [vmem:[%s10191_s1 + $0xf68] sm:$0xf]  ;;  %v6623_v11 = vld [vmem:[%s10191_s1 + $0xc54] sm:$0xf0]  ;;  %v3456_v22 = vadd.f32 %v9147_v57, %v3442_v55 }
 0x170   :  { %3810 = vmatpush.bf16.msrb.mxu0 %v5791_v56  ;;  %v9255_v56 = vpop.f32.mrf.mxu0  ;;  %v5998_v15 = vld [vmem:[%s10191_s1 + $0xe48] sm:$0xf]  ;;  %v6687_v21 = vld [vmem:[%s10191_s1 + $0xe54] sm:$0xf0] }
 0x171   :  { %3824 = vmatpush.bf16.msrb.mxu1 %v5919_v27  ;;  %v6723_v27 = vld [vmem:[%s10191_s1 + $0xf74] sm:$0xf0]  ;;  %v3482_v51 = vadd.f32 %v9167_v16, %v3468_v44  ;;  %v5999_v0 = vor.u32 %v6687_v21, %v5998_v15  ;;  %v5726_v57 = vld [vmem:[%s10191_s1 + $0xc28] sm:$0xf]  ;;  %v3470_v55 = vadd.f32 %v9158_v7, %v3456_v22 }
 0x172   :  { %3838 = vmatpush.bf16.msrb.mxu2 %v6047_v4  ;;  %v3232_v4 = vadd.f32 %v8152_v18, %v3218_v23  ;;  %v5870_v18 = vld [vmem:[%s10191_s1 + $0xd48] sm:$0xf]  ;;  %v6143_v12 = vor.u32 %v6723_v27, %v6142_v3  ;;  %v6655_v16 = vld [vmem:[%s10191_s1 + $0xd54] sm:$0xf0]  ;;  %v9315_v3 = vpop.f32.mrf.mxu3 }
 0x173   :  { %3852 = vmatpush.bf16.msrb.mxu3 %v6175_v8  ;;  %v6015_v8 = vor.u32 %v6691_v9, %v6014_v52  ;;  %v6126_v23 = vld [vmem:[%s10191_s1 + $0xf48] sm:$0xf]  ;;  %v5871_v33 = vor.u32 %v6655_v16, %v5870_v18  ;;  %v6619_v45 = vld [vmem:[%s10191_s1 + $0xc34] sm:$0xf0] }
 0x174   :  { %3811 = vmatpush.bf16.msrb.mxu0 %v5775_v63  ;;  %v6719_v63 = vld [vmem:[%s10191_s1 + $0xf54] sm:$0xf0]  ;;  %v3246_v44 = vadd.f32 %v8163_v25, %v3232_v4  ;;  %v5854_v25 = vld [vmem:[%s10191_s1 + $0xd28] sm:$0xf] }
 0x175   :  { %3825 = vmatpush.bf16.msrb.mxu1 %v5903_v34  ;;  %v5743_v34 = vor.u32 %v6623_v11, %v5742_v13  ;;  %v6651_v49 = vld [vmem:[%s10191_s1 + $0xd34] sm:$0xf0]  ;;  %v5982_v52 = vld [vmem:[%s10191_s1 + $0xe28] sm:$0xf] }
 0x176   :  { %3839 = vmatpush.bf16.msrb.mxu2 %v6031_v50  ;;  %v3496_v50 = vadd.f32 %v9178_v42, %v3482_v51  ;;  %v6127_v42 = vor.u32 %v6719_v63, %v6126_v23  ;;  %v6683_v9 = vld [vmem:[%s10191_s1 + $0xe34] sm:$0xf0]  ;;  %v6110_v4 = vld [vmem:[%s10191_s1 + $0xf28] sm:$0xf]  ;;  %v3260_v51 = vadd.f32 %v8321_v26, %v3246_v44  ;;  %v5855_v18 = vor.u32 %v6651_v49, %v5854_v25  ;;  %v6257_v44 = vld [vmem:[%s10191_s1 + $0xec] sm:$0xf] }
 0x177   :  { %3853 = vmatpush.bf16.msrb.mxu3 %v6159_v20  ;;  %v9303_v20 = vpop.f32.mrf.mxu2  ;;  %v5710_v7 = vld [vmem:[%s10191_s1 + $0xc08] sm:$0xf]  ;;  %v6615_v13 = vld [vmem:[%s10191_s1 + $0xc14] sm:$0xf0]  ;;  %v3484_v63 = vadd.f32 %v9255_v56, %v3470_v55  ;;  %v4416_v56 = vld [vmem:[%s10191_s1 + $0x1f8] sm:$0xf0] }
 0x178   :  { %3812 = vmatpush.bf16.msrb.mxu0 %v5759_v54  ;;  %v3537_v27 = vpop.f32.mrf.mxu0  ;;  %v6715_v54 = vld [vmem:[%s10191_s1 + $0xf34] sm:$0xf0]  ;;  %v3510_v11 = vadd.f32 %v9231_v28, %v3496_v50  ;;  %v5838_v26 = vld [vmem:[%s10191_s1 + $0xd08] sm:$0xf]  ;;  %v6289_v50 = vld [vmem:[%s10191_s1 + $0x1ec] sm:$0xf] }
 0x179   :  { %3826 = vmatpush.bf16.msrb.mxu1 %v5887_v59  ;;  %v9324_v59 = vpop.f32.mrf.mxu1  ;;  %v6647_v16 = vld [vmem:[%s10191_s1 + $0xd14] sm:$0xf0]  ;;  %v5966_v15 = vld [vmem:[%s10191_s1 + $0xe08] sm:$0xf]  ;;  %v6111_v21 = vor.u32 %v6715_v54, %v6110_v4  ;;  %v6353_v49 = vld [vmem:[%s10191_s1 + $0x3ec] sm:$0xf] }
 0x17a   :  { %3840 = vmatpush.bf16.msrb.mxu2 %v6015_v8  ;;  %v5727_v8 = vor.u32 %v6619_v45, %v5726_v57  ;;  %v6679_v28 = vld [vmem:[%s10191_s1 + $0xe14] sm:$0xf0]  ;;  %v6094_v22 = vld [vmem:[%s10191_s1 + $0xf08] sm:$0xf]  ;;  %v6321_v57 = vld [vmem:[%s10191_s1 + $0x2ec] sm:$0xf]  ;;  %v3524_v25 = vadd.f32 %v9234_v47, %v3510_v11  ;;  %v3498_v47 = vadd.f32 %v9264_v5, %v3484_v63 }
 0x17b   :  { %3854 = vmatpush.bf16.msrb.mxu3 %v6143_v12  ;;  %v5983_v12 = vor.u32 %v6683_v9, %v5982_v52  ;;  %v6711_v23 = vld [vmem:[%s10191_s1 + $0xf14] sm:$0xf0]  ;;  %v4544_v45 = vld [vmem:[%s10191_s1 + $0x2f8] sm:$0xf0]  ;;  %v6253_v11 = vld [vmem:[%s10191_s1 + $0xcc] sm:$0xf] }
 0x17c   :  { %3813 = vmatpush.bf16.msrb.mxu0 %v5743_v34  ;;  %v4288_v34 = vld [vmem:[%s10191_s1 + $0xf8] sm:$0xf0]  ;;  %v6095_v4 = vor.u32 %v6711_v23, %v6094_v22 }
 0x17d   :  { %3827 = vmatpush.bf16.msrb.mxu1 %v5871_v33  ;;  %v3274_v33 = vadd.f32 %v8329_v29, %v3260_v51  ;;  %v5967_v29 = vor.u32 %v6679_v28, %v5966_v15  ;;  %v4672_v52 = vld [vmem:[%s10191_s1 + $0x3f8] sm:$0xf0]  ;;  %v4291_v54 = vor.u32 %v6257_v44, %v4288_v34  ;;  %v3538_v51 = vadd.f32 %v3537_v27, %v3524_v25  ;;  %v6317_v27 = vld [vmem:[%s10191_s1 + $0x2cc] sm:$0xf] }
 0x17e   :  { %3841 = vmatpush.bf16.msrb.mxu2 %v5999_v0  ;;  %v5711_v0 = vor.u32 %v6615_v13, %v5710_v7  ;;  %v4419_v7 = vor.u32 %v6289_v50, %v4416_v56  ;;  %v4547_v13 = vor.u32 %v6321_v57, %v4544_v45  ;;  %v4400_v5 = vld [vmem:[%s10191_s1 + $0x1d8] sm:$0xf0]  ;;  %v6249_v50 = vld [vmem:[%s10191_s1 + $0xac] sm:$0xf] }
 0x17f   :  { %3855 = vmatpush.bf16.msrb.mxu3 %v6127_v42  ;;  %v5839_v42 = vor.u32 %v6647_v16, %v5838_v26  ;;  %v3288_v9 = vadd.f32 %v8368_v62, %v3274_v33  ;;  %v3565_v55 = vpop.f32.mrf.mxu2  ;;  %v6285_v62 = vld [vmem:[%s10191_s1 + $0x1cc] sm:$0xf]  ;;  %v4528_v26 = vld [vmem:[%s10191_s1 + $0x2d8] sm:$0xf0]  ;;  %v3512_v16 = vadd.f32 %v9303_v20, %v3498_v47  ;;  %v3552_v44 = vadd.f32 %v9324_v59, %v3538_v51 }
 0x180   :  { %3814 = vmatpush.bf16.msrb.mxu0 %v5727_v8  ;;  %v3579_v8 = vpop.f32.mrf.mxu3  ;;  %v3539_v15 = vpop.f32.mrf.mxu0  ;;  %v4656_v28 = vld [vmem:[%s10191_s1 + $0x3d8] sm:$0xf0]  ;;  %v4403_v20 = vor.u32 %v6285_v62, %v4400_v5  ;;  %v4531_v34 = vor.u32 %v6317_v27, %v4528_v26  ;;  %v6313_v57 = vld [vmem:[%s10191_s1 + $0x2ac] sm:$0xf] }
 0x181   :  { %3828 = vmatpush.bf16.msrb.mxu1 %v5855_v18  ;;  %v4272_v18 = vld [vmem:[%s10191_s1 + $0xd8] sm:$0xf0]  ;;  %v3302_v22 = vadd.f32 %v8379_v6, %v3288_v9  ;;  %v3553_v23 = vpop.f32.mrf.mxu1  ;;  %v6281_v6 = vld [vmem:[%s10191_s1 + $0x1ac] sm:$0xf]  ;;  %v3526_v25 = vadd.f32 %v9315_v3, %v3512_v16 }
 0x182   :  { %3842 = vmatpush.bf16.msrb.mxu2 %v5983_v12  ;;  %v4675_v12 = vor.u32 %v6353_v49, %v4672_v52  ;;  %v4275_v63 = vor.u32 %v6253_v11, %v4272_v18  ;;  %v4256_v33 = vld [vmem:[%s10191_s1 + $0xb8] sm:$0xf0]  ;;  %v6245_v3 = vld [vmem:[%s10191_s1 + $0x8c] sm:$0xf] }
 0x183   :  { %3856 = vmatpush.bf16.msrb.mxu3 %v6111_v21  ;;  %v6349_v21 = vld [vmem:[%s10191_s1 + $0x3cc] sm:$0xf]  ;;  %v4384_v56 = vld [vmem:[%s10191_s1 + $0x1b8] sm:$0xf0]  ;;  %v4259_v49 = vor.u32 %v6249_v50, %v4256_v33  ;;  %v3540_v52 = vadd.f32 %v3539_v15, %v3526_v25 }
 0x184   :  { %3815 = vmatpush.bf16.msrb.mxu0 %v5711_v0  ;;  %v3316_v0 = vadd.f32 %v8528_v14, %v3302_v22  ;;  %v4659_v59 = vor.u32 %v6349_v21, %v4656_v28  ;;  %v4512_v45 = vld [vmem:[%s10191_s1 + $0x2b8] sm:$0xf0]  ;;  %v6345_v14 = vld [vmem:[%s10191_s1 + $0x3ac] sm:$0xf]  ;;  %v4387_v9 = vor.u32 %v6281_v6, %v4384_v56 }
 0x185   :  { %3829 = vmatpush.bf16.msrb.mxu1 %v5839_v42  ;;  %v3566_v42 = vadd.f32 %v3565_v55, %v3552_v44  ;;  %v4515_v55 = vor.u32 %v6313_v57, %v4512_v45  ;;  %v4368_v47 = vld [vmem:[%s10191_s1 + $0x198] sm:$0xf0]  ;;  %v6309_v11 = vld [vmem:[%s10191_s1 + $0x28c] sm:$0xf]  ;;  %v3554_v28 = vadd.f32 %v3553_v23, %v3540_v52 }
 0x186   :  { %3843 = vmatpush.bf16.msrb.mxu2 %v5967_v29  ;;  %v4640_v29 = vld [vmem:[%s10191_s1 + $0x3b8] sm:$0xf0]  ;;  %v3330_v51 = vadd.f32 %v8536_v19, %v3316_v0  ;;  %v6341_v27 = vld [vmem:[%s10191_s1 + $0x38c] sm:$0xf] }
 0x187   :  { %3857 = vmatpush.bf16.msrb.mxu3 %v6095_v4  ;;  %3816 = vmatmul.bf16.vlgmr.msrb.gmra.mxu0 %v7695_v32  ;;  %v4240_v4 = vld [vmem:[%s10191_s1 + $0x98] sm:$0xf0]  ;;  %v3580_v62 = vadd.f32 %v3579_v8, %v3566_v42  ;;  %v6337_v6 = vld [vmem:[%s10191_s1 + $0x36c] sm:$0xf] }
 0x188   :  { %3864 = vmatpush.bf16.msra.mxu0 %v4291_v54  ;;  %3830 = vmatmul.bf16.vlgmr.msrb.gmra.mxu1 %v7708_v41  ;;  %v6277_v54 = vld [vmem:[%s10191_s1 + $0x18c] sm:$0xf]  ;;  %v4496_v18 = vld [vmem:[%s10191_s1 + $0x298] sm:$0xf0]  ;;  %v3593_v5 = vpop.f32.mrf.mxu0  ;;  %v3344_v26 = vadd.f32 %v8575_v53, %v3330_v51  ;;  %v4243_v16 = vor.u32 %v6245_v3, %v4240_v4 }
 0x189   :  { %3878 = vmatpush.bf16.msra.mxu1 %v4419_v7  ;;  %3844 = vmatmul.bf16.vlgmr.msrb.gmra.mxu2 %v7706_v38  ;;  %v3567_v7 = vpop.f32.mrf.mxu2  ;;  %v4624_v19 = vld [vmem:[%s10191_s1 + $0x398] sm:$0xf0]  ;;  %v4371_v15 = vor.u32 %v6277_v54, %v4368_v47  ;;  %v3607_v21 = vpop.f32.mrf.mxu1  ;;  %v3594_v8 = vadd.f32 %v3593_v5, %v3580_v62  ;;  %v4499_v22 = vor.u32 %v6309_v11, %v4496_v18  ;;  %v6273_v53 = vld [vmem:[%s10191_s1 + $0x16c] sm:$0xf] }
 0x18a   :  { %3892 = vmatpush.bf16.msra.mxu2 %v4547_v13  ;;  %3858 = vmatmul.bf16.vlgmr.msrb.gmra.mxu3 %v7716_v46  ;;  %v4643_v13 = vor.u32 %v6345_v14, %v4640_v29  ;;  %v4224_v44 = vld [vmem:[%s10191_s1 + $0x78] sm:$0xf0]  ;;  %v3568_v33 = vadd.f32 %v3567_v7, %v3554_v28  ;;  %v6237_v57 = vld [vmem:[%s10191_s1 + $0x4c] sm:$0xf] }
 0x18b   :  { %3906 = vmatpush.bf16.msra.mxu3 %v4675_v12  ;;  %v3581_v12 = vpop.f32.mrf.mxu3  ;;  %v4352_v23 = vld [vmem:[%s10191_s1 + $0x178] sm:$0xf0]  ;;  %v3608_v45 = vadd.f32 %v3607_v21, %v3594_v8  ;;  %v6269_v29 = vld [vmem:[%s10191_s1 + $0x14c] sm:$0xf] }
 0x18c   :  { %3865 = vmatpush.bf16.msra.mxu0 %v4275_v63  ;;  %v6241_v63 = vld [vmem:[%s10191_s1 + $0x6c] sm:$0xf]  ;;  %v4480_v50 = vld [vmem:[%s10191_s1 + $0x278] sm:$0xf0]  ;;  %v4355_v25 = vor.u32 %v6273_v53, %v4352_v23  ;;  %v3582_v4 = vadd.f32 %v3581_v12, %v3568_v33 }
 0x18d   :  { %3879 = vmatpush.bf16.msra.mxu1 %v4403_v20  ;;  %v4627_v20 = vor.u32 %v6341_v27, %v4624_v19  ;;  %v4608_v0 = vld [vmem:[%s10191_s1 + $0x378] sm:$0xf0]  ;;  %v4227_v56 = vor.u32 %v6241_v63, %v4224_v44  ;;  %v6333_v7 = vld [vmem:[%s10191_s1 + $0x34c] sm:$0xf] }
 0x18e   :  { %3893 = vmatpush.bf16.msra.mxu2 %v4531_v34  ;;  %v6305_v34 = vld [vmem:[%s10191_s1 + $0x26c] sm:$0xf]  ;;  %v4208_v14 = vld [vmem:[%s10191_s1 + $0x58] sm:$0xf0]  ;;  %v4611_v3 = vor.u32 %v6337_v6, %v4608_v0 }
 0x18f   :  { %3907 = vmatpush.bf16.msra.mxu3 %v4659_v59  ;;  %v3358_v59 = vadd.f32 %v8586_v60, %v3344_v26  ;;  %v4483_v42 = vor.u32 %v6305_v34, %v4480_v50  ;;  %v4336_v60 = vld [vmem:[%s10191_s1 + $0x158] sm:$0xf0]  ;;  %v6233_v12 = vld [vmem:[%s10191_s1 + $0x2c] sm:$0xf] }
 0x190   :  { %3866 = vmatpush.bf16.msra.mxu0 %v4259_v49  ;;  %v3595_v47 = vpop.f32.mrf.mxu0  ;;  %v4339_v11 = vor.u32 %v6269_v29, %v4336_v60  ;;  %v4192_v27 = vld [vmem:[%s10191_s1 + $0x38] sm:$0xf0]  ;;  %v6265_v19 = vld [vmem:[%s10191_s1 + $0x12c] sm:$0xf] }
 0x191   :  { %3880 = vmatpush.bf16.msra.mxu1 %v4387_v9  ;;  %v3372_v49 = vadd.f32 %v8956_v37, %v3358_v59  ;;  %v3621_v52 = vpop.f32.mrf.mxu2  ;;  %v6301_v9 = vld [vmem:[%s10191_s1 + $0x24c] sm:$0xf]  ;;  %v4592_v37 = vld [vmem:[%s10191_s1 + $0x358] sm:$0xf0]  ;;  %v3596_v18 = vadd.f32 %v3595_v47, %v3582_v4  ;;  %v4195_v53 = vor.u32 %v6233_v12, %v4192_v27 }
 0x192   :  { %3894 = vmatpush.bf16.msra.mxu2 %v4515_v55  ;;  %v4464_v55 = vld [vmem:[%s10191_s1 + $0x258] sm:$0xf0]  ;;  %v3622_v54 = vadd.f32 %v3621_v52, %v3608_v45  ;;  %v6297_v28 = vld [vmem:[%s10191_s1 + $0x22c] sm:$0xf] }
 0x193   :  { %3908 = vmatpush.bf16.msra.mxu3 %v4643_v13  ;;  %v3635_v51 = vpop.f32.mrf.mxu3  ;;  %v4211_v13 = vor.u32 %v6237_v57, %v4208_v14  ;;  %v4467_v5 = vor.u32 %v6301_v9, %v4464_v55  ;;  %v3386_v26 = vadd.f32 %v8966_v48, %v3372_v49  ;;  %v4320_v21 = vld [vmem:[%s10191_s1 + $0x138] sm:$0xf0]  ;;  %v6329_v48 = vld [vmem:[%s10191_s1 + $0x32c] sm:$0xf] }
 0x194   :  { %3867 = vmatpush.bf16.msra.mxu0 %v4243_v16  ;;  %v3636_v62 = vadd.f32 %v3635_v51, %v3622_v54  ;;  %v4595_v16 = vor.u32 %v6333_v7, %v4592_v37  ;;  %v4448_v8 = vld [vmem:[%s10191_s1 + $0x238] sm:$0xf0]  ;;  %v4323_v34 = vor.u32 %v6265_v19, %v4320_v21  ;;  %v6293_v6 = vld [vmem:[%s10191_s1 + $0x20c] sm:$0xf] }
 0x195   :  { %3881 = vmatpush.bf16.msra.mxu1 %v4371_v15  ;;  %v3609_v15 = vpop.f32.mrf.mxu1  ;;  %v4576_v63 = vld [vmem:[%s10191_s1 + $0x338] sm:$0xf0]  ;;  %v3400_v44 = vadd.f32 %v9002_v2, %v3386_v26  ;;  %v4451_v50 = vor.u32 %v6297_v28, %v4448_v8  ;;  %v6261_v2 = vld [vmem:[%s10191_s1 + $0x10c] sm:$0xf] }
 0x196   :  { %3895 = vmatpush.bf16.msra.mxu2 %v4499_v22  ;;  %v4088_v22 = vpack.c.bf16 %v3636_v62, %v8643_v61  ;;  %v4176_v61 = vld [vmem:[%s10191_s1 + $0x18] sm:$0xf0]  ;;  %v3610_v23 = vadd.f32 %v3609_v15, %v3596_v18  ;;  %v4579_v0 = vor.u32 %v6329_v48, %v4576_v63  ;;  %v6325_v57 = vld [vmem:[%s10191_s1 + $0x30c] sm:$0xf] }
 0x197   :  { %3909 = vmatpush.bf16.msra.mxu3 %v4627_v20  ;;  %v6229_v20 = vld [vmem:[%s10191_s1 + $0xc] sm:$0xf]  ;;  %v4304_v33 = vld [vmem:[%s10191_s1 + $0x118] sm:$0xf0]  ;;  %v3414_v49 = vadd.f32 %v9013_v24, %v3400_v44 }
 0x198   :  { %3868 = vmatpush.bf16.msra.mxu0 %v4227_v56  ;;  %4092 = vst [vmem:[%s10194_s3] sm:$0xff] %v4088_v22  ;;  %v4432_v56 = vld [vmem:[%s10191_s1 + $0x218] sm:$0xf0]  ;;  %v6385_v14 = vld [vmem:[%s10191_s1 + $0x4ec] sm:$0xf]  ;;  %v4307_v54 = vor.u32 %v6261_v2, %v4304_v33  ;;  %v546_v33 = vperm.slane %v9080_v30, 2 }
 0x199   :  { %3882 = vmatpush.bf16.msra.mxu1 %v4355_v25  ;;  %v3623_v59 = vpop.f32.mrf.mxu2  ;;  %v4560_v45 = vld [vmem:[%s10191_s1 + $0x318] sm:$0xf0]  ;;  %v6417_v60 = vld [vmem:[%s10191_s1 + $0x5ec] sm:$0xf]  ;;  %v4435_v47 = vor.u32 %v6293_v6, %v4432_v56 }
 0x19a   :  { %3896 = vmatpush.bf16.msra.mxu2 %v4483_v42  ;;  %v3624_v25 = vadd.f32 %v3623_v59, %v3610_v23  ;;  %v4800_v29 = vld [vmem:[%s10191_s1 + $0x4f8] sm:$0xf0]  ;;  %v6449_v9 = vld [vmem:[%s10191_s1 + $0x6ec] sm:$0xf]  ;;  %v4563_v7 = vor.u32 %v6325_v57, %v4560_v45 }
 0x19b   :  { %3910 = vmatpush.bf16.msra.mxu3 %v4611_v3  ;;  %v3637_v42 = vpop.f32.mrf.mxu3  ;;  %v4179_v3 = vor.u32 %v6229_v20, %v4176_v61  ;;  %v4928_v52 = vld [vmem:[%s10191_s1 + $0x5f8] sm:$0xf0]  ;;  %v6481_v24 = vld [vmem:[%s10191_s1 + $0x7ec] sm:$0xf]  ;;  %v4803_v37 = vor.u32 %v6385_v14, %v4800_v29 }
 0x19c   :  { %3869 = vmatpush.bf16.msra.mxu0 %v4211_v13  ;;  %v5056_v55 = vld [vmem:[%s10191_s1 + $0x6f8] sm:$0xf0]  ;;  %v3638_v4 = vadd.f32 %v3637_v42, %v3624_v25  ;;  %v6381_v62 = vld [vmem:[%s10191_s1 + $0x4cc] sm:$0xf] }
 0x19d   :  { %3883 = vmatpush.bf16.msra.mxu1 %v4339_v11  ;;  %v5184_v51 = vld [vmem:[%s10191_s1 + $0x7f8] sm:$0xf0]  ;;  %v4931_v11 = vor.u32 %v6417_v60, %v4928_v52  ;;  %v5059_v18 = vor.u32 %v6449_v9, %v5056_v55  ;;  %v6413_v12 = vld [vmem:[%s10191_s1 + $0x5cc] sm:$0xf] }
 0x19e   :  { %3897 = vmatpush.bf16.msra.mxu2 %v4467_v5  ;;  %v4090_v13 = vpack.c.bf16 %v3638_v4, %v3414_v49  ;;  %v4784_v5 = vld [vmem:[%s10191_s1 + $0x4d8] sm:$0xf0]  ;;  %v5187_v27 = vor.u32 %v6481_v24, %v5184_v51  ;;  %v6445_v26 = vld [vmem:[%s10191_s1 + $0x6cc] sm:$0xf] }
 0x19f   :  { %3911 = vmatpush.bf16.msra.mxu3 %v4595_v16  ;;  %v4912_v19 = vld [vmem:[%s10191_s1 + $0x5d8] sm:$0xf0]  ;;  %v6477_v15 = vld [vmem:[%s10191_s1 + $0x7cc] sm:$0xf]  ;;  %v4787_v28 = vor.u32 %v6381_v62, %v4784_v5 }
 0x1a0   :  { %3870 = vmatpush.bf16.msra.mxu0 %v4195_v53  ;;  %v5040_v16 = vld [vmem:[%s10191_s1 + $0x6d8] sm:$0xf0]  ;;  %4094 = vst [vmem:[%s10194_s3 + $0x10] sm:$0xff] %v4090_v13  ;;  %v4915_v8 = vor.u32 %v6413_v12, %v4912_v19  ;;  %v6377_v48 = vld [vmem:[%s10191_s1 + $0x4ac] sm:$0xf] }
 0x1a1   :  { %3884 = vmatpush.bf16.msra.mxu1 %v4323_v34  ;;  %v5168_v21 = vld [vmem:[%s10191_s1 + $0x7d8] sm:$0xf0]  ;;  %v5043_v22 = vor.u32 %v6445_v26, %v5040_v16  ;;  %v6409_v44 = vld [vmem:[%s10191_s1 + $0x5ac] sm:$0xf] }
 0x1a2   :  { %3898 = vmatpush.bf16.msra.mxu2 %v4451_v50  ;;  %v4768_v63 = vld [vmem:[%s10191_s1 + $0x4b8] sm:$0xf0]  ;;  %v5171_v53 = vor.u32 %v6477_v15, %v5168_v21  ;;  %v6441_v61 = vld [vmem:[%s10191_s1 + $0x6ac] sm:$0xf] }
 0x1a3   :  { %3912 = vmatpush.bf16.msra.mxu3 %v4579_v0  ;;  %v4896_v20 = vld [vmem:[%s10191_s1 + $0x5b8] sm:$0xf0]  ;;  %v6473_v34 = vld [vmem:[%s10191_s1 + $0x7ac] sm:$0xf]  ;;  %v4771_v2 = vor.u32 %v6377_v48, %v4768_v63 }
 0x1a4   :  { %3871 = vmatpush.bf16.msra.mxu0 %v4179_v3  ;;  %v5024_v23 = vld [vmem:[%s10191_s1 + $0x6b8] sm:$0xf0]  ;;  %v6373_v0 = vld [vmem:[%s10191_s1 + $0x48c] sm:$0xf]  ;;  %v3649_v25 = vpop.f32.mrf.mxu0 }
 0x1a5   :  { %3885 = vmatpush.bf16.msra.mxu1 %v4307_v54  ;;  %v5152_v50 = vld [vmem:[%s10191_s1 + $0x7b8] sm:$0xf0]  ;;  %v5027_v6 = vor.u32 %v6441_v61, %v5024_v23  ;;  %v6437_v59 = vld [vmem:[%s10191_s1 + $0x68c] sm:$0xf]  ;;  %v3650_v14 = vadd.f32 %v3649_v25, %v546_v33  ;;  %v3663_v29 = vpop.f32.mrf.mxu1 }
 0x1a6   :  { %3899 = vmatpush.bf16.msra.mxu2 %v4435_v47  ;;  %v4880_v30 = vld [vmem:[%s10191_s1 + $0x598] sm:$0xf0]  ;;  %v6469_v57 = vld [vmem:[%s10191_s1 + $0x78c] sm:$0xf] }
 0x1a7   :  { %3913 = vmatpush.bf16.msra.mxu3 %v4563_v7  ;;  %3872 = vmatmul.bf16.vlgmr.msra.gmra.mxu0 %v7017_v58  ;;  %v4899_v58 = vor.u32 %v6409_v44, %v4896_v20  ;;  %v5008_v56 = vld [vmem:[%s10191_s1 + $0x698] sm:$0xf0]  ;;  %v6369_v3 = vld [vmem:[%s10191_s1 + $0x46c] sm:$0xf]  ;;  %v3664_v24 = vadd.f32 %v3663_v29, %v3650_v14 }
 0x1a8   :  { %3920 = vmatpush.bf16.msrb.mxu0 %v4803_v37  ;;  %3886 = vmatmul.bf16.vlgmr.msra.gmra.mxu1 %v7053_v10  ;;  %v6405_v10 = vld [vmem:[%s10191_s1 + $0x58c] sm:$0xf]  ;;  %v5136_v45 = vld [vmem:[%s10191_s1 + $0x798] sm:$0xf0]  ;;  %v5011_v49 = vor.u32 %v6437_v59, %v5008_v56 }
 0x1a9   :  { %3934 = vmatpush.bf16.msrb.mxu1 %v4931_v11  ;;  %3900 = vmatmul.bf16.vlgmr.msra.gmra.mxu2 %v7031_v1  ;;  %v4752_v1 = vld [vmem:[%s10191_s1 + $0x498] sm:$0xf0]  ;;  %v4883_v60 = vor.u32 %v6405_v10, %v4880_v30  ;;  %v6401_v9 = vld [vmem:[%s10191_s1 + $0x56c] sm:$0xf]  ;;  %v5139_v55 = vor.u32 %v6469_v57, %v5136_v45 }
 0x1aa   :  { %3948 = vmatpush.bf16.msrb.mxu2 %v5059_v18  ;;  %3914 = vmatmul.bf16.vlgmr.msra.gmra.mxu3 %v7067_v17  ;;  %v5155_v17 = vor.u32 %v6473_v34, %v5152_v50  ;;  %v4755_v42 = vor.u32 %v6373_v0, %v4752_v1  ;;  %v4736_v52 = vld [vmem:[%s10191_s1 + $0x478] sm:$0xf0]  ;;  %v6433_v54 = vld [vmem:[%s10191_s1 + $0x66c] sm:$0xf] }
 0x1ab   :  { %3962 = vmatpush.bf16.msrb.mxu3 %v5187_v27  ;;  %v4864_v4 = vld [vmem:[%s10191_s1 + $0x578] sm:$0xf0]  ;;  %v6465_v51 = vld [vmem:[%s10191_s1 + $0x76c] sm:$0xf]  ;;  %v4739_v37 = vor.u32 %v6369_v3, %v4736_v52 }
 0x1ac   :  { %3921 = vmatpush.bf16.msrb.mxu0 %v4787_v28  ;;  %v4992_v47 = vld [vmem:[%s10191_s1 + $0x678] sm:$0xf0]  ;;  %v4867_v13 = vor.u32 %v6401_v9, %v4864_v4  ;;  %v6365_v18 = vld [vmem:[%s10191_s1 + $0x44c] sm:$0xf]  ;;  %v3677_v16 = vpop.f32.mrf.mxu2 }
 0x1ad   :  { %3935 = vmatpush.bf16.msrb.mxu1 %v4915_v8  ;;  %v5120_v7 = vld [vmem:[%s10191_s1 + $0x778] sm:$0xf0]  ;;  %v4995_v11 = vor.u32 %v6433_v54, %v4992_v47  ;;  %v6397_v5 = vld [vmem:[%s10191_s1 + $0x54c] sm:$0xf]  ;;  %v3678_v28 = vadd.f32 %v3677_v16, %v3664_v24  ;;  %v3651_v8 = vpop.f32.mrf.mxu0  ;;  %v3665_v50 = vpop.f32.mrf.mxu1 }
 0x1ae   :  { %3949 = vmatpush.bf16.msrb.mxu2 %v5043_v22  ;;  %v4720_v62 = vld [vmem:[%s10191_s1 + $0x458] sm:$0xf0]  ;;  %v5123_v12 = vor.u32 %v6465_v51, %v5120_v7  ;;  %v6429_v19 = vld [vmem:[%s10191_s1 + $0x64c] sm:$0xf]  ;;  %v3691_v22 = vpop.f32.mrf.mxu3  ;;  %v3652_v63 = vadd.f32 %v3651_v8, %v546_v33 }
 0x1af   :  { %3963 = vmatpush.bf16.msrb.mxu3 %v5171_v53  ;;  %v4848_v27 = vld [vmem:[%s10191_s1 + $0x558] sm:$0xf0]  ;;  %v6461_v15 = vld [vmem:[%s10191_s1 + $0x74c] sm:$0xf]  ;;  %v4723_v48 = vor.u32 %v6365_v18, %v4720_v62  ;;  %v9729_v34 = vadd.f32 %v3691_v22, %v3678_v28 }
 0x1b0   :  { %3922 = vmatpush.bf16.msrb.mxu0 %v4771_v2  ;;  %v4976_v26 = vld [vmem:[%s10191_s1 + $0x658] sm:$0xf0]  ;;  %v4851_v44 = vor.u32 %v6397_v5, %v4848_v27  ;;  %v6361_v20 = vld [vmem:[%s10191_s1 + $0x42c] sm:$0xf]  ;;  %v3666_v0 = vadd.f32 %v3665_v50, %v3652_v63 }
 0x1b1   :  { %3936 = vmatpush.bf16.msrb.mxu1 %v4899_v58  ;;  %v5104_v21 = vld [vmem:[%s10191_s1 + $0x758] sm:$0xf0]  ;;  %v4979_v53 = vor.u32 %v6429_v19, %v4976_v26  ;;  %v6393_v23 = vld [vmem:[%s10191_s1 + $0x52c] sm:$0xf] }
 0x1b2   :  { %3950 = vmatpush.bf16.msrb.mxu2 %v5027_v6  ;;  %v4704_v61 = vld [vmem:[%s10191_s1 + $0x438] sm:$0xf0]  ;;  %v5107_v2 = vor.u32 %v6461_v15, %v5104_v21  ;;  %v6425_v58 = vld [vmem:[%s10191_s1 + $0x62c] sm:$0xf] }
 0x1b3   :  { %3964 = vmatpush.bf16.msrb.mxu3 %v5155_v17  ;;  %v4832_v33 = vld [vmem:[%s10191_s1 + $0x538] sm:$0xf0]  ;;  %v6457_v1 = vld [vmem:[%s10191_s1 + $0x72c] sm:$0xf]  ;;  %v4707_v17 = vor.u32 %v6361_v20, %v4704_v61 }
 0x1b4   :  { %3923 = vmatpush.bf16.msrb.mxu0 %v4755_v42  ;;  %v4960_v6 = vld [vmem:[%s10191_s1 + $0x638] sm:$0xf0]  ;;  %v6357_v30 = vld [vmem:[%s10191_s1 + $0x40c] sm:$0xf]  ;;  %v4835_v56 = vor.u32 %v6393_v23, %v4832_v33  ;;  %v3679_v3 = vpop.f32.mrf.mxu2 }
 0x1b5   :  { %3937 = vmatpush.bf16.msrb.mxu1 %v4883_v60  ;;  %v5088_v10 = vld [vmem:[%s10191_s1 + $0x738] sm:$0xf0]  ;;  %v4963_v57 = vor.u32 %v6425_v58, %v4960_v6  ;;  %v6389_v45 = vld [vmem:[%s10191_s1 + $0x50c] sm:$0xf]  ;;  %v3680_v4 = vadd.f32 %v3679_v3, %v3666_v0  ;;  %v10201_v0 = vld [vmem:[#allocation2_spill] sm:$0xff] }
 0x1b6   :  { %3951 = vmatpush.bf16.msrb.mxu2 %v5011_v49  ;;  %v4688_v59 = vld [vmem:[%s10191_s1 + $0x418] sm:$0xf0]  ;;  %v6421_v42 = vld [vmem:[%s10191_s1 + $0x60c] sm:$0xf]  ;;  %v5091_v14 = vor.u32 %v6457_v1, %v5088_v10  ;;  %v3693_v7 = vpop.f32.mrf.mxu3 }
 0x1b7   :  { %3965 = vmatpush.bf16.msrb.mxu3 %v5139_v55  ;;  %v4816_v25 = vld [vmem:[%s10191_s1 + $0x518] sm:$0xf0]  ;;  %v6453_v60 = vld [vmem:[%s10191_s1 + $0x70c] sm:$0xf]  ;;  %v4691_v54 = vor.u32 %v6357_v30, %v4688_v59  ;;  %v9794_v62 = vadd.f32 %v3693_v7, %v3680_v4 }
 0x1b8   :  { %3924 = vmatpush.bf16.msrb.mxu0 %v4739_v37  ;;  %v4944_v29 = vld [vmem:[%s10191_s1 + $0x618] sm:$0xf0]  ;;  %v6513_v52 = vld [vmem:[%s10191_s1 + $0x8ec] sm:$0xf]  ;;  %v4819_v37 = vor.u32 %v6389_v45, %v4816_v25 }
 0x1b9   :  { %3938 = vmatpush.bf16.msrb.mxu1 %v4867_v13  ;;  %v5072_v49 = vld [vmem:[%s10191_s1 + $0x718] sm:$0xf0]  ;;  %v6545_v55 = vld [vmem:[%s10191_s1 + $0x9ec] sm:$0xf]  ;;  %v4947_v13 = vor.u32 %v6421_v42, %v4944_v29 }
 0x1ba   :  { %3952 = vmatpush.bf16.msrb.mxu2 %v4995_v11  ;;  %v5312_v9 = vld [vmem:[%s10191_s1 + $0x8f8] sm:$0xf0]  ;;  %v6577_v24 = vld [vmem:[%s10191_s1 + $0xaec] sm:$0xf]  ;;  %v5075_v5 = vor.u32 %v6453_v60, %v5072_v49 }
 0x1bb   :  { %3966 = vmatpush.bf16.msrb.mxu3 %v5123_v12  ;;  %v5440_v47 = vld [vmem:[%s10191_s1 + $0x9f8] sm:$0xf0]  ;;  %v6609_v11 = vld [vmem:[%s10191_s1 + $0xbec] sm:$0xf]  ;;  %v5315_v12 = vor.u32 %v6513_v52, %v5312_v9 }
 0x1bc   :  { %3925 = vmatpush.bf16.msrb.mxu0 %v4723_v48  ;;  %v5568_v51 = vld [vmem:[%s10191_s1 + $0xaf8] sm:$0xf0]  ;;  %v5443_v27 = vor.u32 %v6545_v55, %v5440_v47  ;;  %v6509_v26 = vld [vmem:[%s10191_s1 + $0x8cc] sm:$0xf] }
 0x1bd   :  { %3939 = vmatpush.bf16.msrb.mxu1 %v4851_v44  ;;  %v5696_v18 = vld [vmem:[%s10191_s1 + $0xbf8] sm:$0xf0]  ;;  %v5571_v19 = vor.u32 %v6577_v24, %v5568_v51  ;;  %v6541_v15 = vld [vmem:[%s10191_s1 + $0x9cc] sm:$0xf] }
 0x1be   :  { %3953 = vmatpush.bf16.msrb.mxu2 %v4979_v53  ;;  %v5296_v16 = vld [vmem:[%s10191_s1 + $0x8d8] sm:$0xf0]  ;;  %v5699_v21 = vor.u32 %v6609_v11, %v5696_v18  ;;  %v6573_v8 = vld [vmem:[%s10191_s1 + $0xacc] sm:$0xf] }
 0x1bf   :  { %3967 = vmatpush.bf16.msrb.mxu3 %v5107_v2  ;;  %v5424_v28 = vld [vmem:[%s10191_s1 + $0x9d8] sm:$0xf0]  ;;  %v6605_v48 = vld [vmem:[%s10191_s1 + $0xbcc] sm:$0xf]  ;;  %v5299_v44 = vor.u32 %v6509_v26, %v5296_v16 }
 0x1c0   :  { %3926 = vmatpush.bf16.msrb.mxu0 %v4707_v17  ;;  %v5552_v22 = vld [vmem:[%s10191_s1 + $0xad8] sm:$0xf0]  ;;  %v5427_v53 = vor.u32 %v6541_v15, %v5424_v28  ;;  %v6505_v61 = vld [vmem:[%s10191_s1 + $0x8ac] sm:$0xf] }
 0x1c1   :  { %3940 = vmatpush.bf16.msrb.mxu1 %v4835_v56  ;;  %v5680_v63 = vld [vmem:[%s10191_s1 + $0xbd8] sm:$0xf0]  ;;  %v5555_v20 = vor.u32 %v6573_v8, %v5552_v22  ;;  %v6537_v50 = vld [vmem:[%s10191_s1 + $0x9ac] sm:$0xf] }
 0x1c2   :  { %3954 = vmatpush.bf16.msrb.mxu2 %v4963_v57  ;;  %v5280_v23 = vld [vmem:[%s10191_s1 + $0x8b8] sm:$0xf0]  ;;  %v5683_v2 = vor.u32 %v6605_v48, %v5680_v63  ;;  %v6569_v58 = vld [vmem:[%s10191_s1 + $0xaac] sm:$0xf] }
 0x1c3   :  { %3968 = vmatpush.bf16.msrb.mxu3 %v5091_v14  ;;  %v5408_v33 = vld [vmem:[%s10191_s1 + $0x9b8] sm:$0xf0]  ;;  %v10202_v10 = vld [vmem:[#allocation3_spill] sm:$0xff]  ;;  %v5283_v17 = vor.u32 %v6505_v61, %v5280_v23 }
 0x1c4   :  { %3927 = vmatpush.bf16.msrb.mxu0 %v4691_v54  ;;  %v5536_v6 = vld [vmem:[%s10191_s1 + $0xab8] sm:$0xf0]  ;;  %v5411_v30 = vor.u32 %v6537_v50, %v5408_v33  ;;  %v6533_v57 = vld [vmem:[%s10191_s1 + $0x98c] sm:$0xf]  ;;  %v3705_v29 = vpop.f32.mrf.mxu0 }
 0x1c5   :  { %3941 = vmatpush.bf16.msrb.mxu1 %v4819_v37  ;;  %v5664_v1 = vld [vmem:[%s10191_s1 + $0xbb8] sm:$0xf0]  ;;  %v5539_v59 = vor.u32 %v6569_v58, %v5536_v6  ;;  %v6565_v42 = vld [vmem:[%s10191_s1 + $0xa8c] sm:$0xf]  ;;  %v3706_v3 = vadd.f32 %v3705_v29, %v9729_v34  ;;  %v3719_v9 = vpop.f32.mrf.mxu1 }
 0x1c6   :  { %3955 = vmatpush.bf16.msrb.mxu2 %v4947_v13  ;;  %v5264_v56 = vld [vmem:[%s10191_s1 + $0x898] sm:$0xf0]  ;;  %v6597_v60 = vld [vmem:[%s10191_s1 + $0xb8c] sm:$0xf] }
 0x1c7   :  { %3969 = vmatpush.bf16.msrb.mxu3 %v5075_v5  ;;  %3928 = vmatmul.bf16.vlgmr.msrb.gmra.mxu0 %v7239_v39  ;;  %v6601_v39 = vld [vmem:[%s10191_s1 + $0xbac] sm:$0xf]  ;;  %v5392_v25 = vld [vmem:[%s10191_s1 + $0x998] sm:$0xf0]  ;;  %v3720_v51 = vadd.f32 %v3719_v9, %v3706_v3 }
 0x1c8   :  { %3976 = vmatpush.bf16.msra.mxu0 %v5315_v12  ;;  %3942 = vmatmul.bf16.vlgmr.msrb.gmra.mxu1 %v10201_v0  ;;  %v5667_v45 = vor.u32 %v6601_v39, %v5664_v1  ;;  %v5520_v14 = vld [vmem:[%s10191_s1 + $0xa98] sm:$0xf0]  ;;  %v5395_v55 = vor.u32 %v6533_v57, %v5392_v25  ;;  %v6497_v54 = vld [vmem:[%s10191_s1 + $0x86c] sm:$0xf] }
 0x1c9   :  { %3990 = vmatpush.bf16.msra.mxu1 %v5443_v27  ;;  %3956 = vmatmul.bf16.vlgmr.msrb.gmra.mxu2 %v7250_v43  ;;  %v6501_v43 = vld [vmem:[%s10191_s1 + $0x88c] sm:$0xf]  ;;  %v5648_v49 = vld [vmem:[%s10191_s1 + $0xb98] sm:$0xf0]  ;;  %v5523_v4 = vor.u32 %v6565_v42, %v5520_v14 }
 0x1ca   :  { %4004 = vmatpush.bf16.msra.mxu2 %v5571_v19  ;;  %3970 = vmatmul.bf16.vlgmr.msrb.gmra.mxu3 %v10202_v10  ;;  %v5267_v52 = vor.u32 %v6501_v43, %v5264_v56  ;;  %v5248_v47 = vld [vmem:[%s10191_s1 + $0x878] sm:$0xf0]  ;;  %v6529_v24 = vld [vmem:[%s10191_s1 + $0x96c] sm:$0xf]  ;;  %v5651_v34 = vor.u32 %v6597_v60, %v5648_v49 }
 0x1cb   :  { %4018 = vmatpush.bf16.msra.mxu3 %v5699_v21  ;;  %v5376_v7 = vld [vmem:[%s10191_s1 + $0x978] sm:$0xf0]  ;;  %v6561_v37 = vld [vmem:[%s10191_s1 + $0xa6c] sm:$0xf]  ;;  %v5251_v5 = vor.u32 %v6497_v54, %v5248_v47 }
 0x1cc   :  { %3977 = vmatpush.bf16.msra.mxu0 %v5299_v44  ;;  %v5504_v13 = vld [vmem:[%s10191_s1 + $0xa78] sm:$0xf0]  ;;  %v6593_v11 = vld [vmem:[%s10191_s1 + $0xb6c] sm:$0xf]  ;;  %v5379_v12 = vor.u32 %v6529_v24, %v5376_v7  ;;  %v3733_v21 = vpop.f32.mrf.mxu2  ;;  %v3707_v63 = vpop.f32.mrf.mxu0 }
 0x1cd   :  { %3991 = vmatpush.bf16.msra.mxu1 %v5427_v53  ;;  %v5632_v18 = vld [vmem:[%s10191_s1 + $0xb78] sm:$0xf0]  ;;  %v5507_v27 = vor.u32 %v6561_v37, %v5504_v13  ;;  %v6493_v19 = vld [vmem:[%s10191_s1 + $0x84c] sm:$0xf]  ;;  %v3734_v48 = vadd.f32 %v3733_v21, %v3720_v51  ;;  %v3747_v44 = vpop.f32.mrf.mxu3  ;;  %v3708_v61 = vadd.f32 %v3707_v63, %v9794_v62  ;;  %v3721_v50 = vpop.f32.mrf.mxu1 }
 0x1ce   :  { %4005 = vmatpush.bf16.msra.mxu2 %v5555_v20  ;;  %v5232_v26 = vld [vmem:[%s10191_s1 + $0x858] sm:$0xf0]  ;;  %v6525_v16 = vld [vmem:[%s10191_s1 + $0x94c] sm:$0xf]  ;;  %v5635_v15 = vor.u32 %v6593_v11, %v5632_v18 }
 0x1cf   :  { %4019 = vmatpush.bf16.msra.mxu3 %v5683_v2  ;;  %v5360_v28 = vld [vmem:[%s10191_s1 + $0x958] sm:$0xf0]  ;;  %v6557_v8 = vld [vmem:[%s10191_s1 + $0xa4c] sm:$0xf]  ;;  %v5235_v23 = vor.u32 %v6493_v19, %v5232_v26  ;;  %v9922_v2 = vadd.f32 %v3747_v44, %v3734_v48  ;;  %v3722_v1 = vadd.f32 %v3721_v50, %v3708_v61 }
 0x1d0   :  { %3978 = vmatpush.bf16.msra.mxu0 %v5283_v17  ;;  %v5488_v22 = vld [vmem:[%s10191_s1 + $0xa58] sm:$0xf0]  ;;  %v6589_v53 = vld [vmem:[%s10191_s1 + $0xb4c] sm:$0xf]  ;;  %v5363_v33 = vor.u32 %v6525_v16, %v5360_v28 }
 0x1d1   :  { %3992 = vmatpush.bf16.msra.mxu1 %v5411_v30  ;;  %v5616_v20 = vld [vmem:[%s10191_s1 + $0xb58] sm:$0xf0]  ;;  %v5491_v58 = vor.u32 %v6557_v8, %v5488_v22  ;;  %v6489_v6 = vld [vmem:[%s10191_s1 + $0x82c] sm:$0xf] }
 0x1d2   :  { %4006 = vmatpush.bf16.msra.mxu2 %v5539_v59  ;;  %v5216_v0 = vld [vmem:[%s10191_s1 + $0x838] sm:$0xf0]  ;;  %v6521_v62 = vld [vmem:[%s10191_s1 + $0x92c] sm:$0xf]  ;;  %v5619_v39 = vor.u32 %v6589_v53, %v5616_v20 }
 0x1d3   :  { %4020 = vmatpush.bf16.msra.mxu3 %v5667_v45  ;;  %v5344_v10 = vld [vmem:[%s10191_s1 + $0x938] sm:$0xf0]  ;;  %v6553_v17 = vld [vmem:[%s10191_s1 + $0xa2c] sm:$0xf]  ;;  %v5219_v56 = vor.u32 %v6489_v6, %v5216_v0 }
 0x1d4   :  { %3979 = vmatpush.bf16.msra.mxu0 %v5267_v52  ;;  %v5472_v30 = vld [vmem:[%s10191_s1 + $0xa38] sm:$0xf0]  ;;  %v6585_v59 = vld [vmem:[%s10191_s1 + $0xb2c] sm:$0xf]  ;;  %v5347_v25 = vor.u32 %v6521_v62, %v5344_v10  ;;  %v3735_v3 = vpop.f32.mrf.mxu2 }
 0x1d5   :  { %3993 = vmatpush.bf16.msra.mxu1 %v5395_v55  ;;  %v5600_v43 = vld [vmem:[%s10191_s1 + $0xb38] sm:$0xf0]  ;;  %v6485_v57 = vld [vmem:[%s10191_s1 + $0x80c] sm:$0xf]  ;;  %v5475_v42 = vor.u32 %v6553_v17, %v5472_v30  ;;  %v3749_v54 = vpop.f32.mrf.mxu3 }
 0x1d6   :  { %4007 = vmatpush.bf16.msra.mxu2 %v5523_v4  ;;  %v5200_v45 = vld [vmem:[%s10191_s1 + $0x818] sm:$0xf0]  ;;  %v6517_v14 = vld [vmem:[%s10191_s1 + $0x90c] sm:$0xf]  ;;  %v5603_v49 = vor.u32 %v6585_v59, %v5600_v43  ;;  %v3736_v4 = vadd.f32 %v3735_v3, %v3722_v1 }
 0x1d7   :  { %4021 = vmatpush.bf16.msra.mxu3 %v5651_v34  ;;  %v5328_v29 = vld [vmem:[%s10191_s1 + $0x918] sm:$0xf0]  ;;  %v6549_v60 = vld [vmem:[%s10191_s1 + $0xa0c] sm:$0xf]  ;;  %v5203_v51 = vor.u32 %v6485_v57, %v5200_v45 }
 0x1d8   :  { %3980 = vmatpush.bf16.msra.mxu0 %v5251_v5  ;;  %v5456_v52 = vld [vmem:[%s10191_s1 + $0xa18] sm:$0xf0]  ;;  %v6581_v9 = vld [vmem:[%s10191_s1 + $0xb0c] sm:$0xf]  ;;  %v9990_v11 = vadd.f32 %v3749_v54, %v3736_v4  ;;  %v5331_v18 = vor.u32 %v6517_v14, %v5328_v29 }
 0x1d9   :  { %3994 = vmatpush.bf16.msra.mxu1 %v5379_v12  ;;  %v5584_v55 = vld [vmem:[%s10191_s1 + $0xb18] sm:$0xf0]  ;;  %v6641_v47 = vld [vmem:[%s10191_s1 + $0xcec] sm:$0xf]  ;;  %v5459_v5 = vor.u32 %v6549_v60, %v5456_v52 }
 0x1da   :  { %4008 = vmatpush.bf16.msra.mxu2 %v5507_v27  ;;  %v5824_v24 = vld [vmem:[%s10191_s1 + $0xcf8] sm:$0xf0]  ;;  %v6673_v34 = vld [vmem:[%s10191_s1 + $0xdec] sm:$0xf]  ;;  %v5587_v19 = vor.u32 %v6581_v9, %v5584_v55 }
 0x1db   :  { %4022 = vmatpush.bf16.msra.mxu3 %v5635_v15  ;;  %v5952_v7 = vld [vmem:[%s10191_s1 + $0xdf8] sm:$0xf0]  ;;  %v6705_v37 = vld [vmem:[%s10191_s1 + $0xeec] sm:$0xf]  ;;  %v5827_v26 = vor.u32 %v6641_v47, %v5824_v24 }
 0x1dc   :  { %3981 = vmatpush.bf16.msra.mxu0 %v5235_v23  ;;  %v6080_v13 = vld [vmem:[%s10191_s1 + $0xef8] sm:$0xf0]  ;;  %v6737_v12 = vld [vmem:[%s10191_s1 + $0xfec] sm:$0xf]  ;;  %v5955_v16 = vor.u32 %v6673_v34, %v5952_v7 }
 0x1dd   :  { %3995 = vmatpush.bf16.msra.mxu1 %v5363_v33  ;;  %v6208_v27 = vld [vmem:[%s10191_s1 + $0xff8] sm:$0xf0]  ;;  %v6083_v15 = vor.u32 %v6705_v37, %v6080_v13  ;;  %v6637_v21 = vld [vmem:[%s10191_s1 + $0xccc] sm:$0xf] }
 0x1de   :  { %4009 = vmatpush.bf16.msra.mxu2 %v5491_v58  ;;  %v5808_v28 = vld [vmem:[%s10191_s1 + $0xcd8] sm:$0xf0]  ;;  %v6669_v8 = vld [vmem:[%s10191_s1 + $0xdcc] sm:$0xf]  ;;  %v6211_v22 = vor.u32 %v6737_v12, %v6208_v27 }
 0x1df   :  { %4023 = vmatpush.bf16.msra.mxu3 %v5619_v39  ;;  %v5936_v48 = vld [vmem:[%s10191_s1 + $0xdd8] sm:$0xf0]  ;;  %v6701_v63 = vld [vmem:[%s10191_s1 + $0xecc] sm:$0xf]  ;;  %v5811_v61 = vor.u32 %v6637_v21, %v5808_v28 }
 0x1e0   :  { %3982 = vmatpush.bf16.msra.mxu0 %v5219_v56  ;;  %v6064_v44 = vld [vmem:[%s10191_s1 + $0xed8] sm:$0xf0]  ;;  %v6733_v53 = vld [vmem:[%s10191_s1 + $0xfcc] sm:$0xf]  ;;  %v5939_v23 = vor.u32 %v6669_v8, %v5936_v48 }
 0x1e1   :  { %3996 = vmatpush.bf16.msra.mxu1 %v5347_v25  ;;  %v6192_v20 = vld [vmem:[%s10191_s1 + $0xfd8] sm:$0xf0]  ;;  %v6067_v50 = vor.u32 %v6701_v63, %v6064_v44  ;;  %v6633_v33 = vld [vmem:[%s10191_s1 + $0xcac] sm:$0xf] }
 0x1e2   :  { %4010 = vmatpush.bf16.msra.mxu2 %v5475_v42  ;;  %v5792_v58 = vld [vmem:[%s10191_s1 + $0xcb8] sm:$0xf0]  ;;  %v6665_v6 = vld [vmem:[%s10191_s1 + $0xdac] sm:$0xf]  ;;  %v6195_v0 = vor.u32 %v6733_v53, %v6192_v20 }
 0x1e3   :  { %4024 = vmatpush.bf16.msra.mxu3 %v5603_v49  ;;  %v5920_v62 = vld [vmem:[%s10191_s1 + $0xdb8] sm:$0xf0]  ;;  %v6697_v39 = vld [vmem:[%s10191_s1 + $0xeac] sm:$0xf]  ;;  %v5795_v17 = vor.u32 %v6633_v33, %v5792_v58 }
 0x1e4   :  { %3983 = vmatpush.bf16.msra.mxu0 %v5203_v51  ;;  %v6048_v1 = vld [vmem:[%s10191_s1 + $0xeb8] sm:$0xf0]  ;;  %v5923_v30 = vor.u32 %v6665_v6, %v5920_v62  ;;  %v6661_v43 = vld [vmem:[%s10191_s1 + $0xd8c] sm:$0xf]  ;;  %v3761_v25 = vpop.f32.mrf.mxu0 }
 0x1e5   :  { %3997 = vmatpush.bf16.msra.mxu1 %v5331_v18  ;;  %v6176_v10 = vld [vmem:[%s10191_s1 + $0xfb8] sm:$0xf0]  ;;  %v6051_v59 = vor.u32 %v6697_v39, %v6048_v1  ;;  %v6693_v57 = vld [vmem:[%s10191_s1 + $0xe8c] sm:$0xf]  ;;  %v3762_v29 = vadd.f32 %v3761_v25, %v9922_v2  ;;  %v3775_v49 = vpop.f32.mrf.mxu1 }
 0x1e6   :  { %4011 = vmatpush.bf16.msra.mxu2 %v5459_v5  ;;  %v5904_v56 = vld [vmem:[%s10191_s1 + $0xd98] sm:$0xf0]  ;;  %v6725_v42 = vld [vmem:[%s10191_s1 + $0xf8c] sm:$0xf] }
 0x1e7   :  { %4025 = vmatpush.bf16.msra.mxu3 %v5587_v19  ;;  %3984 = vmatmul.bf16.vlgmr.msra.gmra.mxu0 %v7467_v31  ;;  %v6729_v31 = vld [vmem:[%s10191_s1 + $0xfac] sm:$0xf]  ;;  %v6032_v45 = vld [vmem:[%s10191_s1 + $0xe98] sm:$0xf0]  ;;  %v5907_v3 = vor.u32 %v6661_v43, %v5904_v56  ;;  %v3776_v54 = vadd.f32 %v3775_v49, %v3762_v29 }
 0x1e8   :  { %4032 = vmatpush.bf16.msrb.mxu0 %v5827_v26  ;;  %3998 = vmatmul.bf16.vlgmr.msra.gmra.mxu1 %v7480_v36  ;;  %v5776_v36 = vld [vmem:[%s10191_s1 + $0xc98] sm:$0xf0]  ;;  %v6035_v52 = vor.u32 %v6693_v57, %v6032_v45  ;;  %v6625_v9 = vld [vmem:[%s10191_s1 + $0xc6c] sm:$0xf] }
 0x1e9   :  { %4046 = vmatpush.bf16.msrb.mxu1 %v5955_v16  ;;  %4012 = vmatmul.bf16.vlgmr.msra.gmra.mxu2 %v7478_v35  ;;  %v6629_v35 = vld [vmem:[%s10191_s1 + $0xc8c] sm:$0xf]  ;;  %v6160_v14 = vld [vmem:[%s10191_s1 + $0xf98] sm:$0xf0] }
 0x1ea   :  { %4060 = vmatpush.bf16.msrb.mxu2 %v6083_v15  ;;  %4026 = vmatmul.bf16.vlgmr.msra.gmra.mxu3 %v7488_v40  ;;  %v6179_v40 = vor.u32 %v6729_v31, %v6176_v10  ;;  %v5779_v60 = vor.u32 %v6629_v35, %v5776_v36  ;;  %v5760_v55 = vld [vmem:[%s10191_s1 + $0xc78] sm:$0xf0]  ;;  %v6657_v4 = vld [vmem:[%s10191_s1 + $0xd6c] sm:$0xf]  ;;  %v6163_v2 = vor.u32 %v6725_v42, %v6160_v14 }
 0x1eb   :  { %4074 = vmatpush.bf16.msrb.mxu3 %v6211_v22  ;;  %v5888_v47 = vld [vmem:[%s10191_s1 + $0xd78] sm:$0xf0]  ;;  %v6689_v24 = vld [vmem:[%s10191_s1 + $0xe6c] sm:$0xf]  ;;  %v5763_v37 = vor.u32 %v6625_v9, %v5760_v55 }
 0x1ec   :  { %4033 = vmatpush.bf16.msrb.mxu0 %v5811_v61  ;;  %v6016_v34 = vld [vmem:[%s10191_s1 + $0xe78] sm:$0xf0]  ;;  %v6721_v51 = vld [vmem:[%s10191_s1 + $0xf6c] sm:$0xf]  ;;  %v5891_v13 = vor.u32 %v6657_v4, %v5888_v47  ;;  %v3789_v26 = vpop.f32.mrf.mxu2  ;;  %v3763_v8 = vpop.f32.mrf.mxu0 }
 0x1ed   :  { %4047 = vmatpush.bf16.msrb.mxu1 %v5939_v23  ;;  %v6144_v7 = vld [vmem:[%s10191_s1 + $0xf78] sm:$0xf0]  ;;  %v6019_v18 = vor.u32 %v6689_v24, %v6016_v34  ;;  %v6621_v5 = vld [vmem:[%s10191_s1 + $0xc4c] sm:$0xf]  ;;  %v3790_v28 = vadd.f32 %v3789_v26, %v3776_v54  ;;  %v3803_v22 = vpop.f32.mrf.mxu3  ;;  %v3764_v44 = vadd.f32 %v3763_v8, %v9990_v11  ;;  %v3777_v20 = vpop.f32.mrf.mxu1 }
 0x1ee   :  { %4061 = vmatpush.bf16.msrb.mxu2 %v6067_v50  ;;  %v5744_v12 = vld [vmem:[%s10191_s1 + $0xc58] sm:$0xf0]  ;;  %v6653_v27 = vld [vmem:[%s10191_s1 + $0xd4c] sm:$0xf]  ;;  %v6147_v19 = vor.u32 %v6721_v51, %v6144_v7 }
 0x1ef   :  { %4075 = vmatpush.bf16.msrb.mxu3 %v6195_v0  ;;  %v5872_v16 = vld [vmem:[%s10191_s1 + $0xd58] sm:$0xf0]  ;;  %v6685_v15 = vld [vmem:[%s10191_s1 + $0xe4c] sm:$0xf]  ;;  %v5747_v53 = vor.u32 %v6621_v5, %v5744_v12  ;;  %v3804_v61 = vadd.f32 %v3803_v22, %v3790_v28  ;;  %v3778_v0 = vadd.f32 %v3777_v20, %v3764_v44 }
 0x1f0   :  { %4034 = vmatpush.bf16.msrb.mxu0 %v5795_v17  ;;  %v6000_v21 = vld [vmem:[%s10191_s1 + $0xe58] sm:$0xf0]  ;;  %v6717_v48 = vld [vmem:[%s10191_s1 + $0xf4c] sm:$0xf]  ;;  %v5875_v23 = vor.u32 %v6653_v27, %v5872_v16 }
 0x1f1   :  { %4048 = vmatpush.bf16.msrb.mxu1 %v5923_v30  ;;  %v6128_v63 = vld [vmem:[%s10191_s1 + $0xf58] sm:$0xf0]  ;;  %v6003_v50 = vor.u32 %v6685_v15, %v6000_v21  ;;  %v6617_v33 = vld [vmem:[%s10191_s1 + $0xc2c] sm:$0xf]  ;;  %v6741_v15 = vld [vmem:[%s10193_s2] sm:$0xf] }
 0x1f2   :  { %4062 = vmatpush.bf16.msrb.mxu2 %v6051_v59  ;;  %v5728_v58 = vld [vmem:[%s10191_s1 + $0xc38] sm:$0xf0]  ;;  %v6649_v6 = vld [vmem:[%s10191_s1 + $0xd2c] sm:$0xf]  ;;  %v6131_v11 = vor.u32 %v6717_v48, %v6128_v63  ;;  %v547_v21 = vperm.slane %v6741_v15, 3 }
 0x1f3   :  { %4076 = vmatpush.bf16.msrb.mxu3 %v6179_v40  ;;  %v5856_v62 = vld [vmem:[%s10191_s1 + $0xd38] sm:$0xf0]  ;;  %v6681_v39 = vld [vmem:[%s10191_s1 + $0xe2c] sm:$0xf]  ;;  %v5731_v17 = vor.u32 %v6617_v33, %v5728_v58 }
 0x1f4   :  { %4035 = vmatpush.bf16.msrb.mxu0 %v5779_v60  ;;  %v5984_v1 = vld [vmem:[%s10191_s1 + $0xe38] sm:$0xf0]  ;;  %v6713_v31 = vld [vmem:[%s10191_s1 + $0xf2c] sm:$0xf]  ;;  %v5859_v30 = vor.u32 %v6649_v6, %v5856_v62  ;;  %v3791_v56 = vpop.f32.mrf.mxu2 }
 0x1f5   :  { %4049 = vmatpush.bf16.msrb.mxu1 %v5907_v3  ;;  %v6112_v10 = vld [vmem:[%s10191_s1 + $0xf38] sm:$0xf0]  ;;  %v5987_v59 = vor.u32 %v6681_v39, %v5984_v1  ;;  %v6613_v35 = vld [vmem:[%s10191_s1 + $0xc0c] sm:$0xf]  ;;  %v3792_v42 = vadd.f32 %v3791_v56, %v3778_v0  ;;  %v3805_v14 = vpop.f32.mrf.mxu3 }
 0x1f6   :  { %4063 = vmatpush.bf16.msrb.mxu2 %v6035_v52  ;;  %v5712_v36 = vld [vmem:[%s10191_s1 + $0xc18] sm:$0xf0]  ;;  %v6645_v43 = vld [vmem:[%s10191_s1 + $0xd0c] sm:$0xf]  ;;  %v6115_v40 = vor.u32 %v6713_v31, %v6112_v10 }
 0x1f7   :  { %4077 = vmatpush.bf16.msrb.mxu3 %v6163_v2  ;;  %v5840_v57 = vld [vmem:[%s10191_s1 + $0xd18] sm:$0xf0]  ;;  %v6677_v45 = vld [vmem:[%s10191_s1 + $0xe0c] sm:$0xf]  ;;  %v5715_v49 = vor.u32 %v6613_v35, %v5712_v36  ;;  %v3806_v3 = vadd.f32 %v3805_v14, %v3792_v42 }
 0x1f8   :  { %4036 = vmatpush.bf16.msrb.mxu0 %v5763_v37  ;;  %v5968_v25 = vld [vmem:[%s10191_s1 + $0xe18] sm:$0xf0]  ;;  %v6709_v29 = vld [vmem:[%s10191_s1 + $0xf0c] sm:$0xf]  ;;  %v5843_v52 = vor.u32 %v6645_v43, %v5840_v57 }
 0x1f9   :  { %4050 = vmatpush.bf16.msrb.mxu1 %v5891_v13  ;;  %v6096_v60 = vld [vmem:[%s10191_s1 + $0xf18] sm:$0xf0]  ;;  %v5971_v9 = vor.u32 %v6677_v45, %v5968_v25 }
 0x1fa   :  { %4064 = vmatpush.bf16.msrb.mxu2 %v6019_v18  ;;  %v6099_v55 = vor.u32 %v6709_v29, %v6096_v60 }
 0x1fb   :  { %4078 = vmatpush.bf16.msrb.mxu3 %v6147_v19 }
 0x1fc   :  { %4037 = vmatpush.bf16.msrb.mxu0 %v5747_v53 }
 0x1fd   :  { %4051 = vmatpush.bf16.msrb.mxu1 %v5875_v23 }
 0x1fe   :  { %4065 = vmatpush.bf16.msrb.mxu2 %v6003_v50 }
 0x1ff   :  { %4079 = vmatpush.bf16.msrb.mxu3 %v6131_v11 }
 0x200   :  { %4038 = vmatpush.bf16.msrb.mxu0 %v5731_v17 }
 0x201   :  { %4052 = vmatpush.bf16.msrb.mxu1 %v5859_v30 }
 0x202   :  { %4066 = vmatpush.bf16.msrb.mxu2 %v5987_v59 }
 0x203   :  { %4080 = vmatpush.bf16.msrb.mxu3 %v6115_v40 }
 0x204   :  { %4039 = vmatpush.bf16.msrb.mxu0 %v5715_v49  ;;  %v3817_v4 = vpop.f32.mrf.mxu0 }
 0x205   :  { %4053 = vmatpush.bf16.msrb.mxu1 %v5843_v52  ;;  %v3818_v2 = vadd.f32 %v3817_v4, %v3804_v61  ;;  %v3831_v54 = vpop.f32.mrf.mxu1 }
 0x206   :  { %4067 = vmatpush.bf16.msrb.mxu2 %v5971_v9 }
 0x207   :  { %4081 = vmatpush.bf16.msrb.mxu3 %v6099_v55  ;;  %4040 = vmatmul.bf16.vlgmr.msrb.gmra.mxu0 %v7695_v32  ;;  %v3832_v47 = vadd.f32 %v3831_v54, %v3818_v2 }
 0x208   :  { %4054 = vmatmul.bf16.vlgmr.msrb.gmra.mxu1 %v7708_v41 }
 0x209   :  { %4068 = vmatmul.bf16.vlgmr.msrb.gmra.mxu2 %v7706_v38 }
 0x20a   :  { %4082 = vmatmul.bf16.vlgmr.msrb.gmra.mxu3 %v7716_v46 }
 0x20c   :  { %v3845_v24 = vpop.f32.mrf.mxu2  ;;  %v3819_v51 = vpop.f32.mrf.mxu0 }
 0x20d   :  { %v3846_v34 = vadd.f32 %v3845_v24, %v3832_v47  ;;  %v3859_v7 = vpop.f32.mrf.mxu3  ;;  %v3820_v37 = vadd.f32 %v3819_v51, %v3806_v3  ;;  %v3833_v13 = vpop.f32.mrf.mxu1 }
 0x20f   :  { %v10176_v18 = vadd.f32 %v3859_v7, %v3846_v34  ;;  %v3834_v5 = vadd.f32 %v3833_v13, %v3820_v37 }
 0x214   :  { %v3847_v32 = vpop.f32.mrf.mxu2 }
 0x215   :  { %v3848_v12 = vadd.f32 %v3847_v32, %v3834_v5  ;;  %v3861_v41 = vpop.f32.mrf.mxu3 }
 0x217   :  { %v10178_v27 = vadd.f32 %v3861_v41, %v3848_v12 }
 0x224   :  { %v3873_v38 = vpop.f32.mrf.mxu0 }
 0x225   :  { %v3887_v46 = vpop.f32.mrf.mxu1  ;;  %v3874_v8 = vadd.f32 %v3873_v38, %v547_v21 }
 0x227   :  { %v3888_v63 = vadd.f32 %v3887_v46, %v3874_v8 }
 0x22c   :  { %v3901_v19 = vpop.f32.mrf.mxu2  ;;  %v3875_v16 = vpop.f32.mrf.mxu0 }
 0x22d   :  { %v3915_v26 = vpop.f32.mrf.mxu3  ;;  %v3889_v28 = vpop.f32.mrf.mxu1  ;;  %v3902_v20 = vadd.f32 %v3901_v19, %v3888_v63  ;;  %v3876_v61 = vadd.f32 %v3875_v16, %v547_v21 }
 0x22f   :  { %v3916_v50 = vadd.f32 %v3915_v26, %v3902_v20  ;;  %v3890_v58 = vadd.f32 %v3889_v28, %v3876_v61 }
 0x234   :  { %v3903_v22 = vpop.f32.mrf.mxu2 }
 0x235   :  { %v3917_v48 = vpop.f32.mrf.mxu3  ;;  %v3904_v62 = vadd.f32 %v3903_v22, %v3890_v58 }
 0x237   :  { %v3918_v31 = vadd.f32 %v3917_v48, %v3904_v62 }
 0x244   :  { %v3929_v44 = vpop.f32.mrf.mxu0 }
 0x245   :  { %v3943_v53 = vpop.f32.mrf.mxu1  ;;  %v3930_v11 = vadd.f32 %v3929_v44, %v3916_v50 }
 0x247   :  { %v3944_v39 = vadd.f32 %v3943_v53, %v3930_v11 }
 0x24c   :  { %v3957_v23 = vpop.f32.mrf.mxu2  ;;  %v3931_v6 = vpop.f32.mrf.mxu0 }
 0x24d   :  { %v3971_v33 = vpop.f32.mrf.mxu3  ;;  %v3945_v0 = vpop.f32.mrf.mxu1  ;;  %v3958_v30 = vadd.f32 %v3957_v23, %v3944_v39  ;;  %v3932_v35 = vadd.f32 %v3931_v6, %v3918_v31 }
 0x24f   :  { %v3972_v36 = vadd.f32 %v3971_v33, %v3958_v30  ;;  %v3946_v40 = vadd.f32 %v3945_v0, %v3932_v35 }
 0x254   :  { %v3959_v1 = vpop.f32.mrf.mxu2 }
 0x255   :  { %v3973_v10 = vpop.f32.mrf.mxu3  ;;  %v3960_v45 = vadd.f32 %v3959_v1, %v3946_v40 }
 0x257   :  { %v3974_v29 = vadd.f32 %v3973_v10, %v3960_v45 }
 0x264   :  { %v3985_v17 = vpop.f32.mrf.mxu0 }
 0x265   :  { %v3999_v59 = vpop.f32.mrf.mxu1  ;;  %v3986_v56 = vadd.f32 %v3985_v17, %v3972_v36 }
 0x267   :  { %v4000_v42 = vadd.f32 %v3999_v59, %v3986_v56 }
 0x26c   :  { %v4013_v43 = vpop.f32.mrf.mxu2  ;;  %v3987_v25 = vpop.f32.mrf.mxu0 }
 0x26d   :  { %v4027_v57 = vpop.f32.mrf.mxu3  ;;  %v4001_v14 = vpop.f32.mrf.mxu1  ;;  %v4014_v60 = vadd.f32 %v4013_v43, %v4000_v42  ;;  %v3988_v49 = vadd.f32 %v3987_v25, %v3974_v29 }
 0x26f   :  { %v4028_v52 = vadd.f32 %v4027_v57, %v4014_v60  ;;  %v4002_v4 = vadd.f32 %v4001_v14, %v3988_v49 }
 0x274   :  { %v4015_v3 = vpop.f32.mrf.mxu2 }
 0x275   :  { %v4029_v9 = vpop.f32.mrf.mxu3  ;;  %v4016_v47 = vadd.f32 %v4015_v3, %v4002_v4 }
 0x277   :  { %v4030_v51 = vadd.f32 %v4029_v9, %v4016_v47 }
 0x284   :  { %v4041_v55 = vpop.f32.mrf.mxu0 }
 0x285   :  { %v4042_v2 = vadd.f32 %v4041_v55, %v4028_v52  ;;  %v4055_v54 = vpop.f32.mrf.mxu1 }
 0x287   :  { %v4056_v24 = vadd.f32 %v4055_v54, %v4042_v2 }
 0x28c   :  { %v4069_v34 = vpop.f32.mrf.mxu2  ;;  %v4043_v13 = vpop.f32.mrf.mxu0 }
 0x28d   :  { %v4070_v7 = vadd.f32 %v4069_v34, %v4056_v24  ;;  %v4083_v37 = vpop.f32.mrf.mxu3  ;;  %v4044_v32 = vadd.f32 %v4043_v13, %v4030_v51  ;;  %v4057_v41 = vpop.f32.mrf.mxu1 }
 0x28f   :  { %v4084_v5 = vadd.f32 %v4083_v37, %v4070_v7  ;;  %v4058_v38 = vadd.f32 %v4057_v41, %v4044_v32 }
 0x291   :  { %v4089_v12 = vpack.c.bf16 %v4084_v5, %v10176_v18 }
 0x293   :  { %4093 = vst [vmem:[%s10194_s3 + $0x8] sm:$0xff] %v4089_v12 }
 0x294   :  { %v4071_v46 = vpop.f32.mrf.mxu2 }
 0x295   :  { %v4072_v19 = vadd.f32 %v4071_v46, %v4058_v38  ;;  %v4085_v26 = vpop.f32.mrf.mxu3 }
 0x297   :  { %v4086_v16 = vadd.f32 %v4085_v26, %v4072_v19 }
 0x299   :  { %v4091_v15 = vpack.c.bf16 %v4086_v16, %v10178_v27 }
 0x29b   :  { %4095 = vst [vmem:[%s10194_s3 + $0x18] sm:$0xff] %v4091_v15 }

</bundles_post_ra>
